<compile_context>
chip_gen: v7x
topology: tpu7x:2x2x1
jax: 0.10.0
libtpu: 0.0.40
codegen_flags: <defaults>
</compile_context>

<pallas_src>
import math

import jax
import jax.numpy as jnp
from jax import lax
from jax.experimental import pallas as pl
from jax.experimental.pallas import tpu as pltpu

C = 320                 # channels of SetTransformerAggregation
CPAD = 384              # lane-dense (3 x 128) padded output width
HEADS = 2
DH = C // HEADS         # 160, per-head dim
NUM_MABS = 3            # 0: encoder SAB, 1: PMA's MAB, 2: decoder SAB
NEG_INF = -1e30         # additive key-padding mask value for padded keys
ROWS_TARGET = 256       # target Bb*S rows per grid step (fills MXU rows)

PARAM_ORDER = ("wq", "bq", "wk", "bk", "wv", "bv", "wo", "bo",
               "wlin", "blin", "pma_w", "pma_b", "seed")
_BF16_WEIGHTS = ("wq", "wk", "wv", "wo", "wlin", "pma_w")


# ----------------------------------------------------------------------------
# Pallas kernel: full Set Transformer aggregation for a block of Bb groups.
# ----------------------------------------------------------------------------
def _set_transformer_kernel(x_ref, addm_ref, valid_ref,
                            wq_ref, bq_ref, wk_ref, bk_ref, wv_ref, bv_ref,
                            wo_ref, bo_ref, wlin_ref, blin_ref,
                            pmaw_ref, pmab_ref, seed_ref,
                            o_ref):
    f32 = jnp.float32
    bf16 = jnp.bfloat16

    x = x_ref[...]                          # [Bb, S, C]  bf16 (cast on host)
    Bb, S, _ = x.shape
    addm = addm_ref[...].astype(f32)        # [Bb, 1, S]  0 = valid key, NEG_INF = pad
    q_valid = valid_ref[...].astype(f32)    # [Bb, S, 1]  1 = valid query row, 0 = pad

    def proj(a_bf, w, b):
        """[Bb, Sq, C] bf16  @  [C, Cout] bf16  (+ bias, f32 accumulation)."""
        bb, sq, cin = a_bf.shape
        r = jnp.dot(a_bf.reshape(bb * sq, cin), w, preferred_element_type=f32)
        return r.reshape(bb, sq, -1) + b

    def mab(m, q_in, kv_in, q_mask, key_addm):
        """MultiheadAttentionBlock m (torch.nn.MultiheadAttention semantics,
        batch_first, no layer_norm, dropout=0); 1/sqrt(dh) pre-folded in Wq."""
        qb = q_in if q_in.dtype == bf16 else q_in.astype(bf16)
        if kv_in is q_in:
            kvb = qb
        else:
            kvb = kv_in if kv_in.dtype == bf16 else kv_in.astype(bf16)

        # Fused full-width projections on the flattened [Bb*Sq, C] slab.
        qh = proj(qb, wq_ref[m], bq_ref[m]).astype(bf16)    # [Bb, Sq, C]
        kh = proj(kvb, wk_ref[m], bk_ref[m]).astype(bf16)   # [Bb, Sk, C]
        vh = proj(kvb, wv_ref[m], bv_ref[m]).astype(bf16)   # [Bb, Sk, C]

        ctx = []
        for h in range(HEADS):                              # static unroll (2)
            sl = slice(h * DH, (h + 1) * DH)
            # scores[b, sq, sk] = q_h . k_h  (batched over groups)
            s = lax.dot_general(qh[..., sl], kh[..., sl],
                                (((2,), (2,)), ((0,), (0,))),
                                preferred_element_type=f32)
            if key_addm is not None:
                s = s + key_addm                            # key-padding mask
            s = s - jnp.max(s, axis=-1, keepdims=True)      # softmax over keys
            e = jnp.exp(s)
            p = (e * pl.reciprocal(jnp.sum(e, axis=-1, keepdims=True),
                                   approx=True)).astype(bf16)
            ctx.append(lax.dot_general(p, vh[..., sl],
                                       (((2,), (1,)), ((0,), (0,))),
                                       preferred_element_type=f32))  # [Bb,Sq,DH]

        # out_proj: concat(heads) @ Wo + bias  (single full-width matmul)
        attn = proj(jnp.concatenate(ctx, axis=-1).astype(bf16),
                    wo_ref[m], bo_ref[m])                   # [Bb, Sq, C]
        if q_mask is not None:
            attn = attn * q_mask                            # out[~x_mask] = 0
        out = attn + q_in.astype(f32)                       # residual
        lin = proj(out.astype(bf16), wlin_ref[m], blin_ref[m])
        return out + jnp.maximum(lin, 0.0)                  # out + relu(lin(out))

    # encoder SAB: MAB(x, x, x_mask=mask, y_mask=mask)
    h1 = mab(0, x, x, q_valid, addm)                        # [Bb, S, C] f32
    # PMA: MAB(seed, relu(lin(h1)), x_mask=None, y_mask=mask)
    y = jnp.maximum(proj(h1.astype(bf16), pmaw_ref[...], pmab_ref[...]), 0.0)
    seed = jnp.broadcast_to(seed_ref[...].astype(f32)[None], (Bb, 1, C))
    h2 = mab(1, seed, y, None, addm)                        # [Bb, 1, C]
    # decoder SAB on the pooled seed (K=1), no mask
    h3 = mab(2, h2, h2, None, None)                         # [Bb, 1, C]

    # x.nan_to_num(): nan -> 0, +/-inf -> finite max/min; then flatten(1, 2)
    big = jnp.finfo(jnp.float32).max
    h3 = jnp.clip(jnp.where(jnp.isnan(h3), 0.0, h3), -big, big).reshape(Bb, C)

    # lane-dense unmasked store: pad channels C -> CPAD; wrapper slices back.
    pad = jnp.zeros((Bb, o_ref.shape[-1] - C), f32)
    o_ref[...] = jnp.concatenate([h3, pad], axis=-1).astype(o_ref.dtype)


def _choose_group_block(B, S):
    """Pick Bb groups per grid step (and padded group count Bp)."""
    bb = max(1, -(-ROWS_TARGET // S))        # ceil(ROWS_TARGET / S)
    if bb >= B:
        return B, B                          # single grid step: block == full dim
    bb = max(8, (bb // 8) * 8)               # multi-step: sublane-aligned out block
    Bp = -(-B // bb) * bb
    return bb, Bp


def set_transformer_agg(params, x_dense, add_mask, valid):
    """x_dense: [B, S, C], add_mask: [B, 1, S] (0 valid / NEG_INF pad),
    valid: [B, S, 1] (1 valid query / 0 pad)  ->  [B, C]."""
    B, S, _ = x_dense.shape
    out_dtype = x_dense.dtype
    Bb, Bp = _choose_group_block(B, S)

    x_bf = x_dense.astype(jnp.bfloat16)      # bf16 activations into the kernel
    addm = add_mask.astype(jnp.float32)
    vmask = valid.astype(jnp.float32)
    if Bp > B:                               # benign zero groups; sliced off below
        padw = [(0, Bp - B), (0, 0), (0, 0)]
        x_bf = jnp.pad(x_bf, padw)
        addm = jnp.pad(addm, padw)           # 0  -> all keys "valid" (finite math)
        vmask = jnp.pad(vmask, padw)         # 0  -> dummy query rows masked out

    weights = [params[name] for name in PARAM_ORDER]

    def weight_spec(arr):
        nd = arr.ndim
        # Constant index_map -> re-fetch DMAs elided; single-buffer to halve
        # weight VMEM residency.
        return pl.BlockSpec(arr.shape, lambda g, _nd=nd: (0,) * _nd,
                            pipeline_mode=pl.Buffered(1))

    in_specs = ([pl.BlockSpec((Bb, S, C), lambda g: (g, 0, 0)),
                 pl.BlockSpec((Bb, 1, S), lambda g: (g, 0, 0)),
                 pl.BlockSpec((Bb, S, 1), lambda g: (g, 0, 0))]
                + [weight_spec(w) for w in weights])

    # --- advisory cost estimate (lets XLA schedule the custom call) ---------
    mm2 = 2 * C * C

    def mab_flops(sq, sk):
        proj_f = (sq + 2 * sk) * mm2          # q, k, v projections
        attn_f = 2 * 2 * sq * sk * C          # scores + ctx (both heads)
        return proj_f + 2 * sq * mm2 + attn_f  # + out_proj + rFF

    flops = Bp * (mab_flops(S, S) + S * mm2 + mab_flops(1, S) + mab_flops(1, 1))
    transcendentals = Bp * HEADS * (S * S + S + 1)
    weight_bytes = sum(int(w.size) * w.dtype.itemsize for w in weights)
    bytes_accessed = weight_bytes + Bp * S * C * 2 + Bp * CPAD * 4
    cost = pl.CostEstimate(flops=int(flops),
                           transcendentals=int(transcendentals),
                           bytes_accessed=int(bytes_accessed))

    out = pl.pallas_call(
        _set_transformer_kernel,
        out_shape=jax.ShapeDtypeStruct((Bp, CPAD), out_dtype),
        grid=(Bp // Bb,),
        in_specs=in_specs,
        out_specs=pl.BlockSpec((Bb, CPAD), lambda g: (g, 0)),
        compiler_params=pltpu.CompilerParams(
            dimension_semantics=("parallel",),          # group blocks independent
            vmem_limit_bytes=48 * 1024 * 1024),         # < 64 MiB (v7x-safe)
        cost_estimate=cost,
    )(x_bf, addm, vmask, *weights)
    return out[:B, :C]


# ----------------------------------------------------------------------------
# Deterministic parameter construction (synthetic; no checkpoint loading).
# Linear weights stored pre-transposed ([in, out]); per-head splits are
# implicit column ranges of the fused [C, C] projection matrices.
# 1/sqrt(head_dim) is folded into wq / bq here (host-side transform).
# Big matmul weights stored in bfloat16 (halves HBM traffic / VMEM).
# ----------------------------------------------------------------------------
def init_params(key):
    shapes = {
        "wq":    (NUM_MABS, C, C),
        "bq":    (NUM_MABS, 1, C),
        "wk":    (NUM_MABS, C, C),
        "bk":    (NUM_MABS, 1, C),
        "wv":    (NUM_MABS, C, C),
        "bv":    (NUM_MABS, 1, C),
        "wo":    (NUM_MABS, C, C),
        "bo":    (NUM_MABS, 1, C),
        "wlin":  (NUM_MABS, C, C),
        "blin":  (NUM_MABS, 1, C),
        "pma_w": (C, C),
        "pma_b": (1, C),
        "seed":  (1, C),
    }
    w_scale = 1.0 / math.sqrt(C)
    b_scale = 0.01
    inv_sqrt_dh = 1.0 / math.sqrt(DH)
    keys = jax.random.split(key, len(PARAM_ORDER))
    params = {}
    for k, name in zip(keys, PARAM_ORDER):
        scale = b_scale if (name.startswith("b") or name == "pma_b") else w_scale
        arr = jax.random.normal(k, shapes[name], jnp.float32) * scale
        if name in ("wq", "bq"):
            arr = arr * inv_sqrt_dh          # fold attention scale into q proj
        if name in _BF16_WEIGHTS:
            arr = arr.astype(jnp.bfloat16)
        params[name] = arr
    # TODO(synk): fp8 (v7x) / int8 (v5e, v6e) weight stacks with per-column f32
    # scales would halve weight-DMA again; omitted pending accuracy validation.
    return params


# ----------------------------------------------------------------------------
# Aggregator.forward
# ----------------------------------------------------------------------------
def aggregator_forward(params, msg, index, t, dim_size):
    N, channels = msg.shape
    assert channels == C
    out = jnp.zeros((dim_size, channels), msg.dtype)

    # Reference: the aggregation branch only runs when ind.size(0) == 1.
    if N != 1:
        return out

    # --- glue (plain JAX): scatter_max argmax + mask ------------------------
    onehot = index[None, :] == jnp.arange(dim_size)[:, None]      # [dim_size, N]
    tmat = jnp.where(onehot, t[None, :], -jnp.inf)
    has_msg = onehot.any(axis=1)
    argmax = jnp.where(has_msg, jnp.argmax(tmat, axis=1), N)      # fill = N
    mask = argmax < N                                             # argmax < msg.size(0)

    # --- glue: val, ind = index.sort();  msg[ind] ---------------------------
    ind = jnp.argsort(index)
    x_sorted = msg[ind]

    # NOTE: the torch reference is only shape-consistent (error-free) for
    # index == [0]; we implement that case (one group of one message) and write
    # the aggregated row at the single masked node, with no host sync so this
    # wrapper stays jit-compatible.
    B, S = 1, 1
    x_dense = x_sorted.reshape(B, S, channels)
    add_mask = jnp.zeros((B, 1, S), jnp.float32)   # 0 -> valid key (no padding)
    valid = jnp.ones((B, S, 1), jnp.float32)       # 1 -> valid query row

    ret = set_transformer_agg(params, x_dense, add_mask, valid)   # [1, C]

    # out[mask] = ret   (exactly one True row and one ret row -> exact)
    out = jnp.where(mask[:, None], ret[0][None, :], out)
    return out


if __name__ == "__main__":
    root = jax.random.PRNGKey(0)
    k_params, k_msg, k_t, k_x2 = jax.random.split(root, 4)

    params = init_params(k_params)

    # --- Demo 1: the module's realized path (single message for node 0) -----
    N, dim_size = 1, 5
    msg = jax.random.normal(k_msg, (N, C), jnp.float32)
    index = jnp.zeros((N,), jnp.int32)
    t = jax.random.normal(k_t, (N,), jnp.float32)

    out = aggregator_forward(params, msg, index, t, dim_size)
    out = jax.block_until_ready(out)
    assert out.shape == (dim_size, C)
    assert bool(jnp.all(jnp.isfinite(out)))
    # rows 1.. must stay zero (nodes without messages)
    assert float(jnp.abs(out[1:]).max()) == 0.0

    # --- Demo 2: exercise the Bb-blocked, multi-step, masked kernel path ----
    B2, S2 = 12, 32                          # -> Bb=8, Bp=16, grid=(2,)
    lens = jnp.array([32, 17, 8, 1, 25, 32, 5, 12, 30, 3, 16, 9], jnp.int32)
    pos = jnp.arange(S2)
    key_valid = pos[None, :] < lens[:, None]                      # [B2, S2]
    add_mask2 = jnp.where(key_valid, 0.0, NEG_INF)[:, None, :]    # [B2, 1, S2]
    valid2 = key_valid.astype(jnp.float32)[:, :, None]            # [B2, S2, 1]
    x2 = jax.random.normal(k_x2, (B2, S2, C), jnp.float32) * key_valid[..., None]

    ret2 = set_transformer_agg(params, x2, add_mask2, valid2)
    ret2 = jax.block_until_ready(ret2)
    assert ret2.shape == (B2, C)
    assert bool(jnp.all(jnp.isfinite(ret2)))

    print("KERNEL_OK")
</pallas_src>

<mosaic_0001>
module attributes {stable_mosaic.version = 11 : i64} {
  func.func @_set_transformer_kernel(%arg0: i32, %arg1: memref<1x1x320xbf16, #tpu.memory_space<vmem>>, %arg2: memref<1x1x1xf32, #tpu.memory_space<vmem>>, %arg3: memref<1x1x1xf32, #tpu.memory_space<vmem>>, %arg4: memref<3x320x320xbf16, #tpu.memory_space<vmem>>, %arg5: memref<3x1x320xf32, #tpu.memory_space<vmem>>, %arg6: memref<3x320x320xbf16, #tpu.memory_space<vmem>>, %arg7: memref<3x1x320xf32, #tpu.memory_space<vmem>>, %arg8: memref<3x320x320xbf16, #tpu.memory_space<vmem>>, %arg9: memref<3x1x320xf32, #tpu.memory_space<vmem>>, %arg10: memref<3x320x320xbf16, #tpu.memory_space<vmem>>, %arg11: memref<3x1x320xf32, #tpu.memory_space<vmem>>, %arg12: memref<3x320x320xbf16, #tpu.memory_space<vmem>>, %arg13: memref<3x1x320xf32, #tpu.memory_space<vmem>>, %arg14: memref<320x320xbf16, #tpu.memory_space<vmem>>, %arg15: memref<1x320xf32, #tpu.memory_space<vmem>>, %arg16: memref<1x320xf32, #tpu.memory_space<vmem>>, %arg17: memref<1x384xf32, #tpu.memory_space<vmem>>) attributes {dimension_semantics = [#tpu.dimension_semantics<parallel>], iteration_bounds = array<i64: 1>, scalar_prefetch = 0 : i64, scratch_operands = 0 : i64, tpu.core_type = #tpu.core_type<tc>, window_params = [{transform_indices = @transform_0, window_bounds = array<i64: 1, 1, 320>}, {transform_indices = @transform_1, window_bounds = array<i64: 1, 1, 1>}, {transform_indices = @transform_2, window_bounds = array<i64: 1, 1, 1>}, {pipeline_mode = #tpu.pipeline_mode<synchronous>, transform_indices = @transform_3, window_bounds = array<i64: 3, 320, 320>}, {pipeline_mode = #tpu.pipeline_mode<synchronous>, transform_indices = @transform_4, window_bounds = array<i64: 3, 1, 320>}, {pipeline_mode = #tpu.pipeline_mode<synchronous>, transform_indices = @transform_5, window_bounds = array<i64: 3, 320, 320>}, {pipeline_mode = #tpu.pipeline_mode<synchronous>, transform_indices = @transform_6, window_bounds = array<i64: 3, 1, 320>}, {pipeline_mode = #tpu.pipeline_mode<synchronous>, transform_indices = @transform_7, window_bounds = array<i64: 3, 320, 320>}, {pipeline_mode = #tpu.pipeline_mode<synchronous>, transform_indices = @transform_8, window_bounds = array<i64: 3, 1, 320>}, {pipeline_mode = #tpu.pipeline_mode<synchronous>, transform_indices = @transform_9, window_bounds = array<i64: 3, 320, 320>}, {pipeline_mode = #tpu.pipeline_mode<synchronous>, transform_indices = @transform_10, window_bounds = array<i64: 3, 1, 320>}, {pipeline_mode = #tpu.pipeline_mode<synchronous>, transform_indices = @transform_11, window_bounds = array<i64: 3, 320, 320>}, {pipeline_mode = #tpu.pipeline_mode<synchronous>, transform_indices = @transform_12, window_bounds = array<i64: 3, 1, 320>}, {pipeline_mode = #tpu.pipeline_mode<synchronous>, transform_indices = @transform_13, window_bounds = array<i64: 320, 320>}, {pipeline_mode = #tpu.pipeline_mode<synchronous>, transform_indices = @transform_14, window_bounds = array<i64: 1, 320>}, {pipeline_mode = #tpu.pipeline_mode<synchronous>, transform_indices = @transform_15, window_bounds = array<i64: 1, 320>}, {transform_indices = @transform_16, window_bounds = array<i64: 1, 384>}]} {
    %c0 = arith.constant 0 : index
    %c0_0 = arith.constant 0 : index
    %c0_1 = arith.constant 0 : index
    %0 = vector.load %arg1[%c0, %c0_0, %c0_1] : memref<1x1x320xbf16, #tpu.memory_space<vmem>>, vector<1x1x320xbf16>
    %c0_2 = arith.constant 0 : index
    %c0_3 = arith.constant 0 : index
    %c0_4 = arith.constant 0 : index
    %1 = vector.load %arg2[%c0_2, %c0_3, %c0_4] : memref<1x1x1xf32, #tpu.memory_space<vmem>>, vector<1x1x1xf32>
    %c0_5 = arith.constant 0 : index
    %c0_6 = arith.constant 0 : index
    %c0_7 = arith.constant 0 : index
    %2 = vector.load %arg3[%c0_5, %c0_6, %c0_7] : memref<1x1x1xf32, #tpu.memory_space<vmem>>, vector<1x1x1xf32>
    %c0_8 = arith.constant 0 : index
    %c0_9 = arith.constant 0 : index
    %c0_10 = arith.constant 0 : index
    %3 = vector.load %arg4[%c0_8, %c0_9, %c0_10] : memref<3x320x320xbf16, #tpu.memory_space<vmem>>, vector<1x320x320xbf16>
    %4 = vector.shape_cast %3 : vector<1x320x320xbf16> to vector<320x320xbf16>
    %c0_11 = arith.constant 0 : index
    %c0_12 = arith.constant 0 : index
    %c0_13 = arith.constant 0 : index
    %5 = vector.load %arg5[%c0_11, %c0_12, %c0_13] : memref<3x1x320xf32, #tpu.memory_space<vmem>>, vector<1x1x320xf32>
    %6 = vector.shape_cast %5 : vector<1x1x320xf32> to vector<1x320xf32>
    %7 = vector.shape_cast %0 : vector<1x1x320xbf16> to vector<1x320xbf16>
    %cst = arith.constant dense<0.000000e+00> : vector<1x320xf32>
    %8 = tpu.matmul %7, %4, %cst {dimension_numbers = #tpu.dot_dimension_numbers<[1], [0], [0], [1], [0, 0, 1, 1], [], []>} : vector<1x320xbf16>, vector<320x320xbf16>, vector<1x320xf32> -> vector<1x320xf32>
    %9 = vector.shape_cast %8 : vector<1x320xf32> to vector<1x1x320xf32>
    %10 = vector.shape_cast %6 : vector<1x320xf32> to vector<1x1x320xf32>
    %11 = arith.addf %9, %10 : vector<1x1x320xf32>
    %12 = arith.truncf %11 : vector<1x1x320xf32> to vector<1x1x320xbf16>
    %c0_14 = arith.constant 0 : index
    %c0_15 = arith.constant 0 : index
    %c0_16 = arith.constant 0 : index
    %13 = vector.load %arg6[%c0_14, %c0_15, %c0_16] : memref<3x320x320xbf16, #tpu.memory_space<vmem>>, vector<1x320x320xbf16>
    %14 = vector.shape_cast %13 : vector<1x320x320xbf16> to vector<320x320xbf16>
    %c0_17 = arith.constant 0 : index
    %c0_18 = arith.constant 0 : index
    %c0_19 = arith.constant 0 : index
    %15 = vector.load %arg7[%c0_17, %c0_18, %c0_19] : memref<3x1x320xf32, #tpu.memory_space<vmem>>, vector<1x1x320xf32>
    %16 = vector.shape_cast %15 : vector<1x1x320xf32> to vector<1x320xf32>
    %17 = vector.shape_cast %0 : vector<1x1x320xbf16> to vector<1x320xbf16>
    %cst_20 = arith.constant dense<0.000000e+00> : vector<1x320xf32>
    %18 = tpu.matmul %17, %14, %cst_20 {dimension_numbers = #tpu.dot_dimension_numbers<[1], [0], [0], [1], [0, 0, 1, 1], [], []>} : vector<1x320xbf16>, vector<320x320xbf16>, vector<1x320xf32> -> vector<1x320xf32>
    %19 = vector.shape_cast %18 : vector<1x320xf32> to vector<1x1x320xf32>
    %20 = vector.shape_cast %16 : vector<1x320xf32> to vector<1x1x320xf32>
    %21 = arith.addf %19, %20 : vector<1x1x320xf32>
    %22 = arith.truncf %21 : vector<1x1x320xf32> to vector<1x1x320xbf16>
    %c0_21 = arith.constant 0 : index
    %c0_22 = arith.constant 0 : index
    %c0_23 = arith.constant 0 : index
    %23 = vector.load %arg8[%c0_21, %c0_22, %c0_23] : memref<3x320x320xbf16, #tpu.memory_space<vmem>>, vector<1x320x320xbf16>
    %24 = vector.shape_cast %23 : vector<1x320x320xbf16> to vector<320x320xbf16>
    %c0_24 = arith.constant 0 : index
    %c0_25 = arith.constant 0 : index
    %c0_26 = arith.constant 0 : index
    %25 = vector.load %arg9[%c0_24, %c0_25, %c0_26] : memref<3x1x320xf32, #tpu.memory_space<vmem>>, vector<1x1x320xf32>
    %26 = vector.shape_cast %25 : vector<1x1x320xf32> to vector<1x320xf32>
    %27 = vector.shape_cast %0 : vector<1x1x320xbf16> to vector<1x320xbf16>
    %cst_27 = arith.constant dense<0.000000e+00> : vector<1x320xf32>
    %28 = tpu.matmul %27, %24, %cst_27 {dimension_numbers = #tpu.dot_dimension_numbers<[1], [0], [0], [1], [0, 0, 1, 1], [], []>} : vector<1x320xbf16>, vector<320x320xbf16>, vector<1x320xf32> -> vector<1x320xf32>
    %29 = vector.shape_cast %28 : vector<1x320xf32> to vector<1x1x320xf32>
    %30 = vector.shape_cast %26 : vector<1x320xf32> to vector<1x1x320xf32>
    %31 = arith.addf %29, %30 : vector<1x1x320xf32>
    %32 = arith.truncf %31 : vector<1x1x320xf32> to vector<1x1x320xbf16>
    %33 = vector.extract_strided_slice %12 {offsets = [0, 0, 0], sizes = [1, 1, 160], strides = [1, 1, 1]} : vector<1x1x320xbf16> to vector<1x1x160xbf16>
    %34 = vector.extract_strided_slice %22 {offsets = [0, 0, 0], sizes = [1, 1, 160], strides = [1, 1, 1]} : vector<1x1x320xbf16> to vector<1x1x160xbf16>
    %cst_28 = arith.constant dense<0.000000e+00> : vector<1x1x1xf32>
    %35 = tpu.matmul %33, %34, %cst_28 {dimension_numbers = #tpu.dot_dimension_numbers<[2], [2], [1], [1], [0, 0, 0, 1, 1, 1], [0], [0]>} : vector<1x1x160xbf16>, vector<1x1x160xbf16>, vector<1x1x1xf32> -> vector<1x1x1xf32>
    %36 = arith.addf %35, %1 : vector<1x1x1xf32>
    %cst_29 = arith.constant dense<0xFF800000> : vector<1x1xf32>
    %37 = vector.multi_reduction <maximumf>, %36, %cst_29 [2] : vector<1x1x1xf32> to vector<1x1xf32>
    %38 = vector.shape_cast %37 : vector<1x1xf32> to vector<1x1x1xf32>
    %39 = arith.subf %36, %38 : vector<1x1x1xf32>
    %40 = math.exp %39 : vector<1x1x1xf32>
    %cst_30 = arith.constant dense<0.000000e+00> : vector<1x1xf32>
    %41 = vector.multi_reduction <add>, %40, %cst_30 [2] : vector<1x1x1xf32> to vector<1x1xf32>
    %42 = vector.shape_cast %41 : vector<1x1xf32> to vector<1x1x1xf32>
    %43 = tpu.reciprocal %42 {approx = true} : vector<1x1x1xf32> -> vector<1x1x1xf32>
    %44 = arith.mulf %40, %43 : vector<1x1x1xf32>
    %45 = arith.truncf %44 : vector<1x1x1xf32> to vector<1x1x1xbf16>
    %46 = vector.extract_strided_slice %32 {offsets = [0, 0, 0], sizes = [1, 1, 160], strides = [1, 1, 1]} : vector<1x1x320xbf16> to vector<1x1x160xbf16>
    %cst_31 = arith.constant dense<0.000000e+00> : vector<1x1x160xf32>
    %47 = tpu.matmul %45, %46, %cst_31 {dimension_numbers = #tpu.dot_dimension_numbers<[2], [1], [1], [2], [0, 0, 0, 1, 1, 2], [0], [0]>} : vector<1x1x1xbf16>, vector<1x1x160xbf16>, vector<1x1x160xf32> -> vector<1x1x160xf32>
    %48 = vector.extract_strided_slice %12 {offsets = [0, 0, 160], sizes = [1, 1, 160], strides = [1, 1, 1]} : vector<1x1x320xbf16> to vector<1x1x160xbf16>
    %49 = vector.extract_strided_slice %22 {offsets = [0, 0, 160], sizes = [1, 1, 160], strides = [1, 1, 1]} : vector<1x1x320xbf16> to vector<1x1x160xbf16>
    %cst_32 = arith.constant dense<0.000000e+00> : vector<1x1x1xf32>
    %50 = tpu.matmul %48, %49, %cst_32 {dimension_numbers = #tpu.dot_dimension_numbers<[2], [2], [1], [1], [0, 0, 0, 1, 1, 1], [0], [0]>} : vector<1x1x160xbf16>, vector<1x1x160xbf16>, vector<1x1x1xf32> -> vector<1x1x1xf32>
    %51 = arith.addf %50, %1 : vector<1x1x1xf32>
    %cst_33 = arith.constant dense<0xFF800000> : vector<1x1xf32>
    %52 = vector.multi_reduction <maximumf>, %51, %cst_33 [2] : vector<1x1x1xf32> to vector<1x1xf32>
    %53 = vector.shape_cast %52 : vector<1x1xf32> to vector<1x1x1xf32>
    %54 = arith.subf %51, %53 : vector<1x1x1xf32>
    %55 = math.exp %54 : vector<1x1x1xf32>
    %cst_34 = arith.constant dense<0.000000e+00> : vector<1x1xf32>
    %56 = vector.multi_reduction <add>, %55, %cst_34 [2] : vector<1x1x1xf32> to vector<1x1xf32>
    %57 = vector.shape_cast %56 : vector<1x1xf32> to vector<1x1x1xf32>
    %58 = tpu.reciprocal %57 {approx = true} : vector<1x1x1xf32> -> vector<1x1x1xf32>
    %59 = arith.mulf %55, %58 : vector<1x1x1xf32>
    %60 = arith.truncf %59 : vector<1x1x1xf32> to vector<1x1x1xbf16>
    %61 = vector.extract_strided_slice %32 {offsets = [0, 0, 160], sizes = [1, 1, 160], strides = [1, 1, 1]} : vector<1x1x320xbf16> to vector<1x1x160xbf16>
    %cst_35 = arith.constant dense<0.000000e+00> : vector<1x1x160xf32>
    %62 = tpu.matmul %60, %61, %cst_35 {dimension_numbers = #tpu.dot_dimension_numbers<[2], [1], [1], [2], [0, 0, 0, 1, 1, 2], [0], [0]>} : vector<1x1x1xbf16>, vector<1x1x160xbf16>, vector<1x1x160xf32> -> vector<1x1x160xf32>
    %63 = tpu.concatenate %47, %62 in 2 : vector<1x1x160xf32>, vector<1x1x160xf32> -> vector<1x1x320xf32>
    %64 = arith.truncf %63 : vector<1x1x320xf32> to vector<1x1x320xbf16>
    %c0_36 = arith.constant 0 : index
    %c0_37 = arith.constant 0 : index
    %c0_38 = arith.constant 0 : index
    %65 = vector.load %arg10[%c0_36, %c0_37, %c0_38] : memref<3x320x320xbf16, #tpu.memory_space<vmem>>, vector<1x320x320xbf16>
    %66 = vector.shape_cast %65 : vector<1x320x320xbf16> to vector<320x320xbf16>
    %c0_39 = arith.constant 0 : index
    %c0_40 = arith.constant 0 : index
    %c0_41 = arith.constant 0 : index
    %67 = vector.load %arg11[%c0_39, %c0_40, %c0_41] : memref<3x1x320xf32, #tpu.memory_space<vmem>>, vector<1x1x320xf32>
    %68 = vector.shape_cast %67 : vector<1x1x320xf32> to vector<1x320xf32>
    %69 = vector.shape_cast %64 : vector<1x1x320xbf16> to vector<1x320xbf16>
    %cst_42 = arith.constant dense<0.000000e+00> : vector<1x320xf32>
    %70 = tpu.matmul %69, %66, %cst_42 {dimension_numbers = #tpu.dot_dimension_numbers<[1], [0], [0], [1], [0, 0, 1, 1], [], []>} : vector<1x320xbf16>, vector<320x320xbf16>, vector<1x320xf32> -> vector<1x320xf32>
    %71 = vector.shape_cast %70 : vector<1x320xf32> to vector<1x1x320xf32>
    %72 = vector.shape_cast %68 : vector<1x320xf32> to vector<1x1x320xf32>
    %73 = arith.addf %71, %72 : vector<1x1x320xf32>
    %74 = vector.broadcast %2 : vector<1x1x1xf32> to vector<1x1x320xf32>
    %75 = arith.mulf %73, %74 : vector<1x1x320xf32>
    %76 = arith.extf %0 : vector<1x1x320xbf16> to vector<1x1x320xf32>
    %77 = arith.addf %75, %76 : vector<1x1x320xf32>
    %78 = arith.truncf %77 : vector<1x1x320xf32> to vector<1x1x320xbf16>
    %c0_43 = arith.constant 0 : index
    %c0_44 = arith.constant 0 : index
    %c0_45 = arith.constant 0 : index
    %79 = vector.load %arg12[%c0_43, %c0_44, %c0_45] : memref<3x320x320xbf16, #tpu.memory_space<vmem>>, vector<1x320x320xbf16>
    %80 = vector.shape_cast %79 : vector<1x320x320xbf16> to vector<320x320xbf16>
    %c0_46 = arith.constant 0 : index
    %c0_47 = arith.constant 0 : index
    %c0_48 = arith.constant 0 : index
    %81 = vector.load %arg13[%c0_46, %c0_47, %c0_48] : memref<3x1x320xf32, #tpu.memory_space<vmem>>, vector<1x1x320xf32>
    %82 = vector.shape_cast %81 : vector<1x1x320xf32> to vector<1x320xf32>
    %83 = vector.shape_cast %78 : vector<1x1x320xbf16> to vector<1x320xbf16>
    %cst_49 = arith.constant dense<0.000000e+00> : vector<1x320xf32>
    %84 = tpu.matmul %83, %80, %cst_49 {dimension_numbers = #tpu.dot_dimension_numbers<[1], [0], [0], [1], [0, 0, 1, 1], [], []>} : vector<1x320xbf16>, vector<320x320xbf16>, vector<1x320xf32> -> vector<1x320xf32>
    %85 = vector.shape_cast %84 : vector<1x320xf32> to vector<1x1x320xf32>
    %86 = vector.shape_cast %82 : vector<1x320xf32> to vector<1x1x320xf32>
    %87 = arith.addf %85, %86 : vector<1x1x320xf32>
    %cst_50 = arith.constant 0.000000e+00 : f32
    %88 = vector.broadcast %cst_50 : f32 to vector<1x1x320xf32>
    %89 = arith.maximumf %87, %88 : vector<1x1x320xf32>
    %90 = arith.addf %77, %89 : vector<1x1x320xf32>
    %91 = arith.truncf %90 : vector<1x1x320xf32> to vector<1x1x320xbf16>
    %c0_51 = arith.constant 0 : index
    %c0_52 = arith.constant 0 : index
    %92 = vector.load %arg14[%c0_51, %c0_52] : memref<320x320xbf16, #tpu.memory_space<vmem>>, vector<320x320xbf16>
    %c0_53 = arith.constant 0 : index
    %c0_54 = arith.constant 0 : index
    %93 = vector.load %arg15[%c0_53, %c0_54] : memref<1x320xf32, #tpu.memory_space<vmem>>, vector<1x320xf32>
    %94 = vector.shape_cast %91 : vector<1x1x320xbf16> to vector<1x320xbf16>
    %cst_55 = arith.constant dense<0.000000e+00> : vector<1x320xf32>
    %95 = tpu.matmul %94, %92, %cst_55 {dimension_numbers = #tpu.dot_dimension_numbers<[1], [0], [0], [1], [0, 0, 1, 1], [], []>} : vector<1x320xbf16>, vector<320x320xbf16>, vector<1x320xf32> -> vector<1x320xf32>
    %96 = vector.shape_cast %95 : vector<1x320xf32> to vector<1x1x320xf32>
    %97 = vector.shape_cast %93 : vector<1x320xf32> to vector<1x1x320xf32>
    %98 = arith.addf %96, %97 : vector<1x1x320xf32>
    %cst_56 = arith.constant 0.000000e+00 : f32
    %99 = vector.broadcast %cst_56 : f32 to vector<1x1x320xf32>
    %100 = arith.maximumf %98, %99 : vector<1x1x320xf32>
    %c0_57 = arith.constant 0 : index
    %c0_58 = arith.constant 0 : index
    %101 = vector.load %arg16[%c0_57, %c0_58] : memref<1x320xf32, #tpu.memory_space<vmem>>, vector<1x320xf32>
    %102 = vector.shape_cast %101 : vector<1x320xf32> to vector<1x1x320xf32>
    %103 = arith.truncf %102 : vector<1x1x320xf32> to vector<1x1x320xbf16>
    %104 = arith.truncf %100 : vector<1x1x320xf32> to vector<1x1x320xbf16>
    %c1 = arith.constant 1 : index
    %c0_59 = arith.constant 0 : index
    %c0_60 = arith.constant 0 : index
    %105 = vector.load %arg4[%c1, %c0_59, %c0_60] : memref<3x320x320xbf16, #tpu.memory_space<vmem>>, vector<1x320x320xbf16>
    %106 = vector.shape_cast %105 : vector<1x320x320xbf16> to vector<320x320xbf16>
    %c1_61 = arith.constant 1 : index
    %c0_62 = arith.constant 0 : index
    %c0_63 = arith.constant 0 : index
    %107 = vector.load %arg5[%c1_61, %c0_62, %c0_63] : memref<3x1x320xf32, #tpu.memory_space<vmem>>, vector<1x1x320xf32>
    %108 = vector.shape_cast %107 : vector<1x1x320xf32> to vector<1x320xf32>
    %109 = vector.shape_cast %103 : vector<1x1x320xbf16> to vector<1x320xbf16>
    %cst_64 = arith.constant dense<0.000000e+00> : vector<1x320xf32>
    %110 = tpu.matmul %109, %106, %cst_64 {dimension_numbers = #tpu.dot_dimension_numbers<[1], [0], [0], [1], [0, 0, 1, 1], [], []>} : vector<1x320xbf16>, vector<320x320xbf16>, vector<1x320xf32> -> vector<1x320xf32>
    %111 = vector.shape_cast %110 : vector<1x320xf32> to vector<1x1x320xf32>
    %112 = vector.shape_cast %108 : vector<1x320xf32> to vector<1x1x320xf32>
    %113 = arith.addf %111, %112 : vector<1x1x320xf32>
    %114 = arith.truncf %113 : vector<1x1x320xf32> to vector<1x1x320xbf16>
    %c1_65 = arith.constant 1 : index
    %c0_66 = arith.constant 0 : index
    %c0_67 = arith.constant 0 : index
    %115 = vector.load %arg6[%c1_65, %c0_66, %c0_67] : memref<3x320x320xbf16, #tpu.memory_space<vmem>>, vector<1x320x320xbf16>
    %116 = vector.shape_cast %115 : vector<1x320x320xbf16> to vector<320x320xbf16>
    %c1_68 = arith.constant 1 : index
    %c0_69 = arith.constant 0 : index
    %c0_70 = arith.constant 0 : index
    %117 = vector.load %arg7[%c1_68, %c0_69, %c0_70] : memref<3x1x320xf32, #tpu.memory_space<vmem>>, vector<1x1x320xf32>
    %118 = vector.shape_cast %117 : vector<1x1x320xf32> to vector<1x320xf32>
    %119 = vector.shape_cast %104 : vector<1x1x320xbf16> to vector<1x320xbf16>
    %cst_71 = arith.constant dense<0.000000e+00> : vector<1x320xf32>
    %120 = tpu.matmul %119, %116, %cst_71 {dimension_numbers = #tpu.dot_dimension_numbers<[1], [0], [0], [1], [0, 0, 1, 1], [], []>} : vector<1x320xbf16>, vector<320x320xbf16>, vector<1x320xf32> -> vector<1x320xf32>
    %121 = vector.shape_cast %120 : vector<1x320xf32> to vector<1x1x320xf32>
    %122 = vector.shape_cast %118 : vector<1x320xf32> to vector<1x1x320xf32>
    %123 = arith.addf %121, %122 : vector<1x1x320xf32>
    %124 = arith.truncf %123 : vector<1x1x320xf32> to vector<1x1x320xbf16>
    %c1_72 = arith.constant 1 : index
    %c0_73 = arith.constant 0 : index
    %c0_74 = arith.constant 0 : index
    %125 = vector.load %arg8[%c1_72, %c0_73, %c0_74] : memref<3x320x320xbf16, #tpu.memory_space<vmem>>, vector<1x320x320xbf16>
    %126 = vector.shape_cast %125 : vector<1x320x320xbf16> to vector<320x320xbf16>
    %c1_75 = arith.constant 1 : index
    %c0_76 = arith.constant 0 : index
    %c0_77 = arith.constant 0 : index
    %127 = vector.load %arg9[%c1_75, %c0_76, %c0_77] : memref<3x1x320xf32, #tpu.memory_space<vmem>>, vector<1x1x320xf32>
    %128 = vector.shape_cast %127 : vector<1x1x320xf32> to vector<1x320xf32>
    %129 = vector.shape_cast %104 : vector<1x1x320xbf16> to vector<1x320xbf16>
    %cst_78 = arith.constant dense<0.000000e+00> : vector<1x320xf32>
    %130 = tpu.matmul %129, %126, %cst_78 {dimension_numbers = #tpu.dot_dimension_numbers<[1], [0], [0], [1], [0, 0, 1, 1], [], []>} : vector<1x320xbf16>, vector<320x320xbf16>, vector<1x320xf32> -> vector<1x320xf32>
    %131 = vector.shape_cast %130 : vector<1x320xf32> to vector<1x1x320xf32>
    %132 = vector.shape_cast %128 : vector<1x320xf32> to vector<1x1x320xf32>
    %133 = arith.addf %131, %132 : vector<1x1x320xf32>
    %134 = arith.truncf %133 : vector<1x1x320xf32> to vector<1x1x320xbf16>
    %135 = vector.extract_strided_slice %114 {offsets = [0, 0, 0], sizes = [1, 1, 160], strides = [1, 1, 1]} : vector<1x1x320xbf16> to vector<1x1x160xbf16>
    %136 = vector.extract_strided_slice %124 {offsets = [0, 0, 0], sizes = [1, 1, 160], strides = [1, 1, 1]} : vector<1x1x320xbf16> to vector<1x1x160xbf16>
    %cst_79 = arith.constant dense<0.000000e+00> : vector<1x1x1xf32>
    %137 = tpu.matmul %135, %136, %cst_79 {dimension_numbers = #tpu.dot_dimension_numbers<[2], [2], [1], [1], [0, 0, 0, 1, 1, 1], [0], [0]>} : vector<1x1x160xbf16>, vector<1x1x160xbf16>, vector<1x1x1xf32> -> vector<1x1x1xf32>
    %138 = arith.addf %137, %1 : vector<1x1x1xf32>
    %cst_80 = arith.constant dense<0xFF800000> : vector<1x1xf32>
    %139 = vector.multi_reduction <maximumf>, %138, %cst_80 [2] : vector<1x1x1xf32> to vector<1x1xf32>
    %140 = vector.shape_cast %139 : vector<1x1xf32> to vector<1x1x1xf32>
    %141 = arith.subf %138, %140 : vector<1x1x1xf32>
    %142 = math.exp %141 : vector<1x1x1xf32>
    %cst_81 = arith.constant dense<0.000000e+00> : vector<1x1xf32>
    %143 = vector.multi_reduction <add>, %142, %cst_81 [2] : vector<1x1x1xf32> to vector<1x1xf32>
    %144 = vector.shape_cast %143 : vector<1x1xf32> to vector<1x1x1xf32>
    %145 = tpu.reciprocal %144 {approx = true} : vector<1x1x1xf32> -> vector<1x1x1xf32>
    %146 = arith.mulf %142, %145 : vector<1x1x1xf32>
    %147 = arith.truncf %146 : vector<1x1x1xf32> to vector<1x1x1xbf16>
    %148 = vector.extract_strided_slice %134 {offsets = [0, 0, 0], sizes = [1, 1, 160], strides = [1, 1, 1]} : vector<1x1x320xbf16> to vector<1x1x160xbf16>
    %cst_82 = arith.constant dense<0.000000e+00> : vector<1x1x160xf32>
    %149 = tpu.matmul %147, %148, %cst_82 {dimension_numbers = #tpu.dot_dimension_numbers<[2], [1], [1], [2], [0, 0, 0, 1, 1, 2], [0], [0]>} : vector<1x1x1xbf16>, vector<1x1x160xbf16>, vector<1x1x160xf32> -> vector<1x1x160xf32>
    %150 = vector.extract_strided_slice %114 {offsets = [0, 0, 160], sizes = [1, 1, 160], strides = [1, 1, 1]} : vector<1x1x320xbf16> to vector<1x1x160xbf16>
    %151 = vector.extract_strided_slice %124 {offsets = [0, 0, 160], sizes = [1, 1, 160], strides = [1, 1, 1]} : vector<1x1x320xbf16> to vector<1x1x160xbf16>
    %cst_83 = arith.constant dense<0.000000e+00> : vector<1x1x1xf32>
    %152 = tpu.matmul %150, %151, %cst_83 {dimension_numbers = #tpu.dot_dimension_numbers<[2], [2], [1], [1], [0, 0, 0, 1, 1, 1], [0], [0]>} : vector<1x1x160xbf16>, vector<1x1x160xbf16>, vector<1x1x1xf32> -> vector<1x1x1xf32>
    %153 = arith.addf %152, %1 : vector<1x1x1xf32>
    %cst_84 = arith.constant dense<0xFF800000> : vector<1x1xf32>
    %154 = vector.multi_reduction <maximumf>, %153, %cst_84 [2] : vector<1x1x1xf32> to vector<1x1xf32>
    %155 = vector.shape_cast %154 : vector<1x1xf32> to vector<1x1x1xf32>
    %156 = arith.subf %153, %155 : vector<1x1x1xf32>
    %157 = math.exp %156 : vector<1x1x1xf32>
    %cst_85 = arith.constant dense<0.000000e+00> : vector<1x1xf32>
    %158 = vector.multi_reduction <add>, %157, %cst_85 [2] : vector<1x1x1xf32> to vector<1x1xf32>
    %159 = vector.shape_cast %158 : vector<1x1xf32> to vector<1x1x1xf32>
    %160 = tpu.reciprocal %159 {approx = true} : vector<1x1x1xf32> -> vector<1x1x1xf32>
    %161 = arith.mulf %157, %160 : vector<1x1x1xf32>
    %162 = arith.truncf %161 : vector<1x1x1xf32> to vector<1x1x1xbf16>
    %163 = vector.extract_strided_slice %134 {offsets = [0, 0, 160], sizes = [1, 1, 160], strides = [1, 1, 1]} : vector<1x1x320xbf16> to vector<1x1x160xbf16>
    %cst_86 = arith.constant dense<0.000000e+00> : vector<1x1x160xf32>
    %164 = tpu.matmul %162, %163, %cst_86 {dimension_numbers = #tpu.dot_dimension_numbers<[2], [1], [1], [2], [0, 0, 0, 1, 1, 2], [0], [0]>} : vector<1x1x1xbf16>, vector<1x1x160xbf16>, vector<1x1x160xf32> -> vector<1x1x160xf32>
    %165 = tpu.concatenate %149, %164 in 2 : vector<1x1x160xf32>, vector<1x1x160xf32> -> vector<1x1x320xf32>
    %166 = arith.truncf %165 : vector<1x1x320xf32> to vector<1x1x320xbf16>
    %c1_87 = arith.constant 1 : index
    %c0_88 = arith.constant 0 : index
    %c0_89 = arith.constant 0 : index
    %167 = vector.load %arg10[%c1_87, %c0_88, %c0_89] : memref<3x320x320xbf16, #tpu.memory_space<vmem>>, vector<1x320x320xbf16>
    %168 = vector.shape_cast %167 : vector<1x320x320xbf16> to vector<320x320xbf16>
    %c1_90 = arith.constant 1 : index
    %c0_91 = arith.constant 0 : index
    %c0_92 = arith.constant 0 : index
    %169 = vector.load %arg11[%c1_90, %c0_91, %c0_92] : memref<3x1x320xf32, #tpu.memory_space<vmem>>, vector<1x1x320xf32>
    %170 = vector.shape_cast %169 : vector<1x1x320xf32> to vector<1x320xf32>
    %171 = vector.shape_cast %166 : vector<1x1x320xbf16> to vector<1x320xbf16>
    %cst_93 = arith.constant dense<0.000000e+00> : vector<1x320xf32>
    %172 = tpu.matmul %171, %168, %cst_93 {dimension_numbers = #tpu.dot_dimension_numbers<[1], [0], [0], [1], [0, 0, 1, 1], [], []>} : vector<1x320xbf16>, vector<320x320xbf16>, vector<1x320xf32> -> vector<1x320xf32>
    %173 = vector.shape_cast %172 : vector<1x320xf32> to vector<1x1x320xf32>
    %174 = vector.shape_cast %170 : vector<1x320xf32> to vector<1x1x320xf32>
    %175 = arith.addf %173, %174 : vector<1x1x320xf32>
    %176 = arith.addf %175, %102 : vector<1x1x320xf32>
    %177 = arith.truncf %176 : vector<1x1x320xf32> to vector<1x1x320xbf16>
    %c1_94 = arith.constant 1 : index
    %c0_95 = arith.constant 0 : index
    %c0_96 = arith.constant 0 : index
    %178 = vector.load %arg12[%c1_94, %c0_95, %c0_96] : memref<3x320x320xbf16, #tpu.memory_space<vmem>>, vector<1x320x320xbf16>
    %179 = vector.shape_cast %178 : vector<1x320x320xbf16> to vector<320x320xbf16>
    %c1_97 = arith.constant 1 : index
    %c0_98 = arith.constant 0 : index
    %c0_99 = arith.constant 0 : index
    %180 = vector.load %arg13[%c1_97, %c0_98, %c0_99] : memref<3x1x320xf32, #tpu.memory_space<vmem>>, vector<1x1x320xf32>
    %181 = vector.shape_cast %180 : vector<1x1x320xf32> to vector<1x320xf32>
    %182 = vector.shape_cast %177 : vector<1x1x320xbf16> to vector<1x320xbf16>
    %cst_100 = arith.constant dense<0.000000e+00> : vector<1x320xf32>
    %183 = tpu.matmul %182, %179, %cst_100 {dimension_numbers = #tpu.dot_dimension_numbers<[1], [0], [0], [1], [0, 0, 1, 1], [], []>} : vector<1x320xbf16>, vector<320x320xbf16>, vector<1x320xf32> -> vector<1x320xf32>
    %184 = vector.shape_cast %183 : vector<1x320xf32> to vector<1x1x320xf32>
    %185 = vector.shape_cast %181 : vector<1x320xf32> to vector<1x1x320xf32>
    %186 = arith.addf %184, %185 : vector<1x1x320xf32>
    %cst_101 = arith.constant 0.000000e+00 : f32
    %187 = vector.broadcast %cst_101 : f32 to vector<1x1x320xf32>
    %188 = arith.maximumf %186, %187 : vector<1x1x320xf32>
    %189 = arith.addf %176, %188 : vector<1x1x320xf32>
    %190 = arith.truncf %189 : vector<1x1x320xf32> to vector<1x1x320xbf16>
    %c2 = arith.constant 2 : index
    %c0_102 = arith.constant 0 : index
    %c0_103 = arith.constant 0 : index
    %191 = vector.load %arg4[%c2, %c0_102, %c0_103] : memref<3x320x320xbf16, #tpu.memory_space<vmem>>, vector<1x320x320xbf16>
    %192 = vector.shape_cast %191 : vector<1x320x320xbf16> to vector<320x320xbf16>
    %c2_104 = arith.constant 2 : index
    %c0_105 = arith.constant 0 : index
    %c0_106 = arith.constant 0 : index
    %193 = vector.load %arg5[%c2_104, %c0_105, %c0_106] : memref<3x1x320xf32, #tpu.memory_space<vmem>>, vector<1x1x320xf32>
    %194 = vector.shape_cast %193 : vector<1x1x320xf32> to vector<1x320xf32>
    %195 = vector.shape_cast %190 : vector<1x1x320xbf16> to vector<1x320xbf16>
    %cst_107 = arith.constant dense<0.000000e+00> : vector<1x320xf32>
    %196 = tpu.matmul %195, %192, %cst_107 {dimension_numbers = #tpu.dot_dimension_numbers<[1], [0], [0], [1], [0, 0, 1, 1], [], []>} : vector<1x320xbf16>, vector<320x320xbf16>, vector<1x320xf32> -> vector<1x320xf32>
    %197 = vector.shape_cast %196 : vector<1x320xf32> to vector<1x1x320xf32>
    %198 = vector.shape_cast %194 : vector<1x320xf32> to vector<1x1x320xf32>
    %199 = arith.addf %197, %198 : vector<1x1x320xf32>
    %200 = arith.truncf %199 : vector<1x1x320xf32> to vector<1x1x320xbf16>
    %c2_108 = arith.constant 2 : index
    %c0_109 = arith.constant 0 : index
    %c0_110 = arith.constant 0 : index
    %201 = vector.load %arg6[%c2_108, %c0_109, %c0_110] : memref<3x320x320xbf16, #tpu.memory_space<vmem>>, vector<1x320x320xbf16>
    %202 = vector.shape_cast %201 : vector<1x320x320xbf16> to vector<320x320xbf16>
    %c2_111 = arith.constant 2 : index
    %c0_112 = arith.constant 0 : index
    %c0_113 = arith.constant 0 : index
    %203 = vector.load %arg7[%c2_111, %c0_112, %c0_113] : memref<3x1x320xf32, #tpu.memory_space<vmem>>, vector<1x1x320xf32>
    %204 = vector.shape_cast %203 : vector<1x1x320xf32> to vector<1x320xf32>
    %205 = vector.shape_cast %190 : vector<1x1x320xbf16> to vector<1x320xbf16>
    %cst_114 = arith.constant dense<0.000000e+00> : vector<1x320xf32>
    %206 = tpu.matmul %205, %202, %cst_114 {dimension_numbers = #tpu.dot_dimension_numbers<[1], [0], [0], [1], [0, 0, 1, 1], [], []>} : vector<1x320xbf16>, vector<320x320xbf16>, vector<1x320xf32> -> vector<1x320xf32>
    %207 = vector.shape_cast %206 : vector<1x320xf32> to vector<1x1x320xf32>
    %208 = vector.shape_cast %204 : vector<1x320xf32> to vector<1x1x320xf32>
    %209 = arith.addf %207, %208 : vector<1x1x320xf32>
    %210 = arith.truncf %209 : vector<1x1x320xf32> to vector<1x1x320xbf16>
    %c2_115 = arith.constant 2 : index
    %c0_116 = arith.constant 0 : index
    %c0_117 = arith.constant 0 : index
    %211 = vector.load %arg8[%c2_115, %c0_116, %c0_117] : memref<3x320x320xbf16, #tpu.memory_space<vmem>>, vector<1x320x320xbf16>
    %212 = vector.shape_cast %211 : vector<1x320x320xbf16> to vector<320x320xbf16>
    %c2_118 = arith.constant 2 : index
    %c0_119 = arith.constant 0 : index
    %c0_120 = arith.constant 0 : index
    %213 = vector.load %arg9[%c2_118, %c0_119, %c0_120] : memref<3x1x320xf32, #tpu.memory_space<vmem>>, vector<1x1x320xf32>
    %214 = vector.shape_cast %213 : vector<1x1x320xf32> to vector<1x320xf32>
    %215 = vector.shape_cast %190 : vector<1x1x320xbf16> to vector<1x320xbf16>
    %cst_121 = arith.constant dense<0.000000e+00> : vector<1x320xf32>
    %216 = tpu.matmul %215, %212, %cst_121 {dimension_numbers = #tpu.dot_dimension_numbers<[1], [0], [0], [1], [0, 0, 1, 1], [], []>} : vector<1x320xbf16>, vector<320x320xbf16>, vector<1x320xf32> -> vector<1x320xf32>
    %217 = vector.shape_cast %216 : vector<1x320xf32> to vector<1x1x320xf32>
    %218 = vector.shape_cast %214 : vector<1x320xf32> to vector<1x1x320xf32>
    %219 = arith.addf %217, %218 : vector<1x1x320xf32>
    %220 = arith.truncf %219 : vector<1x1x320xf32> to vector<1x1x320xbf16>
    %221 = vector.extract_strided_slice %200 {offsets = [0, 0, 0], sizes = [1, 1, 160], strides = [1, 1, 1]} : vector<1x1x320xbf16> to vector<1x1x160xbf16>
    %222 = vector.extract_strided_slice %210 {offsets = [0, 0, 0], sizes = [1, 1, 160], strides = [1, 1, 1]} : vector<1x1x320xbf16> to vector<1x1x160xbf16>
    %cst_122 = arith.constant dense<0.000000e+00> : vector<1x1x1xf32>
    %223 = tpu.matmul %221, %222, %cst_122 {dimension_numbers = #tpu.dot_dimension_numbers<[2], [2], [1], [1], [0, 0, 0, 1, 1, 1], [0], [0]>} : vector<1x1x160xbf16>, vector<1x1x160xbf16>, vector<1x1x1xf32> -> vector<1x1x1xf32>
    %cst_123 = arith.constant dense<0xFF800000> : vector<1x1xf32>
    %224 = vector.multi_reduction <maximumf>, %223, %cst_123 [2] : vector<1x1x1xf32> to vector<1x1xf32>
    %225 = vector.shape_cast %224 : vector<1x1xf32> to vector<1x1x1xf32>
    %226 = arith.subf %223, %225 : vector<1x1x1xf32>
    %227 = math.exp %226 : vector<1x1x1xf32>
    %cst_124 = arith.constant dense<0.000000e+00> : vector<1x1xf32>
    %228 = vector.multi_reduction <add>, %227, %cst_124 [2] : vector<1x1x1xf32> to vector<1x1xf32>
    %229 = vector.shape_cast %228 : vector<1x1xf32> to vector<1x1x1xf32>
    %230 = tpu.reciprocal %229 {approx = true} : vector<1x1x1xf32> -> vector<1x1x1xf32>
    %231 = arith.mulf %227, %230 : vector<1x1x1xf32>
    %232 = arith.truncf %231 : vector<1x1x1xf32> to vector<1x1x1xbf16>
    %233 = vector.extract_strided_slice %220 {offsets = [0, 0, 0], sizes = [1, 1, 160], strides = [1, 1, 1]} : vector<1x1x320xbf16> to vector<1x1x160xbf16>
    %cst_125 = arith.constant dense<0.000000e+00> : vector<1x1x160xf32>
    %234 = tpu.matmul %232, %233, %cst_125 {dimension_numbers = #tpu.dot_dimension_numbers<[2], [1], [1], [2], [0, 0, 0, 1, 1, 2], [0], [0]>} : vector<1x1x1xbf16>, vector<1x1x160xbf16>, vector<1x1x160xf32> -> vector<1x1x160xf32>
    %235 = vector.extract_strided_slice %200 {offsets = [0, 0, 160], sizes = [1, 1, 160], strides = [1, 1, 1]} : vector<1x1x320xbf16> to vector<1x1x160xbf16>
    %236 = vector.extract_strided_slice %210 {offsets = [0, 0, 160], sizes = [1, 1, 160], strides = [1, 1, 1]} : vector<1x1x320xbf16> to vector<1x1x160xbf16>
    %cst_126 = arith.constant dense<0.000000e+00> : vector<1x1x1xf32>
    %237 = tpu.matmul %235, %236, %cst_126 {dimension_numbers = #tpu.dot_dimension_numbers<[2], [2], [1], [1], [0, 0, 0, 1, 1, 1], [0], [0]>} : vector<1x1x160xbf16>, vector<1x1x160xbf16>, vector<1x1x1xf32> -> vector<1x1x1xf32>
    %cst_127 = arith.constant dense<0xFF800000> : vector<1x1xf32>
    %238 = vector.multi_reduction <maximumf>, %237, %cst_127 [2] : vector<1x1x1xf32> to vector<1x1xf32>
    %239 = vector.shape_cast %238 : vector<1x1xf32> to vector<1x1x1xf32>
    %240 = arith.subf %237, %239 : vector<1x1x1xf32>
    %241 = math.exp %240 : vector<1x1x1xf32>
    %cst_128 = arith.constant dense<0.000000e+00> : vector<1x1xf32>
    %242 = vector.multi_reduction <add>, %241, %cst_128 [2] : vector<1x1x1xf32> to vector<1x1xf32>
    %243 = vector.shape_cast %242 : vector<1x1xf32> to vector<1x1x1xf32>
    %244 = tpu.reciprocal %243 {approx = true} : vector<1x1x1xf32> -> vector<1x1x1xf32>
    %245 = arith.mulf %241, %244 : vector<1x1x1xf32>
    %246 = arith.truncf %245 : vector<1x1x1xf32> to vector<1x1x1xbf16>
    %247 = vector.extract_strided_slice %220 {offsets = [0, 0, 160], sizes = [1, 1, 160], strides = [1, 1, 1]} : vector<1x1x320xbf16> to vector<1x1x160xbf16>
    %cst_129 = arith.constant dense<0.000000e+00> : vector<1x1x160xf32>
    %248 = tpu.matmul %246, %247, %cst_129 {dimension_numbers = #tpu.dot_dimension_numbers<[2], [1], [1], [2], [0, 0, 0, 1, 1, 2], [0], [0]>} : vector<1x1x1xbf16>, vector<1x1x160xbf16>, vector<1x1x160xf32> -> vector<1x1x160xf32>
    %249 = tpu.concatenate %234, %248 in 2 : vector<1x1x160xf32>, vector<1x1x160xf32> -> vector<1x1x320xf32>
    %250 = arith.truncf %249 : vector<1x1x320xf32> to vector<1x1x320xbf16>
    %c2_130 = arith.constant 2 : index
    %c0_131 = arith.constant 0 : index
    %c0_132 = arith.constant 0 : index
    %251 = vector.load %arg10[%c2_130, %c0_131, %c0_132] : memref<3x320x320xbf16, #tpu.memory_space<vmem>>, vector<1x320x320xbf16>
    %252 = vector.shape_cast %251 : vector<1x320x320xbf16> to vector<320x320xbf16>
    %c2_133 = arith.constant 2 : index
    %c0_134 = arith.constant 0 : index
    %c0_135 = arith.constant 0 : index
    %253 = vector.load %arg11[%c2_133, %c0_134, %c0_135] : memref<3x1x320xf32, #tpu.memory_space<vmem>>, vector<1x1x320xf32>
    %254 = vector.shape_cast %253 : vector<1x1x320xf32> to vector<1x320xf32>
    %255 = vector.shape_cast %250 : vector<1x1x320xbf16> to vector<1x320xbf16>
    %cst_136 = arith.constant dense<0.000000e+00> : vector<1x320xf32>
    %256 = tpu.matmul %255, %252, %cst_136 {dimension_numbers = #tpu.dot_dimension_numbers<[1], [0], [0], [1], [0, 0, 1, 1], [], []>} : vector<1x320xbf16>, vector<320x320xbf16>, vector<1x320xf32> -> vector<1x320xf32>
    %257 = vector.shape_cast %256 : vector<1x320xf32> to vector<1x1x320xf32>
    %258 = vector.shape_cast %254 : vector<1x320xf32> to vector<1x1x320xf32>
    %259 = arith.addf %257, %258 : vector<1x1x320xf32>
    %260 = arith.addf %259, %189 : vector<1x1x320xf32>
    %261 = arith.truncf %260 : vector<1x1x320xf32> to vector<1x1x320xbf16>
    %c2_137 = arith.constant 2 : index
    %c0_138 = arith.constant 0 : index
    %c0_139 = arith.constant 0 : index
    %262 = vector.load %arg12[%c2_137, %c0_138, %c0_139] : memref<3x320x320xbf16, #tpu.memory_space<vmem>>, vector<1x320x320xbf16>
    %263 = vector.shape_cast %262 : vector<1x320x320xbf16> to vector<320x320xbf16>
    %c2_140 = arith.constant 2 : index
    %c0_141 = arith.constant 0 : index
    %c0_142 = arith.constant 0 : index
    %264 = vector.load %arg13[%c2_140, %c0_141, %c0_142] : memref<3x1x320xf32, #tpu.memory_space<vmem>>, vector<1x1x320xf32>
    %265 = vector.shape_cast %264 : vector<1x1x320xf32> to vector<1x320xf32>
    %266 = vector.shape_cast %261 : vector<1x1x320xbf16> to vector<1x320xbf16>
    %cst_143 = arith.constant dense<0.000000e+00> : vector<1x320xf32>
    %267 = tpu.matmul %266, %263, %cst_143 {dimension_numbers = #tpu.dot_dimension_numbers<[1], [0], [0], [1], [0, 0, 1, 1], [], []>} : vector<1x320xbf16>, vector<320x320xbf16>, vector<1x320xf32> -> vector<1x320xf32>
    %268 = vector.shape_cast %267 : vector<1x320xf32> to vector<1x1x320xf32>
    %269 = vector.shape_cast %265 : vector<1x320xf32> to vector<1x1x320xf32>
    %270 = arith.addf %268, %269 : vector<1x1x320xf32>
    %cst_144 = arith.constant 0.000000e+00 : f32
    %271 = vector.broadcast %cst_144 : f32 to vector<1x1x320xf32>
    %272 = arith.maximumf %270, %271 : vector<1x1x320xf32>
    %273 = arith.addf %260, %272 : vector<1x1x320xf32>
    %274 = arith.cmpf one, %273, %273 : vector<1x1x320xf32>
    %cst_145 = arith.constant 0.000000e+00 : f32
    %275 = vector.broadcast %cst_145 : f32 to vector<1x1x320xf32>
    %276 = arith.select %274, %275, %273 : vector<1x1x320xi1>, vector<1x1x320xf32>
    %cst_146 = arith.constant -3.40282347E+38 : f32
    %cst_147 = arith.constant 3.40282347E+38 : f32
    %277 = vector.broadcast %cst_146 : f32 to vector<1x1x320xf32>
    %278 = arith.maximumf %277, %276 : vector<1x1x320xf32>
    %279 = vector.broadcast %cst_147 : f32 to vector<1x1x320xf32>
    %280 = arith.minimumf %279, %278 : vector<1x1x320xf32>
    %281 = vector.shape_cast %280 : vector<1x1x320xf32> to vector<1x320xf32>
    %cst_148 = arith.constant 0.000000e+00 : f32
    %282 = vector.broadcast %cst_148 : f32 to vector<1x64xf32>
    %283 = tpu.concatenate %281, %282 in 1 : vector<1x320xf32>, vector<1x64xf32> -> vector<1x384xf32>
    %c0_149 = arith.constant 0 : index
    %c0_150 = arith.constant 0 : index
    %284 = vector.load %arg17[%c0_149, %c0_150] : memref<1x384xf32, #tpu.memory_space<vmem>>, vector<1x384xf32>
    tpu.vector_store %arg17[%c0_149, %c0_150], %283 {strides = array<i32>} : memref<1x384xf32, #tpu.memory_space<vmem>>, vector<1x384xf32>,
    return
  }
  func.func @transform_0(%arg0: i32) -> (i32, i32, i32) {
    %c0_i32 = arith.constant 0 : i32
    %c0_i32_0 = arith.constant 0 : i32
    %c0_i32_1 = arith.constant 0 : i32
    return %arg0, %c0_i32, %c0_i32_0 : i32, i32, i32
  }
  func.func @transform_1(%arg0: i32) -> (i32, i32, i32) {
    %c0_i32 = arith.constant 0 : i32
    %c0_i32_0 = arith.constant 0 : i32
    %c0_i32_1 = arith.constant 0 : i32
    return %arg0, %c0_i32, %c0_i32_0 : i32, i32, i32
  }
  func.func @transform_2(%arg0: i32) -> (i32, i32, i32) {
    %c0_i32 = arith.constant 0 : i32
    %c0_i32_0 = arith.constant 0 : i32
    %c0_i32_1 = arith.constant 0 : i32
    return %arg0, %c0_i32, %c0_i32_0 : i32, i32, i32
  }
  func.func @transform_3(%arg0: i32) -> (i32, i32, i32) {
    %c0_i32 = arith.constant 0 : i32
    %c0_i32_0 = arith.constant 0 : i32
    %c0_i32_1 = arith.constant 0 : i32
    %c0_i32_2 = arith.constant 0 : i32
    return %c0_i32, %c0_i32_0, %c0_i32_1 : i32, i32, i32
  }
  func.func @transform_4(%arg0: i32) -> (i32, i32, i32) {
    %c0_i32 = arith.constant 0 : i32
    %c0_i32_0 = arith.constant 0 : i32
    %c0_i32_1 = arith.constant 0 : i32
    %c0_i32_2 = arith.constant 0 : i32
    return %c0_i32, %c0_i32_0, %c0_i32_1 : i32, i32, i32
  }
  func.func @transform_5(%arg0: i32) -> (i32, i32, i32) {
    %c0_i32 = arith.constant 0 : i32
    %c0_i32_0 = arith.constant 0 : i32
    %c0_i32_1 = arith.constant 0 : i32
    %c0_i32_2 = arith.constant 0 : i32
    return %c0_i32, %c0_i32_0, %c0_i32_1 : i32, i32, i32
  }
  func.func @transform_6(%arg0: i32) -> (i32, i32, i32) {
    %c0_i32 = arith.constant 0 : i32
    %c0_i32_0 = arith.constant 0 : i32
    %c0_i32_1 = arith.constant 0 : i32
    %c0_i32_2 = arith.constant 0 : i32
    return %c0_i32, %c0_i32_0, %c0_i32_1 : i32, i32, i32
  }
  func.func @transform_7(%arg0: i32) -> (i32, i32, i32) {
    %c0_i32 = arith.constant 0 : i32
    %c0_i32_0 = arith.constant 0 : i32
    %c0_i32_1 = arith.constant 0 : i32
    %c0_i32_2 = arith.constant 0 : i32
    return %c0_i32, %c0_i32_0, %c0_i32_1 : i32, i32, i32
  }
  func.func @transform_8(%arg0: i32) -> (i32, i32, i32) {
    %c0_i32 = arith.constant 0 : i32
    %c0_i32_0 = arith.constant 0 : i32
    %c0_i32_1 = arith.constant 0 : i32
    %c0_i32_2 = arith.constant 0 : i32
    return %c0_i32, %c0_i32_0, %c0_i32_1 : i32, i32, i32
  }
  func.func @transform_9(%arg0: i32) -> (i32, i32, i32) {
    %c0_i32 = arith.constant 0 : i32
    %c0_i32_0 = arith.constant 0 : i32
    %c0_i32_1 = arith.constant 0 : i32
    %c0_i32_2 = arith.constant 0 : i32
    return %c0_i32, %c0_i32_0, %c0_i32_1 : i32, i32, i32
  }
  func.func @transform_10(%arg0: i32) -> (i32, i32, i32) {
    %c0_i32 = arith.constant 0 : i32
    %c0_i32_0 = arith.constant 0 : i32
    %c0_i32_1 = arith.constant 0 : i32
    %c0_i32_2 = arith.constant 0 : i32
    return %c0_i32, %c0_i32_0, %c0_i32_1 : i32, i32, i32
  }
  func.func @transform_11(%arg0: i32) -> (i32, i32, i32) {
    %c0_i32 = arith.constant 0 : i32
    %c0_i32_0 = arith.constant 0 : i32
    %c0_i32_1 = arith.constant 0 : i32
    %c0_i32_2 = arith.constant 0 : i32
    return %c0_i32, %c0_i32_0, %c0_i32_1 : i32, i32, i32
  }
  func.func @transform_12(%arg0: i32) -> (i32, i32, i32) {
    %c0_i32 = arith.constant 0 : i32
    %c0_i32_0 = arith.constant 0 : i32
    %c0_i32_1 = arith.constant 0 : i32
    %c0_i32_2 = arith.constant 0 : i32
    return %c0_i32, %c0_i32_0, %c0_i32_1 : i32, i32, i32
  }
  func.func @transform_13(%arg0: i32) -> (i32, i32) {
    %c0_i32 = arith.constant 0 : i32
    %c0_i32_0 = arith.constant 0 : i32
    %c0_i32_1 = arith.constant 0 : i32
    return %c0_i32, %c0_i32_0 : i32, i32
  }
  func.func @transform_14(%arg0: i32) -> (i32, i32) {
    %c0_i32 = arith.constant 0 : i32
    %c0_i32_0 = arith.constant 0 : i32
    %c0_i32_1 = arith.constant 0 : i32
    return %c0_i32, %c0_i32_0 : i32, i32
  }
  func.func @transform_15(%arg0: i32) -> (i32, i32) {
    %c0_i32 = arith.constant 0 : i32
    %c0_i32_0 = arith.constant 0 : i32
    %c0_i32_1 = arith.constant 0 : i32
    return %c0_i32, %c0_i32_0 : i32, i32
  }
  func.func @transform_16(%arg0: i32) -> (i32, i32) {
    %c0_i32 = arith.constant 0 : i32
    %c0_i32_0 = arith.constant 0 : i32
    return %arg0, %c0_i32 : i32, i32
  }
}

</mosaic_0001>

<bundles_post_ra>
// kernel: tpu_custom_call.1
= control target key start
LH: loop header
LB: loop body
LE: loop exit
PB: predicated region body
PF: predicated region fallthrough
CT: control target
= control target key end

     0   :  { %s14458_s0 = inlined_call_operand.hbm [shape: bf16[1,1,320], index: 0, kind: input, shape index: {}]   ;;  %s14459_s1 = inlined_call_operand.<no memory space> [shape: f32[1,1,1], index: 1, kind: input, shape index: {}]   ;;  %s14460_s3 = inlined_call_operand.hbm [shape: bf16[3,320,320], index: 3, kind: input, shape index: {}]   ;;  %s14461_s4 = inlined_call_operand.vmem [shape: f32[3,1,320], index: 4, kind: input, shape index: {}]   ;;  %s14462_s5 = inlined_call_operand.hbm [shape: bf16[3,320,320], index: 5, kind: input, shape index: {}]   ;;  %s14463_s6 = inlined_call_operand.vmem [shape: f32[3,1,320], index: 6, kind: input, shape index: {}]   ;;  %s14464_s7 = inlined_call_operand.hbm [shape: bf16[3,320,320], index: 7, kind: input, shape index: {}]   ;;  %s14465_s8 = inlined_call_operand.vmem [shape: f32[3,1,320], index: 8, kind: input, shape index: {}]   ;;  %s14466_s9 = inlined_call_operand.hbm [shape: bf16[3,320,320], index: 9, kind: input, shape index: {}]   ;;  %s14467_s10 = inlined_call_operand.vmem [shape: f32[3,1,320], index: 10, kind: input, shape index: {}]   ;;  %s14468_s11 = inlined_call_operand.hbm [shape: bf16[3,320,320], index: 11, kind: input, shape index: {}]   ;;  %s14469_s12 = inlined_call_operand.vmem [shape: f32[3,1,320], index: 12, kind: input, shape index: {}]   ;;  %s14470_s13 = inlined_call_operand.hbm [shape: bf16[320,320], index: 13, kind: input, shape index: {}]   ;;  %s14471_s14 = inlined_call_operand.vmem [shape: f32[1,320], index: 14, kind: input, shape index: {}]   ;;  %s14472_s15 = inlined_call_operand.vmem [shape: f32[1,320], index: 15, kind: input, shape index: {}]   ;;  %s14473_s16 = inlined_call_operand.hbm [shape: f32[1,384], index: 16, kind: output, shape index: {}]   ;;  %s14474_s2 = inlined_call_operand.<no memory space> [shape: f32[1,1,1], index: 2, kind: input, shape index: {}]  }
   0x1   :  { %14476 = sst [smem:[#allocation22_spill]] %s14458_s0  ;;  %v21_v0 = vstv %s14459_s1  ;;  %v23_v1 = vstv %s14474_s2 }
   0x2   :  { %22 = vst [vmem:[#allocation2] sm:$0x1] %v21_v0  ;;  %24 = vst [vmem:[#allocation3] sm:$0x1] %v23_v1 }
   0x3   :  { %25 = vsyncpa [#allocation5], 0 }
   0x4   :  { %26 = vsyncpa [#allocation8], 0 }
   0x5   :  { %27 = vsyncpa [#allocation11], 0 }
   0x6   :  { %28 = vsyncpa [#allocation14], 0 }
   0x7   :  { %29 = vsyncpa [#allocation6], 0  ;;  %s13639_s25 = smov [#allocation7]   ;;  %s13453_s29 = scalar_lea.hbm %s14460_s3, 23040 }
   0x8   :  { %s49_s26 = sshll.u32 %s13639_s25, 4  ;;  %p13454_p0 = scmp.ne.s32.totalorder %s14460_s3, %s13453_s29  ;;  %s50_s26 = int_to_ptr.vmem [resolvable:$true] %s49_s26 }
   0x9   :  { %p13457_p1 = scmp.lt.u32.totalorder %s13453_s29, %s14460_s3 }
   0xb   :  { %p13459_p2 = pnand %p13457_p1, %p13454_p0 }
   0xd   :  { %13462 = shalt.err (!%p13459_p2)
}
   0xe   :  { %s13463_s17 = scalar_lea.vmem %s50_s26, 23040  ;;  %p13468_p4 = scmp.lt.s32.totalorder %s50_s26, %s50_s26 }
   0xf   :  { %p13464_p3 = scmp.ne.s32.totalorder %s50_s26, %s13463_s17  ;;  %p13469_p5 = scmp.lt.s32.totalorder %s13463_s17, %s13463_s17 }
  0x11   :  { %p13470_p6 = por %p13469_p5, %p13468_p4 }
  0x13   :  { %p13471_p7 = pnand %p13470_p6, %p13464_p3 }
  0x15   :  { %13474 = shalt.err (!%p13471_p7)
}
  0x16   :  { %s13640_s18 = smov 192   ;;  %s13641_s19 = smov 12  }
  0x17   :  { %55 = dma.hbm_to_vmem [thread:$0]  %s14460_s3, 23040, %s50_s26, [#allocation8], %s13640_s18, %s13640_s18, %s13641_s19  }
  0x18   :  { %s13642_s22 = smov [#allocation10]   ;;  %s13643_s24 = smov [#allocation13]  }
  0x19   :  { %s77_s23 = sshll.u32 %s13642_s22, 4  ;;  %s105_s25 = sshll.u32 %s13643_s24, 4  ;;  %s78_s23 = int_to_ptr.vmem [resolvable:$true] %s77_s23  ;;  %s106_s25 = int_to_ptr.vmem [resolvable:$true] %s105_s25 }
  0x1a   :  { %s13475_s29 = scalar_lea.hbm %s14464_s7, 23040 }
  0x1b   :  { %p13476_p8 = scmp.ne.s32.totalorder %s14464_s7, %s13475_s29  ;;  %p13479_p9 = scmp.lt.u32.totalorder %s13475_s29, %s14464_s7 }
  0x1d   :  { %p13481_p10 = pnand %p13479_p9, %p13476_p8 }
  0x1f   :  { %13484 = shalt.err (!%p13481_p10)
}
  0x20   :  { %s13485_s3 = scalar_lea.vmem %s78_s23, 23040  ;;  %p13490_p12 = scmp.lt.s32.totalorder %s78_s23, %s78_s23 }
  0x21   :  { %p13486_p11 = scmp.ne.s32.totalorder %s78_s23, %s13485_s3  ;;  %p13491_p13 = scmp.lt.s32.totalorder %s13485_s3, %s13485_s3 }
  0x23   :  { %p13492_p0 = por %p13491_p13, %p13490_p12 }
  0x25   :  { %p13493_p1 = pnand %p13492_p0, %p13486_p11 }
  0x27   :  { %13496 = shalt.err (!%p13493_p1)
}
  0x28   :  { %83 = dma.hbm_to_vmem [thread:$0]  %s14464_s7, 23040, %s78_s23, [#allocation11], %s13640_s18, %s13640_s18, %s13641_s19  }
  0x29   :  { %s13497_s22 = scalar_lea.hbm %s14468_s11, 23040 }
  0x2a   :  { %p13498_p2 = scmp.ne.s32.totalorder %s14468_s11, %s13497_s22  ;;  %p13501_p3 = scmp.lt.u32.totalorder %s13497_s22, %s14468_s11 }
  0x2c   :  { %p13503_p4 = pnand %p13501_p3, %p13498_p2 }
  0x2e   :  { %13506 = shalt.err (!%p13503_p4)
}
  0x2f   :  { %s13507_s30 = scalar_lea.vmem %s106_s25, 23040  ;;  %p13512_p6 = scmp.lt.s32.totalorder %s106_s25, %s106_s25 }
  0x30   :  { %p13508_p5 = scmp.ne.s32.totalorder %s106_s25, %s13507_s30  ;;  %p13513_p7 = scmp.lt.s32.totalorder %s13507_s30, %s13507_s30 }
  0x32   :  { %p13514_p8 = por %p13513_p7, %p13512_p6 }
  0x34   :  { %p13515_p9 = pnand %p13514_p8, %p13508_p5 }
  0x36   :  { %13518 = shalt.err (!%p13515_p9)
}
  0x37   :  { %111 = dma.hbm_to_vmem [thread:$0]  %s14468_s11, 23040, %s106_s25, [#allocation14], %s13640_s18, %s13640_s18, %s13641_s19  }
  0x38   :  { %s13644_s1 = smov [#allocation4]   ;;  %s13645_s2 = smov [#allocation9]  }
  0x39   :  { %s36_s0 = sshll.u32 %s13644_s1, 4  ;;  %s63_s3 = sshll.u32 %s13645_s2, 4  ;;  %s37_s0 = int_to_ptr.vmem [resolvable:$true] %s36_s0  ;;  %s64_s3 = int_to_ptr.vmem [resolvable:$true] %s63_s3 }
  0x3a   :  { %s14477_s20 = sld [smem:[#allocation22_spill]] }
  0x40   :  { %s13519_s21 = scalar_lea.hbm %s14477_s20, 48 }
  0x41   :  { %p13520_p10 = scmp.ne.s32.totalorder %s14477_s20, %s13519_s21  ;;  %p13523_p11 = scmp.lt.u32.totalorder %s13519_s21, %s14477_s20 }
  0x43   :  { %p13525_p12 = pnand %p13523_p11, %p13520_p10 }
  0x45   :  { %13528 = shalt.err (!%p13525_p12)
}
  0x46   :  { %s13529_s11 = scalar_lea.vmem %s37_s0, 48  ;;  %s13533_s25 = scalar_lea.vmem %s37_s0, 64 }
  0x47   :  { %p13530_p13 = scmp.ne.s32.totalorder %s37_s0, %s13529_s11  ;;  %p13534_p0 = scmp.lt.s32.totalorder %s37_s0, %s37_s0 }
  0x48   :  { %p13535_p1 = scmp.lt.s32.totalorder %s13533_s25, %s13529_s11 }
  0x4a   :  { %p13536_p2 = por %p13535_p1, %p13534_p0 }
  0x4c   :  { %p13537_p3 = pnand %p13536_p2, %p13530_p13 }
  0x4e   :  { %13540 = shalt.err (!%p13537_p3)
}
  0x4f   :  { %39 = dma.hbm_to_vmem [thread:$0]  %s14477_s20, 48, %s37_s0, [#allocation5]  }
  0x50   :  { %s13541_s1 = scalar_lea.hbm %s14462_s5, 23040 }
  0x51   :  { %p13542_p4 = scmp.ne.s32.totalorder %s14462_s5, %s13541_s1  ;;  %p13545_p5 = scmp.lt.u32.totalorder %s13541_s1, %s14462_s5 }
  0x53   :  { %p13547_p6 = pnand %p13545_p5, %p13542_p4 }
  0x55   :  { %13550 = shalt.err (!%p13547_p6)
}
  0x56   :  { %s13551_s22 = scalar_lea.vmem %s64_s3, 23040  ;;  %p13556_p8 = scmp.lt.s32.totalorder %s64_s3, %s64_s3 }
  0x57   :  { %p13552_p7 = scmp.ne.s32.totalorder %s64_s3, %s13551_s22  ;;  %p13557_p9 = scmp.lt.s32.totalorder %s13551_s22, %s13551_s22 }
  0x59   :  { %p13558_p10 = por %p13557_p9, %p13556_p8 }
  0x5b   :  { %p13559_p11 = pnand %p13558_p10, %p13552_p7 }
  0x5d   :  { %13562 = shalt.err (!%p13559_p11)
}
  0x5e   :  { %69 = dma.hbm_to_vmem [thread:$0]  %s14462_s5, 23040, %s64_s3, [#allocation8], %s13640_s18, %s13640_s18, %s13641_s19  }
  0x5f   :  { %s13646_s24 = smov [#allocation12]   ;;  %s13647_s28 = smov [#allocation15]  }
  0x60   :  { %s91_s27 = sshll.u32 %s13646_s24, 4  ;;  %s119_s11 = sshll.u32 %s13647_s28, 4  ;;  %s92_s27 = int_to_ptr.vmem [resolvable:$true] %s91_s27  ;;  %s120_s11 = int_to_ptr.vmem [resolvable:$true] %s119_s11 }
  0x61   :  { %s13563_s30 = scalar_lea.hbm %s14466_s9, 23040 }
  0x62   :  { %p13564_p12 = scmp.ne.s32.totalorder %s14466_s9, %s13563_s30  ;;  %p13567_p13 = scmp.lt.u32.totalorder %s13563_s30, %s14466_s9 }
  0x64   :  { %p13569_p0 = pnand %p13567_p13, %p13564_p12 }
  0x66   :  { %13572 = shalt.err (!%p13569_p0)
}
  0x67   :  { %s13573_s5 = scalar_lea.vmem %s92_s27, 23040  ;;  %p13578_p2 = scmp.lt.s32.totalorder %s92_s27, %s92_s27 }
  0x68   :  { %p13574_p1 = scmp.ne.s32.totalorder %s92_s27, %s13573_s5  ;;  %p13579_p3 = scmp.lt.s32.totalorder %s13573_s5, %s13573_s5 }
  0x6a   :  { %p13580_p4 = por %p13579_p3, %p13578_p2 }
  0x6c   :  { %p13581_p5 = pnand %p13580_p4, %p13574_p1 }
  0x6e   :  { %13584 = shalt.err (!%p13581_p5)
}
  0x6f   :  { %97 = dma.hbm_to_vmem [thread:$0]  %s14466_s9, 23040, %s92_s27, [#allocation11], %s13640_s18, %s13640_s18, %s13641_s19  }
  0x70   :  { %s13585_s22 = scalar_lea.hbm %s14470_s13, 7680 }
  0x71   :  { %p13586_p6 = scmp.ne.s32.totalorder %s14470_s13, %s13585_s22  ;;  %p13589_p7 = scmp.lt.u32.totalorder %s13585_s22, %s14470_s13 }
  0x73   :  { %p13591_p8 = pnand %p13589_p7, %p13586_p6 }
  0x75   :  { %13594 = shalt.err (!%p13591_p8)
}
  0x76   :  { %s13595_s25 = scalar_lea.vmem %s120_s11, 7680  ;;  %p13600_p10 = scmp.lt.s32.totalorder %s120_s11, %s120_s11 }
  0x77   :  { %p13596_p9 = scmp.ne.s32.totalorder %s120_s11, %s13595_s25  ;;  %p13601_p11 = scmp.lt.s32.totalorder %s13595_s25, %s13595_s25 }
  0x79   :  { %p13602_p12 = por %p13601_p11, %p13600_p10 }
  0x7b   :  { %p13603_p13 = pnand %p13602_p12, %p13596_p9 }
  0x7d   :  { %13606 = shalt.err (!%p13603_p13)
}
  0x7e   :  { %125 = dma.hbm_to_vmem [thread:$0]  %s14470_s13, 7680, %s120_s11, [#allocation14], %s13640_s18, %s13640_s18, %s13641_s19  }
  0x7f   :  { %13629 = dma.done.wait [#allocation5], 48  }
  0x80   :  { %13630 = vsyncadd [#allocation5], 4294967248 }
  0x81   :  { %13631 = dma.done.wait [#allocation8], 46080  }
  0x82   :  { %13632 = vsyncadd [#allocation8], 4294921216 }
  0x83   :  { %13633 = dma.done.wait [#allocation11], 46080  }
  0x84   :  { %13634 = vsyncadd [#allocation11], 4294921216 }
  0x85   :  { %13635 = dma.done.wait [#allocation14], 30720  }
  0x86   :  { %13636 = vsyncadd [#allocation14], 4294936576  ;;  %v13648_v2 = vmov 0   ;;  %v12146_v3 = vld [vmem:[#allocation7 + $0x4] ss:$12 sps:$4 sm:$0xff]   ;;  %v240_v9 = vlaneseq  ;;  %vm582_vm0 = vcmask 523264  }
  0x87   :  { %659 = vmatprep.mubr.bf16.mxu1 %v13648_v2  ;;  %12134 = vset.pattern.permute.xlu1 %v13648_v2  ;;  %v12148_v4 = vld [vmem:[#allocation7 + $0x184] ss:$12 sps:$4 sm:$0xff]   ;;  %v12150_v5 = vld [vmem:[#allocation7] ss:$12 sps:$4 sm:$0xff]   ;;  %v13649_v7 = vmov 1966171168  }
  0x88   :  { %12145 = vset.pattern.permute.xlu0 %v13648_v2  ;;  %586 = vmatprep.subr.bf16.mxu0 %v12146_v3  ;;  %v12151_v6 = vld [vmem:[#allocation7 + $0x180] ss:$12 sps:$4 sm:$0xff]   ;;  %v238_v8 = vunpack.c.l.s4 %v13649_v7  ;;  %v12152_v10 = vld [vmem:[#allocation7 + $0x1c] ss:$12 sps:$4 sm:$0xff]   ;;  %v12156_v12 = vld [vmem:[#allocation7 + $0x18] ss:$12 sps:$4 sm:$0xff]  }
  0x89   :  { %627 = vmatprep.subr.bf16.mxu1 %v12148_v4  ;;  %587 = vmatpush1.bf16.msra.mxu0 %v12150_v5  ;;  %v12154_v11 = vld [vmem:[#allocation7 + $0x19c] ss:$12 sps:$4 sm:$0xff]   ;;  %v12157_v13 = vld [vmem:[#allocation7 + $0x198] ss:$12 sps:$4 sm:$0xff]   ;;  %v12158_v14 = vld [vmem:[#allocation7 + $0x34] ss:$12 sps:$4 sm:$0xff]  }
  0x8a   :  { %628 = vmatpush1.bf16.msra.mxu1 %v12151_v6  ;;  %588 = vmatprep.subr.bf16.mxu0 %v12152_v10  ;;  %v239_v15 = vunpack.c.0.s8 %v238_v8  ;;  %v13852_v16 = vshrl.u32 %v240_v9, 7  ;;  %v12160_v17 = vld [vmem:[#allocation7 + $0x1b4] ss:$12 sps:$4 sm:$0xff]   ;;  %v12162_v18 = vld [vmem:[#allocation7 + $0x30] ss:$12 sps:$4 sm:$0xff]   ;;  %v13650_v3 = vmov 0.0  }
  0x8b   :  { %629 = vmatprep.subr.bf16.mxu1 %v12154_v11  ;;  %v12163_v19 = vld [vmem:[#allocation7 + $0x1b0] ss:$12 sps:$4 sm:$0xff]   ;;  %v12164_v20 = vld [vmem:[#allocation7 + $0x4c] ss:$12 sps:$4 sm:$0xff]   ;;  %v12168_v22 = vld [vmem:[#allocation7 + $0x48] ss:$12 sps:$4 sm:$0xff]  }
  0x8c   :  { %v12166_v21 = vld [vmem:[#allocation7 + $0x1cc] ss:$12 sps:$4 sm:$0xff]   ;;  %v13855_v23 = vsub.s32 %v239_v15, %v13852_v16  ;;  %v12169_v24 = vld [vmem:[#allocation7 + $0x1c8] ss:$12 sps:$4 sm:$0xff]   ;;  %v12170_v25 = vld [vmem:[#allocation7 + $0x64] ss:$12 sps:$4 sm:$0xff]  }
  0x8d   :  { %589 = vmatpush1.bf16.msra.mxu0 %v12156_v12  ;;  %v12172_v26 = vld [vmem:[#allocation7 + $0xc8] ss:$12 sps:$4 sm:$0xff]   ;;  %v13452_v27 = vld.sshfl [vmem:[#allocation4] sm:$0x13 pattern:$0x75316420] }
  0x8e   :  { %630 = vmatpush1.bf16.msra.mxu1 %v12157_v13  ;;  %590 = vmatprep.subr.bf16.mxu0 %v12158_v14  ;;  %v12173_v28 = vld [vmem:[#allocation7 + $0x60] ss:$12 sps:$4 sm:$0xff]   ;;  %v13858_v29 = vrot.slane %v13452_v27, %v13855_v23  ;;  %v12174_v30 = vld [vmem:[#allocation7 + $0x8] ss:$12 sps:$4 sm:$0xff]   ;;  %v244_v31 = vcombine.high %v13452_v27, %v13452_v27  ;;  %v12178_v36 = vld [vmem:[#allocation7 + $0x78] ss:$12 sps:$4 sm:$0xff]  }
  0x8f   :  { %631 = vmatprep.subr.bf16.mxu1 %v12160_v17  ;;  %v12175_v32 = vld [vmem:[#allocation7 + $0x7c] ss:$12 sps:$4 sm:$0xff]   ;;  %v12177_v34 = vld [vmem:[#allocation7 + $0xe0] ss:$12 sps:$4 sm:$0xff]   ;;  %v12182_v39 = vld [vmem:[#allocation7 + $0xf8] ss:$12 sps:$4 sm:$0xff]  }
  0x90   :  { %v13862_v33 = vcombine.high %v13858_v29, %v13858_v29  ;;  %v13865_v35 = vrot.slane %v244_v31, %v13855_v23  ;;  %v12179_v37 = vld [vmem:[#allocation7 + $0x20] ss:$12 sps:$4 sm:$0xff]   ;;  %v12183_v40 = vld [vmem:[#allocation7 + $0x90] ss:$12 sps:$4 sm:$0xff]   ;;  %v12184_v41 = vld [vmem:[#allocation7 + $0x38] ss:$12 sps:$4 sm:$0xff]  }
  0x91   :  { %591 = vmatpush1.bf16.msra.mxu0 %v12162_v18  ;;  %v12180_v38 = vld [vmem:[#allocation7 + $0x94] ss:$12 sps:$4 sm:$0xff]   ;;  %v12185_v42 = vld [vmem:[#allocation7 + $0xac] ss:$12 sps:$4 sm:$0xff]   ;;  %v12187_v43 = vld [vmem:[#allocation7 + $0x110] ss:$12 sps:$4 sm:$0xff]  }
  0x92   :  { %632 = vmatpush1.bf16.msra.mxu1 %v12163_v19  ;;  %592 = vmatprep.subr.bf16.mxu0 %v12164_v20  ;;  %v12188_v44 = vld [vmem:[#allocation7 + $0xa8] ss:$12 sps:$4 sm:$0xff]   ;;  %v12189_v45 = vld [vmem:[#allocation7 + $0x50] ss:$12 sps:$4 sm:$0xff]   ;;  %v12193_v48 = vld [vmem:[#allocation7 + $0xc0] ss:$12 sps:$4 sm:$0xff]  }
  0x93   :  { %633 = vmatprep.subr.bf16.mxu1 %v12166_v21  ;;  %618 = vmatprep.mubr.bf16.mxu0 %v13865_v35  ;;  %v12190_v46 = vld [vmem:[#allocation7 + $0xc4] ss:$12 sps:$4 sm:$0xff]   ;;  %v12192_v47 = vld [vmem:[#allocation7 + $0x128] ss:$12 sps:$4 sm:$0xff]   ;;  %v12197_v51 = vld [vmem:[#allocation7 + $0x140] ss:$12 sps:$4 sm:$0xff]  }
  0x94   :  { %v12194_v49 = vld [vmem:[#allocation7 + $0x68] ss:$12 sps:$4 sm:$0xff]   ;;  %v12198_v52 = vld [vmem:[#allocation7 + $0xd8] ss:$12 sps:$4 sm:$0xff]   ;;  %v12199_v53 = vld [vmem:[#allocation7 + $0x80] ss:$12 sps:$4 sm:$0xff]  }
  0x95   :  { %593 = vmatpush1.bf16.msra.mxu0 %v12168_v22  ;;  %v12195_v50 = vld [vmem:[#allocation7 + $0xdc] ss:$12 sps:$4 sm:$0xff]   ;;  %v12200_v54 = vld [vmem:[#allocation7 + $0xf4] ss:$12 sps:$4 sm:$0xff]   ;;  %v12202_v55 = vld [vmem:[#allocation7 + $0x158] ss:$12 sps:$4 sm:$0xff]  }
  0x96   :  { %634 = vmatpush1.bf16.msra.mxu1 %v12169_v24  ;;  %594 = vmatprep.subr.bf16.mxu0 %v12170_v25  ;;  %v12203_v56 = vld [vmem:[#allocation7 + $0xf0] ss:$12 sps:$4 sm:$0xff]   ;;  %v12204_v57 = vld [vmem:[#allocation7 + $0x98] ss:$12 sps:$4 sm:$0xff]   ;;  %v12208_v60 = vld [vmem:[#allocation7 + $0x108] ss:$12 sps:$4 sm:$0xff]  }
  0x97   :  { %11489 = vmatprep.subr.bf16.mxu1 %v12172_v26  ;;  %v12205_v58 = vld [vmem:[#allocation7 + $0x10c] ss:$12 sps:$4 sm:$0xff]   ;;  %v12207_v59 = vld [vmem:[#allocation7 + $0x170] ss:$12 sps:$4 sm:$0xff]   ;;  %v12213_v0 = vld [vmem:[#allocation7 + $0x188] ss:$12 sps:$4 sm:$0xff]  }
  0x98   :  { %v12209_v61 = vld [vmem:[#allocation7 + $0xb0] ss:$12 sps:$4 sm:$0xff]   ;;  %v12212_v63 = vld [vmem:[#allocation7 + $0x120] ss:$12 sps:$4 sm:$0xff]   ;;  %v12216_v4 = vld [vmem:[#allocation7 + $0x138] ss:$12 sps:$4 sm:$0xff]  }
  0x99   :  { %595 = vmatpush1.bf16.msra.mxu0 %v12173_v28  ;;  %10526 = vmatmul.mubr.msk.bf16.vlgmr.msra.gmra.mrb[0].mxu1 %vm582_vm0, %v13862_v33  ;;  %v12210_v62 = vld [vmem:[#allocation7 + $0x124] ss:$12 sps:$4 sm:$0xff]   ;;  %v12214_v1 = vld [vmem:[#allocation7 + $0x13c] ss:$12 sps:$4 sm:$0xff]   ;;  %v12217_v5 = vld [vmem:[#allocation7 + $0x1a0] ss:$12 sps:$4 sm:$0xff]  }
  0x9a   :  { %11490 = vmatpush3.bf16.msra.mxu1 %v12174_v30  ;;  %596 = vmatprep.subr.bf16.mxu0 %v12175_v32  ;;  %v12218_v6 = vld [vmem:[#allocation7 + $0x154] ss:$12 sps:$4 sm:$0xff]   ;;  %vm13651_vm1 = vmmov 0   ;;  %v12220_v7 = vld [vmem:[#allocation7 + $0x150] ss:$12 sps:$4 sm:$0xff]   ;;  %vm1940_vm2 = vcmask 261120  }
  0x9b   :  { %11491 = vmatprep.subr.bf16.mxu1 %v12177_v34  ;;  %700 = vmatprep.mubr.bf16.mxu1 %v13865_v35  ;;  %v12221_v8 = vld [vmem:[#allocation7 + $0x1b8] ss:$12 sps:$4 sm:$0xff]   ;;  %v12224_v11 = vld [vmem:[#allocation7 + $0x168] ss:$12 sps:$4 sm:$0xff]   ;;  %v12225_v12 = vld [vmem:[#allocation7 + $0x1d0] ss:$12 sps:$4 sm:$0xff]  }
  0x9c   :  { %v12222_v10 = vld [vmem:[#allocation7 + $0x16c] ss:$12 sps:$4 sm:$0xff]   ;;  %v12228_v13 = vld [vmem:[#allocation9 + $0x4] ss:$12 sps:$4 sm:$0xff]   ;;  %v12234_v18 = vld [vmem:[#allocation9 + $0x1c] ss:$12 sps:$4 sm:$0xff]  }
  0x9d   :  { %597 = vmatpush1.bf16.msra.mxu0 %v12178_v36  ;;  %v12231_v14 = vld [vmem:[#allocation9 + $0x184] ss:$12 sps:$4 sm:$0xff]   ;;  %v12226_v15 = vld [vmem:[#allocation9] ss:$12 sps:$4 sm:$0xff]   ;;  %v12237_v19 = vld [vmem:[#allocation9 + $0x19c] ss:$12 sps:$4 sm:$0xff]  }
  0x9e   :  { %11492 = vmatpush3.bf16.msra.mxu1 %v12179_v37  ;;  %598 = vmatprep.subr.bf16.mxu0 %v12180_v38  ;;  %v12229_v17 = vld [vmem:[#allocation9 + $0x180] ss:$12 sps:$4 sm:$0xff]   ;;  %v12232_v20 = vld [vmem:[#allocation9 + $0x18] ss:$12 sps:$4 sm:$0xff]   ;;  %v12238_v25 = vld [vmem:[#allocation9 + $0x30] ss:$12 sps:$4 sm:$0xff]  }
  0x9f   :  { %11493 = vmatprep.subr.bf16.mxu1 %v12182_v39  ;;  %v12235_v21 = vld [vmem:[#allocation9 + $0x198] ss:$12 sps:$4 sm:$0xff]   ;;  %v12240_v22 = vld [vmem:[#allocation9 + $0x34] ss:$12 sps:$4 sm:$0xff]   ;;  %v12241_v26 = vld [vmem:[#allocation9 + $0x1b0] ss:$12 sps:$4 sm:$0xff]  }
  0xa0   :  { %v12243_v24 = vld [vmem:[#allocation9 + $0x1b4] ss:$12 sps:$4 sm:$0xff]   ;;  %v12246_v27 = vld [vmem:[#allocation9 + $0x4c] ss:$12 sps:$4 sm:$0xff]   ;;  %v12252_v32 = vld [vmem:[#allocation9 + $0x64] ss:$12 sps:$4 sm:$0xff]  }
  0xa1   :  { %599 = vmatpush1.bf16.msra.mxu0 %v12183_v40  ;;  %v12249_v28 = vld [vmem:[#allocation9 + $0x1cc] ss:$12 sps:$4 sm:$0xff]   ;;  %v12244_v30 = vld [vmem:[#allocation9 + $0x48] ss:$12 sps:$4 sm:$0xff]   ;;  %s13652_s19 = smov 96   ;;  %vm1998_vm3 = vcmask 1040384  }
  0xa2   :  { %11494 = vmatpush3.bf16.msra.mxu1 %v12184_v41  ;;  %600 = vmatprep.subr.bf16.mxu0 %v12185_v42  ;;  %v12247_v31 = vld [vmem:[#allocation9 + $0x1c8] ss:$12 sps:$4 sm:$0xff]   ;;  %v12250_v36 = vld [vmem:[#allocation9 + $0x60] ss:$12 sps:$4 sm:$0xff]   ;;  %v12255_v40 = vld [vmem:[#allocation9 + $0x78] ss:$12 sps:$4 sm:$0xff]  }
  0xa3   :  { %11495 = vmatprep.subr.bf16.mxu1 %v12187_v43  ;;  %v12253_v34 = vld [vmem:[#allocation9 + $0xc8] ss:$12 sps:$4 sm:$0xff]   ;;  %v12258_v39 = vld [vmem:[#allocation9 + $0xe0] ss:$12 sps:$4 sm:$0xff]   ;;  %v12263_v43 = vld [vmem:[#allocation9 + $0xf8] ss:$12 sps:$4 sm:$0xff]  }
  0xa4   :  { %v12254_v37 = vld [vmem:[#allocation9 + $0x8] ss:$12 sps:$4 sm:$0xff]   ;;  %v12259_v41 = vld [vmem:[#allocation9 + $0x20] ss:$12 sps:$4 sm:$0xff]   ;;  %vm2054_vm4 = vcmask 785408   ;;  %vm1994_vm5 = vcmask 7168  }
  0xa5   :  { %601 = vmatpush1.bf16.msra.mxu0 %v12188_v44  ;;  %v12257_v38 = vld [vmem:[#allocation9 + $0x7c] ss:$12 sps:$4 sm:$0xff]   ;;  %v12262_v42 = vld [vmem:[#allocation9 + $0x94] ss:$12 sps:$4 sm:$0xff]   ;;  %s13653_s23 = smov 32   ;;  %vm10445_vm9 = vcmp.lt.s32.totalorder %v240_v9, 384 }
  0xa6   :  { %11496 = vmatpush3.bf16.msra.mxu1 %v12189_v45  ;;  %602 = vmatprep.subr.bf16.mxu0 %v12190_v46  ;;  %v12260_v44 = vld [vmem:[#allocation9 + $0x90] ss:$12 sps:$4 sm:$0xff]   ;;  %v12264_v45 = vld [vmem:[#allocation9 + $0x38] ss:$12 sps:$4 sm:$0xff]  }
  0xa7   :  { %11497 = vmatprep.subr.bf16.mxu1 %v12192_v47  ;;  %v12267_v46 = vld [vmem:[#allocation9 + $0xac] ss:$12 sps:$4 sm:$0xff]   ;;  %v12268_v47 = vld [vmem:[#allocation9 + $0x110] ss:$12 sps:$4 sm:$0xff]  }
  0xa9   :  { %603 = vmatpush1.bf16.msra.mxu0 %v12193_v48  ;;  %v12265_v48 = vld [vmem:[#allocation9 + $0xa8] ss:$12 sps:$4 sm:$0xff]  }
  0xaa   :  { %11498 = vmatpush3.bf16.msra.mxu1 %v12194_v49  ;;  %604 = vmatprep.subr.bf16.mxu0 %v12195_v50  ;;  %v12269_v49 = vld [vmem:[#allocation9 + $0x50] ss:$12 sps:$4 sm:$0xff]  }
  0xab   :  { %11499 = vmatprep.subr.bf16.mxu1 %v12197_v51  ;;  %v12272_v50 = vld [vmem:[#allocation9 + $0xc4] ss:$12 sps:$4 sm:$0xff]   ;;  %v12273_v51 = vld [vmem:[#allocation9 + $0x128] ss:$12 sps:$4 sm:$0xff]  }
  0xad   :  { %605 = vmatpush1.bf16.msra.mxu0 %v12198_v52  ;;  %v12270_v52 = vld [vmem:[#allocation9 + $0xc0] ss:$12 sps:$4 sm:$0xff]  }
  0xae   :  { %11500 = vmatpush3.bf16.msra.mxu1 %v12199_v53  ;;  %606 = vmatprep.subr.bf16.mxu0 %v12200_v54  ;;  %v12274_v53 = vld [vmem:[#allocation9 + $0x68] ss:$12 sps:$4 sm:$0xff]  }
  0xaf   :  { %11501 = vmatprep.subr.bf16.mxu1 %v12202_v55  ;;  %v12277_v54 = vld [vmem:[#allocation9 + $0xdc] ss:$12 sps:$4 sm:$0xff]   ;;  %v12278_v55 = vld [vmem:[#allocation9 + $0x140] ss:$12 sps:$4 sm:$0xff]  }
  0xb1   :  { %607 = vmatpush1.bf16.msra.mxu0 %v12203_v56  ;;  %v12275_v56 = vld [vmem:[#allocation9 + $0xd8] ss:$12 sps:$4 sm:$0xff]  }
  0xb2   :  { %11502 = vmatpush3.bf16.msra.mxu1 %v12204_v57  ;;  %608 = vmatprep.subr.bf16.mxu0 %v12205_v58  ;;  %v12279_v57 = vld [vmem:[#allocation9 + $0x80] ss:$12 sps:$4 sm:$0xff]  }
  0xb3   :  { %11503 = vmatprep.subr.bf16.mxu1 %v12207_v59  ;;  %v12282_v58 = vld [vmem:[#allocation9 + $0xf4] ss:$12 sps:$4 sm:$0xff]   ;;  %v12283_v59 = vld [vmem:[#allocation9 + $0x158] ss:$12 sps:$4 sm:$0xff]  }
  0xb5   :  { %609 = vmatpush1.bf16.msra.mxu0 %v12208_v60  ;;  %v12280_v60 = vld [vmem:[#allocation9 + $0xf0] ss:$12 sps:$4 sm:$0xff]  }
  0xb6   :  { %11504 = vmatpush3.bf16.msra.mxu1 %v12209_v61  ;;  %610 = vmatprep.subr.bf16.mxu0 %v12210_v62  ;;  %v12284_v61 = vld [vmem:[#allocation9 + $0x98] ss:$12 sps:$4 sm:$0xff]  }
  0xb7   :  { %11921 = vmatprep.subr.bf16.mxu1 %v13650_v3  ;;  %v12287_v62 = vld [vmem:[#allocation9 + $0x10c] ss:$12 sps:$4 sm:$0xff]  }
  0xb9   :  { %611 = vmatpush1.bf16.msra.mxu0 %v12212_v63  ;;  %701 = vmatmul.mubr.bf16.vlgmr.msra.gmra.mrb[4].mxu1 %v13858_v29  ;;  %v12288_v63 = vld [vmem:[#allocation9 + $0x170] ss:$12 sps:$4 sm:$0xff]  }
  0xba   :  { %11922 = vmatpush3.bf16.msra.mxu1 %v12213_v0  ;;  %612 = vmatprep.subr.bf16.mxu0 %v12214_v1  ;;  %v12285_v0 = vld [vmem:[#allocation9 + $0x108] ss:$12 sps:$4 sm:$0xff]   ;;  %v12289_v1 = vld [vmem:[#allocation9 + $0xb0] ss:$12 sps:$4 sm:$0xff]  }
  0xbb   :  { %11923 = vmatprep.subr.bf16.mxu1 %v13650_v3  ;;  %11929 = vmatprep.mubr.msk.bf16.mxu1 %vm13651_vm1, %v13650_v3 }
  0xbd   :  { %613 = vmatpush1.bf16.msra.mxu0 %v12216_v4  ;;  %v12292_v4 = vld [vmem:[#allocation9 + $0x124] ss:$12 sps:$4 sm:$0xff]  }
  0xbe   :  { %11924 = vmatpush3.bf16.msra.mxu1 %v12217_v5  ;;  %614 = vmatprep.subr.bf16.mxu0 %v12218_v6  ;;  %v12290_v5 = vld [vmem:[#allocation9 + $0x120] ss:$12 sps:$4 sm:$0xff]   ;;  %v12293_v6 = vld [vmem:[#allocation9 + $0x188] ss:$12 sps:$4 sm:$0xff]  }
  0xbf   :  { %11925 = vmatprep.subr.bf16.mxu1 %v13650_v3 }
  0xc1   :  { %615 = vmatpush1.bf16.msra.mxu0 %v12220_v7  ;;  %v12296_v7 = vld [vmem:[#allocation9 + $0x13c] ss:$12 sps:$4 sm:$0xff]  }
  0xc2   :  { %11926 = vmatpush3.bf16.msra.mxu1 %v12221_v8  ;;  %616 = vmatprep.subr.bf16.mxu0 %v12222_v10  ;;  %v12294_v8 = vld [vmem:[#allocation9 + $0x138] ss:$12 sps:$4 sm:$0xff]   ;;  %v12297_v10 = vld [vmem:[#allocation9 + $0x1a0] ss:$12 sps:$4 sm:$0xff]  }
  0xc3   :  { %11927 = vmatprep.subr.bf16.mxu1 %v13650_v3 }
  0xc5   :  { %617 = vmatpush1.bf16.msra.mxu0 %v12224_v11  ;;  %v12300_v11 = vld [vmem:[#allocation9 + $0x154] ss:$12 sps:$4 sm:$0xff]  }
  0xc6   :  { %11928 = vmatpush3.bf16.msra.mxu1 %v12225_v12  ;;  %1171 = vmatprep.subr.bf16.mxu0 %v12228_v13  ;;  %v12298_v12 = vld [vmem:[#allocation9 + $0x150] ss:$12 sps:$4 sm:$0xff]   ;;  %v12301_v13 = vld [vmem:[#allocation9 + $0x1b8] ss:$12 sps:$4 sm:$0xff]  }
  0xc7   :  { %1212 = vmatprep.subr.bf16.mxu1 %v12231_v14  ;;  %v12304_v14 = vld [vmem:[#allocation9 + $0x16c] ss:$12 sps:$4 sm:$0xff]  }
  0xc8   :  { %619 = vmatmul.mubr.bf16.vlgmr.msra.gmra.mrb[0].mxu0 %v13858_v29 }
  0xc9   :  { %11930 = vmatmul.mubr.msk.bf16.vlgmr.msra.gmra.mrb[8].mxu1 %vm582_vm0, %v13862_v33  ;;  %1172 = vmatpush1.bf16.msra.mxu0 %v12226_v15  ;;  %v12302_v15 = vld [vmem:[#allocation9 + $0x168] ss:$12 sps:$4 sm:$0xff]  }
  0xca   :  { %1213 = vmatpush1.bf16.msra.mxu1 %v12229_v17  ;;  %1173 = vmatprep.subr.bf16.mxu0 %v12234_v18  ;;  %v12305_v17 = vld [vmem:[#allocation9 + $0x1d0] ss:$12 sps:$4 sm:$0xff]  }
  0xcb   :  { %1214 = vmatprep.subr.bf16.mxu1 %v12237_v19  ;;  %1244 = vmatprep.mubr.bf16.mxu1 %v13648_v2  ;;  %v12308_v18 = vld [vmem:[#allocation10 + $0x4] ss:$12 sps:$4 sm:$0xff]   ;;  %v12306_v19 = vld [vmem:[#allocation10] ss:$12 sps:$4 sm:$0xff]  }
  0xcc   :  { %1203 = vmatprep.mubr.bf16.mxu0 %v13865_v35 }
  0xcd   :  { %1174 = vmatpush1.bf16.msra.mxu0 %v12232_v20  ;;  %v12311_v20 = vld [vmem:[#allocation10 + $0x1c] ss:$12 sps:$4 sm:$0xff]  }
  0xce   :  { %1215 = vmatpush1.bf16.msra.mxu1 %v12235_v21  ;;  %1175 = vmatprep.subr.bf16.mxu0 %v12240_v22  ;;  %v12309_v21 = vld [vmem:[#allocation10 + $0x18] ss:$12 sps:$4 sm:$0xff]   ;;  %v12314_v22 = vld [vmem:[#allocation10 + $0x34] ss:$12 sps:$4 sm:$0xff]  }
  0xcf   :  { %1216 = vmatprep.subr.bf16.mxu1 %v12243_v24  ;;  %v12312_v24 = vld [vmem:[#allocation10 + $0x30] ss:$12 sps:$4 sm:$0xff]  }
  0xd1   :  { %1176 = vmatpush1.bf16.msra.mxu0 %v12238_v25  ;;  %v12317_v25 = vld [vmem:[#allocation10 + $0x4c] ss:$12 sps:$4 sm:$0xff]  }
  0xd2   :  { %1217 = vmatpush1.bf16.msra.mxu1 %v12241_v26  ;;  %1177 = vmatprep.subr.bf16.mxu0 %v12246_v27  ;;  %v12342_v26 = vld [vmem:[#allocation10 + $0x180] ss:$12 sps:$4 sm:$0xff]   ;;  %v12344_v27 = vld [vmem:[#allocation10 + $0x184] ss:$12 sps:$4 sm:$0xff]  }
  0xd3   :  { %1218 = vmatprep.subr.bf16.mxu1 %v12249_v28  ;;  %v12350_v28 = vld [vmem:[#allocation10 + $0x19c] ss:$12 sps:$4 sm:$0xff]  }
  0xd5   :  { %1178 = vmatpush1.bf16.msra.mxu0 %v12244_v30  ;;  %v12315_v30 = vld [vmem:[#allocation10 + $0x48] ss:$12 sps:$4 sm:$0xff]  }
  0xd6   :  { %1219 = vmatpush1.bf16.msra.mxu1 %v12247_v31  ;;  %1179 = vmatprep.subr.bf16.mxu0 %v12252_v32  ;;  %v12348_v31 = vld [vmem:[#allocation10 + $0x198] ss:$12 sps:$4 sm:$0xff]  }
  0xd7   :  { %11516 = vmatprep.subr.bf16.mxu1 %v12253_v34  ;;  %v12320_v32 = vld [vmem:[#allocation10 + $0x64] ss:$12 sps:$4 sm:$0xff]   ;;  %v12356_v34 = vld [vmem:[#allocation10 + $0x1b4] ss:$12 sps:$4 sm:$0xff]  }
  0xd9   :  { %1180 = vmatpush1.bf16.msra.mxu0 %v12250_v36  ;;  %10588 = vmatmul.mubr.msk.bf16.vlgmr.msra.gmra.mrb[12].mxu1 %vm582_vm0, %v13862_v33  ;;  %v12318_v36 = vld [vmem:[#allocation10 + $0x60] ss:$12 sps:$4 sm:$0xff]  }
  0xda   :  { %11517 = vmatpush3.bf16.msra.mxu1 %v12254_v37  ;;  %1181 = vmatprep.subr.bf16.mxu0 %v12257_v38  ;;  %v12354_v37 = vld [vmem:[#allocation10 + $0x1b0] ss:$12 sps:$4 sm:$0xff]  }
  0xdb   :  { %11518 = vmatprep.subr.bf16.mxu1 %v12258_v39  ;;  %1285 = vmatprep.mubr.bf16.mxu1 %v13865_v35  ;;  %v12323_v38 = vld [vmem:[#allocation10 + $0x7c] ss:$12 sps:$4 sm:$0xff]   ;;  %v12321_v39 = vld [vmem:[#allocation10 + $0x78] ss:$12 sps:$4 sm:$0xff]  }
  0xdd   :  { %1182 = vmatpush1.bf16.msra.mxu0 %v12255_v40  ;;  %v12326_v40 = vld [vmem:[#allocation10 + $0x94] ss:$12 sps:$4 sm:$0xff]  }
  0xde   :  { %11519 = vmatpush3.bf16.msra.mxu1 %v12259_v41  ;;  %1183 = vmatprep.subr.bf16.mxu0 %v12262_v42  ;;  %v12324_v41 = vld [vmem:[#allocation10 + $0x90] ss:$12 sps:$4 sm:$0xff]   ;;  %v12329_v42 = vld [vmem:[#allocation10 + $0xac] ss:$12 sps:$4 sm:$0xff]  }
  0xdf   :  { %11520 = vmatprep.subr.bf16.mxu1 %v12263_v43  ;;  %v12327_v43 = vld [vmem:[#allocation10 + $0xa8] ss:$12 sps:$4 sm:$0xff]  }
  0xe1   :  { %1184 = vmatpush1.bf16.msra.mxu0 %v12260_v44  ;;  %v12362_v44 = vld [vmem:[#allocation10 + $0x1cc] ss:$12 sps:$4 sm:$0xff]  }
  0xe2   :  { %11521 = vmatpush3.bf16.msra.mxu1 %v12264_v45  ;;  %1185 = vmatprep.subr.bf16.mxu0 %v12267_v46  ;;  %v12332_v45 = vld [vmem:[#allocation10 + $0xc4] ss:$12 sps:$4 sm:$0xff]   ;;  %v12360_v46 = vld [vmem:[#allocation10 + $0x1c8] ss:$12 sps:$4 sm:$0xff]  }
  0xe3   :  { %11522 = vmatprep.subr.bf16.mxu1 %v12268_v47  ;;  %v12366_v47 = vld [vmem:[#allocation10 + $0xc8] ss:$12 sps:$4 sm:$0xff]  }
  0xe5   :  { %1186 = vmatpush1.bf16.msra.mxu0 %v12265_v48  ;;  %v12367_v48 = vld [vmem:[#allocation10 + $0x8] ss:$12 sps:$4 sm:$0xff]  }
  0xe6   :  { %11523 = vmatpush3.bf16.msra.mxu1 %v12269_v49  ;;  %1187 = vmatprep.subr.bf16.mxu0 %v12272_v50  ;;  %v12330_v49 = vld [vmem:[#allocation10 + $0xc0] ss:$12 sps:$4 sm:$0xff]  }
  0xe7   :  { %11524 = vmatprep.subr.bf16.mxu1 %v12273_v51  ;;  %v12368_v50 = vld [vmem:[#allocation10 + $0xe0] ss:$12 sps:$4 sm:$0xff]   ;;  %v12335_v51 = vld [vmem:[#allocation10 + $0xdc] ss:$12 sps:$4 sm:$0xff]  }
  0xe9   :  { %1188 = vmatpush1.bf16.msra.mxu0 %v12270_v52  ;;  %v12369_v52 = vld [vmem:[#allocation10 + $0x20] ss:$12 sps:$4 sm:$0xff]  }
  0xea   :  { %11525 = vmatpush3.bf16.msra.mxu1 %v12274_v53  ;;  %1189 = vmatprep.subr.bf16.mxu0 %v12277_v54  ;;  %v12333_v53 = vld [vmem:[#allocation10 + $0xd8] ss:$12 sps:$4 sm:$0xff]  }
  0xeb   :  { %11526 = vmatprep.subr.bf16.mxu1 %v12278_v55  ;;  %v12370_v54 = vld [vmem:[#allocation10 + $0xf8] ss:$12 sps:$4 sm:$0xff]   ;;  %v12338_v55 = vld [vmem:[#allocation10 + $0xf4] ss:$12 sps:$4 sm:$0xff]  }
  0xed   :  { %1190 = vmatpush1.bf16.msra.mxu0 %v12275_v56  ;;  %v12371_v56 = vld [vmem:[#allocation10 + $0x38] ss:$12 sps:$4 sm:$0xff]  }
  0xee   :  { %11527 = vmatpush3.bf16.msra.mxu1 %v12279_v57  ;;  %1191 = vmatprep.subr.bf16.mxu0 %v12282_v58  ;;  %v12372_v57 = vld [vmem:[#allocation10 + $0x110] ss:$12 sps:$4 sm:$0xff]  }
  0xef   :  { %11528 = vmatprep.subr.bf16.mxu1 %v12283_v59  ;;  %v12336_v58 = vld [vmem:[#allocation10 + $0xf0] ss:$12 sps:$4 sm:$0xff]   ;;  %v12341_v59 = vld [vmem:[#allocation10 + $0x10c] ss:$12 sps:$4 sm:$0xff]  }
  0xf1   :  { %1192 = vmatpush1.bf16.msra.mxu0 %v12280_v60  ;;  %v12373_v60 = vld [vmem:[#allocation10 + $0x50] ss:$12 sps:$4 sm:$0xff]  }
  0xf2   :  { %11529 = vmatpush3.bf16.msra.mxu1 %v12284_v61  ;;  %1193 = vmatprep.subr.bf16.mxu0 %v12287_v62  ;;  %v12374_v61 = vld [vmem:[#allocation10 + $0x128] ss:$12 sps:$4 sm:$0xff]  }
  0xf3   :  { %11530 = vmatprep.subr.bf16.mxu1 %v12288_v63  ;;  %v12339_v62 = vld [vmem:[#allocation10 + $0x108] ss:$12 sps:$4 sm:$0xff]   ;;  %v12347_v63 = vld [vmem:[#allocation10 + $0x124] ss:$12 sps:$4 sm:$0xff]  }
  0xf5   :  { %1194 = vmatpush1.bf16.msra.mxu0 %v12285_v0  ;;  %v12376_v0 = vld [vmem:[#allocation10 + $0x140] ss:$12 sps:$4 sm:$0xff]  }
  0xf6   :  { %11531 = vmatpush3.bf16.msra.mxu1 %v12289_v1  ;;  %1195 = vmatprep.subr.bf16.mxu0 %v12292_v4  ;;  %v12345_v1 = vld [vmem:[#allocation10 + $0x120] ss:$12 sps:$4 sm:$0xff]   ;;  %v12353_v4 = vld [vmem:[#allocation10 + $0x13c] ss:$12 sps:$4 sm:$0xff]  }
  0xf7   :  { %11933 = vmatprep.subr.bf16.mxu1 %v13650_v3 }
  0xf9   :  { %1196 = vmatpush1.bf16.msra.mxu0 %v12290_v5  ;;  %1286 = vmatmul.mubr.bf16.vlgmr.msra.gmra.mrb[16].mxu1 %v13858_v29  ;;  %v12377_v5 = vld [vmem:[#allocation10 + $0x80] ss:$12 sps:$4 sm:$0xff]  }
  0xfa   :  { %11934 = vmatpush3.bf16.msra.mxu1 %v12293_v6  ;;  %1197 = vmatprep.subr.bf16.mxu0 %v12296_v7  ;;  %v12378_v6 = vld [vmem:[#allocation10 + $0x158] ss:$12 sps:$4 sm:$0xff]  }
  0xfb   :  { %11935 = vmatprep.subr.bf16.mxu1 %v13650_v3  ;;  %11941 = vmatprep.mubr.msk.bf16.mxu1 %vm13651_vm1, %v13650_v3  ;;  %v12351_v7 = vld [vmem:[#allocation10 + $0x138] ss:$12 sps:$4 sm:$0xff]  }
  0xfd   :  { %1198 = vmatpush1.bf16.msra.mxu0 %v12294_v8  ;;  %v12359_v8 = vld [vmem:[#allocation10 + $0x154] ss:$12 sps:$4 sm:$0xff]  }
  0xfe   :  { %11936 = vmatpush3.bf16.msra.mxu1 %v12297_v10  ;;  %1199 = vmatprep.subr.bf16.mxu0 %v12300_v11  ;;  %v12379_v10 = vld [vmem:[#allocation10 + $0x98] ss:$12 sps:$4 sm:$0xff]   ;;  %v12380_v11 = vld [vmem:[#allocation10 + $0x170] ss:$12 sps:$4 sm:$0xff]  }
  0xff   :  { %11937 = vmatprep.subr.bf16.mxu1 %v13650_v3 }
 0x101   :  { %1200 = vmatpush1.bf16.msra.mxu0 %v12298_v12  ;;  %v12357_v12 = vld [vmem:[#allocation10 + $0x150] ss:$12 sps:$4 sm:$0xff]  }
 0x102   :  { %11938 = vmatpush3.bf16.msra.mxu1 %v12301_v13  ;;  %1201 = vmatprep.subr.bf16.mxu0 %v12304_v14  ;;  %v12365_v13 = vld [vmem:[#allocation10 + $0x16c] ss:$12 sps:$4 sm:$0xff]   ;;  %v12381_v14 = vld [vmem:[#allocation10 + $0xb0] ss:$12 sps:$4 sm:$0xff]  }
 0x103   :  { %11939 = vmatprep.subr.bf16.mxu1 %v13650_v3 }
 0x105   :  { %1202 = vmatpush1.bf16.msra.mxu0 %v12302_v15  ;;  %v12363_v15 = vld [vmem:[#allocation10 + $0x168] ss:$12 sps:$4 sm:$0xff]  }
 0x106   :  { %11940 = vmatpush3.bf16.msra.mxu1 %v12305_v17  ;;  %1756 = vmatprep.subr.bf16.mxu0 %v12308_v18  ;;  %v12382_v17 = vld [vmem:[#allocation10 + $0x188] ss:$12 sps:$4 sm:$0xff]   ;;  %v12383_v18 = vld [vmem:[#allocation10 + $0x1a0] ss:$12 sps:$4 sm:$0xff]  }
 0x107   :  { %1797 = vmatprep.subr.bf16.mxu1 %v12344_v27 }
 0x108   :  { %1204 = vmatmul.mubr.bf16.vlgmr.msra.gmra.mrb[4].mxu0 %v13858_v29 }
 0x109   :  { %11942 = vmatmul.mubr.msk.bf16.vlgmr.msra.gmra.mrb[20].mxu1 %vm582_vm0, %v13862_v33  ;;  %1757 = vmatpush1.bf16.msra.mxu0 %v12306_v19  ;;  %v12384_v19 = vld [vmem:[#allocation10 + $0x1b8] ss:$12 sps:$4 sm:$0xff]  }
 0x10a   :  { %1758 = vmatprep.subr.bf16.mxu0 %v12311_v20  ;;  %1829 = vmatprep.mubr.bf16.mxu1 %v13648_v2  ;;  %v12385_v20 = vld [vmem:[#allocation10 + $0x1d0] ss:$12 sps:$4 sm:$0xff]  }
 0x10b   :  { %1788 = vmatprep.mubr.bf16.mxu0 %v13865_v35  ;;  %1798 = vmatpush1.bf16.msra.mxu1 %v12342_v26 }
 0x10c   :  { %1799 = vmatprep.subr.bf16.mxu1 %v12350_v28 }
 0x10d   :  { %1759 = vmatpush1.bf16.msra.mxu0 %v12309_v21 }
 0x10e   :  { %1760 = vmatprep.subr.bf16.mxu0 %v12314_v22 }
 0x10f   :  { %1800 = vmatpush1.bf16.msra.mxu1 %v12348_v31  ;;  %v13913_v31 = vsub.s32 0, %v13852_v16 }
 0x110   :  { %1801 = vmatprep.subr.bf16.mxu1 %v12356_v34  ;;  %v13922_v34 = vsub.s32 2, %v13852_v16 }
 0x111   :  { %1761 = vmatpush1.bf16.msra.mxu0 %v12312_v24 }
 0x112   :  { %1762 = vmatprep.subr.bf16.mxu0 %v12317_v25 }
 0x113   :  { %1802 = vmatpush1.bf16.msra.mxu1 %v12354_v37 }
 0x114   :  { %1803 = vmatprep.subr.bf16.mxu1 %v12362_v44 }
 0x115   :  { %1763 = vmatpush1.bf16.msra.mxu0 %v12315_v30 }
 0x116   :  { %1764 = vmatprep.subr.bf16.mxu0 %v12320_v32  ;;  %v235_v32 = vld [vmem:[%s14461_s4] sm:$0x7] }
 0x117   :  { %1804 = vmatpush1.bf16.msra.mxu1 %v12360_v46 }
 0x118   :  { %11543 = vmatprep.subr.bf16.mxu1 %v12366_v47 }
 0x119   :  { %1765 = vmatpush1.bf16.msra.mxu0 %v12318_v36  ;;  %v752_v36 = vrot.slane %v235_v32, %v13913_v31 }
 0x11a   :  { %1766 = vmatprep.subr.bf16.mxu0 %v12323_v38  ;;  %10650 = vmatmul.mubr.msk.bf16.vlgmr.msra.gmra.mrb[24].mxu1 %vm582_vm0, %v13862_v33 }
 0x11b   :  { %11544 = vmatpush3.bf16.msra.mxu1 %v12367_v48  ;;  %1870 = vmatprep.mubr.bf16.mxu1 %v13865_v35  ;;  %v12375_v35 = vld [vmem:[#allocation10 + $0x68] ss:$12 sps:$4 sm:$0xff]  }
 0x11c   :  { %11545 = vmatprep.subr.bf16.mxu1 %v12368_v50 }
 0x11d   :  { %1767 = vmatpush1.bf16.msra.mxu0 %v12321_v39 }
 0x11e   :  { %1768 = vmatprep.subr.bf16.mxu0 %v12326_v40 }
 0x11f   :  { %11546 = vmatpush3.bf16.msra.mxu1 %v12369_v52 }
 0x120   :  { %11547 = vmatprep.subr.bf16.mxu1 %v12370_v54 }
 0x121   :  { %1769 = vmatpush1.bf16.msra.mxu0 %v12324_v41 }
 0x122   :  { %1770 = vmatprep.subr.bf16.mxu0 %v12329_v42 }
 0x123   :  { %11548 = vmatpush3.bf16.msra.mxu1 %v12371_v56 }
 0x124   :  { %11549 = vmatprep.subr.bf16.mxu1 %v12372_v57 }
 0x125   :  { %1771 = vmatpush1.bf16.msra.mxu0 %v12327_v43  ;;  %v760_v43 = vrot.slane %v235_v32, %v13922_v34 }
 0x126   :  { %1772 = vmatprep.subr.bf16.mxu0 %v12332_v45 }
 0x127   :  { %11550 = vmatpush3.bf16.msra.mxu1 %v12373_v60 }
 0x128   :  { %11551 = vmatprep.subr.bf16.mxu1 %v12374_v61 }
 0x129   :  { %1773 = vmatpush1.bf16.msra.mxu0 %v12330_v49 }
 0x12a   :  { %1774 = vmatprep.subr.bf16.mxu0 %v12335_v51 }
 0x12b   :  { %11552 = vmatpush3.bf16.msra.mxu1 %v12375_v35  ;;  %v850_v35 = vld [vmem:[%s14463_s6] sm:$0x7] }
 0x12c   :  { %11553 = vmatprep.subr.bf16.mxu1 %v12376_v0  ;;  %v1337_v0 = vrot.slane %v850_v35, %v13913_v31 }
 0x12d   :  { %1775 = vmatpush1.bf16.msra.mxu0 %v12333_v53 }
 0x12e   :  { %1776 = vmatprep.subr.bf16.mxu0 %v12338_v55 }
 0x12f   :  { %11554 = vmatpush3.bf16.msra.mxu1 %v12377_v5 }
 0x130   :  { %11555 = vmatprep.subr.bf16.mxu1 %v12378_v6 }
 0x131   :  { %1777 = vmatpush1.bf16.msra.mxu0 %v12336_v58 }
 0x132   :  { %1778 = vmatprep.subr.bf16.mxu0 %v12341_v59 }
 0x133   :  { %11556 = vmatpush3.bf16.msra.mxu1 %v12379_v10  ;;  %v1345_v10 = vrot.slane %v850_v35, %v13922_v34 }
 0x134   :  { %11557 = vmatprep.subr.bf16.mxu1 %v12380_v11 }
 0x135   :  { %1779 = vmatpush1.bf16.msra.mxu0 %v12339_v62 }
 0x136   :  { %1780 = vmatprep.subr.bf16.mxu0 %v12347_v63 }
 0x137   :  { %11558 = vmatpush3.bf16.msra.mxu1 %v12381_v14 }
 0x138   :  { %11945 = vmatprep.subr.bf16.mxu1 %v13650_v3 }
 0x139   :  { %1781 = vmatpush1.bf16.msra.mxu0 %v12345_v1 }
 0x13a   :  { %1782 = vmatprep.subr.bf16.mxu0 %v12353_v4  ;;  %1871 = vmatmul.mubr.bf16.vlgmr.msra.gmra.mrb[28].mxu1 %v13858_v29 }
 0x13b   :  { %11946 = vmatpush3.bf16.msra.mxu1 %v12382_v17  ;;  %11953 = vmatprep.mubr.msk.bf16.mxu1 %vm13651_vm1, %v13650_v3 }
 0x13c   :  { %11947 = vmatprep.subr.bf16.mxu1 %v13650_v3 }
 0x13d   :  { %1783 = vmatpush1.bf16.msra.mxu0 %v12351_v7 }
 0x13e   :  { %1784 = vmatprep.subr.bf16.mxu0 %v12359_v8 }
 0x13f   :  { %11948 = vmatpush3.bf16.msra.mxu1 %v12383_v18 }
 0x140   :  { %11949 = vmatprep.subr.bf16.mxu1 %v13650_v3 }
 0x141   :  { %1785 = vmatpush1.bf16.msra.mxu0 %v12357_v12 }
 0x142   :  { %1786 = vmatprep.subr.bf16.mxu0 %v12365_v13 }
 0x143   :  { %11950 = vmatpush3.bf16.msra.mxu1 %v12384_v19 }
 0x144   :  { %11951 = vmatprep.subr.bf16.mxu1 %v13650_v3 }
 0x145   :  { %1787 = vmatpush1.bf16.msra.mxu0 %v12363_v15 }
 0x147   :  { %11952 = vmatpush3.bf16.msra.mxu1 %v12385_v20 }
 0x148   :  { %1789 = vmatmul.mubr.bf16.vlgmr.msra.gmra.mrb[8].mxu0 %v13858_v29 }
 0x14a   :  { %11954 = vmatmul.mubr.msk.bf16.vlgmr.msra.gmra.mrb[32].mxu1 %vm582_vm0, %v13862_v33  ;;  %v13919_v33 = vsub.s32 1, %v13852_v16 }
 0x14b   :  { %2039 = vmatprep.mubr.bf16.mxu1 %v13648_v2 }
 0x14c   :  { %v756_v38 = vrot.slane %v235_v32, %v13919_v33  ;;  %v1341_v4 = vrot.slane %v850_v35, %v13919_v33  ;;  %v1435_v32 = vld [vmem:[%s14465_s8] sm:$0x7] }
 0x16c   :  { %v661_v21 = vpop.f32.mrb[0].mxu1 }
 0x16d   :  { %v663_v22 = vpop.f32.mrb[1].mxu1 }
 0x16e   :  { %v665_v24 = vpop.f32.mrb[2].mxu1 }
 0x16f   :  { %v666_v25 = vpop.f32.mrb[3].mxu1 }
 0x18c   :  { %v11505_v26 = vpop.f32.mrb[4].mxu1 }
 0x18d   :  { %v11506_v29 = vpop.f32.mrb[5].mxu1 }
 0x18e   :  { %v11507_v27 = vadd.f32 %v11506_v29, %v11505_v26  ;;  %v11508_v28 = vpop.f32.mrb[6].mxu1 }
 0x18f   :  { %v11509_v30 = vpop.f32.mrb[7].mxu1 }
 0x19b   :  { %v620_v37 = vpop.f32.mrb[0].mxu0 }
 0x19c   :  { %v662_v39 = vadd.f32 %v661_v21, %v620_v37  ;;  %v742_v40 = vpop.f32.mrb[8].mxu1  ;;  %v622_v41 = vpop.f32.mrb[1].mxu0 }
 0x19d   :  { %v743_v42 = vadd.f32 %v11507_v27, %v742_v40  ;;  %v664_v44 = vadd.f32 %v663_v22, %v622_v41  ;;  %v624_v45 = vpop.f32.mrb[2].mxu0  ;;  %v11931_v46 = vpop.f32.mrb[9].mxu1  ;;  %v1922_v40 = vrot.slane %v1435_v32, %v13913_v31 }
 0x19e   :  { %v764_v47 = vadd.f32 %v752_v36, %v662_v39  ;;  %v625_v48 = vpop.f32.mrb[3].mxu0  ;;  %v745_v49 = vpop.f32.mrb[10].mxu1 }
 0x19f   :  { %v11932_v50 = vpop.f32.mrb[11].mxu1  ;;  %v765_v51 = vadd.f32 %v756_v38, %v664_v44  ;;  %v766_v52 = vadd.f32 %v760_v43, %v743_v42  ;;  %v1926_v43 = vrot.slane %v1435_v32, %v13919_v33 }
 0x1a0   :  { %v767_v25 = vpack.c.bf16 %v764_v47, %v764_v47 }
 0x1a1   :  { %v768_v53 = vpack.c.bf16 %v765_v51, %v765_v51  ;;  %v769_v54 = vpack.c.bf16 %v766_v52, %v766_v52  ;;  %v13946_v51 = vsel %vm1998_vm3, 65535, %v13648_v2 }
 0x1a3   :  { %2050 = vrot.lane.b32.xlu1 %v768_v53, %s13652_s19  ;;  %10653 = vmatprep.mubr.msk.bf16.mxu0 %vm1940_vm2, %v768_v53 }
 0x1a7   :  { %2052 = vrot.lane.b32.xlu1 %v769_v54, %s13652_s19 }
 0x1ac   :  { %v1246_v55 = vpop.f32.mrb[12].mxu1 }
 0x1ad   :  { %v1248_v56 = vpop.f32.mrb[13].mxu1 }
 0x1ae   :  { %v1250_v57 = vpop.f32.mrb[14].mxu1 }
 0x1af   :  { %v1251_v58 = vpop.f32.mrb[15].mxu1  ;;  %v1930_v57 = vrot.slane %v1435_v32, %v13922_v34 }
 0x1cc   :  { %v11532_v59 = vpop.f32.mrb[16].mxu1 }
 0x1cd   :  { %v11533_v60 = vpop.f32.mrb[17].mxu1 }
 0x1ce   :  { %v11534_v61 = vadd.f32 %v11533_v60, %v11532_v59  ;;  %v11535_v62 = vpop.f32.mrb[18].mxu1 }
 0x1cf   :  { %v11536_v63 = vpop.f32.mrb[19].mxu1 }
 0x1db   :  { %v1205_v1 = vpop.f32.mrb[4].mxu0 }
 0x1dc   :  { %v1247_v5 = vadd.f32 %v1246_v55, %v1205_v1  ;;  %v1327_v6 = vpop.f32.mrb[20].mxu1  ;;  %v1207_v7 = vpop.f32.mrb[5].mxu0 }
 0x1dd   :  { %v1328_v8 = vadd.f32 %v11534_v61, %v1327_v6  ;;  %v1249_v11 = vadd.f32 %v1248_v56, %v1207_v7  ;;  %v1209_v12 = vpop.f32.mrb[6].mxu0  ;;  %v11943_v13 = vpop.f32.mrb[21].mxu1 }
 0x1de   :  { %v1349_v14 = vadd.f32 %v1337_v0, %v1247_v5  ;;  %v1210_v15 = vpop.f32.mrb[7].mxu0  ;;  %v1330_v17 = vpop.f32.mrb[22].mxu1 }
 0x1df   :  { %v11944_v18 = vpop.f32.mrb[23].mxu1  ;;  %v1350_v19 = vadd.f32 %v1341_v4, %v1249_v11  ;;  %v1351_v20 = vadd.f32 %v1345_v10, %v1328_v8  ;;  %v153_v8 = vld [vmem:[#allocation2] sm:$0x1] }
 0x1e0   :  { %v1352_v22 = vpack.c.bf16 %v1349_v14, %v1349_v14 }
 0x1e1   :  { %v1353_v21 = vpack.c.bf16 %v1350_v19, %v1350_v19  ;;  %v1354_v24 = vpack.c.bf16 %v1351_v20, %v1351_v20 }
 0x1e3   :  { %2059 = vrot.lane.b32.xlu0 %v1353_v21, %s13652_s19  ;;  %10652 = vmatprep.subr.msk.bf16.mxu0 %vm1940_vm2, %v1353_v21 }
 0x1e4   :  { %1948 = vmatpush1.bf16.xpose.msra.mxu0 %v1352_v22 }
 0x1e7   :  { %2061 = vrot.lane.b32.xlu0 %v1354_v24, %s13652_s19 }
 0x1eb   :  { %1980 = vmatmul.mubr.bf16.vlgmr.msra.gmra.mrb[12].mxu0 %v767_v25 }
 0x1ed   :  { %v1831_v26 = vpop.f32.mrb[24].mxu1 }
 0x1ee   :  { %v1833_v29 = vpop.f32.mrb[25].mxu1 }
 0x1ef   :  { %v1835_v27 = vpop.f32.mrb[26].mxu1 }
 0x1f0   :  { %v1836_v28 = vpop.f32.mrb[27].mxu1 }
 0x20d   :  { %v11559_v36 = vpop.f32.mrb[28].mxu1 }
 0x20e   :  { %v11560_v38 = vpop.f32.mrb[29].mxu1 }
 0x20f   :  { %v11561_v39 = vadd.f32 %v11560_v38, %v11559_v36  ;;  %v11562_v41 = vpop.f32.mrb[30].mxu1 }
 0x210   :  { %v11563_v44 = vpop.f32.mrb[31].mxu1  ;;  %v12386_v41 = vld [vmem:[#allocation12] ss:$12 sps:$4 sm:$0xff]  }
 0x211   :  { %v12389_v44 = vld [vmem:[#allocation12 + $0x18] ss:$12 sps:$4 sm:$0xff]  }
 0x215   :  { %v2051_v30 = vpop.permute.xlu1 %2050 }
 0x219   :  { %v2053_v37 = vpop.permute.xlu1 %2052 }
 0x21a   :  { %10656 = vmatprep.mubr.msk.bf16.mxu0 %vm1940_vm2, %v2053_v37  ;;  %v2055_v5 = vsel %vm2054_vm4, %v2051_v30, %v2053_v37 }
 0x21b   :  { %v1790_v42 = vpop.f32.mrb[8].mxu0 }
 0x21c   :  { %v1832_v45 = vadd.f32 %v1831_v26, %v1790_v42  ;;  %v1792_v46 = vpop.f32.mrb[9].mxu0  ;;  %v12388_v42 = vld [vmem:[#allocation12 + $0x4] ss:$12 sps:$4 sm:$0xff]  }
 0x21d   :  { %v1834_v47 = vadd.f32 %v1833_v29, %v1792_v46  ;;  %v1794_v48 = vpop.f32.mrb[10].mxu0  ;;  %v1912_v58 = vpop.f32.mrb[32].mxu1 }
 0x21e   :  { %v1934_v49 = vadd.f32 %v1922_v40, %v1832_v45  ;;  %v1795_v50 = vpop.f32.mrb[11].mxu0  ;;  %v1913_v59 = vadd.f32 %v11561_v39, %v1912_v58  ;;  %v11955_v60 = vpop.f32.mrb[33].mxu1  ;;  %v12394_v45 = vld [vmem:[#allocation12 + $0x34] ss:$12 sps:$4 sm:$0xff]   ;;  %v12428_v58 = vld [vmem:[#allocation12 + $0x198] ss:$12 sps:$4 sm:$0xff]  }
 0x21f   :  { %v1935_v52 = vadd.f32 %v1926_v43, %v1834_v47  ;;  %v1915_v61 = vpop.f32.mrb[34].mxu1  ;;  %v12391_v43 = vld [vmem:[#allocation12 + $0x1c] ss:$12 sps:$4 sm:$0xff]   ;;  %v12398_v60 = vld [vmem:[#allocation12 + $0x60] ss:$12 sps:$4 sm:$0xff]  }
 0x220   :  { %v1937_v53 = vpack.c.bf16 %v1934_v49, %v1934_v49  ;;  %v1936_v62 = vadd.f32 %v1930_v57, %v1913_v59  ;;  %v11956_v63 = vpop.f32.mrb[35].mxu1  ;;  %v12392_v49 = vld [vmem:[#allocation12 + $0x30] ss:$12 sps:$4 sm:$0xff]   ;;  %v12436_v59 = vld [vmem:[#allocation12 + $0x1b4] ss:$12 sps:$4 sm:$0xff]  }
 0x221   :  { %v1938_v54 = vpack.c.bf16 %v1935_v52, %v1935_v52  ;;  %v12397_v52 = vld [vmem:[#allocation12 + $0x4c] ss:$12 sps:$4 sm:$0xff]   ;;  %v12400_v57 = vld [vmem:[#allocation12 + $0x64] ss:$12 sps:$4 sm:$0xff]   ;;  %v12403_v61 = vld [vmem:[#allocation12 + $0x7c] ss:$12 sps:$4 sm:$0xff]  }
 0x222   :  { %v2002_v55 = vand.u32 %v13946_v51, %v1937_v53  ;;  %v1939_v35 = vpack.c.bf16 %v1936_v62, %v1936_v62  ;;  %v12422_v53 = vld [vmem:[#allocation12 + $0x180] ss:$12 sps:$4 sm:$0xff]   ;;  %v12434_v62 = vld [vmem:[#allocation12 + $0x1b0] ss:$12 sps:$4 sm:$0xff]   ;;  %v12401_v63 = vld [vmem:[#allocation12 + $0x78] ss:$12 sps:$4 sm:$0xff]  }
 0x223   :  { %2120 = vrot.lane.b32.xlu0 %v1938_v54, %s13652_s19  ;;  %v2005_v56 = vand.u32 %v13946_v51, %v1938_v54  ;;  %v12424_v54 = vld [vmem:[#allocation12 + $0x184] ss:$12 sps:$4 sm:$0xff]  }
 0x224   :  { %2122 = vrot.lane.b32.xlu1 %v1939_v35, %s13652_s19  ;;  %v12406_v35 = vld [vmem:[#allocation12 + $0x94] ss:$12 sps:$4 sm:$0xff]  }
 0x225   :  { %2007 = vmatprep.subr.bf16.mxu1 %v2005_v56  ;;  %v12430_v56 = vld [vmem:[#allocation12 + $0x19c] ss:$12 sps:$4 sm:$0xff]  }
 0x226   :  { %2008 = vmatpush1.bf16.msra.mxu1 %v2002_v55  ;;  %v12395_v55 = vld [vmem:[#allocation12 + $0x48] ss:$12 sps:$4 sm:$0xff]  }
 0x255   :  { %v2060_v0 = vpop.permute.xlu0 %2059 }
 0x259   :  { %v2062_v1 = vpop.permute.xlu0 %2061 }
 0x25a   :  { %v2063_v4 = vsel %vm2054_vm4, %v2060_v0, %v2062_v1  ;;  %10655 = vmatprep.subr.msk.bf16.mxu0 %vm1940_vm2, %v2062_v1  ;;  %v12404_v0 = vld [vmem:[#allocation12 + $0x90] ss:$12 sps:$4 sm:$0xff]   ;;  %v12409_v1 = vld [vmem:[#allocation12 + $0xac] ss:$12 sps:$4 sm:$0xff]  }
 0x25b   :  { %2072 = vmatpush1.bf16.xpose.msra.mxu0 %v2063_v4  ;;  %v12407_v4 = vld [vmem:[#allocation12 + $0xa8] ss:$12 sps:$4 sm:$0xff]  }
 0x25c   :  { %2592 = vmatprep.subr.bf16.mxu0 %v12388_v42 }
 0x262   :  { %2104 = vmatmul.mubr.bf16.vlgmr.msra.gmra.mrb[16].mxu0 %v2055_v5  ;;  %v12412_v5 = vld [vmem:[#allocation12 + $0xc4] ss:$12 sps:$4 sm:$0xff]  }
 0x263   :  { %2593 = vmatpush1.bf16.msra.mxu0 %v12386_v41 }
 0x264   :  { %2594 = vmatprep.subr.bf16.mxu0 %v12391_v43  ;;  %v12447_v43 = vld [vmem:[#allocation12 + $0x8] ss:$12 sps:$4 sm:$0xff]  }
 0x267   :  { %2595 = vmatpush1.bf16.msra.mxu0 %v12389_v44 }
 0x268   :  { %2596 = vmatprep.subr.bf16.mxu0 %v12394_v45 }
 0x26b   :  { %2597 = vmatpush1.bf16.msra.mxu0 %v12392_v49 }
 0x26c   :  { %2598 = vmatprep.subr.bf16.mxu0 %v12397_v52  ;;  %v12471_v52 = vld [vmem:[#allocation13 + $0x1c] ss:$12 sps:$4 sm:$0xff]  }
 0x26f   :  { %2599 = vmatpush1.bf16.msra.mxu0 %v12395_v55  ;;  %v12474_v55 = vld [vmem:[#allocation13 + $0x34] ss:$12 sps:$4 sm:$0xff]  }
 0x270   :  { %2600 = vmatprep.subr.bf16.mxu0 %v12400_v57  ;;  %v12472_v57 = vld [vmem:[#allocation13 + $0x30] ss:$12 sps:$4 sm:$0xff]  }
 0x273   :  { %2601 = vmatpush1.bf16.msra.mxu0 %v12398_v60  ;;  %v12454_v60 = vld [vmem:[#allocation12 + $0x128] ss:$12 sps:$4 sm:$0xff]  }
 0x274   :  { %2602 = vmatprep.subr.bf16.mxu0 %v12403_v61  ;;  %v12475_v61 = vld [vmem:[#allocation13 + $0x48] ss:$12 sps:$4 sm:$0xff]  }
 0x277   :  { %2603 = vmatpush1.bf16.msra.mxu0 %v12401_v63  ;;  %v12455_v63 = vld [vmem:[#allocation12 + $0x68] ss:$12 sps:$4 sm:$0xff]  }
 0x278   :  { %2604 = vmatprep.subr.bf16.mxu0 %v12406_v35  ;;  %v12456_v35 = vld [vmem:[#allocation12 + $0x140] ss:$12 sps:$4 sm:$0xff]  }
 0x27b   :  { %2605 = vmatpush1.bf16.msra.mxu0 %v12404_v0  ;;  %v12478_v0 = vld [vmem:[#allocation13 + $0x60] ss:$12 sps:$4 sm:$0xff]  }
 0x27c   :  { %2606 = vmatprep.subr.bf16.mxu0 %v12409_v1  ;;  %v12483_v1 = vld [vmem:[#allocation13 + $0x7c] ss:$12 sps:$4 sm:$0xff]  }
 0x27f   :  { %2607 = vmatpush1.bf16.msra.mxu0 %v12407_v4  ;;  %v12457_v4 = vld [vmem:[#allocation12 + $0x80] ss:$12 sps:$4 sm:$0xff]  }
 0x280   :  { %2608 = vmatprep.subr.bf16.mxu0 %v12412_v5  ;;  %v12458_v5 = vld [vmem:[#allocation12 + $0x158] ss:$12 sps:$4 sm:$0xff]  }
 0x295   :  { %v2121_v19 = vpop.permute.xlu0 %2120 }
 0x296   :  { %v2123_v6 = vpop.permute.xlu1 %2122 }
 0x297   :  { %v2132_v7 = vand.u32 %v2123_v6, %v13946_v51  ;;  %v2124_v20 = vsel %vm2054_vm4, %v2121_v19, %v2123_v6  ;;  %v12410_v6 = vld [vmem:[#allocation12 + $0xc0] ss:$12 sps:$4 sm:$0xff]  }
 0x298   :  { %v2129_v24 = vand.u32 %v2124_v20, %v13946_v51  ;;  %2609 = vmatpush1.bf16.msra.mxu0 %v12410_v6  ;;  %v12439_v19 = vld [vmem:[#allocation12 + $0x154] ss:$12 sps:$4 sm:$0xff]   ;;  %v12437_v20 = vld [vmem:[#allocation12 + $0x150] ss:$12 sps:$4 sm:$0xff]   ;;  %v12481_v6 = vld [vmem:[#allocation13 + $0x78] ss:$12 sps:$4 sm:$0xff]  }
 0x299   :  { %2134 = vmatprep.subr.bf16.mxu1 %v2132_v7  ;;  %v12415_v7 = vld [vmem:[#allocation12 + $0xdc] ss:$12 sps:$4 sm:$0xff]  }
 0x29a   :  { %2610 = vmatprep.subr.bf16.mxu0 %v12415_v7  ;;  %v12486_v7 = vld [vmem:[#allocation13 + $0x94] ss:$12 sps:$4 sm:$0xff]  }
 0x2be   :  { %v1981_v10 = vpop.f32.mrb[12].mxu0 }
 0x2bf   :  { %v1982_v11 = vadd.f32 %v1981_v10, %v153_v8  ;;  %v1983_v12 = vpop.f32.mrb[13].mxu0  ;;  %v12418_v10 = vld [vmem:[#allocation12 + $0xf4] ss:$12 sps:$4 sm:$0xff]  }
 0x2c0   :  { %v1984_v13 = vpop.f32.mrb[14].mxu0  ;;  %v12421_v12 = vld [vmem:[#allocation12 + $0x10c] ss:$12 sps:$4 sm:$0xff]  }
 0x2c1   :  { %v1987_v14 = vsub.f32 %v1982_v11, %v1982_v11  ;;  %v1985_v15 = vpop.f32.mrb[15].mxu0  ;;  %v12416_v11 = vld [vmem:[#allocation12 + $0xf0] ss:$12 sps:$4 sm:$0xff]   ;;  %v12419_v13 = vld [vmem:[#allocation12 + $0x108] ss:$12 sps:$4 sm:$0xff]  }
 0x2c2   :  { %v12425_v15 = vld [vmem:[#allocation12 + $0x120] ss:$12 sps:$4 sm:$0xff]  }
 0x2c3   :  { %v1988_v17 = vmul.f32 1.442695, %v1987_v14  ;;  %v12427_v14 = vld [vmem:[#allocation12 + $0x124] ss:$12 sps:$4 sm:$0xff]  }
 0x2c5   :  { %13426 = vpow2.f32 %v1988_v17  ;;  %v12433_v17 = vld [vmem:[#allocation12 + $0x13c] ss:$12 sps:$4 sm:$0xff]  }
 0x2cf   :  { %v13427_v18 = vpop.eup %13426 }
 0x2d0   :  { %13428 = vrcp.f32 %v13427_v18 }
 0x2da   :  { %v13429_v21 = vpop.eup %13428 }
 0x2db   :  { %v1992_v22 = vmul.f32 %v13429_v21, %v13427_v18  ;;  %v12431_v18 = vld [vmem:[#allocation12 + $0x138] ss:$12 sps:$4 sm:$0xff]  }
 0x2dc   :  { %v12442_v21 = vld [vmem:[#allocation12 + $0x1cc] ss:$12 sps:$4 sm:$0xff]  }
 0x2dd   :  { %v1993_v25 = vpack.c.bf16 %v1992_v22, %v1992_v22  ;;  %v12440_v22 = vld [vmem:[#allocation12 + $0x1c8] ss:$12 sps:$4 sm:$0xff]  }
 0x2df   :  { %10654 = vmatmul.mubr.msk.bf16.vlgmr.msra.gmra.mrb[36].mxu1 %vm1994_vm5, %v1993_v25  ;;  %v12443_v25 = vld [vmem:[#allocation12 + $0x168] ss:$12 sps:$4 sm:$0xff]  }
 0x2e0   :  { %2135 = vmatpush1.bf16.msra.mxu1 %v2129_v24  ;;  %2166 = vmatprep.mubr.bf16.mxu1 %v13648_v2  ;;  %v12445_v24 = vld [vmem:[#allocation12 + $0x16c] ss:$12 sps:$4 sm:$0xff]  }
 0x2e1   :  { %2633 = vmatprep.subr.bf16.mxu1 %v12424_v54  ;;  %v12469_v54 = vld [vmem:[#allocation13 + $0x18] ss:$12 sps:$4 sm:$0xff]  }
 0x335   :  { %v2105_v26 = vpop.f32.mrb[16].mxu0 }
 0x336   :  { %v2106_v29 = vadd.f32 %v2105_v26, %v153_v8  ;;  %v2107_v27 = vpop.f32.mrb[17].mxu0  ;;  %v12413_v8 = vld [vmem:[#allocation12 + $0xd8] ss:$12 sps:$4 sm:$0xff]   ;;  %v12446_v26 = vld [vmem:[#allocation12 + $0xc8] ss:$12 sps:$4 sm:$0xff]  }
 0x337   :  { %v2108_v28 = vpop.f32.mrb[18].mxu0  ;;  %2611 = vmatpush1.bf16.msra.mxu0 %v12413_v8  ;;  %v12459_v8 = vld [vmem:[#allocation12 + $0x98] ss:$12 sps:$4 sm:$0xff]  }
 0x338   :  { %v2111_v30 = vsub.f32 %v2106_v29, %v2106_v29  ;;  %v2109_v32 = vpop.f32.mrb[19].mxu0  ;;  %2612 = vmatprep.subr.bf16.mxu0 %v12418_v10  ;;  %v12460_v10 = vld [vmem:[#allocation12 + $0x170] ss:$12 sps:$4 sm:$0xff]  }
 0x33a   :  { %v2112_v36 = vmul.f32 1.442695, %v2111_v30 }
 0x33b   :  { %2613 = vmatpush1.bf16.msra.mxu0 %v12416_v11  ;;  %v12484_v11 = vld [vmem:[#allocation13 + $0x90] ss:$12 sps:$4 sm:$0xff]  }
 0x33c   :  { %13430 = vpow2.f32 %v2112_v36  ;;  %2614 = vmatprep.subr.bf16.mxu0 %v12421_v12  ;;  %v154_v36 = vld [vmem:[#allocation3] sm:$0x1] }
 0x33d   :  { %2775 = vperm.xlu1 %12134, %v154_v36   ;;  %v12489_v12 = vld [vmem:[#allocation13 + $0xac] ss:$12 sps:$4 sm:$0xff]  }
 0x33e   :  { %v12505_v36 = vld [vmem:[#allocation13 + $0x138] ss:$12 sps:$4 sm:$0xff]  }
 0x33f   :  { %2615 = vmatpush1.bf16.msra.mxu0 %v12419_v13  ;;  %v12461_v13 = vld [vmem:[#allocation12 + $0xb0] ss:$12 sps:$4 sm:$0xff]  }
 0x340   :  { %2616 = vmatprep.subr.bf16.mxu0 %v12427_v14  ;;  %v12487_v14 = vld [vmem:[#allocation13 + $0xa8] ss:$12 sps:$4 sm:$0xff]  }
 0x343   :  { %2617 = vmatpush1.bf16.msra.mxu0 %v12425_v15  ;;  %v12492_v15 = vld [vmem:[#allocation13 + $0xc4] ss:$12 sps:$4 sm:$0xff]  }
 0x344   :  { %2618 = vmatprep.subr.bf16.mxu0 %v12433_v17  ;;  %v12462_v17 = vld [vmem:[#allocation12 + $0x188] ss:$12 sps:$4 sm:$0xff]  }
 0x346   :  { %v13431_v37 = vpop.eup %13430 }
 0x347   :  { %13432 = vrcp.f32 %v13431_v37  ;;  %2619 = vmatpush1.bf16.msra.mxu0 %v12431_v18  ;;  %v12490_v18 = vld [vmem:[#allocation13 + $0xc0] ss:$12 sps:$4 sm:$0xff]  }
 0x348   :  { %2620 = vmatprep.subr.bf16.mxu0 %v12439_v19  ;;  %v12495_v19 = vld [vmem:[#allocation13 + $0xdc] ss:$12 sps:$4 sm:$0xff]  }
 0x34b   :  { %2621 = vmatpush1.bf16.msra.mxu0 %v12437_v20  ;;  %v12463_v20 = vld [vmem:[#allocation12 + $0x1a0] ss:$12 sps:$4 sm:$0xff]  }
 0x34c   :  { %2622 = vmatprep.subr.bf16.mxu0 %v12445_v24  ;;  %v12464_v24 = vld [vmem:[#allocation12 + $0x1b8] ss:$12 sps:$4 sm:$0xff]  }
 0x34f   :  { %2623 = vmatpush1.bf16.msra.mxu0 %v12443_v25  ;;  %v12496_v25 = vld [vmem:[#allocation13 + $0xf0] ss:$12 sps:$4 sm:$0xff]  }
 0x351   :  { %v13433_v38 = vpop.eup %13432 }
 0x352   :  { %v2116_v39 = vmul.f32 %v13433_v38, %v13431_v37  ;;  %v12468_v37 = vld [vmem:[#allocation13 + $0x4] ss:$12 sps:$4 sm:$0xff]  }
 0x353   :  { %3212 = vmatprep.subr.bf16.mxu0 %v12468_v37  ;;  %v12510_v37 = vld [vmem:[#allocation13 + $0x154] ss:$12 sps:$4 sm:$0xff]  }
 0x354   :  { %v2117_v40 = vpack.c.bf16 %v2116_v39, %v2116_v39 }
 0x356   :  { %10657 = vmatmul.mubr.msk.bf16.vlgmr.msra.gmra.mrb[40].mxu1 %vm1994_vm5, %v2117_v40 }
 0x357   :  { %2665 = vmatprep.mubr.bf16.mxu1 %v13648_v2  ;;  %2634 = vmatpush1.bf16.msra.mxu1 %v12422_v53  ;;  %v12449_v53 = vld [vmem:[#allocation12 + $0x20] ss:$12 sps:$4 sm:$0xff]  }
 0x358   :  { %2635 = vmatprep.subr.bf16.mxu1 %v12430_v56  ;;  %v12452_v56 = vld [vmem:[#allocation12 + $0x110] ss:$12 sps:$4 sm:$0xff]  }
 0x35b   :  { %2636 = vmatpush1.bf16.msra.mxu1 %v12428_v58  ;;  %v12477_v58 = vld [vmem:[#allocation13 + $0x4c] ss:$12 sps:$4 sm:$0xff]  }
 0x35c   :  { %2637 = vmatprep.subr.bf16.mxu1 %v12436_v59  ;;  %v12453_v59 = vld [vmem:[#allocation12 + $0x50] ss:$12 sps:$4 sm:$0xff]  }
 0x35f   :  { %2638 = vmatpush1.bf16.msra.mxu1 %v12434_v62  ;;  %v12480_v62 = vld [vmem:[#allocation13 + $0x64] ss:$12 sps:$4 sm:$0xff]  }
 0x360   :  { %2639 = vmatprep.subr.bf16.mxu1 %v12442_v21  ;;  %v12493_v21 = vld [vmem:[#allocation13 + $0xd8] ss:$12 sps:$4 sm:$0xff]  }
 0x363   :  { %2640 = vmatpush1.bf16.msra.mxu1 %v12440_v22  ;;  %v12498_v22 = vld [vmem:[#allocation13 + $0xf4] ss:$12 sps:$4 sm:$0xff]  }
 0x364   :  { %11570 = vmatprep.subr.bf16.mxu1 %v12446_v26  ;;  %v12501_v26 = vld [vmem:[#allocation13 + $0x10c] ss:$12 sps:$4 sm:$0xff]  }
 0x3b2   :  { %v13963_v46 = vpop.f32.mrb[36].mxu1 }
 0x3b3   :  { %v13965_v47 = vpop.f32.mrb[37].mxu1  ;;  %v13975_v49 = vpack.c.bf16 %v13963_v46, %v13963_v46  ;;  %v12451_v46 = vld [vmem:[#allocation12 + $0x38] ss:$12 sps:$4 sm:$0xff]  }
 0x3b4   :  { %v2045_v48 = vpop.f32.mrb[38].mxu1 }
 0x3b5   :  { %v2046_v50 = vpop.f32.mrb[39].mxu1  ;;  %v12448_v48 = vld [vmem:[#allocation12 + $0xe0] ss:$12 sps:$4 sm:$0xff]  }
 0x3b6   :  { %v12466_v50 = vld [vmem:[#allocation13] ss:$12 sps:$4 sm:$0xff]  }
 0x429   :  { %v2168_v29 = vpop.f32.mrb[40].mxu1 }
 0x42a   :  { %v2170_v27 = vpop.f32.mrb[41].mxu1 }
 0x42b   :  { %v12129_v28 = vpack.i.bf16 %v2170_v27, %v2168_v29  ;;  %v2172_v30 = vpop.f32.mrb[42].mxu1  ;;  %v12465_v29 = vld [vmem:[#allocation12 + $0x1d0] ss:$12 sps:$4 sm:$0xff]   ;;  %v12499_v27 = vld [vmem:[#allocation13 + $0x108] ss:$12 sps:$4 sm:$0xff]  }
 0x42c   :  { %v2173_v32 = vpop.f32.mrb[43].mxu1  ;;  %v12502_v30 = vld [vmem:[#allocation13 + $0x120] ss:$12 sps:$4 sm:$0xff]  }
 0x42d   :  { %12130 = vrot.lane.b32.xlu0 %v12129_v28, %s13653_s23  ;;  %v12504_v28 = vld [vmem:[#allocation13 + $0x124] ss:$12 sps:$4 sm:$0xff]   ;;  %v12507_v32 = vld [vmem:[#allocation13 + $0x13c] ss:$12 sps:$4 sm:$0xff]  }
 0x49f   :  { %v12131_v38 = vpop.permute.xlu0 %12130 }
 0x4a0   :  { %v12133_v39 = vunpack.i.h.bf16 %v12131_v38  ;;  %v12132_v40 = vunpack.i.l.bf16 %v12131_v38  ;;  %v12508_v38 = vld [vmem:[#allocation13 + $0x150] ss:$12 sps:$4 sm:$0xff]  }
 0x4a2   :  { %v2181_v41 = vsel %vm1940_vm2, %v12132_v40, %v12133_v39  ;;  %v2184_v42 = vsel %vm1940_vm2, %v13965_v47, %v12132_v40  ;;  %v12450_v47 = vld [vmem:[#allocation12 + $0xf8] ss:$12 sps:$4 sm:$0xff]   ;;  %v12511_v39 = vld [vmem:[#allocation13 + $0x168] ss:$12 sps:$4 sm:$0xff]  }
 0x4a3   :  { %v13971_v44 = vpack.c.bf16 %v2181_v41, %v2181_v41  ;;  %v2186_v45 = vpack.c.bf16 %v2184_v42, %v2184_v42  ;;  %v12513_v40 = vld [vmem:[#allocation13 + $0x16c] ss:$12 sps:$4 sm:$0xff]   ;;  %v12516_v42 = vld [vmem:[#allocation13 + $0x184] ss:$12 sps:$4 sm:$0xff]  }
 0x4a4   :  { %v12514_v41 = vld [vmem:[#allocation13 + $0x180] ss:$12 sps:$4 sm:$0xff]  }
 0x4a5   :  { %2624 = vmatprep.mubr.bf16.mxu0 %v2186_v45  ;;  %10718 = vmatmul.mubr.msk.bf16.vlgmr.msra.gmra.mrb[44].mxu1 %vm582_vm0, %v13971_v44 }
 0x4a6   :  { %11571 = vmatpush3.bf16.msra.mxu1 %v12447_v43  ;;  %2625 = vmatmul.mubr.bf16.vlgmr.msra.gmra.mrb[20].mxu0 %v13975_v49  ;;  %v12519_v43 = vld [vmem:[#allocation13 + $0x19c] ss:$12 sps:$4 sm:$0xff]  }
 0x4a7   :  { %2706 = vmatprep.mubr.bf16.mxu1 %v2186_v45  ;;  %11572 = vmatprep.subr.bf16.mxu1 %v12448_v48  ;;  %v12522_v45 = vld [vmem:[#allocation13 + $0x1b4] ss:$12 sps:$4 sm:$0xff]   ;;  %v12520_v48 = vld [vmem:[#allocation13 + $0x1b0] ss:$12 sps:$4 sm:$0xff]  }
 0x4a8   :  { %3213 = vmatpush1.bf16.msra.mxu0 %v12466_v50  ;;  %v12523_v50 = vld [vmem:[#allocation13 + $0x1c8] ss:$12 sps:$4 sm:$0xff]  }
 0x4a9   :  { %3214 = vmatprep.subr.bf16.mxu0 %v12471_v52  ;;  %v12526_v52 = vld [vmem:[#allocation13 + $0xc8] ss:$12 sps:$4 sm:$0xff]  }
 0x4aa   :  { %11573 = vmatpush3.bf16.msra.mxu1 %v12449_v53  ;;  %v12548_v53 = vld [vmem:[#allocation15 + $0x4] ss:$12 sps:$4 sm:$0xff]  }
 0x4ab   :  { %11574 = vmatprep.subr.bf16.mxu1 %v12450_v47  ;;  %v2268_v47 = vld [vmem:[%s14467_s10] sm:$0x7] }
 0x4ac   :  { %3215 = vmatpush1.bf16.msra.mxu0 %v12469_v54  ;;  %v2776_v54 = vpop.permute.xlu1 %2775 }
 0x4ad   :  { %3216 = vmatprep.subr.bf16.mxu0 %v12474_v55 }
 0x4ae   :  { %11575 = vmatpush3.bf16.msra.mxu1 %v12451_v46  ;;  %v2758_v46 = vrot.slane %v2268_v47, %v13913_v31 }
 0x4af   :  { %11576 = vmatprep.subr.bf16.mxu1 %v12452_v56  ;;  %v13450_v56 = vld [vmem:[#allocation4] sm:$0x7] }
 0x4b0   :  { %3217 = vmatpush1.bf16.msra.mxu0 %v12472_v57  ;;  %v2785_v57 = vunpack.c.l.bf16 %v13450_v56  ;;  %v12540_v56 = vld [vmem:[#allocation13 + $0x170] ss:$12 sps:$4 sm:$0xff]  }
 0x4b1   :  { %3218 = vmatprep.subr.bf16.mxu0 %v12477_v58 }
 0x4b2   :  { %11577 = vmatpush3.bf16.msra.mxu1 %v12453_v59 }
 0x4b3   :  { %11578 = vmatprep.subr.bf16.mxu1 %v12454_v60  ;;  %v2762_v60 = vrot.slane %v2268_v47, %v13919_v33 }
 0x4b4   :  { %3219 = vmatpush1.bf16.msra.mxu0 %v12475_v61 }
 0x4b5   :  { %3220 = vmatprep.subr.bf16.mxu0 %v12480_v62 }
 0x4b6   :  { %11579 = vmatpush3.bf16.msra.mxu1 %v12455_v63 }
 0x4b7   :  { %11580 = vmatprep.subr.bf16.mxu1 %v12456_v35  ;;  %v2781_v35 = vrot.slane %v2776_v54, %v13913_v31  ;;  %v12537_v54 = vld [vmem:[#allocation13 + $0x80] ss:$12 sps:$4 sm:$0xff]  }
 0x4b8   :  { %3221 = vmatpush1.bf16.msra.mxu0 %v12478_v0 }
 0x4b9   :  { %3222 = vmatprep.subr.bf16.mxu0 %v12483_v1 }
 0x4ba   :  { %11581 = vmatpush3.bf16.msra.mxu1 %v12457_v4 }
 0x4bb   :  { %11582 = vmatprep.subr.bf16.mxu1 %v12458_v5 }
 0x4bc   :  { %3223 = vmatpush1.bf16.msra.mxu0 %v12481_v6  ;;  %v2790_v6 = vrot.slane %v2785_v57, %v13913_v31 }
 0x4bd   :  { %3224 = vmatprep.subr.bf16.mxu0 %v12486_v7 }
 0x4be   :  { %11583 = vmatpush3.bf16.msra.mxu1 %v12459_v8 }
 0x4bf   :  { %11584 = vmatprep.subr.bf16.mxu1 %v12460_v10  ;;  %v2794_v10 = vrot.slane %v2785_v57, %v13922_v34 }
 0x4c0   :  { %3225 = vmatpush1.bf16.msra.mxu0 %v12484_v11 }
 0x4c1   :  { %3226 = vmatprep.subr.bf16.mxu0 %v12489_v12 }
 0x4c2   :  { %11585 = vmatpush3.bf16.msra.mxu1 %v12461_v13 }
 0x4c3   :  { %11957 = vmatprep.subr.bf16.mxu1 %v13650_v3 }
 0x4c4   :  { %3227 = vmatpush1.bf16.msra.mxu0 %v12487_v14 }
 0x4c5   :  { %2707 = vmatmul.mubr.bf16.vlgmr.msra.gmra.mrb[48].mxu1 %v13975_v49  ;;  %3228 = vmatprep.subr.bf16.mxu0 %v12492_v15  ;;  %v12525_v49 = vld [vmem:[#allocation13 + $0x1cc] ss:$12 sps:$4 sm:$0xff]  }
 0x4c6   :  { %11958 = vmatpush3.bf16.msra.mxu1 %v12462_v17  ;;  %11965 = vmatprep.mubr.msk.bf16.mxu1 %vm13651_vm1, %v13650_v3  ;;  %v12546_v17 = vld [vmem:[#allocation15] ss:$12 sps:$4 sm:$0xff]  }
 0x4c7   :  { %11959 = vmatprep.subr.bf16.mxu1 %v13650_v3 }
 0x4c8   :  { %3229 = vmatpush1.bf16.msra.mxu0 %v12490_v18 }
 0x4c9   :  { %3230 = vmatprep.subr.bf16.mxu0 %v12495_v19  ;;  %v12551_v19 = vld [vmem:[#allocation15 + $0x1c] ss:$12 sps:$4 sm:$0xff]  }
 0x4ca   :  { %11960 = vmatpush3.bf16.msra.mxu1 %v12463_v20  ;;  %v12549_v20 = vld [vmem:[#allocation15 + $0x18] ss:$12 sps:$4 sm:$0xff]  }
 0x4cb   :  { %11961 = vmatprep.subr.bf16.mxu1 %v13650_v3 }
 0x4cc   :  { %3231 = vmatpush1.bf16.msra.mxu0 %v12493_v21 }
 0x4cd   :  { %3232 = vmatprep.subr.bf16.mxu0 %v12498_v22 }
 0x4ce   :  { %11962 = vmatpush3.bf16.msra.mxu1 %v12464_v24 }
 0x4cf   :  { %11963 = vmatprep.subr.bf16.mxu1 %v13650_v3 }
 0x4d0   :  { %3233 = vmatpush1.bf16.msra.mxu0 %v12496_v25 }
 0x4d1   :  { %3234 = vmatprep.subr.bf16.mxu0 %v12501_v26 }
 0x4d2   :  { %11964 = vmatpush3.bf16.msra.mxu1 %v12465_v29  ;;  %v2766_v29 = vrot.slane %v2268_v47, %v13922_v34  ;;  %v12536_v47 = vld [vmem:[#allocation13 + $0x140] ss:$12 sps:$4 sm:$0xff]  }
 0x4d3   :  { %3253 = vmatprep.subr.bf16.mxu1 %v12516_v42  ;;  %v12527_v42 = vld [vmem:[#allocation13 + $0x8] ss:$12 sps:$4 sm:$0xff]  }
 0x4d4   :  { %3235 = vmatpush1.bf16.msra.mxu0 %v12499_v27  ;;  %v2797_v27 = vsub.s32 4, %v13852_v16  ;;  %v12529_v16 = vld [vmem:[#allocation13 + $0x20] ss:$12 sps:$4 sm:$0xff]  }
 0x4d5   :  { %11966 = vmatmul.mubr.msk.bf16.vlgmr.msra.gmra.mrb[52].mxu1 %vm582_vm0, %v13971_v44  ;;  %3236 = vmatprep.subr.bf16.mxu0 %v12504_v28  ;;  %v12517_v44 = vld [vmem:[#allocation13 + $0x198] ss:$12 sps:$4 sm:$0xff]  }
 0x4d6   :  { %3285 = vmatprep.mubr.bf16.mxu1 %v13648_v2  ;;  %3254 = vmatpush1.bf16.msra.mxu1 %v12514_v41 }
 0x4d7   :  { %3255 = vmatprep.subr.bf16.mxu1 %v12519_v43 }
 0x4d8   :  { %3237 = vmatpush1.bf16.msra.mxu0 %v12502_v30 }
 0x4d9   :  { %3238 = vmatprep.subr.bf16.mxu0 %v12507_v32 }
 0x4da   :  { %3256 = vmatpush1.bf16.msra.mxu1 %v12517_v44  ;;  %v12528_v44 = vld [vmem:[#allocation13 + $0xe0] ss:$12 sps:$4 sm:$0xff]  }
 0x4db   :  { %3257 = vmatprep.subr.bf16.mxu1 %v12522_v45  ;;  %v12530_v45 = vld [vmem:[#allocation13 + $0xf8] ss:$12 sps:$4 sm:$0xff]  }
 0x4dc   :  { %3239 = vmatpush1.bf16.msra.mxu0 %v12505_v36 }
 0x4dd   :  { %3240 = vmatprep.subr.bf16.mxu0 %v12510_v37 }
 0x4de   :  { %3258 = vmatpush1.bf16.msra.mxu1 %v12520_v48  ;;  %v12531_v48 = vld [vmem:[#allocation13 + $0x38] ss:$12 sps:$4 sm:$0xff]  }
 0x4df   :  { %3259 = vmatprep.subr.bf16.mxu1 %v12525_v49  ;;  %v12532_v49 = vld [vmem:[#allocation13 + $0x110] ss:$12 sps:$4 sm:$0xff]  }
 0x4e0   :  { %3241 = vmatpush1.bf16.msra.mxu0 %v12508_v38  ;;  %v2798_v38 = vrot.slane %v2785_v57, %v2797_v27  ;;  %v12541_v57 = vld [vmem:[#allocation13 + $0xb0] ss:$12 sps:$4 sm:$0xff]   ;;  %v12590_v27 = vld [vmem:[#allocation15 + $0x154] ss:$12 sps:$4 sm:$0xff]  }
 0x4e1   :  { %3242 = vmatprep.subr.bf16.mxu0 %v12513_v40 }
 0x4e2   :  { %3260 = vmatpush1.bf16.msra.mxu1 %v12523_v50  ;;  %v12533_v50 = vld [vmem:[#allocation13 + $0x50] ss:$12 sps:$4 sm:$0xff]  }
 0x4e3   :  { %11597 = vmatprep.subr.bf16.mxu1 %v12526_v52  ;;  %v12534_v52 = vld [vmem:[#allocation13 + $0x128] ss:$12 sps:$4 sm:$0xff]  }
 0x4e4   :  { %3243 = vmatpush1.bf16.msra.mxu0 %v12511_v39 }
 0x4e5   :  { %3806 = vmatprep.subr.bf16.mxu0 %v12548_v53  ;;  %v12535_v53 = vld [vmem:[#allocation13 + $0x68] ss:$12 sps:$4 sm:$0xff]  }
 0x578   :  { %v2667_v55 = vpop.f32.mrb[44].mxu1 }
 0x579   :  { %v2626_v58 = vpop.f32.mrb[20].mxu0  ;;  %v2669_v59 = vpop.f32.mrb[45].mxu1 }
 0x57a   :  { %v2668_v61 = vadd.f32 %v2667_v55, %v2626_v58  ;;  %v2628_v62 = vpop.f32.mrb[21].mxu0  ;;  %v2671_v63 = vpop.f32.mrb[46].mxu1  ;;  %v12538_v55 = vld [vmem:[#allocation13 + $0x158] ss:$12 sps:$4 sm:$0xff]   ;;  %v12542_v58 = vld [vmem:[#allocation13 + $0x188] ss:$12 sps:$4 sm:$0xff]  }
 0x57b   :  { %v2670_v0 = vadd.f32 %v2669_v59, %v2628_v62  ;;  %v2630_v1 = vpop.f32.mrb[22].mxu0  ;;  %v2672_v4 = vpop.f32.mrb[47].mxu1  ;;  %v12543_v59 = vld [vmem:[#allocation13 + $0x1a0] ss:$12 sps:$4 sm:$0xff]   ;;  %v12545_v63 = vld [vmem:[#allocation13 + $0x1d0] ss:$12 sps:$4 sm:$0xff]  }
 0x57c   :  { %v2770_v5 = vadd.f32 %v2758_v46, %v2668_v61  ;;  %v2631_v7 = vpop.f32.mrb[23].mxu0  ;;  %v12539_v46 = vld [vmem:[#allocation13 + $0x98] ss:$12 sps:$4 sm:$0xff]   ;;  %v12552_v61 = vld [vmem:[#allocation15 + $0x30] ss:$12 sps:$4 sm:$0xff]  }
 0x57d   :  { %v2771_v8 = vadd.f32 %v2762_v60, %v2670_v0  ;;  %v12544_v60 = vld [vmem:[#allocation13 + $0x1b8] ss:$12 sps:$4 sm:$0xff]   ;;  %v12554_v62 = vld [vmem:[#allocation15 + $0x34] ss:$12 sps:$4 sm:$0xff]  }
 0x57e   :  { %v2782_v11 = vmul.f32 %v2781_v35, %v2770_v5  ;;  %v12555_v0 = vld [vmem:[#allocation15 + $0x48] ss:$12 sps:$4 sm:$0xff]   ;;  %v12560_v1 = vld [vmem:[#allocation15 + $0x64] ss:$12 sps:$4 sm:$0xff]   ;;  %v12558_v4 = vld [vmem:[#allocation15 + $0x60] ss:$12 sps:$4 sm:$0xff]  }
 0x57f   :  { %v2783_v12 = vmul.f32 %v2781_v35, %v2771_v8  ;;  %v12563_v5 = vld [vmem:[#allocation15 + $0x7c] ss:$12 sps:$4 sm:$0xff]   ;;  %v12566_v7 = vld [vmem:[#allocation15 + $0x94] ss:$12 sps:$4 sm:$0xff]  }
 0x580   :  { %v13998_v13 = vadd.f32 %v2790_v6, %v2782_v11  ;;  %v12561_v6 = vld [vmem:[#allocation15 + $0x78] ss:$12 sps:$4 sm:$0xff]   ;;  %v12564_v8 = vld [vmem:[#allocation15 + $0x90] ss:$12 sps:$4 sm:$0xff]   ;;  %v12567_v11 = vld [vmem:[#allocation15 + $0xa8] ss:$12 sps:$4 sm:$0xff]  }
 0x581   :  { %v14000_v14 = vadd.f32 %v2794_v10, %v2783_v12  ;;  %v12569_v10 = vld [vmem:[#allocation15 + $0xac] ss:$12 sps:$4 sm:$0xff]   ;;  %v12572_v12 = vld [vmem:[#allocation15 + $0xc4] ss:$12 sps:$4 sm:$0xff]  }
 0x582   :  { %v2805_v18 = vpack.c.bf16 %v13998_v13, %v13998_v13 }
 0x583   :  { %v2806_v15 = vpack.c.bf16 %v14000_v14, %v14000_v14 }
 0x585   :  { %3244 = vmatprep.mubr.bf16.mxu0 %v2806_v15 }
 0x586   :  { %3245 = vmatmul.mubr.bf16.vlgmr.msra.gmra.mrb[24].mxu0 %v2805_v18 }
 0x587   :  { %3807 = vmatpush1.bf16.msra.mxu0 %v12546_v17  ;;  %v12575_v17 = vld [vmem:[#allocation15 + $0xdc] ss:$12 sps:$4 sm:$0xff]  }
 0x588   :  { %3808 = vmatprep.subr.bf16.mxu0 %v12551_v19  ;;  %v12578_v19 = vld [vmem:[#allocation15 + $0xf4] ss:$12 sps:$4 sm:$0xff]  }
 0x58b   :  { %3809 = vmatpush1.bf16.msra.mxu0 %v12549_v20  ;;  %v12576_v20 = vld [vmem:[#allocation15 + $0xf0] ss:$12 sps:$4 sm:$0xff]  }
 0x58c   :  { %3810 = vmatprep.subr.bf16.mxu0 %v12554_v62 }
 0x58f   :  { %3811 = vmatpush1.bf16.msra.mxu0 %v12552_v61  ;;  %v14033_v61 = vld [vmem:[%s14472_s15] sm:$0x7] }
 0x598   :  { %v11586_v21 = vpop.f32.mrb[48].mxu1 }
 0x599   :  { %v11587_v22 = vpop.f32.mrb[49].mxu1 }
 0x59a   :  { %v11588_v24 = vadd.f32 %v11587_v22, %v11586_v21  ;;  %v11589_v25 = vpop.f32.mrb[50].mxu1  ;;  %v12581_v21 = vld [vmem:[#allocation15 + $0x10c] ss:$12 sps:$4 sm:$0xff]   ;;  %v12579_v22 = vld [vmem:[#allocation15 + $0x108] ss:$12 sps:$4 sm:$0xff]  }
 0x59b   :  { %v11590_v26 = vpop.f32.mrb[51].mxu1  ;;  %v12582_v25 = vld [vmem:[#allocation15 + $0x120] ss:$12 sps:$4 sm:$0xff]  }
 0x59c   :  { %v12587_v26 = vld [vmem:[#allocation15 + $0x13c] ss:$12 sps:$4 sm:$0xff]  }
 0x5a8   :  { %v2748_v28 = vpop.f32.mrb[52].mxu1 }
 0x5a9   :  { %v2749_v30 = vadd.f32 %v11588_v24, %v2748_v28  ;;  %v11967_v32 = vpop.f32.mrb[53].mxu1  ;;  %v12584_v24 = vld [vmem:[#allocation15 + $0x124] ss:$12 sps:$4 sm:$0xff]  }
 0x5aa   :  { %v2751_v36 = vpop.f32.mrb[54].mxu1  ;;  %v12588_v28 = vld [vmem:[#allocation15 + $0x150] ss:$12 sps:$4 sm:$0xff]   ;;  %v12591_v32 = vld [vmem:[#allocation15 + $0x168] ss:$12 sps:$4 sm:$0xff]  }
 0x5ab   :  { %v2772_v37 = vadd.f32 %v2766_v29, %v2749_v30  ;;  %v11968_v39 = vpop.f32.mrb[55].mxu1  ;;  %v12585_v29 = vld [vmem:[#allocation15 + $0x138] ss:$12 sps:$4 sm:$0xff]   ;;  %v12594_v36 = vld [vmem:[#allocation15 + $0x180] ss:$12 sps:$4 sm:$0xff]  }
 0x5ac   :  { %v12593_v30 = vld [vmem:[#allocation15 + $0x16c] ss:$12 sps:$4 sm:$0xff]  }
 0x5ad   :  { %v2784_v40 = vmul.f32 %v2781_v35, %v2772_v37  ;;  %v12557_v35 = vld [vmem:[#allocation15 + $0x4c] ss:$12 sps:$4 sm:$0xff]   ;;  %v12596_v37 = vld [vmem:[#allocation15 + $0x184] ss:$12 sps:$4 sm:$0xff]  }
 0x5ae   :  { %3812 = vmatprep.subr.bf16.mxu0 %v12557_v35  ;;  %v12597_v39 = vld [vmem:[#allocation15 + $0x198] ss:$12 sps:$4 sm:$0xff]  }
 0x5af   :  { %v14008_v41 = vadd.f32 %v2798_v38, %v2784_v40  ;;  %3813 = vmatpush1.bf16.msra.mxu0 %v12555_v0  ;;  %v12599_v38 = vld [vmem:[#allocation15 + $0x19c] ss:$12 sps:$4 sm:$0xff]   ;;  %v12602_v40 = vld [vmem:[#allocation15 + $0x1b4] ss:$12 sps:$4 sm:$0xff]   ;;  %v14037_v0 = vrot.slane %v14033_v61, %v13919_v33 }
 0x5b0   :  { %3814 = vmatprep.subr.bf16.mxu0 %v12560_v1 }
 0x5b1   :  { %v2807_v43 = vpack.c.bf16 %v14008_v41, %v14008_v41 }
 0x5b3   :  { %10780 = vmatmul.mubr.msk.bf16.vlgmr.msra.gmra.mrb[56].mxu1 %vm582_vm0, %v2807_v43  ;;  %3815 = vmatpush1.bf16.msra.mxu0 %v12558_v4 }
 0x5b4   :  { %11598 = vmatpush3.bf16.msra.mxu1 %v12527_v42  ;;  %3326 = vmatprep.mubr.bf16.mxu1 %v2806_v15  ;;  %v12570_v15 = vld [vmem:[#allocation15 + $0xc0] ss:$12 sps:$4 sm:$0xff]   ;;  %v12600_v42 = vld [vmem:[#allocation15 + $0x1b0] ss:$12 sps:$4 sm:$0xff]  }
 0x5b5   :  { %11599 = vmatprep.subr.bf16.mxu1 %v12528_v44  ;;  %3816 = vmatprep.subr.bf16.mxu0 %v12563_v5  ;;  %v12603_v44 = vld [vmem:[#allocation15 + $0x1c8] ss:$12 sps:$4 sm:$0xff]  }
 0x5b7   :  { %3817 = vmatpush1.bf16.msra.mxu0 %v12561_v6  ;;  %v12626_v6 = vld [vmem:[#allocation7 + $0x1e0] ss:$12 sps:$4 sm:$0xff]  }
 0x5b8   :  { %11600 = vmatpush3.bf16.msra.mxu1 %v12529_v16  ;;  %3818 = vmatprep.subr.bf16.mxu0 %v12566_v7  ;;  %v12606_v16 = vld [vmem:[#allocation15 + $0xc8] ss:$12 sps:$4 sm:$0xff]   ;;  %v14045_v7 = vpack.c.bf16 %v14037_v0, %v14037_v0 }
 0x5b9   :  { %11601 = vmatprep.subr.bf16.mxu1 %v12530_v45 }
 0x5bb   :  { %3819 = vmatpush1.bf16.msra.mxu0 %v12564_v8 }
 0x5bc   :  { %11602 = vmatpush3.bf16.msra.mxu1 %v12531_v48  ;;  %3820 = vmatprep.subr.bf16.mxu0 %v12569_v10  ;;  %v12631_v10 = vld [vmem:[#allocation7 + $0x1fc] ss:$12 sps:$4 sm:$0xff]  }
 0x5bd   :  { %11603 = vmatprep.subr.bf16.mxu1 %v12532_v49 }
 0x5bf   :  { %3821 = vmatpush1.bf16.msra.mxu0 %v12567_v11  ;;  %v12629_v11 = vld [vmem:[#allocation7 + $0x1f8] ss:$12 sps:$4 sm:$0xff]  }
 0x5c0   :  { %11604 = vmatpush3.bf16.msra.mxu1 %v12533_v50  ;;  %3822 = vmatprep.subr.bf16.mxu0 %v12572_v12  ;;  %v12637_v12 = vld [vmem:[#allocation7 + $0x22c] ss:$12 sps:$4 sm:$0xff]  }
 0x5c1   :  { %11605 = vmatprep.subr.bf16.mxu1 %v12534_v52  ;;  %v12628_v52 = vld [vmem:[#allocation7 + $0x1e4] ss:$12 sps:$4 sm:$0xff]  }
 0x5c3   :  { %3823 = vmatpush1.bf16.msra.mxu0 %v12570_v15  ;;  %v12635_v15 = vld [vmem:[#allocation7 + $0x228] ss:$12 sps:$4 sm:$0xff]  }
 0x5c4   :  { %11606 = vmatpush3.bf16.msra.mxu1 %v12535_v53  ;;  %3824 = vmatprep.subr.bf16.mxu0 %v12575_v17  ;;  %v14024_v53 = vld [vmem:[%s14469_s12] sm:$0x7]  ;;  %v12640_v17 = vld [vmem:[#allocation7 + $0x244] ss:$12 sps:$4 sm:$0xff]  }
 0x5c5   :  { %11607 = vmatprep.subr.bf16.mxu1 %v12536_v47  ;;  %v3378_v47 = vrot.slane %v14024_v53, %v13913_v31 }
 0x5c8   :  { %11608 = vmatpush3.bf16.msra.mxu1 %v12537_v54 }
 0x5c9   :  { %11609 = vmatprep.subr.bf16.mxu1 %v12538_v55  ;;  %v3382_v55 = vrot.slane %v14024_v53, %v13919_v33 }
 0x5cc   :  { %11610 = vmatpush3.bf16.msra.mxu1 %v12539_v46 }
 0x5cd   :  { %11611 = vmatprep.subr.bf16.mxu1 %v12540_v56 }
 0x5d0   :  { %11612 = vmatpush3.bf16.msra.mxu1 %v12541_v57 }
 0x5d1   :  { %11969 = vmatprep.subr.bf16.mxu1 %v13650_v3 }
 0x5d3   :  { %3327 = vmatmul.mubr.bf16.vlgmr.msra.gmra.mrb[60].mxu1 %v2805_v18  ;;  %v12573_v18 = vld [vmem:[#allocation15 + $0xd8] ss:$12 sps:$4 sm:$0xff]  }
 0x5d4   :  { %11970 = vmatpush3.bf16.msra.mxu1 %v12542_v58  ;;  %11977 = vmatprep.mubr.msk.bf16.mxu1 %vm13651_vm1, %v13650_v3 }
 0x5d5   :  { %11971 = vmatprep.subr.bf16.mxu1 %v13650_v3  ;;  %3825 = vmatpush1.bf16.msra.mxu0 %v12573_v18  ;;  %v12638_v18 = vld [vmem:[#allocation7 + $0x240] ss:$12 sps:$4 sm:$0xff]  }
 0x5d6   :  { %3826 = vmatprep.subr.bf16.mxu0 %v12578_v19  ;;  %v12643_v19 = vld [vmem:[#allocation7 + $0x25c] ss:$12 sps:$4 sm:$0xff]  }
 0x5d8   :  { %11972 = vmatpush3.bf16.msra.mxu1 %v12543_v59 }
 0x5d9   :  { %11973 = vmatprep.subr.bf16.mxu1 %v13650_v3  ;;  %3827 = vmatpush1.bf16.msra.mxu0 %v12576_v20  ;;  %v12641_v20 = vld [vmem:[#allocation7 + $0x258] ss:$12 sps:$4 sm:$0xff]  }
 0x5da   :  { %3828 = vmatprep.subr.bf16.mxu0 %v12581_v21  ;;  %v12646_v21 = vld [vmem:[#allocation7 + $0x274] ss:$12 sps:$4 sm:$0xff]  }
 0x5dc   :  { %11974 = vmatpush3.bf16.msra.mxu1 %v12544_v60 }
 0x5dd   :  { %11975 = vmatprep.subr.bf16.mxu1 %v13650_v3  ;;  %3829 = vmatpush1.bf16.msra.mxu0 %v12579_v22 }
 0x5de   :  { %3830 = vmatprep.subr.bf16.mxu0 %v12584_v24 }
 0x5e0   :  { %11976 = vmatpush3.bf16.msra.mxu1 %v12545_v63 }
 0x5e1   :  { %3831 = vmatpush1.bf16.msra.mxu0 %v12582_v25  ;;  %3847 = vmatprep.subr.bf16.mxu1 %v12596_v37  ;;  %v12655_v37 = vld [vmem:[#allocation7 + $0x2bc] ss:$12 sps:$4 sm:$0xff]  }
 0x5e2   :  { %3832 = vmatprep.subr.bf16.mxu0 %v12587_v26 }
 0x5e3   :  { %11978 = vmatmul.mubr.msk.bf16.vlgmr.msra.gmra.mrb[64].mxu1 %vm582_vm0, %v2807_v43  ;;  %v12605_v43 = vld [vmem:[#allocation15 + $0x1cc] ss:$12 sps:$4 sm:$0xff]  }
 0x5e4   :  { %3879 = vmatprep.mubr.bf16.mxu1 %v13648_v2  ;;  %3848 = vmatpush1.bf16.msra.mxu1 %v12594_v36  ;;  %v12650_v36 = vld [vmem:[#allocation7 + $0x2a0] ss:$12 sps:$4 sm:$0xff]  }
 0x5e5   :  { %3833 = vmatpush1.bf16.msra.mxu0 %v12585_v29  ;;  %3849 = vmatprep.subr.bf16.mxu1 %v12599_v38  ;;  %v12644_v29 = vld [vmem:[#allocation7 + $0x270] ss:$12 sps:$4 sm:$0xff]   ;;  %v12653_v38 = vld [vmem:[#allocation7 + $0x2b8] ss:$12 sps:$4 sm:$0xff]  }
 0x5e6   :  { %3834 = vmatprep.subr.bf16.mxu0 %v12590_v27 }
 0x5e8   :  { %3850 = vmatpush1.bf16.msra.mxu1 %v12597_v39  ;;  %v3386_v39 = vrot.slane %v14024_v53, %v13922_v34  ;;  %v12607_v53 = vld [vmem:[#allocation15 + $0x8] ss:$12 sps:$4 sm:$0xff]  }
 0x5e9   :  { %3835 = vmatpush1.bf16.msra.mxu0 %v12588_v28  ;;  %3851 = vmatprep.subr.bf16.mxu1 %v12602_v40  ;;  %v12649_v28 = vld [vmem:[#allocation7 + $0x28c] ss:$12 sps:$4 sm:$0xff]   ;;  %v12658_v40 = vld [vmem:[#allocation7 + $0x2d4] ss:$12 sps:$4 sm:$0xff]  }
 0x5ea   :  { %3836 = vmatprep.subr.bf16.mxu0 %v12593_v30  ;;  %v12647_v30 = vld [vmem:[#allocation7 + $0x288] ss:$12 sps:$4 sm:$0xff]  }
 0x5ec   :  { %3852 = vmatpush1.bf16.msra.mxu1 %v12600_v42 }
 0x5ed   :  { %3837 = vmatpush1.bf16.msra.mxu0 %v12591_v32  ;;  %3853 = vmatprep.subr.bf16.mxu1 %v12605_v43  ;;  %v12652_v32 = vld [vmem:[#allocation7 + $0x2a4] ss:$12 sps:$4 sm:$0xff]  }
 0x5ee   :  { %4419 = vmatprep.subr.bf16.mxu0 %v12628_v52 }
 0x5f0   :  { %3854 = vmatpush1.bf16.msra.mxu1 %v12603_v44 }
 0x5f1   :  { %11624 = vmatprep.subr.bf16.mxu1 %v12606_v16 }
 0x659   :  { %v3246_v45 = vpop.f32.mrb[24].mxu0 }
 0x65a   :  { %v3248_v48 = vpop.f32.mrb[25].mxu0 }
 0x65b   :  { %v3250_v49 = vpop.f32.mrb[26].mxu0 }
 0x65c   :  { %v3251_v50 = vpop.f32.mrb[27].mxu0 }
 0x65d   :  { %v12661_v50 = vld [vmem:[#allocation7 + $0x2ec] ss:$12 sps:$4 sm:$0xff]  }
 0x686   :  { %v3287_v54 = vpop.f32.mrb[56].mxu1 }
 0x687   :  { %v3288_v46 = vadd.f32 %v3287_v54, %v3246_v45  ;;  %v3289_v56 = vpop.f32.mrb[57].mxu1  ;;  %v12656_v45 = vld [vmem:[#allocation7 + $0x2d0] ss:$12 sps:$4 sm:$0xff]  }
 0x688   :  { %v3290_v57 = vadd.f32 %v3289_v56, %v3248_v48  ;;  %v3291_v58 = vpop.f32.mrb[58].mxu1  ;;  %v12608_v56 = vld [vmem:[#allocation15 + $0xe0] ss:$12 sps:$4 sm:$0xff]  }
 0x689   :  { %v3390_v59 = vadd.f32 %v3378_v47, %v3288_v46  ;;  %v3292_v60 = vpop.f32.mrb[59].mxu1  ;;  %v12659_v47 = vld [vmem:[#allocation7 + $0x2e8] ss:$12 sps:$4 sm:$0xff]  }
 0x68a   :  { %v3391_v62 = vadd.f32 %v3382_v55, %v3290_v57  ;;  %v12664_v55 = vld [vmem:[#allocation7 + $0x304] ss:$12 sps:$4 sm:$0xff]   ;;  %v12662_v57 = vld [vmem:[#allocation7 + $0x300] ss:$12 sps:$4 sm:$0xff]   ;;  %v12667_v58 = vld [vmem:[#allocation7 + $0x31c] ss:$12 sps:$4 sm:$0xff]  }
 0x68b   :  { %v3393_v63 = vmax.f32 %v3390_v59, 0.0  ;;  %v12609_v59 = vld [vmem:[#allocation15 + $0x20] ss:$12 sps:$4 sm:$0xff]   ;;  %v12610_v60 = vld [vmem:[#allocation15 + $0xf8] ss:$12 sps:$4 sm:$0xff]  }
 0x68c   :  { %v3394_v35 = vmax.f32 %v3391_v62, 0.0  ;;  %v12670_v62 = vld [vmem:[#allocation7 + $0x334] ss:$12 sps:$4 sm:$0xff]  }
 0x68d   :  { %v3396_v1 = vadd.f32 %v3393_v63, %v13998_v13  ;;  %v12634_v13 = vld [vmem:[#allocation7 + $0x214] ss:$12 sps:$4 sm:$0xff]   ;;  %v12611_v63 = vld [vmem:[#allocation15 + $0x38] ss:$12 sps:$4 sm:$0xff]  }
 0x68e   :  { %v3397_v4 = vadd.f32 %v3394_v35, %v14000_v14  ;;  %v12632_v14 = vld [vmem:[#allocation7 + $0x210] ss:$12 sps:$4 sm:$0xff]  }
 0x68f   :  { %v14047_v8 = vpack.c.bf16 %v3396_v1, %v3396_v1  ;;  %v12612_v35 = vld [vmem:[#allocation15 + $0x110] ss:$12 sps:$4 sm:$0xff]  }
 0x690   :  { %v14041_v5 = vpack.c.bf16 %v3397_v4, %v3397_v4  ;;  %v12668_v1 = vld [vmem:[#allocation7 + $0x330] ss:$12 sps:$4 sm:$0xff]   ;;  %v12673_v4 = vld [vmem:[#allocation7 + $0x34c] ss:$12 sps:$4 sm:$0xff]  }
 0x692   :  { %3838 = vmatprep.mubr.bf16.mxu0 %v14041_v5 }
 0x693   :  { %3839 = vmatmul.mubr.bf16.vlgmr.msra.gmra.mrb[28].mxu0 %v14047_v8 }
 0x694   :  { %4420 = vmatpush1.bf16.msra.mxu0 %v12626_v6  ;;  %4451 = vmatprep.mubr.bf16.mxu0 %v14045_v7  ;;  %v12613_v6 = vld [vmem:[#allocation15 + $0x50] ss:$12 sps:$4 sm:$0xff]  }
 0x695   :  { %4421 = vmatprep.subr.bf16.mxu0 %v12631_v10  ;;  %v12614_v10 = vld [vmem:[#allocation15 + $0x128] ss:$12 sps:$4 sm:$0xff]  }
 0x698   :  { %4422 = vmatpush1.bf16.msra.mxu0 %v12629_v11  ;;  %v12671_v11 = vld [vmem:[#allocation7 + $0x348] ss:$12 sps:$4 sm:$0xff]  }
 0x699   :  { %4423 = vmatprep.subr.bf16.mxu0 %v12634_v13  ;;  %v12676_v13 = vld [vmem:[#allocation9 + $0x1e4] ss:$12 sps:$4 sm:$0xff]  }
 0x69c   :  { %4424 = vmatpush1.bf16.msra.mxu0 %v12632_v14  ;;  %v12615_v14 = vld [vmem:[#allocation15 + $0x68] ss:$12 sps:$4 sm:$0xff]  }
 0x69d   :  { %4425 = vmatprep.subr.bf16.mxu0 %v12637_v12  ;;  %v12616_v12 = vld [vmem:[#allocation15 + $0x140] ss:$12 sps:$4 sm:$0xff]  }
 0x6a0   :  { %4426 = vmatpush1.bf16.msra.mxu0 %v12635_v15 }
 0x6a1   :  { %4427 = vmatprep.subr.bf16.mxu0 %v12640_v17  ;;  %v12674_v17 = vld [vmem:[#allocation9 + $0x1e0] ss:$12 sps:$4 sm:$0xff]  }
 0x6a4   :  { %4428 = vmatpush1.bf16.msra.mxu0 %v12638_v18  ;;  %v12679_v18 = vld [vmem:[#allocation9 + $0x1fc] ss:$12 sps:$4 sm:$0xff]  }
 0x6a5   :  { %4429 = vmatprep.subr.bf16.mxu0 %v12643_v19  ;;  %v12617_v19 = vld [vmem:[#allocation15 + $0x80] ss:$12 sps:$4 sm:$0xff]  }
 0x6a6   :  { %v11613_v22 = vpop.f32.mrb[60].mxu1 }
 0x6a7   :  { %v11614_v24 = vpop.f32.mrb[61].mxu1 }
 0x6a8   :  { %v11615_v25 = vadd.f32 %v11614_v24, %v11613_v22  ;;  %v11616_v26 = vpop.f32.mrb[62].mxu1  ;;  %4430 = vmatpush1.bf16.msra.mxu0 %v12641_v20  ;;  %v12618_v20 = vld [vmem:[#allocation15 + $0x158] ss:$12 sps:$4 sm:$0xff]   ;;  %v12682_v22 = vld [vmem:[#allocation9 + $0x214] ss:$12 sps:$4 sm:$0xff]  }
 0x6a9   :  { %v11617_v27 = vpop.f32.mrb[63].mxu1  ;;  %4431 = vmatprep.subr.bf16.mxu0 %v12646_v21  ;;  %v12677_v21 = vld [vmem:[#allocation9 + $0x1f8] ss:$12 sps:$4 sm:$0xff]   ;;  %v12680_v26 = vld [vmem:[#allocation9 + $0x210] ss:$12 sps:$4 sm:$0xff]  }
 0x6aa   :  { %v12619_v24 = vld [vmem:[#allocation15 + $0x98] ss:$12 sps:$4 sm:$0xff]   ;;  %v12622_v27 = vld [vmem:[#allocation15 + $0x188] ss:$12 sps:$4 sm:$0xff]  }
 0x6ac   :  { %4432 = vmatpush1.bf16.msra.mxu0 %v12644_v29  ;;  %v12621_v29 = vld [vmem:[#allocation15 + $0xb0] ss:$12 sps:$4 sm:$0xff]  }
 0x6ad   :  { %4433 = vmatprep.subr.bf16.mxu0 %v12649_v28  ;;  %v12623_v28 = vld [vmem:[#allocation15 + $0x1a0] ss:$12 sps:$4 sm:$0xff]  }
 0x6b0   :  { %4434 = vmatpush1.bf16.msra.mxu0 %v12647_v30  ;;  %v12624_v30 = vld [vmem:[#allocation15 + $0x1b8] ss:$12 sps:$4 sm:$0xff]  }
 0x6b1   :  { %4435 = vmatprep.subr.bf16.mxu0 %v12652_v32  ;;  %v12683_v32 = vld [vmem:[#allocation9 + $0x228] ss:$12 sps:$4 sm:$0xff]  }
 0x6b4   :  { %4436 = vmatpush1.bf16.msra.mxu0 %v12650_v36  ;;  %v12685_v36 = vld [vmem:[#allocation9 + $0x22c] ss:$12 sps:$4 sm:$0xff]  }
 0x6b5   :  { %4437 = vmatprep.subr.bf16.mxu0 %v12655_v37  ;;  %v12625_v37 = vld [vmem:[#allocation15 + $0x1d0] ss:$12 sps:$4 sm:$0xff]  }
 0x6b6   :  { %v3368_v42 = vpop.f32.mrb[64].mxu1 }
 0x6b7   :  { %v3369_v43 = vadd.f32 %v11615_v25, %v3368_v42  ;;  %v11979_v44 = vpop.f32.mrb[65].mxu1  ;;  %v12620_v25 = vld [vmem:[#allocation15 + $0x170] ss:$12 sps:$4 sm:$0xff]   ;;  %v12686_v42 = vld [vmem:[#allocation7 + $0x360] ss:$12 sps:$4 sm:$0xff]  }
 0x6b8   :  { %v3371_v16 = vpop.f32.mrb[66].mxu1  ;;  %4438 = vmatpush1.bf16.msra.mxu0 %v12653_v38  ;;  %v12691_v38 = vld [vmem:[#allocation9 + $0x244] ss:$12 sps:$4 sm:$0xff]  }
 0x6b9   :  { %v3392_v48 = vadd.f32 %v3386_v39, %v3369_v43  ;;  %v11980_v49 = vpop.f32.mrb[67].mxu1  ;;  %4439 = vmatprep.subr.bf16.mxu0 %v12658_v40  ;;  %v12689_v39 = vld [vmem:[#allocation9 + $0x240] ss:$12 sps:$4 sm:$0xff]   ;;  %v12697_v40 = vld [vmem:[#allocation9 + $0x25c] ss:$12 sps:$4 sm:$0xff]  }
 0x6ba   :  { %v12694_v43 = vld [vmem:[#allocation7 + $0x37c] ss:$12 sps:$4 sm:$0xff]   ;;  %v12695_v44 = vld [vmem:[#allocation9 + $0x258] ss:$12 sps:$4 sm:$0xff]   ;;  %v12703_v16 = vld [vmem:[#allocation9 + $0x274] ss:$12 sps:$4 sm:$0xff]  }
 0x6bb   :  { %v3395_v52 = vmax.f32 %v3392_v48, 0.0  ;;  %v12700_v48 = vld [vmem:[#allocation7 + $0x394] ss:$12 sps:$4 sm:$0xff]   ;;  %v12701_v49 = vld [vmem:[#allocation9 + $0x270] ss:$12 sps:$4 sm:$0xff]  }
 0x6bc   :  { %4440 = vmatpush1.bf16.msra.mxu0 %v12656_v45  ;;  %v12692_v45 = vld [vmem:[#allocation7 + $0x378] ss:$12 sps:$4 sm:$0xff]  }
 0x6bd   :  { %v3398_v54 = vadd.f32 %v3395_v52, %v14008_v41  ;;  %4441 = vmatprep.subr.bf16.mxu0 %v12661_v50  ;;  %v12665_v41 = vld [vmem:[#allocation7 + $0x318] ss:$12 sps:$4 sm:$0xff]   ;;  %v12698_v52 = vld [vmem:[#allocation7 + $0x390] ss:$12 sps:$4 sm:$0xff]  }
 0x6be   :  { %v12709_v50 = vld [vmem:[#allocation9 + $0x28c] ss:$12 sps:$4 sm:$0xff]  }
 0x6bf   :  { %v14055_v46 = vpack.c.bf16 %v3398_v54, %v3398_v54  ;;  %v12707_v54 = vld [vmem:[#allocation9 + $0x288] ss:$12 sps:$4 sm:$0xff]  }
 0x6c0   :  { %4442 = vmatpush1.bf16.msra.mxu0 %v12659_v47  ;;  %v12706_v47 = vld [vmem:[#allocation7 + $0x3ac] ss:$12 sps:$4 sm:$0xff]  }
 0x6c1   :  { %10842 = vmatmul.mubr.msk.bf16.vlgmr.msra.gmra.mrb[68].mxu1 %vm582_vm0, %v14055_v46  ;;  %4443 = vmatprep.subr.bf16.mxu0 %v12664_v55  ;;  %v14081_v55 = vrot.slane %v14033_v61, %v13922_v34 }
 0x6c2   :  { %11625 = vmatpush3.bf16.msra.mxu1 %v12607_v53  ;;  %3920 = vmatprep.mubr.bf16.mxu1 %v14041_v5  ;;  %v14062_v5 = vrot.slane %v14033_v61, %v13913_v31  ;;  %v12713_v53 = vld [vmem:[#allocation9 + $0x2a4] ss:$12 sps:$4 sm:$0xff]  }
 0x6c3   :  { %11626 = vmatprep.subr.bf16.mxu1 %v12608_v56  ;;  %v12710_v56 = vld [vmem:[#allocation7 + $0x2a8] ss:$12 sps:$4 sm:$0xff]   ;;  %v12716_v61 = vld [vmem:[#allocation9 + $0x2b8] ss:$12 sps:$4 sm:$0xff]  }
 0x6c4   :  { %4444 = vmatpush1.bf16.msra.mxu0 %v12662_v57  ;;  %v14066_v15 = vpack.c.bf16 %v14062_v5, %v14062_v5  ;;  %v12711_v57 = vld [vmem:[#allocation9 + $0x2a0] ss:$12 sps:$4 sm:$0xff]  }
 0x6c5   :  { %4445 = vmatprep.subr.bf16.mxu0 %v12667_v58  ;;  %v14085_v58 = vpack.c.bf16 %v14081_v55, %v14081_v55 }
 0x6c6   :  { %11627 = vmatpush3.bf16.msra.mxu1 %v12609_v59  ;;  %v12718_v59 = vld [vmem:[#allocation9 + $0x2bc] ss:$12 sps:$4 sm:$0xff]  }
 0x6c7   :  { %11628 = vmatprep.subr.bf16.mxu1 %v12610_v60  ;;  %v12714_v60 = vld [vmem:[#allocation7 + $0x1e8] ss:$12 sps:$4 sm:$0xff]  }
 0x6c8   :  { %4446 = vmatpush1.bf16.msra.mxu0 %v12665_v41  ;;  %v12715_v41 = vld [vmem:[#allocation7 + $0x2c0] ss:$12 sps:$4 sm:$0xff]  }
 0x6c9   :  { %4447 = vmatprep.subr.bf16.mxu0 %v12670_v62  ;;  %v12723_v62 = vld [vmem:[#allocation9 + $0x2d4] ss:$12 sps:$4 sm:$0xff]  }
 0x6ca   :  { %11629 = vmatpush3.bf16.msra.mxu1 %v12611_v63  ;;  %v12719_v63 = vld [vmem:[#allocation7 + $0x200] ss:$12 sps:$4 sm:$0xff]  }
 0x6cb   :  { %11630 = vmatprep.subr.bf16.mxu1 %v12612_v35  ;;  %v12720_v35 = vld [vmem:[#allocation7 + $0x2d8] ss:$12 sps:$4 sm:$0xff]  }
 0x6cc   :  { %4448 = vmatpush1.bf16.msra.mxu0 %v12668_v1  ;;  %v12721_v1 = vld [vmem:[#allocation9 + $0x2d0] ss:$12 sps:$4 sm:$0xff]  }
 0x6cd   :  { %4449 = vmatprep.subr.bf16.mxu0 %v12673_v4  ;;  %v12728_v4 = vld [vmem:[#allocation9 + $0x2ec] ss:$12 sps:$4 sm:$0xff]  }
 0x6ce   :  { %11631 = vmatpush3.bf16.msra.mxu1 %v12613_v6  ;;  %v12724_v6 = vld [vmem:[#allocation7 + $0x218] ss:$12 sps:$4 sm:$0xff]  }
 0x6cf   :  { %11632 = vmatprep.subr.bf16.mxu1 %v12614_v10  ;;  %v12725_v10 = vld [vmem:[#allocation7 + $0x2f0] ss:$12 sps:$4 sm:$0xff]  }
 0x6d0   :  { %4450 = vmatpush1.bf16.msra.mxu0 %v12671_v11  ;;  %v12726_v11 = vld [vmem:[#allocation9 + $0x2e8] ss:$12 sps:$4 sm:$0xff]  }
 0x6d1   :  { %5009 = vmatprep.subr.bf16.mxu0 %v12676_v13  ;;  %v12733_v13 = vld [vmem:[#allocation9 + $0x304] ss:$12 sps:$4 sm:$0xff]  }
 0x6d2   :  { %11633 = vmatpush3.bf16.msra.mxu1 %v12615_v14  ;;  %v12729_v14 = vld [vmem:[#allocation7 + $0x230] ss:$12 sps:$4 sm:$0xff]  }
 0x6d3   :  { %11634 = vmatprep.subr.bf16.mxu1 %v12616_v12  ;;  %4452 = vmatmul.mubr.bf16.vlgmr.msra.gmra.mrb[32].mxu0 %v14066_v15  ;;  %v12730_v12 = vld [vmem:[#allocation7 + $0x308] ss:$12 sps:$4 sm:$0xff]  }
 0x6d4   :  { %5010 = vmatpush1.bf16.msra.mxu0 %v12674_v17  ;;  %v12738_v17 = vld [vmem:[#allocation9 + $0x31c] ss:$12 sps:$4 sm:$0xff]  }
 0x6d5   :  { %5011 = vmatprep.subr.bf16.mxu0 %v12679_v18  ;;  %v12734_v18 = vld [vmem:[#allocation7 + $0x248] ss:$12 sps:$4 sm:$0xff]  }
 0x6d6   :  { %11635 = vmatpush3.bf16.msra.mxu1 %v12617_v19  ;;  %v12735_v19 = vld [vmem:[#allocation7 + $0x320] ss:$12 sps:$4 sm:$0xff]  }
 0x6d7   :  { %11636 = vmatprep.subr.bf16.mxu1 %v12618_v20  ;;  %v12736_v20 = vld [vmem:[#allocation9 + $0x318] ss:$12 sps:$4 sm:$0xff]  }
 0x6d8   :  { %5012 = vmatpush1.bf16.msra.mxu0 %v12677_v21  ;;  %v12739_v21 = vld [vmem:[#allocation7 + $0x260] ss:$12 sps:$4 sm:$0xff]  }
 0x6d9   :  { %5013 = vmatprep.subr.bf16.mxu0 %v12682_v22  ;;  %v12740_v22 = vld [vmem:[#allocation7 + $0x338] ss:$12 sps:$4 sm:$0xff]  }
 0x6da   :  { %11637 = vmatpush3.bf16.msra.mxu1 %v12619_v24  ;;  %v12743_v24 = vld [vmem:[#allocation9 + $0x334] ss:$12 sps:$4 sm:$0xff]  }
 0x6db   :  { %11638 = vmatprep.subr.bf16.mxu1 %v12620_v25  ;;  %v12741_v25 = vld [vmem:[#allocation9 + $0x330] ss:$12 sps:$4 sm:$0xff]  }
 0x6dc   :  { %5014 = vmatpush1.bf16.msra.mxu0 %v12680_v26  ;;  %v12744_v26 = vld [vmem:[#allocation7 + $0x278] ss:$12 sps:$4 sm:$0xff]  }
 0x6dd   :  { %5015 = vmatprep.subr.bf16.mxu0 %v12685_v36  ;;  %v12753_v36 = vld [vmem:[#allocation7 + $0x368] ss:$12 sps:$4 sm:$0xff]  }
 0x6de   :  { %11639 = vmatpush3.bf16.msra.mxu1 %v12621_v29  ;;  %v12745_v29 = vld [vmem:[#allocation7 + $0x350] ss:$12 sps:$4 sm:$0xff]  }
 0x6df   :  { %11981 = vmatprep.subr.bf16.mxu1 %v13650_v3 }
 0x6e0   :  { %5016 = vmatpush1.bf16.msra.mxu0 %v12683_v32  ;;  %v12752_v32 = vld [vmem:[#allocation10 + $0x1e4] ss:$12 sps:$4 sm:$0xff]  }
 0x6e1   :  { %3921 = vmatmul.mubr.bf16.vlgmr.msra.gmra.mrb[72].mxu1 %v14047_v8  ;;  %v12688_v8 = vld [vmem:[#allocation7 + $0x364] ss:$12 sps:$4 sm:$0xff]   ;;  %5017 = vmatprep.subr.bf16.mxu0 %v12691_v38 }
 0x6e2   :  { %11982 = vmatpush3.bf16.msra.mxu1 %v12622_v27  ;;  %11989 = vmatprep.mubr.msk.bf16.mxu1 %vm13651_vm1, %v13650_v3  ;;  %v12748_v27 = vld [vmem:[#allocation9 + $0x34c] ss:$12 sps:$4 sm:$0xff]  }
 0x6e3   :  { %11983 = vmatprep.subr.bf16.mxu1 %v13650_v3  ;;  %v12761_v38 = vld [vmem:[#allocation7 + $0x398] ss:$12 sps:$4 sm:$0xff]  }
 0x6e4   :  { %5018 = vmatpush1.bf16.msra.mxu0 %v12689_v39  ;;  %v12780_v39 = vld [vmem:[#allocation9 + $0x364] ss:$12 sps:$4 sm:$0xff]  }
 0x6e5   :  { %5019 = vmatprep.subr.bf16.mxu0 %v12697_v40  ;;  %v12784_v40 = vld [vmem:[#allocation9 + $0x378] ss:$12 sps:$4 sm:$0xff]  }
 0x6e6   :  { %11984 = vmatpush3.bf16.msra.mxu1 %v12623_v28  ;;  %v12746_v28 = vld [vmem:[#allocation9 + $0x348] ss:$12 sps:$4 sm:$0xff]  }
 0x6e7   :  { %11985 = vmatprep.subr.bf16.mxu1 %v13650_v3 }
 0x6e8   :  { %5020 = vmatpush1.bf16.msra.mxu0 %v12695_v44  ;;  %v12790_v44 = vld [vmem:[#allocation9 + $0x390] ss:$12 sps:$4 sm:$0xff]  }
 0x6e9   :  { %5021 = vmatprep.subr.bf16.mxu0 %v12703_v16  ;;  %v12798_v16 = vld [vmem:[#allocation9 + $0x3ac] ss:$12 sps:$4 sm:$0xff]  }
 0x6ea   :  { %11986 = vmatpush3.bf16.msra.mxu1 %v12624_v30  ;;  %v12749_v30 = vld [vmem:[#allocation7 + $0x290] ss:$12 sps:$4 sm:$0xff]  }
 0x6eb   :  { %11987 = vmatprep.subr.bf16.mxu1 %v13650_v3 }
 0x6ec   :  { %5022 = vmatpush1.bf16.msra.mxu0 %v12701_v49 }
 0x6ed   :  { %5023 = vmatprep.subr.bf16.mxu0 %v12709_v50 }
 0x6ee   :  { %11988 = vmatpush3.bf16.msra.mxu1 %v12625_v37  ;;  %v12757_v37 = vld [vmem:[#allocation7 + $0x380] ss:$12 sps:$4 sm:$0xff]  }
 0x6ef   :  { %4460 = vmatprep.subr.bf16.mxu1 %v12688_v8  ;;  %v12765_v8 = vld [vmem:[#allocation7 + $0x3b0] ss:$12 sps:$4 sm:$0xff]  }
 0x6f0   :  { %5024 = vmatpush1.bf16.msra.mxu0 %v12707_v54  ;;  %v14103_v54 = vld [vmem:[%s14471_s14] sm:$0x7] }
 0x6f1   :  { %11990 = vmatmul.mubr.msk.bf16.vlgmr.msra.gmra.mrb[76].mxu1 %vm582_vm0, %v14055_v46  ;;  %v12704_v46 = vld [vmem:[#allocation7 + $0x3a8] ss:$12 sps:$4 sm:$0xff]   ;;  %5025 = vmatprep.subr.bf16.mxu0 %v12713_v53  ;;  %v3972_v53 = vrot.slane %v14103_v54, %v13913_v31 }
 0x6f2   :  { %4461 = vmatpush1.bf16.msra.mxu1 %v12686_v42  ;;  %4492 = vmatprep.mubr.bf16.mxu1 %v13648_v2  ;;  %v12786_v42 = vld [vmem:[#allocation9 + $0x37c] ss:$12 sps:$4 sm:$0xff]  }
 0x6f3   :  { %4462 = vmatprep.subr.bf16.mxu1 %v12694_v43  ;;  %v12792_v43 = vld [vmem:[#allocation9 + $0x394] ss:$12 sps:$4 sm:$0xff]  }
 0x6f4   :  { %5026 = vmatpush1.bf16.msra.mxu0 %v12711_v57 }
 0x6f5   :  { %5027 = vmatprep.subr.bf16.mxu0 %v12718_v59 }
 0x6f6   :  { %4463 = vmatpush1.bf16.msra.mxu1 %v12692_v45  ;;  %v12796_v45 = vld [vmem:[#allocation9 + $0x3a8] ss:$12 sps:$4 sm:$0xff]  }
 0x6f7   :  { %4464 = vmatprep.subr.bf16.mxu1 %v12700_v48  ;;  %v12802_v48 = vld [vmem:[#allocation9 + $0x2a8] ss:$12 sps:$4 sm:$0xff]  }
 0x6f8   :  { %5028 = vmatpush1.bf16.msra.mxu0 %v12716_v61 }
 0x6f9   :  { %5029 = vmatprep.subr.bf16.mxu0 %v12723_v62 }
 0x6fa   :  { %4465 = vmatpush1.bf16.msra.mxu1 %v12698_v52 }
 0x6fb   :  { %4466 = vmatprep.subr.bf16.mxu1 %v12706_v47 }
 0x6fc   :  { %5030 = vmatpush1.bf16.msra.mxu0 %v12721_v1 }
 0x6fd   :  { %5031 = vmatprep.subr.bf16.mxu0 %v12728_v4  ;;  %v12750_v4 = vld [vmem:[#allocation10 + $0x1e0] ss:$12 sps:$4 sm:$0xff]  }
 0x6fe   :  { %4467 = vmatpush1.bf16.msra.mxu1 %v12704_v46 }
 0x6ff   :  { %11651 = vmatprep.subr.bf16.mxu1 %v12710_v56  ;;  %v3976_v56 = vrot.slane %v14103_v54, %v13919_v33 }
 0x700   :  { %5032 = vmatpush1.bf16.msra.mxu0 %v12726_v11  ;;  %v12754_v11 = vld [vmem:[#allocation10 + $0x1f8] ss:$12 sps:$4 sm:$0xff]  }
 0x701   :  { %10905 = vmatmul.mubr.msk.bf16.vlgmr.msra.gmra.mrb[80].mxu1 %vm582_vm0, %v14085_v58  ;;  %5033 = vmatprep.subr.bf16.mxu0 %v12733_v13  ;;  %v12760_v13 = vld [vmem:[#allocation10 + $0x214] ss:$12 sps:$4 sm:$0xff]  }
 0x702   :  { %11652 = vmatpush3.bf16.msra.mxu1 %v12714_v60  ;;  %4533 = vmatprep.mubr.bf16.mxu1 %v14045_v7  ;;  %v12731_v7 = vld [vmem:[#allocation9 + $0x300] ss:$12 sps:$4 sm:$0xff]  }
 0x703   :  { %11653 = vmatprep.subr.bf16.mxu1 %v12715_v41 }
 0x704   :  { %5034 = vmatpush1.bf16.msra.mxu0 %v12731_v7  ;;  %v12762_v7 = vld [vmem:[#allocation10 + $0x228] ss:$12 sps:$4 sm:$0xff]  }
 0x705   :  { %5035 = vmatprep.subr.bf16.mxu0 %v12738_v17  ;;  %v12768_v17 = vld [vmem:[#allocation10 + $0x244] ss:$12 sps:$4 sm:$0xff]  }
 0x706   :  { %11654 = vmatpush3.bf16.msra.mxu1 %v12719_v63 }
 0x707   :  { %11655 = vmatprep.subr.bf16.mxu1 %v12720_v35 }
 0x708   :  { %5036 = vmatpush1.bf16.msra.mxu0 %v12736_v20  ;;  %v12769_v20 = vld [vmem:[#allocation10 + $0x258] ss:$12 sps:$4 sm:$0xff]  }
 0x709   :  { %5037 = vmatprep.subr.bf16.mxu0 %v12743_v24  ;;  %v12772_v24 = vld [vmem:[#allocation10 + $0x270] ss:$12 sps:$4 sm:$0xff]  }
 0x70a   :  { %11656 = vmatpush3.bf16.msra.mxu1 %v12724_v6 }
 0x70b   :  { %11657 = vmatprep.subr.bf16.mxu1 %v12725_v10  ;;  %v12756_v10 = vld [vmem:[#allocation10 + $0x1fc] ss:$12 sps:$4 sm:$0xff]  }
 0x70c   :  { %5038 = vmatpush1.bf16.msra.mxu0 %v12741_v25 }
 0x70d   :  { %5039 = vmatprep.subr.bf16.mxu0 %v12748_v27 }
 0x70e   :  { %11658 = vmatpush3.bf16.msra.mxu1 %v12729_v14  ;;  %v12758_v14 = vld [vmem:[#allocation10 + $0x210] ss:$12 sps:$4 sm:$0xff]  }
 0x70f   :  { %11659 = vmatprep.subr.bf16.mxu1 %v12730_v12  ;;  %v12764_v12 = vld [vmem:[#allocation10 + $0x22c] ss:$12 sps:$4 sm:$0xff]  }
 0x710   :  { %5040 = vmatpush1.bf16.msra.mxu0 %v12746_v28 }
 0x711   :  { %5596 = vmatprep.subr.bf16.mxu0 %v12752_v32  ;;  %v12783_v32 = vld [vmem:[#allocation10 + $0x2a4] ss:$12 sps:$4 sm:$0xff]  }
 0x712   :  { %11660 = vmatpush3.bf16.msra.mxu1 %v12734_v18  ;;  %v12766_v18 = vld [vmem:[#allocation10 + $0x240] ss:$12 sps:$4 sm:$0xff]  }
 0x713   :  { %11661 = vmatprep.subr.bf16.mxu1 %v12735_v19  ;;  %v12771_v19 = vld [vmem:[#allocation10 + $0x25c] ss:$12 sps:$4 sm:$0xff]  }
 0x716   :  { %11662 = vmatpush3.bf16.msra.mxu1 %v12739_v21  ;;  %v12774_v21 = vld [vmem:[#allocation10 + $0x274] ss:$12 sps:$4 sm:$0xff]  }
 0x717   :  { %11663 = vmatprep.subr.bf16.mxu1 %v12740_v22 }
 0x71a   :  { %11664 = vmatpush3.bf16.msra.mxu1 %v12744_v26  ;;  %v12777_v26 = vld [vmem:[#allocation10 + $0x28c] ss:$12 sps:$4 sm:$0xff]  }
 0x71b   :  { %11665 = vmatprep.subr.bf16.mxu1 %v12745_v29 }
 0x71e   :  { %11666 = vmatpush3.bf16.msra.mxu1 %v12749_v30  ;;  %v12775_v30 = vld [vmem:[#allocation10 + $0x288] ss:$12 sps:$4 sm:$0xff]  }
 0x71f   :  { %11993 = vmatprep.subr.bf16.mxu1 %v13650_v3 }
 0x721   :  { %4534 = vmatmul.mubr.bf16.vlgmr.msra.gmra.mrb[84].mxu1 %v14066_v15  ;;  %v12778_v15 = vld [vmem:[#allocation9 + $0x360] ss:$12 sps:$4 sm:$0xff]  }
 0x722   :  { %11994 = vmatpush3.bf16.msra.mxu1 %v12753_v36  ;;  %12001 = vmatprep.mubr.msk.bf16.mxu1 %vm13651_vm1, %v13650_v3  ;;  %v12781_v36 = vld [vmem:[#allocation10 + $0x2a0] ss:$12 sps:$4 sm:$0xff]  }
 0x723   :  { %11995 = vmatprep.subr.bf16.mxu1 %v13650_v3 }
 0x726   :  { %11996 = vmatpush3.bf16.msra.mxu1 %v12757_v37  ;;  %v12789_v37 = vld [vmem:[#allocation10 + $0x2bc] ss:$12 sps:$4 sm:$0xff]  }
 0x727   :  { %11997 = vmatprep.subr.bf16.mxu1 %v13650_v3 }
 0x72a   :  { %11998 = vmatpush3.bf16.msra.mxu1 %v12761_v38 }
 0x72b   :  { %11999 = vmatprep.subr.bf16.mxu1 %v13650_v3 }
 0x72e   :  { %12000 = vmatpush3.bf16.msra.mxu1 %v12765_v8 }
 0x72f   :  { %5050 = vmatprep.subr.bf16.mxu1 %v12780_v39  ;;  %v12787_v39 = vld [vmem:[#allocation10 + $0x2b8] ss:$12 sps:$4 sm:$0xff]  }
 0x731   :  { %12002 = vmatmul.mubr.msk.bf16.vlgmr.msra.gmra.mrb[88].mxu1 %vm582_vm0, %v14085_v58 }
 0x732   :  { %5082 = vmatprep.mubr.bf16.mxu1 %v13648_v2  ;;  %5051 = vmatpush1.bf16.msra.mxu1 %v12778_v15 }
 0x733   :  { %5052 = vmatprep.subr.bf16.mxu1 %v12786_v42  ;;  %v12795_v42 = vld [vmem:[#allocation10 + $0x2d4] ss:$12 sps:$4 sm:$0xff]  }
 0x736   :  { %5053 = vmatpush1.bf16.msra.mxu1 %v12784_v40 }
 0x737   :  { %5054 = vmatprep.subr.bf16.mxu1 %v12792_v43  ;;  %v3980_v43 = vrot.slane %v14103_v54, %v13922_v34  ;;  %v12804_v54 = vld [vmem:[#allocation10 + $0x300] ss:$12 sps:$4 sm:$0xff]  }
 0x73a   :  { %5055 = vmatpush1.bf16.msra.mxu1 %v12790_v44 }
 0x73b   :  { %5056 = vmatprep.subr.bf16.mxu1 %v12798_v16  ;;  %v12793_v16 = vld [vmem:[#allocation10 + $0x2d0] ss:$12 sps:$4 sm:$0xff]  }
 0x73e   :  { %5057 = vmatpush1.bf16.msra.mxu1 %v12796_v45 }
 0x73f   :  { %11678 = vmatprep.subr.bf16.mxu1 %v12802_v48 }
 0x766   :  { %v3840_v49 = vpop.f32.mrb[28].mxu0 }
 0x767   :  { %v3842_v50 = vpop.f32.mrb[29].mxu0 }
 0x768   :  { %v3844_v52 = vpop.f32.mrb[30].mxu0 }
 0x769   :  { %v3845_v47 = vpop.f32.mrb[31].mxu0 }
 0x794   :  { %v3881_v46 = vpop.f32.mrb[68].mxu1 }
 0x795   :  { %v3882_v57 = vadd.f32 %v3881_v46, %v3840_v49  ;;  %v3883_v58 = vpop.f32.mrb[69].mxu1  ;;  %v12801_v49 = vld [vmem:[#allocation10 + $0x2ec] ss:$12 sps:$4 sm:$0xff]  }
 0x796   :  { %v3884_v59 = vadd.f32 %v3883_v58, %v3842_v50  ;;  %v3885_v60 = vpop.f32.mrb[70].mxu1 }
 0x797   :  { %v3984_v41 = vadd.f32 %v3972_v53, %v3882_v57  ;;  %v3886_v61 = vpop.f32.mrb[71].mxu1  ;;  %v12799_v53 = vld [vmem:[#allocation10 + $0x2e8] ss:$12 sps:$4 sm:$0xff]  }
 0x798   :  { %v3985_v62 = vadd.f32 %v3976_v56, %v3884_v59  ;;  %v12806_v56 = vld [vmem:[#allocation10 + $0x304] ss:$12 sps:$4 sm:$0xff]   ;;  %v12803_v57 = vld [vmem:[#allocation9 + $0x1e8] ss:$12 sps:$4 sm:$0xff]   ;;  %v12807_v59 = vld [vmem:[#allocation9 + $0x2c0] ss:$12 sps:$4 sm:$0xff]  }
 0x799   :  { %v3987_v63 = vmax.f32 %v3984_v41, 0.0  ;;  %v12811_v60 = vld [vmem:[#allocation10 + $0x31c] ss:$12 sps:$4 sm:$0xff]   ;;  %v12808_v41 = vld [vmem:[#allocation9 + $0x200] ss:$12 sps:$4 sm:$0xff]  }
 0x79a   :  { %v3988_v35 = vmax.f32 %v3985_v62, 0.0  ;;  %v12812_v61 = vld [vmem:[#allocation9 + $0x2d8] ss:$12 sps:$4 sm:$0xff]  }
 0x79b   :  { %v14111_v6 = vpack.c.bf16 %v3987_v63, %v3987_v63  ;;  %v12809_v62 = vld [vmem:[#allocation10 + $0x318] ss:$12 sps:$4 sm:$0xff]   ;;  %v14126_v63 = vld [vmem:[%s14461_s4 + $0x3] sm:$0x7] }
 0x79c   :  { %v14109_v1 = vpack.c.bf16 %v3988_v35, %v3988_v35  ;;  %v12816_v35 = vld [vmem:[#allocation10 + $0x334] ss:$12 sps:$4 sm:$0xff]  }
 0x79e   :  { %5041 = vmatprep.mubr.bf16.mxu0 %v14109_v1 }
 0x79f   :  { %5042 = vmatmul.mubr.bf16.vlgmr.msra.gmra.mrb[36].mxu0 %v14111_v6 }
 0x7a0   :  { %5597 = vmatpush1.bf16.msra.mxu0 %v12750_v4  ;;  %5628 = vmatprep.mubr.bf16.mxu0 %v14109_v1  ;;  %v12813_v4 = vld [vmem:[#allocation9 + $0x218] ss:$12 sps:$4 sm:$0xff]  }
 0x7a1   :  { %5598 = vmatprep.subr.bf16.mxu0 %v12756_v10  ;;  %v12817_v10 = vld [vmem:[#allocation9 + $0x2f0] ss:$12 sps:$4 sm:$0xff]  }
 0x7a4   :  { %5599 = vmatpush1.bf16.msra.mxu0 %v12754_v11  ;;  %v4585_v11 = vrot.slane %v14126_v63, %v13913_v31 }
 0x7a5   :  { %5600 = vmatprep.subr.bf16.mxu0 %v12760_v13  ;;  %v12814_v13 = vld [vmem:[#allocation10 + $0x330] ss:$12 sps:$4 sm:$0xff]  }
 0x7a6   :  { %v4453_v38 = vpop.f32.mrb[32].mxu0 }
 0x7a7   :  { %v4455_v8 = vpop.f32.mrb[33].mxu0 }
 0x7a8   :  { %5601 = vmatpush1.bf16.msra.mxu0 %v12758_v14  ;;  %v4457_v15 = vpop.f32.mrb[34].mxu0 }
 0x7a9   :  { %5602 = vmatprep.subr.bf16.mxu0 %v12764_v12  ;;  %v4458_v40 = vpop.f32.mrb[35].mxu0  ;;  %v4589_v12 = vrot.slane %v14126_v63, %v13919_v33  ;;  %v12830_v15 = vld [vmem:[#allocation9 + $0x368] ss:$12 sps:$4 sm:$0xff]  }
 0x7aa   :  { %v12832_v40 = vld [vmem:[#allocation9 + $0x398] ss:$12 sps:$4 sm:$0xff]  }
 0x7ac   :  { %5603 = vmatpush1.bf16.msra.mxu0 %v12762_v7  ;;  %v12821_v7 = vld [vmem:[#allocation10 + $0x34c] ss:$12 sps:$4 sm:$0xff]  }
 0x7ad   :  { %5604 = vmatprep.subr.bf16.mxu0 %v12768_v17 }
 0x7b0   :  { %5605 = vmatpush1.bf16.msra.mxu0 %v12766_v18 }
 0x7b1   :  { %5606 = vmatprep.subr.bf16.mxu0 %v12771_v19  ;;  %v12818_v19 = vld [vmem:[#allocation9 + $0x230] ss:$12 sps:$4 sm:$0xff]  }
 0x7b4   :  { %v11640_v22 = vpop.f32.mrb[72].mxu1  ;;  %5607 = vmatpush1.bf16.msra.mxu0 %v12769_v20 }
 0x7b5   :  { %v11641_v25 = vpop.f32.mrb[73].mxu1  ;;  %5608 = vmatprep.subr.bf16.mxu0 %v12774_v21 }
 0x7b6   :  { %v11642_v29 = vadd.f32 %v11641_v25, %v11640_v22  ;;  %v11643_v27 = vpop.f32.mrb[74].mxu1  ;;  %v12822_v22 = vld [vmem:[#allocation9 + $0x308] ss:$12 sps:$4 sm:$0xff]  }
 0x7b7   :  { %v11644_v28 = vpop.f32.mrb[75].mxu1  ;;  %v12823_v27 = vld [vmem:[#allocation9 + $0x248] ss:$12 sps:$4 sm:$0xff]  }
 0x7b8   :  { %5609 = vmatpush1.bf16.msra.mxu0 %v12772_v24  ;;  %v12824_v28 = vld [vmem:[#allocation9 + $0x320] ss:$12 sps:$4 sm:$0xff]  }
 0x7b9   :  { %5610 = vmatprep.subr.bf16.mxu0 %v12777_v26  ;;  %v12819_v26 = vld [vmem:[#allocation10 + $0x348] ss:$12 sps:$4 sm:$0xff]  }
 0x7bc   :  { %5611 = vmatpush1.bf16.msra.mxu0 %v12775_v30 }
 0x7bd   :  { %5612 = vmatprep.subr.bf16.mxu0 %v12783_v32  ;;  %v12825_v32 = vld [vmem:[#allocation9 + $0x260] ss:$12 sps:$4 sm:$0xff]  }
 0x7c0   :  { %5613 = vmatpush1.bf16.msra.mxu0 %v12781_v36  ;;  %v12826_v36 = vld [vmem:[#allocation9 + $0x338] ss:$12 sps:$4 sm:$0xff]  }
 0x7c1   :  { %5614 = vmatprep.subr.bf16.mxu0 %v12789_v37  ;;  %v12827_v37 = vld [vmem:[#allocation9 + $0x278] ss:$12 sps:$4 sm:$0xff]  }
 0x7c4   :  { %v3962_v44 = vpop.f32.mrb[76].mxu1  ;;  %5615 = vmatpush1.bf16.msra.mxu0 %v12787_v39  ;;  %v12831_v39 = vld [vmem:[#allocation9 + $0x380] ss:$12 sps:$4 sm:$0xff]  }
 0x7c5   :  { %v3963_v45 = vadd.f32 %v11642_v29, %v3962_v44  ;;  %v11991_v48 = vpop.f32.mrb[77].mxu1  ;;  %5616 = vmatprep.subr.bf16.mxu0 %v12795_v42 }
 0x7c6   :  { %v3965_v50 = vpop.f32.mrb[78].mxu1 }
 0x7c7   :  { %v3986_v52 = vadd.f32 %v3980_v43, %v3963_v45  ;;  %v11992_v47 = vpop.f32.mrb[79].mxu1  ;;  %v12833_v43 = vld [vmem:[#allocation9 + $0x3b0] ss:$12 sps:$4 sm:$0xff]   ;;  %v12834_v50 = vld [vmem:[#allocation10 + $0x360] ss:$12 sps:$4 sm:$0xff]  }
 0x7c8   :  { %5617 = vmatpush1.bf16.msra.mxu0 %v12793_v16  ;;  %v12836_v16 = vld [vmem:[#allocation10 + $0x364] ss:$12 sps:$4 sm:$0xff]  }
 0x7c9   :  { %v3989_v46 = vmax.f32 %v3986_v52, 0.0  ;;  %5618 = vmatprep.subr.bf16.mxu0 %v12801_v49  ;;  %v12839_v52 = vld [vmem:[#allocation10 + $0x37c] ss:$12 sps:$4 sm:$0xff]   ;;  %v12837_v47 = vld [vmem:[#allocation10 + $0x378] ss:$12 sps:$4 sm:$0xff]  }
 0x7cb   :  { %v14118_v58 = vpack.c.bf16 %v3989_v46, %v3989_v46  ;;  %v12840_v46 = vld [vmem:[#allocation10 + $0x390] ss:$12 sps:$4 sm:$0xff]  }
 0x7cc   :  { %5619 = vmatpush1.bf16.msra.mxu0 %v12799_v53  ;;  %v12842_v53 = vld [vmem:[#allocation10 + $0x394] ss:$12 sps:$4 sm:$0xff]  }
 0x7cd   :  { %10968 = vmatmul.mubr.msk.bf16.vlgmr.msra.gmra.mrb[92].mxu1 %vm582_vm0, %v14118_v58  ;;  %5620 = vmatprep.subr.bf16.mxu0 %v12806_v56  ;;  %v12845_v56 = vld [vmem:[#allocation10 + $0x3ac] ss:$12 sps:$4 sm:$0xff]  }
 0x7ce   :  { %11679 = vmatpush3.bf16.msra.mxu1 %v12803_v57  ;;  %5123 = vmatprep.mubr.bf16.mxu1 %v14109_v1  ;;  %v4593_v57 = vrot.slane %v14126_v63, %v13922_v34  ;;  %v12849_v63 = vld [vmem:[#allocation10 + $0x200] ss:$12 sps:$4 sm:$0xff]  }
 0x7cf   :  { %11680 = vmatprep.subr.bf16.mxu1 %v12807_v59 }
 0x7d0   :  { %5621 = vmatpush1.bf16.msra.mxu0 %v12804_v54 }
 0x7d1   :  { %5622 = vmatprep.subr.bf16.mxu0 %v12811_v60 }
 0x7d2   :  { %11681 = vmatpush3.bf16.msra.mxu1 %v12808_v41  ;;  %v12843_v41 = vld [vmem:[#allocation10 + $0x3a8] ss:$12 sps:$4 sm:$0xff]  }
 0x7d3   :  { %11682 = vmatprep.subr.bf16.mxu1 %v12812_v61 }
 0x7d4   :  { %5623 = vmatpush1.bf16.msra.mxu0 %v12809_v62  ;;  %v4494_v14 = vpop.f32.mrb[80].mxu1  ;;  %v12846_v62 = vld [vmem:[#allocation10 + $0x2a8] ss:$12 sps:$4 sm:$0xff]  }
 0x7d5   :  { %5624 = vmatprep.subr.bf16.mxu0 %v12816_v35  ;;  %v4496_v17 = vpop.f32.mrb[81].mxu1  ;;  %v4495_v18 = vadd.f32 %v4494_v14, %v4453_v38  ;;  %v12828_v38 = vld [vmem:[#allocation9 + $0x350] ss:$12 sps:$4 sm:$0xff]   ;;  %v12851_v14 = vld [vmem:[#allocation10 + $0x218] ss:$12 sps:$4 sm:$0xff]  }
 0x7d6   :  { %11683 = vmatpush3.bf16.msra.mxu1 %v12813_v4  ;;  %v4498_v20 = vpop.f32.mrb[82].mxu1  ;;  %v4497_v21 = vadd.f32 %v4496_v17, %v4455_v8  ;;  %v12829_v8 = vld [vmem:[#allocation9 + $0x290] ss:$12 sps:$4 sm:$0xff]   ;;  %v12854_v17 = vld [vmem:[#allocation10 + $0x308] ss:$12 sps:$4 sm:$0xff]  }
 0x7d7   :  { %11684 = vmatprep.subr.bf16.mxu1 %v12817_v10  ;;  %v14132_v24 = vadd.f32 %v4585_v11, %v4495_v18  ;;  %v4499_v25 = vpop.f32.mrb[83].mxu1  ;;  %v12847_v10 = vld [vmem:[#allocation10 + $0x1e8] ss:$12 sps:$4 sm:$0xff]   ;;  %v12848_v11 = vld [vmem:[#allocation10 + $0x2c0] ss:$12 sps:$4 sm:$0xff]  }
 0x7d8   :  { %5625 = vmatpush1.bf16.msra.mxu0 %v12814_v13  ;;  %v4598_v29 = vadd.f32 %v4589_v12, %v4497_v21  ;;  %v12850_v13 = vld [vmem:[#allocation10 + $0x2d8] ss:$12 sps:$4 sm:$0xff]   ;;  %v12852_v12 = vld [vmem:[#allocation10 + $0x2f0] ss:$12 sps:$4 sm:$0xff]   ;;  %v12855_v18 = vld [vmem:[#allocation10 + $0x248] ss:$12 sps:$4 sm:$0xff]  }
 0x7d9   :  { %5626 = vmatprep.subr.bf16.mxu0 %v12821_v7  ;;  %v12853_v7 = vld [vmem:[#allocation10 + $0x230] ss:$12 sps:$4 sm:$0xff]   ;;  %v12857_v20 = vld [vmem:[#allocation10 + $0x260] ss:$12 sps:$4 sm:$0xff]   ;;  %v12858_v21 = vld [vmem:[#allocation10 + $0x338] ss:$12 sps:$4 sm:$0xff]  }
 0x7da   :  { %11685 = vmatpush3.bf16.msra.mxu1 %v12818_v19  ;;  %v14134_v30 = vpack.c.bf16 %v4598_v29, %v4598_v29  ;;  %v12856_v19 = vld [vmem:[#allocation10 + $0x320] ss:$12 sps:$4 sm:$0xff]   ;;  %v12861_v25 = vld [vmem:[#allocation10 + $0x290] ss:$12 sps:$4 sm:$0xff]  }
 0x7db   :  { %11686 = vmatprep.subr.bf16.mxu1 %v12822_v22  ;;  %v12860_v22 = vld [vmem:[#allocation10 + $0x350] ss:$12 sps:$4 sm:$0xff]   ;;  %v12863_v29 = vld [vmem:[#allocation10 + $0x380] ss:$12 sps:$4 sm:$0xff]  }
 0x7dc   :  { %5627 = vmatpush1.bf16.msra.mxu0 %v12819_v26  ;;  %v12862_v26 = vld [vmem:[#allocation10 + $0x368] ss:$12 sps:$4 sm:$0xff]  }
 0x7de   :  { %11687 = vmatpush3.bf16.msra.mxu1 %v12823_v27  ;;  %v12864_v27 = vld [vmem:[#allocation10 + $0x398] ss:$12 sps:$4 sm:$0xff]  }
 0x7df   :  { %5629 = vmatmul.mubr.bf16.vlgmr.msra.gmra.mrb[40].mxu0 %v14111_v6  ;;  %11688 = vmatprep.subr.bf16.mxu1 %v12824_v28  ;;  %v12865_v28 = vld [vmem:[#allocation10 + $0x3b0] ss:$12 sps:$4 sm:$0xff]  }
 0x7e0   :  { %11034 = vmatprep.mubr.msk.bf16.mxu0 %vm1940_vm2, %v14134_v30 }
 0x7e2   :  { %11689 = vmatpush3.bf16.msra.mxu1 %v12825_v32 }
 0x7e3   :  { %11690 = vmatprep.subr.bf16.mxu1 %v12826_v36 }
 0x7e6   :  { %11691 = vmatpush3.bf16.msra.mxu1 %v12827_v37 }
 0x7e7   :  { %11692 = vmatprep.subr.bf16.mxu1 %v12828_v38  ;;  %v10907_v38 = vld [vmem:[%s14463_s6 + $0x3] sm:$0x7] }
 0x7ea   :  { %11693 = vmatpush3.bf16.msra.mxu1 %v12829_v8  ;;  %v5175_v8 = vrot.slane %v10907_v38, %v13913_v31 }
 0x7eb   :  { %12005 = vmatprep.subr.bf16.mxu1 %v13650_v3 }
 0x7ed   :  { %5124 = vmatmul.mubr.bf16.vlgmr.msra.gmra.mrb[96].mxu1 %v14111_v6 }
 0x7ee   :  { %12006 = vmatpush3.bf16.msra.mxu1 %v12830_v15  ;;  %12013 = vmatprep.mubr.msk.bf16.mxu1 %vm13651_vm1, %v13650_v3 }
 0x7ef   :  { %12007 = vmatprep.subr.bf16.mxu1 %v13650_v3 }
 0x7f2   :  { %12008 = vmatpush3.bf16.msra.mxu1 %v12831_v39  ;;  %v5179_v39 = vrot.slane %v10907_v38, %v13919_v33 }
 0x7f3   :  { %12009 = vmatprep.subr.bf16.mxu1 %v13650_v3 }
 0x7f4   :  { %v11667_v42 = vpop.f32.mrb[84].mxu1 }
 0x7f5   :  { %v11668_v44 = vpop.f32.mrb[85].mxu1 }
 0x7f6   :  { %12010 = vmatpush3.bf16.msra.mxu1 %v12832_v40  ;;  %v11669_v45 = vadd.f32 %v11668_v44, %v11667_v42  ;;  %v11670_v48 = vpop.f32.mrb[86].mxu1 }
 0x7f7   :  { %12011 = vmatprep.subr.bf16.mxu1 %v13650_v3  ;;  %v11671_v49 = vpop.f32.mrb[87].mxu1 }
 0x7fa   :  { %12012 = vmatpush3.bf16.msra.mxu1 %v12833_v43 }
 0x7fb   :  { %5637 = vmatprep.subr.bf16.mxu1 %v12836_v16 }
 0x7fd   :  { %12014 = vmatmul.mubr.msk.bf16.vlgmr.msra.gmra.mrb[100].mxu1 %vm582_vm0, %v14118_v58 }
 0x7fe   :  { %5638 = vmatpush1.bf16.msra.mxu1 %v12834_v50  ;;  %5669 = vmatprep.mubr.bf16.mxu1 %v13648_v2  ;;  %v4600_v50 = vpack.c.bf16 %v14132_v24, %v14132_v24 }
 0x7ff   :  { %5639 = vmatprep.subr.bf16.mxu1 %v12839_v52 }
 0x802   :  { %5640 = vmatpush1.bf16.msra.mxu1 %v12837_v47 }
 0x803   :  { %5641 = vmatprep.subr.bf16.mxu1 %v12842_v53 }
 0x804   :  { %v4575_v59 = vpop.f32.mrb[88].mxu1 }
 0x805   :  { %v4576_v54 = vadd.f32 %v11669_v45, %v4575_v59  ;;  %v12003_v60 = vpop.f32.mrb[89].mxu1 }
 0x806   :  { %5642 = vmatpush1.bf16.msra.mxu1 %v12840_v46  ;;  %v4578_v61 = vpop.f32.mrb[90].mxu1 }
 0x807   :  { %5643 = vmatprep.subr.bf16.mxu1 %v12845_v56  ;;  %v14151_v35 = vadd.f32 %v4593_v57, %v4576_v54  ;;  %v12004_v4 = vpop.f32.mrb[91].mxu1 }
 0x809   :  { %v4602_v24 = vpack.c.bf16 %v14151_v35, %v14151_v35 }
 0x80a   :  { %5644 = vmatpush1.bf16.msra.mxu1 %v12843_v41  ;;  %v5183_v41 = vrot.slane %v10907_v38, %v13922_v34 }
 0x80b   :  { %11705 = vmatprep.subr.bf16.mxu1 %v12846_v62 }
 0x80d   :  { %11031 = vmatmul.mubr.msk.bf16.vlgmr.msra.gmra.mrb[104].mxu1 %vm582_vm0, %v14118_v58 }
 0x80e   :  { %11706 = vmatpush3.bf16.msra.mxu1 %v12847_v10  ;;  %5710 = vmatprep.mubr.bf16.mxu1 %v14109_v1  ;;  %v12859_v1 = vld [vmem:[#allocation10 + $0x278] ss:$12 sps:$4 sm:$0xff]  }
 0x80f   :  { %11707 = vmatprep.subr.bf16.mxu1 %v12848_v11 }
 0x812   :  { %11708 = vmatpush3.bf16.msra.mxu1 %v12849_v63 }
 0x813   :  { %11709 = vmatprep.subr.bf16.mxu1 %v12850_v13  ;;  %v10970_v13 = vld [vmem:[%s14465_s8 + $0x3] sm:$0x7] }
 0x816   :  { %11710 = vmatpush3.bf16.msra.mxu1 %v12851_v14  ;;  %v5762_v14 = vrot.slane %v10970_v13, %v13913_v31 }
 0x817   :  { %11711 = vmatprep.subr.bf16.mxu1 %v12852_v12 }
 0x81a   :  { %11712 = vmatpush3.bf16.msra.mxu1 %v12853_v7  ;;  %v5766_v7 = vrot.slane %v10970_v13, %v13919_v33 }
 0x81b   :  { %11713 = vmatprep.subr.bf16.mxu1 %v12854_v17 }
 0x81e   :  { %11714 = vmatpush3.bf16.msra.mxu1 %v12855_v18 }
 0x81f   :  { %11715 = vmatprep.subr.bf16.mxu1 %v12856_v19 }
 0x822   :  { %11716 = vmatpush3.bf16.msra.mxu1 %v12857_v20 }
 0x823   :  { %11717 = vmatprep.subr.bf16.mxu1 %v12858_v21 }
 0x826   :  { %11718 = vmatpush3.bf16.msra.mxu1 %v12859_v1 }
 0x827   :  { %11719 = vmatprep.subr.bf16.mxu1 %v12860_v22 }
 0x82a   :  { %11720 = vmatpush3.bf16.msra.mxu1 %v12861_v25 }
 0x82b   :  { %12017 = vmatprep.subr.bf16.mxu1 %v13650_v3 }
 0x82d   :  { %5711 = vmatmul.mubr.bf16.vlgmr.msra.gmra.mrb[108].mxu1 %v14111_v6 }
 0x82e   :  { %12018 = vmatpush3.bf16.msra.mxu1 %v12862_v26  ;;  %12025 = vmatprep.mubr.msk.bf16.mxu1 %vm13651_vm1, %v13650_v3 }
 0x82f   :  { %12019 = vmatprep.subr.bf16.mxu1 %v13650_v3 }
 0x832   :  { %12020 = vmatpush3.bf16.msra.mxu1 %v12863_v29 }
 0x833   :  { %12021 = vmatprep.subr.bf16.mxu1 %v13650_v3 }
 0x836   :  { %12022 = vmatpush3.bf16.msra.mxu1 %v12864_v27 }
 0x837   :  { %12023 = vmatprep.subr.bf16.mxu1 %v13650_v3 }
 0x83a   :  { %12024 = vmatpush3.bf16.msra.mxu1 %v12865_v28 }
 0x83d   :  { %12026 = vmatmul.mubr.msk.bf16.vlgmr.msra.gmra.mrb[112].mxu1 %vm582_vm0, %v14118_v58 }
 0x83e   :  { %5874 = vmatprep.mubr.bf16.mxu1 %v13648_v2 }
 0x872   :  { %v5043_v6 = vpop.f32.mrb[36].mxu0 }
 0x873   :  { %v5045_v32 = vpop.f32.mrb[37].mxu0 }
 0x874   :  { %v5047_v36 = vpop.f32.mrb[38].mxu0 }
 0x875   :  { %v5048_v37 = vpop.f32.mrb[39].mxu0 }
 0x876   :  { %v5770_v37 = vrot.slane %v10970_v13, %v13922_v34 }
 0x8a0   :  { %v5084_v15 = vpop.f32.mrb[92].mxu1 }
 0x8a1   :  { %v5085_v40 = vadd.f32 %v5084_v15, %v5043_v6  ;;  %v5086_v42 = vpop.f32.mrb[93].mxu1 }
 0x8a2   :  { %v5087_v43 = vadd.f32 %v5086_v42, %v5045_v32  ;;  %v5088_v44 = vpop.f32.mrb[94].mxu1 }
 0x8a3   :  { %v5187_v58 = vadd.f32 %v5175_v8, %v5085_v40  ;;  %v5089_v16 = vpop.f32.mrb[95].mxu1 }
 0x8a4   :  { %v5188_v45 = vadd.f32 %v5179_v39, %v5087_v43 }
 0x8a5   :  { %v5190_v49 = vpack.c.bf16 %v5187_v58, %v5187_v58 }
 0x8a6   :  { %v5191_v48 = vpack.c.bf16 %v5188_v45, %v5188_v45 }
 0x8a8   :  { %5893 = vrot.lane.b32.xlu0 %v5191_v48, %s13652_s19  ;;  %11033 = vmatprep.subr.msk.bf16.mxu0 %vm1940_vm2, %v5191_v48 }
 0x8a9   :  { %5787 = vmatpush1.bf16.xpose.msra.mxu0 %v5190_v49 }
 0x8ac   :  { %5885 = vrot.lane.b32.xlu0 %v14134_v30, %s13652_s19 }
 0x8b0   :  { %5819 = vmatmul.mubr.bf16.vlgmr.msra.gmra.mrb[44].mxu0 %v4600_v50 }
 0x8b2   :  { %v5630_v52 = vpop.f32.mrb[40].mxu0 }
 0x8b3   :  { %v5632_v47 = vpop.f32.mrb[41].mxu0 }
 0x8b4   :  { %v5634_v53 = vpop.f32.mrb[42].mxu0 }
 0x8b5   :  { %v5635_v46 = vpop.f32.mrb[43].mxu0 }
 0x8c0   :  { %v11694_v56 = vpop.f32.mrb[96].mxu1 }
 0x8c1   :  { %v11695_v57 = vpop.f32.mrb[97].mxu1 }
 0x8c2   :  { %v11696_v59 = vadd.f32 %v11695_v57, %v11694_v56  ;;  %v11697_v54 = vpop.f32.mrb[98].mxu1 }
 0x8c3   :  { %v11698_v60 = vpop.f32.mrb[99].mxu1 }
 0x8d0   :  { %v5165_v61 = vpop.f32.mrb[100].mxu1 }
 0x8d1   :  { %v5166_v62 = vadd.f32 %v11696_v59, %v5165_v61  ;;  %v12015_v4 = vpop.f32.mrb[101].mxu1 }
 0x8d2   :  { %v5168_v10 = vpop.f32.mrb[102].mxu1 }
 0x8d3   :  { %v5189_v30 = vadd.f32 %v5183_v41, %v5166_v62  ;;  %v12016_v11 = vpop.f32.mrb[103].mxu1 }
 0x8d5   :  { %v5192_v63 = vpack.c.bf16 %v5189_v30, %v5189_v30 }
 0x8d7   :  { %5895 = vrot.lane.b32.xlu1 %v5192_v63, %s13652_s19 }
 0x8db   :  { %5887 = vrot.lane.b32.xlu1 %v4602_v24, %s13652_s19 }
 0x8e0   :  { %v5671_v12 = vpop.f32.mrb[104].mxu1 }
 0x8e1   :  { %v5672_v17 = vadd.f32 %v5671_v12, %v5630_v52  ;;  %v5673_v18 = vpop.f32.mrb[105].mxu1  ;;  %v13451_v52 = vld [vmem:[#allocation2] sm:$0x1] }
 0x8e2   :  { %v5674_v19 = vadd.f32 %v5673_v18, %v5632_v47  ;;  %v5675_v20 = vpop.f32.mrb[106].mxu1 }
 0x8e3   :  { %v5774_v21 = vadd.f32 %v5762_v14, %v5672_v17  ;;  %v5676_v1 = vpop.f32.mrb[107].mxu1 }
 0x8e4   :  { %v5775_v22 = vadd.f32 %v5766_v7, %v5674_v19 }
 0x8e5   :  { %v5777_v25 = vpack.c.bf16 %v5774_v21, %v5774_v21 }
 0x8e6   :  { %v5778_v35 = vpack.c.bf16 %v5775_v22, %v5775_v22 }
 0x8e7   :  { %v5837_v29 = vand.u32 %v5777_v25, %v13946_v51 }
 0x8e8   :  { %5954 = vrot.lane.b32.xlu0 %v5778_v35, %s13652_s19  ;;  %v5840_v26 = vand.u32 %v5778_v35, %v13946_v51 }
 0x8ea   :  { %5842 = vmatprep.subr.bf16.mxu1 %v5840_v26  ;;  %v12866_v26 = vld [vmem:[#allocation12 + $0x1e0] ss:$12 sps:$4 sm:$0xff]  }
 0x8eb   :  { %5843 = vmatpush1.bf16.msra.mxu1 %v5837_v29  ;;  %v12868_v29 = vld [vmem:[#allocation12 + $0x1e4] ss:$12 sps:$4 sm:$0xff]  }
 0x900   :  { %v11721_v27 = vpop.f32.mrb[108].mxu1 }
 0x901   :  { %v11722_v28 = vpop.f32.mrb[109].mxu1 }
 0x902   :  { %v11723_v6 = vadd.f32 %v11722_v28, %v11721_v27  ;;  %v11724_v32 = vpop.f32.mrb[110].mxu1  ;;  %v12871_v27 = vld [vmem:[#allocation12 + $0x1fc] ss:$12 sps:$4 sm:$0xff]   ;;  %v12869_v28 = vld [vmem:[#allocation12 + $0x1f8] ss:$12 sps:$4 sm:$0xff]  }
 0x903   :  { %v11725_v36 = vpop.f32.mrb[111].mxu1  ;;  %v12872_v32 = vld [vmem:[#allocation12 + $0x210] ss:$12 sps:$4 sm:$0xff]  }
 0x904   :  { %v12877_v36 = vld [vmem:[#allocation12 + $0x22c] ss:$12 sps:$4 sm:$0xff]  }
 0x910   :  { %v5752_v38 = vpop.f32.mrb[112].mxu1 }
 0x911   :  { %v5753_v8 = vadd.f32 %v11723_v6, %v5752_v38  ;;  %v12027_v15 = vpop.f32.mrb[113].mxu1  ;;  %v12874_v6 = vld [vmem:[#allocation12 + $0x214] ss:$12 sps:$4 sm:$0xff]   ;;  %v12904_v38 = vld [vmem:[#allocation12 + $0x364] ss:$12 sps:$4 sm:$0xff]  }
 0x912   :  { %v5755_v39 = vpop.f32.mrb[114].mxu1  ;;  %v12875_v15 = vld [vmem:[#allocation12 + $0x228] ss:$12 sps:$4 sm:$0xff]  }
 0x913   :  { %v5776_v40 = vadd.f32 %v5770_v37, %v5753_v8  ;;  %v12028_v42 = vpop.f32.mrb[115].mxu1  ;;  %v12902_v37 = vld [vmem:[#allocation12 + $0x360] ss:$12 sps:$4 sm:$0xff]   ;;  %v12910_v8 = vld [vmem:[#allocation12 + $0x37c] ss:$12 sps:$4 sm:$0xff]  }
 0x914   :  { %v12908_v39 = vld [vmem:[#allocation12 + $0x378] ss:$12 sps:$4 sm:$0xff]   ;;  %v12916_v42 = vld [vmem:[#allocation12 + $0x394] ss:$12 sps:$4 sm:$0xff]  }
 0x915   :  { %v5779_v43 = vpack.c.bf16 %v5776_v40, %v5776_v40  ;;  %v12880_v40 = vld [vmem:[#allocation12 + $0x244] ss:$12 sps:$4 sm:$0xff]  }
 0x917   :  { %5956 = vrot.lane.b32.xlu1 %v5779_v43, %s13652_s19  ;;  %v12878_v43 = vld [vmem:[#allocation12 + $0x240] ss:$12 sps:$4 sm:$0xff]  }
 0x91a   :  { %v5894_v44 = vpop.permute.xlu0 %5893 }
 0x91e   :  { %v5886_v48 = vpop.permute.xlu0 %5885 }
 0x949   :  { %v5896_v58 = vpop.permute.xlu1 %5895 }
 0x94a   :  { %v5897_v16 = vsel %vm2054_vm4, %v5894_v44, %v5896_v58  ;;  %11036 = vmatprep.subr.msk.bf16.mxu0 %vm1940_vm2, %v5896_v58  ;;  %v12914_v44 = vld [vmem:[#allocation12 + $0x390] ss:$12 sps:$4 sm:$0xff]  }
 0x94b   :  { %5906 = vmatpush1.bf16.xpose.msra.mxu0 %v5897_v16  ;;  %v12883_v58 = vld [vmem:[#allocation12 + $0x25c] ss:$12 sps:$4 sm:$0xff]   ;;  %v12881_v16 = vld [vmem:[#allocation12 + $0x258] ss:$12 sps:$4 sm:$0xff]  }
 0x94c   :  { %6428 = vmatprep.subr.bf16.mxu0 %v12868_v29  ;;  %v12927_v29 = vld [vmem:[#allocation12 + $0x1e8] ss:$12 sps:$4 sm:$0xff]  }
 0x94d   :  { %v5888_v45 = vpop.permute.xlu1 %5887 }
 0x94e   :  { %11037 = vmatprep.mubr.msk.bf16.mxu0 %vm1940_vm2, %v5888_v45  ;;  %v5889_v49 = vsel %vm2054_vm4, %v5886_v48, %v5888_v45  ;;  %v12886_v45 = vld [vmem:[#allocation12 + $0x274] ss:$12 sps:$4 sm:$0xff]   ;;  %v12884_v48 = vld [vmem:[#allocation12 + $0x270] ss:$12 sps:$4 sm:$0xff]  }
 0x952   :  { %5938 = vmatmul.mubr.bf16.vlgmr.msra.gmra.mrb[48].mxu0 %v5889_v49  ;;  %v12889_v49 = vld [vmem:[#allocation12 + $0x28c] ss:$12 sps:$4 sm:$0xff]  }
 0x953   :  { %6429 = vmatpush1.bf16.msra.mxu0 %v12866_v26 }
 0x954   :  { %6430 = vmatprep.subr.bf16.mxu0 %v12871_v27 }
 0x957   :  { %6431 = vmatpush1.bf16.msra.mxu0 %v12869_v28 }
 0x958   :  { %6432 = vmatprep.subr.bf16.mxu0 %v12874_v6  ;;  %v12928_v6 = vld [vmem:[#allocation12 + $0x2c0] ss:$12 sps:$4 sm:$0xff]  }
 0x95a   :  { %v5955_v62 = vpop.permute.xlu0 %5954 }
 0x95b   :  { %6433 = vmatpush1.bf16.msra.mxu0 %v12872_v32 }
 0x95c   :  { %6434 = vmatprep.subr.bf16.mxu0 %v12877_v36  ;;  %v12946_v36 = vld [vmem:[#allocation13 + $0x1e0] ss:$12 sps:$4 sm:$0xff]  }
 0x95f   :  { %6435 = vmatpush1.bf16.msra.mxu0 %v12875_v15  ;;  %v12954_v15 = vld [vmem:[#allocation13 + $0x214] ss:$12 sps:$4 sm:$0xff]  }
 0x960   :  { %6436 = vmatprep.subr.bf16.mxu0 %v12880_v40  ;;  %v12952_v40 = vld [vmem:[#allocation13 + $0x210] ss:$12 sps:$4 sm:$0xff]  }
 0x963   :  { %6437 = vmatpush1.bf16.msra.mxu0 %v12878_v43  ;;  %v12933_v43 = vld [vmem:[#allocation12 + $0x230] ss:$12 sps:$4 sm:$0xff]  }
 0x964   :  { %6438 = vmatprep.subr.bf16.mxu0 %v12883_v58  ;;  %v12955_v58 = vld [vmem:[#allocation13 + $0x228] ss:$12 sps:$4 sm:$0xff]  }
 0x967   :  { %6439 = vmatpush1.bf16.msra.mxu0 %v12881_v16  ;;  %v12960_v16 = vld [vmem:[#allocation13 + $0x244] ss:$12 sps:$4 sm:$0xff]  }
 0x968   :  { %6440 = vmatprep.subr.bf16.mxu0 %v12886_v45  ;;  %v12935_v45 = vld [vmem:[#allocation12 + $0x248] ss:$12 sps:$4 sm:$0xff]  }
 0x96b   :  { %6441 = vmatpush1.bf16.msra.mxu0 %v12884_v48  ;;  %v12936_v48 = vld [vmem:[#allocation12 + $0x320] ss:$12 sps:$4 sm:$0xff]  }
 0x96c   :  { %6442 = vmatprep.subr.bf16.mxu0 %v12889_v49  ;;  %v12958_v49 = vld [vmem:[#allocation13 + $0x240] ss:$12 sps:$4 sm:$0xff]  }
 0x983   :  { %v5820_v50 = vpop.f32.mrb[44].mxu0 }
 0x984   :  { %v5821_v47 = vadd.f32 %v13451_v52, %v5820_v50  ;;  %v5822_v53 = vpop.f32.mrb[45].mxu0  ;;  %v12887_v50 = vld [vmem:[#allocation12 + $0x288] ss:$12 sps:$4 sm:$0xff]  }
 0x985   :  { %v5823_v46 = vpop.f32.mrb[46].mxu0  ;;  %6443 = vmatpush1.bf16.msra.mxu0 %v12887_v50  ;;  %v12895_v53 = vld [vmem:[#allocation12 + $0x2bc] ss:$12 sps:$4 sm:$0xff]  }
 0x986   :  { %v5826_v56 = vsub.f32 %v5821_v47, %v5821_v47  ;;  %v5824_v57 = vpop.f32.mrb[47].mxu0  ;;  %v12890_v47 = vld [vmem:[#allocation12 + $0x2a0] ss:$12 sps:$4 sm:$0xff]   ;;  %v12893_v46 = vld [vmem:[#allocation12 + $0x2b8] ss:$12 sps:$4 sm:$0xff]  }
 0x987   :  { %v12896_v57 = vld [vmem:[#allocation12 + $0x2d0] ss:$12 sps:$4 sm:$0xff]  }
 0x988   :  { %v5827_v59 = vmul.f32 1.442695, %v5826_v56  ;;  %v12898_v56 = vld [vmem:[#allocation12 + $0x2d4] ss:$12 sps:$4 sm:$0xff]   ;;  %v12963_v50 = vld [vmem:[#allocation13 + $0x25c] ss:$12 sps:$4 sm:$0xff]  }
 0x989   :  { %v5957_v54 = vpop.permute.xlu1 %5956 }
 0x98a   :  { %13434 = vpow2.f32 %v5827_v59  ;;  %v5966_v60 = vand.u32 %v5957_v54, %v13946_v51  ;;  %v5958_v4 = vsel %vm2054_vm4, %v5955_v62, %v5957_v54  ;;  %v12901_v59 = vld [vmem:[#allocation12 + $0x2ec] ss:$12 sps:$4 sm:$0xff]   ;;  %v12899_v54 = vld [vmem:[#allocation12 + $0x2e8] ss:$12 sps:$4 sm:$0xff]  }
 0x98b   :  { %v5963_v11 = vand.u32 %v5958_v4, %v13946_v51  ;;  %v12911_v62 = vld [vmem:[#allocation12 + $0x318] ss:$12 sps:$4 sm:$0xff]   ;;  %v12919_v4 = vld [vmem:[#allocation12 + $0x334] ss:$12 sps:$4 sm:$0xff]  }
 0x98c   :  { %5968 = vmatprep.subr.bf16.mxu1 %v5966_v60  ;;  %v12907_v60 = vld [vmem:[#allocation12 + $0x304] ss:$12 sps:$4 sm:$0xff]  }
 0x994   :  { %v13435_v41 = vpop.eup %13434 }
 0x995   :  { %13436 = vrcp.f32 %v13435_v41 }
 0x99f   :  { %v13437_v61 = vpop.eup %13436 }
 0x9a0   :  { %v5831_v10 = vmul.f32 %v13437_v61, %v13435_v41  ;;  %v12905_v41 = vld [vmem:[#allocation12 + $0x300] ss:$12 sps:$4 sm:$0xff]   ;;  %v12913_v61 = vld [vmem:[#allocation12 + $0x31c] ss:$12 sps:$4 sm:$0xff]  }
 0x9a2   :  { %v5832_v30 = vpack.c.bf16 %v5831_v10, %v5831_v10  ;;  %v12917_v10 = vld [vmem:[#allocation12 + $0x330] ss:$12 sps:$4 sm:$0xff]  }
 0x9a4   :  { %11035 = vmatmul.mubr.msk.bf16.vlgmr.msra.gmra.mrb[116].mxu1 %vm1994_vm5, %v5832_v30  ;;  %v12922_v30 = vld [vmem:[#allocation12 + $0x3ac] ss:$12 sps:$4 sm:$0xff]  }
 0x9a5   :  { %5969 = vmatpush1.bf16.msra.mxu1 %v5963_v11  ;;  %6000 = vmatprep.mubr.bf16.mxu1 %v13648_v2  ;;  %v12920_v11 = vld [vmem:[#allocation12 + $0x3a8] ss:$12 sps:$4 sm:$0xff]  }
 0x9a6   :  { %6469 = vmatprep.subr.bf16.mxu1 %v12904_v38  ;;  %v12929_v38 = vld [vmem:[#allocation12 + $0x200] ss:$12 sps:$4 sm:$0xff]  }
 0xa25   :  { %v5939_v63 = vpop.f32.mrb[48].mxu0 }
 0xa26   :  { %v5940_v24 = vadd.f32 %v13451_v52, %v5939_v63  ;;  %v5941_v13 = vpop.f32.mrb[49].mxu0  ;;  %v12892_v52 = vld [vmem:[#allocation12 + $0x2a4] ss:$12 sps:$4 sm:$0xff]   ;;  %v12925_v63 = vld [vmem:[#allocation12 + $0x34c] ss:$12 sps:$4 sm:$0xff]  }
 0xa27   :  { %v5942_v14 = vpop.f32.mrb[50].mxu0  ;;  %6444 = vmatprep.subr.bf16.mxu0 %v12892_v52  ;;  %v12926_v13 = vld [vmem:[#allocation12 + $0x2a8] ss:$12 sps:$4 sm:$0xff]   ;;  %v12937_v52 = vld [vmem:[#allocation12 + $0x260] ss:$12 sps:$4 sm:$0xff]  }
 0xa28   :  { %v5945_v12 = vsub.f32 %v5940_v24, %v5940_v24  ;;  %v5943_v7 = vpop.f32.mrb[51].mxu0  ;;  %6445 = vmatpush1.bf16.msra.mxu0 %v12890_v47  ;;  %v12923_v24 = vld [vmem:[#allocation12 + $0x348] ss:$12 sps:$4 sm:$0xff]   ;;  %v12938_v47 = vld [vmem:[#allocation12 + $0x338] ss:$12 sps:$4 sm:$0xff]  }
 0xa29   :  { %6446 = vmatprep.subr.bf16.mxu0 %v12895_v53  ;;  %v12961_v53 = vld [vmem:[#allocation13 + $0x258] ss:$12 sps:$4 sm:$0xff]  }
 0xa2a   :  { %v5946_v17 = vmul.f32 1.442695, %v5945_v12 }
 0xa2c   :  { %13438 = vpow2.f32 %v5946_v17  ;;  %6447 = vmatpush1.bf16.msra.mxu0 %v12893_v46  ;;  %v12966_v46 = vld [vmem:[#allocation13 + $0x274] ss:$12 sps:$4 sm:$0xff]  }
 0xa2d   :  { %6448 = vmatprep.subr.bf16.mxu0 %v12898_v56  ;;  %v12939_v56 = vld [vmem:[#allocation12 + $0x278] ss:$12 sps:$4 sm:$0xff]  }
 0xa30   :  { %6449 = vmatpush1.bf16.msra.mxu0 %v12896_v57  ;;  %v12940_v57 = vld [vmem:[#allocation12 + $0x350] ss:$12 sps:$4 sm:$0xff]  }
 0xa31   :  { %6450 = vmatprep.subr.bf16.mxu0 %v12901_v59  ;;  %v12964_v59 = vld [vmem:[#allocation13 + $0x270] ss:$12 sps:$4 sm:$0xff]  }
 0xa34   :  { %6451 = vmatpush1.bf16.msra.mxu0 %v12899_v54  ;;  %v12969_v54 = vld [vmem:[#allocation13 + $0x28c] ss:$12 sps:$4 sm:$0xff]  }
 0xa35   :  { %6452 = vmatprep.subr.bf16.mxu0 %v12907_v60  ;;  %v12941_v60 = vld [vmem:[#allocation12 + $0x290] ss:$12 sps:$4 sm:$0xff]  }
 0xa36   :  { %v13439_v18 = vpop.eup %13438 }
 0xa37   :  { %13440 = vrcp.f32 %v13439_v18 }
 0xa38   :  { %6453 = vmatpush1.bf16.msra.mxu0 %v12905_v41  ;;  %v12967_v41 = vld [vmem:[#allocation13 + $0x288] ss:$12 sps:$4 sm:$0xff]  }
 0xa39   :  { %6454 = vmatprep.subr.bf16.mxu0 %v12913_v61  ;;  %v12972_v61 = vld [vmem:[#allocation13 + $0x2a4] ss:$12 sps:$4 sm:$0xff]  }
 0xa3c   :  { %6455 = vmatpush1.bf16.msra.mxu0 %v12911_v62  ;;  %v12942_v62 = vld [vmem:[#allocation12 + $0x368] ss:$12 sps:$4 sm:$0xff]  }
 0xa3d   :  { %6456 = vmatprep.subr.bf16.mxu0 %v12919_v4  ;;  %v12970_v4 = vld [vmem:[#allocation13 + $0x2a0] ss:$12 sps:$4 sm:$0xff]  }
 0xa40   :  { %6457 = vmatpush1.bf16.msra.mxu0 %v12917_v10  ;;  %v12975_v10 = vld [vmem:[#allocation13 + $0x2bc] ss:$12 sps:$4 sm:$0xff]  }
 0xa41   :  { %v13441_v19 = vpop.eup %13440  ;;  %6458 = vmatprep.subr.bf16.mxu0 %v12925_v63  ;;  %v12978_v63 = vld [vmem:[#allocation13 + $0x2d4] ss:$12 sps:$4 sm:$0xff]  }
 0xa42   :  { %v5950_v20 = vmul.f32 %v13441_v19, %v13439_v18  ;;  %v12948_v19 = vld [vmem:[#allocation13 + $0x1e4] ss:$12 sps:$4 sm:$0xff]  }
 0xa44   :  { %v5951_v21 = vpack.c.bf16 %v5950_v20, %v5950_v20  ;;  %6459 = vmatpush1.bf16.msra.mxu0 %v12923_v24  ;;  %v12944_v24 = vld [vmem:[#allocation12 + $0x398] ss:$12 sps:$4 sm:$0xff]  }
 0xa45   :  { %7021 = vmatprep.subr.bf16.mxu0 %v12948_v19  ;;  %v12987_v19 = vld [vmem:[#allocation13 + $0x31c] ss:$12 sps:$4 sm:$0xff]  }
 0xa46   :  { %11038 = vmatmul.mubr.msk.bf16.vlgmr.msra.gmra.mrb[120].mxu1 %vm1994_vm5, %v5951_v21 }
 0xa47   :  { %6501 = vmatprep.mubr.bf16.mxu1 %v13648_v2  ;;  %6470 = vmatpush1.bf16.msra.mxu1 %v12902_v37  ;;  %v12951_v37 = vld [vmem:[#allocation13 + $0x1fc] ss:$12 sps:$4 sm:$0xff]  }
 0xa48   :  { %6471 = vmatprep.subr.bf16.mxu1 %v12910_v8  ;;  %v12949_v8 = vld [vmem:[#allocation13 + $0x1f8] ss:$12 sps:$4 sm:$0xff]  }
 0xa4b   :  { %6472 = vmatpush1.bf16.msra.mxu1 %v12908_v39  ;;  %v12932_v39 = vld [vmem:[#allocation12 + $0x2f0] ss:$12 sps:$4 sm:$0xff]  }
 0xa4c   :  { %6473 = vmatprep.subr.bf16.mxu1 %v12916_v42  ;;  %v12957_v42 = vld [vmem:[#allocation13 + $0x22c] ss:$12 sps:$4 sm:$0xff]  }
 0xa4f   :  { %6474 = vmatpush1.bf16.msra.mxu1 %v12914_v44  ;;  %v12934_v44 = vld [vmem:[#allocation12 + $0x308] ss:$12 sps:$4 sm:$0xff]  }
 0xa50   :  { %6475 = vmatprep.subr.bf16.mxu1 %v12922_v30  ;;  %v12943_v30 = vld [vmem:[#allocation12 + $0x380] ss:$12 sps:$4 sm:$0xff]  }
 0xa53   :  { %6476 = vmatpush1.bf16.msra.mxu1 %v12920_v11  ;;  %v12973_v11 = vld [vmem:[#allocation13 + $0x2b8] ss:$12 sps:$4 sm:$0xff]  }
 0xa54   :  { %11732 = vmatprep.subr.bf16.mxu1 %v12926_v13  ;;  %v12976_v13 = vld [vmem:[#allocation13 + $0x2d0] ss:$12 sps:$4 sm:$0xff]  }
 0xa77   :  { %v14203_v1 = vpop.f32.mrb[116].mxu1 }
 0xa78   :  { %v14205_v22 = vpop.f32.mrb[117].mxu1  ;;  %v14215_v32 = vpack.c.bf16 %v14203_v1, %v14203_v1  ;;  %v12931_v1 = vld [vmem:[#allocation12 + $0x218] ss:$12 sps:$4 sm:$0xff]  }
 0xa79   :  { %v5880_v25 = vpop.f32.mrb[118].mxu1 }
 0xa7a   :  { %v5881_v35 = vpop.f32.mrb[119].mxu1 }
 0xb19   :  { %v6002_v14 = vpop.f32.mrb[120].mxu1 }
 0xb1a   :  { %v6004_v12 = vpop.f32.mrb[121].mxu1 }
 0xb1b   :  { %v12135_v7 = vpack.i.bf16 %v6004_v12, %v6002_v14  ;;  %v6006_v17 = vpop.f32.mrb[122].mxu1  ;;  %v12981_v14 = vld [vmem:[#allocation13 + $0x2ec] ss:$12 sps:$4 sm:$0xff]   ;;  %v12945_v12 = vld [vmem:[#allocation12 + $0x3b0] ss:$12 sps:$4 sm:$0xff]  }
 0xb1c   :  { %v6007_v18 = vpop.f32.mrb[123].mxu1  ;;  %v12984_v17 = vld [vmem:[#allocation13 + $0x304] ss:$12 sps:$4 sm:$0xff]  }
 0xb1d   :  { %12136 = vrot.lane.b32.xlu0 %v12135_v7, %s13653_s23  ;;  %v12979_v7 = vld [vmem:[#allocation13 + $0x2e8] ss:$12 sps:$4 sm:$0xff]   ;;  %v12982_v18 = vld [vmem:[#allocation13 + $0x300] ss:$12 sps:$4 sm:$0xff]  }
 0xb8f   :  { %v12137_v20 = vpop.permute.xlu0 %12136 }
 0xb90   :  { %v12139_v21 = vunpack.i.h.bf16 %v12137_v20  ;;  %v12138_v25 = vunpack.i.l.bf16 %v12137_v20  ;;  %v12985_v20 = vld [vmem:[#allocation13 + $0x318] ss:$12 sps:$4 sm:$0xff]  }
 0xb92   :  { %v6015_v35 = vsel %vm1940_vm2, %v12138_v25, %v12139_v21  ;;  %v6018_v26 = vsel %vm1940_vm2, %v14205_v22, %v12138_v25  ;;  %v12930_v22 = vld [vmem:[#allocation12 + $0x2d8] ss:$12 sps:$4 sm:$0xff]   ;;  %v12990_v21 = vld [vmem:[#allocation13 + $0x334] ss:$12 sps:$4 sm:$0xff]   ;;  %v12988_v25 = vld [vmem:[#allocation13 + $0x330] ss:$12 sps:$4 sm:$0xff]  }
 0xb93   :  { %v14211_v27 = vpack.c.bf16 %v6015_v35, %v6015_v35  ;;  %v6020_v28 = vpack.c.bf16 %v6018_v26, %v6018_v26  ;;  %v12993_v35 = vld [vmem:[#allocation13 + $0x34c] ss:$12 sps:$4 sm:$0xff]   ;;  %v12991_v26 = vld [vmem:[#allocation13 + $0x348] ss:$12 sps:$4 sm:$0xff]  }
 0xb95   :  { %6460 = vmatprep.mubr.bf16.mxu0 %v6020_v28  ;;  %11100 = vmatmul.mubr.msk.bf16.vlgmr.msra.gmra.mrb[124].mxu1 %vm582_vm0, %v14211_v27 }
 0xb96   :  { %11733 = vmatpush3.bf16.msra.mxu1 %v12927_v29  ;;  %6461 = vmatmul.mubr.bf16.vlgmr.msra.gmra.mrb[52].mxu0 %v14215_v32  ;;  %v12994_v29 = vld [vmem:[#allocation13 + $0x360] ss:$12 sps:$4 sm:$0xff]  }
 0xb97   :  { %6542 = vmatprep.mubr.bf16.mxu1 %v6020_v28  ;;  %11734 = vmatprep.subr.bf16.mxu1 %v12928_v6  ;;  %v12996_v28 = vld [vmem:[#allocation13 + $0x364] ss:$12 sps:$4 sm:$0xff]   ;;  %v12999_v6 = vld [vmem:[#allocation13 + $0x37c] ss:$12 sps:$4 sm:$0xff]  }
 0xb98   :  { %7022 = vmatpush1.bf16.msra.mxu0 %v12946_v36  ;;  %v13000_v36 = vld [vmem:[#allocation13 + $0x390] ss:$12 sps:$4 sm:$0xff]  }
 0xb99   :  { %7023 = vmatprep.subr.bf16.mxu0 %v12951_v37  ;;  %v13005_v37 = vld [vmem:[#allocation13 + $0x3ac] ss:$12 sps:$4 sm:$0xff]  }
 0xb9a   :  { %11735 = vmatpush3.bf16.msra.mxu1 %v12929_v38  ;;  %v13003_v38 = vld [vmem:[#allocation13 + $0x3a8] ss:$12 sps:$4 sm:$0xff]  }
 0xb9b   :  { %11736 = vmatprep.subr.bf16.mxu1 %v12930_v22  ;;  %v13006_v22 = vld [vmem:[#allocation13 + $0x2a8] ss:$12 sps:$4 sm:$0xff]  }
 0xb9c   :  { %7024 = vmatpush1.bf16.msra.mxu0 %v12949_v8  ;;  %v13028_v8 = vld [vmem:[#allocation7 + $0x3c4] ss:$12 sps:$4 sm:$0xff]  }
 0xb9d   :  { %7025 = vmatprep.subr.bf16.mxu0 %v12954_v15  ;;  %v11039_v15 = vld [vmem:[%s14467_s10 + $0x3] sm:$0x7] }
 0xb9e   :  { %11737 = vmatpush3.bf16.msra.mxu1 %v12931_v1 }
 0xb9f   :  { %11738 = vmatprep.subr.bf16.mxu1 %v12932_v39  ;;  %v6594_v39 = vrot.slane %v11039_v15, %v13913_v31 }
 0xba0   :  { %7026 = vmatpush1.bf16.msra.mxu0 %v12952_v40 }
 0xba1   :  { %7027 = vmatprep.subr.bf16.mxu0 %v12957_v42 }
 0xba2   :  { %11739 = vmatpush3.bf16.msra.mxu1 %v12933_v43  ;;  %v6598_v43 = vrot.slane %v11039_v15, %v13919_v33 }
 0xba3   :  { %11740 = vmatprep.subr.bf16.mxu1 %v12934_v44 }
 0xba4   :  { %7028 = vmatpush1.bf16.msra.mxu0 %v12955_v58 }
 0xba5   :  { %7029 = vmatprep.subr.bf16.mxu0 %v12960_v16 }
 0xba6   :  { %11741 = vmatpush3.bf16.msra.mxu1 %v12935_v45 }
 0xba7   :  { %11742 = vmatprep.subr.bf16.mxu1 %v12936_v48 }
 0xba8   :  { %7030 = vmatpush1.bf16.msra.mxu0 %v12958_v49 }
 0xba9   :  { %7031 = vmatprep.subr.bf16.mxu0 %v12963_v50 }
 0xbaa   :  { %11743 = vmatpush3.bf16.msra.mxu1 %v12937_v52 }
 0xbab   :  { %11744 = vmatprep.subr.bf16.mxu1 %v12938_v47 }
 0xbac   :  { %7032 = vmatpush1.bf16.msra.mxu0 %v12961_v53 }
 0xbad   :  { %7033 = vmatprep.subr.bf16.mxu0 %v12966_v46 }
 0xbae   :  { %11745 = vmatpush3.bf16.msra.mxu1 %v12939_v56 }
 0xbaf   :  { %11746 = vmatprep.subr.bf16.mxu1 %v12940_v57  ;;  %v13026_v57 = vld [vmem:[#allocation7 + $0x3c0] ss:$12 sps:$4 sm:$0xff]  }
 0xbb0   :  { %7034 = vmatpush1.bf16.msra.mxu0 %v12964_v59 }
 0xbb1   :  { %7035 = vmatprep.subr.bf16.mxu0 %v12969_v54  ;;  %v13031_v54 = vld [vmem:[#allocation7 + $0x3dc] ss:$12 sps:$4 sm:$0xff]  }
 0xbb2   :  { %11747 = vmatpush3.bf16.msra.mxu1 %v12941_v60  ;;  %v13029_v60 = vld [vmem:[#allocation7 + $0x3d8] ss:$12 sps:$4 sm:$0xff]  }
 0xbb3   :  { %12029 = vmatprep.subr.bf16.mxu1 %v13650_v3 }
 0xbb4   :  { %7036 = vmatpush1.bf16.msra.mxu0 %v12967_v41 }
 0xbb5   :  { %6543 = vmatmul.mubr.bf16.vlgmr.msra.gmra.mrb[128].mxu1 %v14215_v32  ;;  %7037 = vmatprep.subr.bf16.mxu0 %v12972_v61  ;;  %v13002_v32 = vld [vmem:[#allocation13 + $0x394] ss:$12 sps:$4 sm:$0xff]  }
 0xbb6   :  { %12030 = vmatpush3.bf16.msra.mxu1 %v12942_v62  ;;  %12037 = vmatprep.mubr.msk.bf16.mxu1 %vm13651_vm1, %v13650_v3 }
 0xbb7   :  { %12031 = vmatprep.subr.bf16.mxu1 %v13650_v3 }
 0xbb8   :  { %7038 = vmatpush1.bf16.msra.mxu0 %v12970_v4  ;;  %v6602_v4 = vrot.slane %v11039_v15, %v13922_v34  ;;  %v13025_v15 = vld [vmem:[#allocation13 + $0x3b0] ss:$12 sps:$4 sm:$0xff]  }
 0xbb9   :  { %7039 = vmatprep.subr.bf16.mxu0 %v12975_v10 }
 0xbba   :  { %12032 = vmatpush3.bf16.msra.mxu1 %v12943_v30 }
 0xbbb   :  { %12033 = vmatprep.subr.bf16.mxu1 %v13650_v3 }
 0xbbc   :  { %7040 = vmatpush1.bf16.msra.mxu0 %v12973_v11 }
 0xbbd   :  { %7041 = vmatprep.subr.bf16.mxu0 %v12978_v63 }
 0xbbe   :  { %12034 = vmatpush3.bf16.msra.mxu1 %v12944_v24 }
 0xbbf   :  { %12035 = vmatprep.subr.bf16.mxu1 %v13650_v3 }
 0xbc0   :  { %7042 = vmatpush1.bf16.msra.mxu0 %v12976_v13 }
 0xbc1   :  { %7043 = vmatprep.subr.bf16.mxu0 %v12981_v14 }
 0xbc2   :  { %12036 = vmatpush3.bf16.msra.mxu1 %v12945_v12  ;;  %v13007_v12 = vld [vmem:[#allocation13 + $0x1e8] ss:$12 sps:$4 sm:$0xff]  }
 0xbc3   :  { %7062 = vmatprep.subr.bf16.mxu1 %v12996_v28  ;;  %v13018_v28 = vld [vmem:[#allocation13 + $0x338] ss:$12 sps:$4 sm:$0xff]  }
 0xbc4   :  { %7044 = vmatpush1.bf16.msra.mxu0 %v12979_v7 }
 0xbc5   :  { %12038 = vmatmul.mubr.msk.bf16.vlgmr.msra.gmra.mrb[132].mxu1 %vm582_vm0, %v14211_v27  ;;  %7045 = vmatprep.subr.bf16.mxu0 %v12984_v17  ;;  %v12997_v27 = vld [vmem:[#allocation13 + $0x378] ss:$12 sps:$4 sm:$0xff]   ;;  %v13008_v17 = vld [vmem:[#allocation13 + $0x2c0] ss:$12 sps:$4 sm:$0xff]  }
 0xbc6   :  { %7094 = vmatprep.mubr.bf16.mxu1 %v13648_v2  ;;  %7063 = vmatpush1.bf16.msra.mxu1 %v12994_v29  ;;  %v13017_v29 = vld [vmem:[#allocation13 + $0x260] ss:$12 sps:$4 sm:$0xff]  }
 0xbc7   :  { %7064 = vmatprep.subr.bf16.mxu1 %v12999_v6  ;;  %v13019_v6 = vld [vmem:[#allocation13 + $0x278] ss:$12 sps:$4 sm:$0xff]  }
 0xbc8   :  { %7046 = vmatpush1.bf16.msra.mxu0 %v12982_v18  ;;  %v13009_v18 = vld [vmem:[#allocation13 + $0x200] ss:$12 sps:$4 sm:$0xff]  }
 0xbc9   :  { %7047 = vmatprep.subr.bf16.mxu0 %v12987_v19  ;;  %v13010_v19 = vld [vmem:[#allocation13 + $0x2d8] ss:$12 sps:$4 sm:$0xff]  }
 0xbca   :  { %7065 = vmatpush1.bf16.msra.mxu1 %v12997_v27  ;;  %v13020_v27 = vld [vmem:[#allocation13 + $0x350] ss:$12 sps:$4 sm:$0xff]  }
 0xbcb   :  { %7066 = vmatprep.subr.bf16.mxu1 %v13002_v32  ;;  %v13021_v32 = vld [vmem:[#allocation13 + $0x290] ss:$12 sps:$4 sm:$0xff]  }
 0xbcc   :  { %7048 = vmatpush1.bf16.msra.mxu0 %v12985_v20  ;;  %v13011_v20 = vld [vmem:[#allocation13 + $0x218] ss:$12 sps:$4 sm:$0xff]  }
 0xbcd   :  { %7049 = vmatprep.subr.bf16.mxu0 %v12990_v21  ;;  %v13012_v21 = vld [vmem:[#allocation13 + $0x2f0] ss:$12 sps:$4 sm:$0xff]  }
 0xbce   :  { %7067 = vmatpush1.bf16.msra.mxu1 %v13000_v36  ;;  %v13022_v36 = vld [vmem:[#allocation13 + $0x368] ss:$12 sps:$4 sm:$0xff]  }
 0xbcf   :  { %7068 = vmatprep.subr.bf16.mxu1 %v13005_v37  ;;  %v13023_v37 = vld [vmem:[#allocation13 + $0x380] ss:$12 sps:$4 sm:$0xff]  }
 0xbd0   :  { %7050 = vmatpush1.bf16.msra.mxu0 %v12988_v25  ;;  %v13013_v25 = vld [vmem:[#allocation13 + $0x230] ss:$12 sps:$4 sm:$0xff]  }
 0xbd1   :  { %7051 = vmatprep.subr.bf16.mxu0 %v12993_v35  ;;  %v13015_v35 = vld [vmem:[#allocation13 + $0x248] ss:$12 sps:$4 sm:$0xff]  }
 0xbd2   :  { %7069 = vmatpush1.bf16.msra.mxu1 %v13003_v38  ;;  %v13024_v38 = vld [vmem:[#allocation13 + $0x398] ss:$12 sps:$4 sm:$0xff]  }
 0xbd3   :  { %11759 = vmatprep.subr.bf16.mxu1 %v13006_v22  ;;  %v13032_v22 = vld [vmem:[#allocation7 + $0x3f0] ss:$12 sps:$4 sm:$0xff]  }
 0xbd4   :  { %7052 = vmatpush1.bf16.msra.mxu0 %v12991_v26  ;;  %v13016_v26 = vld [vmem:[#allocation13 + $0x320] ss:$12 sps:$4 sm:$0xff]  }
 0xbd5   :  { %7617 = vmatprep.subr.bf16.mxu0 %v13028_v8  ;;  %v13034_v8 = vld [vmem:[#allocation7 + $0x3f4] ss:$12 sps:$4 sm:$0xff]  }
 0xc68   :  { %v6503_v1 = vpop.f32.mrb[124].mxu1 }
 0xc69   :  { %v6462_v40 = vpop.f32.mrb[52].mxu0  ;;  %v6505_v42 = vpop.f32.mrb[125].mxu1 }
 0xc6a   :  { %v6504_v44 = vadd.f32 %v6503_v1, %v6462_v40  ;;  %v6464_v58 = vpop.f32.mrb[53].mxu0  ;;  %v6507_v16 = vpop.f32.mrb[126].mxu1  ;;  %v13035_v1 = vld [vmem:[#allocation7 + $0x408] ss:$12 sps:$4 sm:$0xff]   ;;  %v13040_v40 = vld [vmem:[#allocation7 + $0x424] ss:$12 sps:$4 sm:$0xff]  }
 0xc6b   :  { %v6506_v45 = vadd.f32 %v6505_v42, %v6464_v58  ;;  %v6466_v48 = vpop.f32.mrb[54].mxu0  ;;  %v6508_v49 = vpop.f32.mrb[127].mxu1  ;;  %v13038_v42 = vld [vmem:[#allocation7 + $0x420] ss:$12 sps:$4 sm:$0xff]   ;;  %v13044_v16 = vld [vmem:[#allocation7 + $0x450] ss:$12 sps:$4 sm:$0xff]  }
 0xc6c   :  { %v6606_v50 = vadd.f32 %v6594_v39, %v6504_v44  ;;  %v6467_v52 = vpop.f32.mrb[55].mxu0  ;;  %v13037_v39 = vld [vmem:[#allocation7 + $0x40c] ss:$12 sps:$4 sm:$0xff]   ;;  %v13046_v58 = vld [vmem:[#allocation7 + $0x454] ss:$12 sps:$4 sm:$0xff]  }
 0xc6d   :  { %v6607_v47 = vadd.f32 %v6598_v43, %v6506_v45  ;;  %v13043_v43 = vld [vmem:[#allocation7 + $0x43c] ss:$12 sps:$4 sm:$0xff]   ;;  %v13041_v44 = vld [vmem:[#allocation7 + $0x438] ss:$12 sps:$4 sm:$0xff]  }
 0xc6e   :  { %v14236_v53 = vadd.f32 %v6606_v50, %v14062_v5  ;;  %v13049_v45 = vld [vmem:[#allocation7 + $0x46c] ss:$12 sps:$4 sm:$0xff]   ;;  %v13047_v48 = vld [vmem:[#allocation7 + $0x468] ss:$12 sps:$4 sm:$0xff]   ;;  %v13052_v49 = vld [vmem:[#allocation7 + $0x484] ss:$12 sps:$4 sm:$0xff]  }
 0xc6f   :  { %v14239_v46 = vadd.f32 %v6607_v47, %v14037_v0  ;;  %v13050_v50 = vld [vmem:[#allocation7 + $0x480] ss:$12 sps:$4 sm:$0xff]   ;;  %v13055_v52 = vld [vmem:[#allocation7 + $0x49c] ss:$12 sps:$4 sm:$0xff]   ;;  %v13053_v47 = vld [vmem:[#allocation7 + $0x498] ss:$12 sps:$4 sm:$0xff]  }
 0xc70   :  { %v6612_v59 = vpack.c.bf16 %v14236_v53, %v14236_v53 }
 0xc71   :  { %v6613_v56 = vpack.c.bf16 %v14239_v46, %v14239_v46 }
 0xc73   :  { %7053 = vmatprep.mubr.bf16.mxu0 %v6613_v56 }
 0xc74   :  { %7054 = vmatmul.mubr.bf16.vlgmr.msra.gmra.mrb[56].mxu0 %v6612_v59 }
 0xc75   :  { %7618 = vmatpush1.bf16.msra.mxu0 %v13026_v57  ;;  %v13056_v57 = vld [vmem:[#allocation7 + $0x4b0] ss:$12 sps:$4 sm:$0xff]  }
 0xc76   :  { %7619 = vmatprep.subr.bf16.mxu0 %v13031_v54  ;;  %v13059_v54 = vld [vmem:[#allocation7 + $0x4c8] ss:$12 sps:$4 sm:$0xff]  }
 0xc79   :  { %7620 = vmatpush1.bf16.msra.mxu0 %v13029_v60  ;;  %v13064_v60 = vld [vmem:[#allocation7 + $0x4e4] ss:$12 sps:$4 sm:$0xff]  }
 0xc7a   :  { %7621 = vmatprep.subr.bf16.mxu0 %v13034_v8 }
 0xc7d   :  { %7622 = vmatpush1.bf16.msra.mxu0 %v13032_v22 }
 0xc7e   :  { %7623 = vmatprep.subr.bf16.mxu0 %v13037_v39 }
 0xc81   :  { %7624 = vmatpush1.bf16.msra.mxu0 %v13035_v1 }
 0xc82   :  { %7625 = vmatprep.subr.bf16.mxu0 %v13040_v40 }
 0xc85   :  { %7626 = vmatpush1.bf16.msra.mxu0 %v13038_v42  ;;  %v13074_v42 = vld [vmem:[#allocation9 + $0x3c0] ss:$12 sps:$4 sm:$0xff]  }
 0xc86   :  { %7627 = vmatprep.subr.bf16.mxu0 %v13043_v43 }
 0xc88   :  { %v11748_v41 = vpop.f32.mrb[128].mxu1 }
 0xc89   :  { %v11749_v5 = vpop.f32.mrb[129].mxu1  ;;  %7628 = vmatpush1.bf16.msra.mxu0 %v13041_v44  ;;  %v13079_v44 = vld [vmem:[#allocation9 + $0x3dc] ss:$12 sps:$4 sm:$0xff]  }
 0xc8a   :  { %v11750_v61 = vadd.f32 %v11749_v5, %v11748_v41  ;;  %v11751_v62 = vpop.f32.mrb[130].mxu1  ;;  %7629 = vmatprep.subr.bf16.mxu0 %v13046_v58  ;;  %v13062_v41 = vld [vmem:[#allocation7 + $0x4e0] ss:$12 sps:$4 sm:$0xff]   ;;  %v13067_v5 = vld [vmem:[#allocation7 + $0x4fc] ss:$12 sps:$4 sm:$0xff]  }
 0xc8b   :  { %v11752_v0 = vpop.f32.mrb[131].mxu1  ;;  %v13070_v62 = vld [vmem:[#allocation7 + $0x514] ss:$12 sps:$4 sm:$0xff]   ;;  %v13080_v58 = vld [vmem:[#allocation9 + $0x3f0] ss:$12 sps:$4 sm:$0xff]  }
 0xc8c   :  { %v13068_v0 = vld [vmem:[#allocation7 + $0x510] ss:$12 sps:$4 sm:$0xff]  }
 0xc8d   :  { %7630 = vmatpush1.bf16.msra.mxu0 %v13044_v16  ;;  %v13085_v16 = vld [vmem:[#allocation9 + $0x40c] ss:$12 sps:$4 sm:$0xff]  }
 0xc8e   :  { %7631 = vmatprep.subr.bf16.mxu0 %v13049_v45  ;;  %v13083_v45 = vld [vmem:[#allocation9 + $0x408] ss:$12 sps:$4 sm:$0xff]  }
 0xc91   :  { %7632 = vmatpush1.bf16.msra.mxu0 %v13047_v48  ;;  %v13088_v48 = vld [vmem:[#allocation9 + $0x424] ss:$12 sps:$4 sm:$0xff]  }
 0xc92   :  { %7633 = vmatprep.subr.bf16.mxu0 %v13052_v49  ;;  %v13086_v49 = vld [vmem:[#allocation9 + $0x420] ss:$12 sps:$4 sm:$0xff]  }
 0xc95   :  { %7634 = vmatpush1.bf16.msra.mxu0 %v13050_v50  ;;  %v13091_v50 = vld [vmem:[#allocation9 + $0x43c] ss:$12 sps:$4 sm:$0xff]  }
 0xc96   :  { %7635 = vmatprep.subr.bf16.mxu0 %v13055_v52  ;;  %v13089_v52 = vld [vmem:[#allocation9 + $0x438] ss:$12 sps:$4 sm:$0xff]  }
 0xc98   :  { %v6584_v10 = vpop.f32.mrb[132].mxu1 }
 0xc99   :  { %v6585_v30 = vadd.f32 %v11750_v61, %v6584_v10  ;;  %v12039_v11 = vpop.f32.mrb[133].mxu1  ;;  %7636 = vmatpush1.bf16.msra.mxu0 %v13053_v47  ;;  %v13065_v61 = vld [vmem:[#allocation7 + $0x4f8] ss:$12 sps:$4 sm:$0xff]   ;;  %v13071_v10 = vld [vmem:[#allocation7 + $0x528] ss:$12 sps:$4 sm:$0xff]  }
 0xc9a   :  { %v6587_v63 = vpop.f32.mrb[134].mxu1  ;;  %v13098_v11 = vld [vmem:[#allocation7 + $0x540] ss:$12 sps:$4 sm:$0xff]  }
 0xc9b   :  { %v6608_v24 = vadd.f32 %v6602_v4, %v6585_v30  ;;  %v12040_v13 = vpop.f32.mrb[135].mxu1  ;;  %v13073_v4 = vld [vmem:[#allocation7 + $0x52c] ss:$12 sps:$4 sm:$0xff]   ;;  %v13076_v30 = vld [vmem:[#allocation9 + $0x3c4] ss:$12 sps:$4 sm:$0xff]  }
 0xc9c   :  { %v13100_v63 = vld [vmem:[#allocation7 + $0x544] ss:$12 sps:$4 sm:$0xff]   ;;  %v13106_v13 = vld [vmem:[#allocation7 + $0x55c] ss:$12 sps:$4 sm:$0xff]   ;;  %v13094_v47 = vld [vmem:[#allocation9 + $0x454] ss:$12 sps:$4 sm:$0xff]  }
 0xc9d   :  { %v14247_v14 = vadd.f32 %v6608_v24, %v14081_v55  ;;  %v13014_v55 = vld [vmem:[#allocation13 + $0x308] ss:$12 sps:$4 sm:$0xff]   ;;  %v13104_v24 = vld [vmem:[#allocation7 + $0x558] ss:$12 sps:$4 sm:$0xff]  }
 0xc9f   :  { %v6614_v7 = vpack.c.bf16 %v14247_v14, %v14247_v14 }
 0xca1   :  { %11163 = vmatmul.mubr.msk.bf16.vlgmr.msra.gmra.mrb[136].mxu1 %vm582_vm0, %v6614_v7 }
 0xca2   :  { %11760 = vmatpush3.bf16.msra.mxu1 %v13007_v12  ;;  %7135 = vmatprep.mubr.bf16.mxu1 %v6613_v56  ;;  %v13058_v56 = vld [vmem:[#allocation7 + $0x4b4] ss:$12 sps:$4 sm:$0xff]  }
 0xca3   :  { %11761 = vmatprep.subr.bf16.mxu1 %v13008_v17  ;;  %7637 = vmatprep.subr.bf16.mxu0 %v13058_v56  ;;  %v13112_v12 = vld [vmem:[#allocation7 + $0x574] ss:$12 sps:$4 sm:$0xff]   ;;  %v13118_v17 = vld [vmem:[#allocation7 + $0x58c] ss:$12 sps:$4 sm:$0xff]  }
 0xca4   :  { %7638 = vmatpush1.bf16.msra.mxu0 %v13056_v57 }
 0xca6   :  { %11762 = vmatpush3.bf16.msra.mxu1 %v13009_v18  ;;  %v13116_v18 = vld [vmem:[#allocation7 + $0x588] ss:$12 sps:$4 sm:$0xff]  }
 0xca7   :  { %11763 = vmatprep.subr.bf16.mxu1 %v13010_v19  ;;  %v13122_v19 = vld [vmem:[#allocation7 + $0x488] ss:$12 sps:$4 sm:$0xff]  }
 0xcaa   :  { %11764 = vmatpush3.bf16.msra.mxu1 %v13011_v20 }
 0xcab   :  { %11765 = vmatprep.subr.bf16.mxu1 %v13012_v21 }
 0xcae   :  { %11766 = vmatpush3.bf16.msra.mxu1 %v13013_v25 }
 0xcaf   :  { %11767 = vmatprep.subr.bf16.mxu1 %v13014_v55 }
 0xcb2   :  { %11768 = vmatpush3.bf16.msra.mxu1 %v13015_v35  ;;  %v14263_v35 = vld [vmem:[%s14469_s12 + $0x3] sm:$0x7] }
 0xcb3   :  { %11769 = vmatprep.subr.bf16.mxu1 %v13016_v26  ;;  %v7187_v26 = vrot.slane %v14263_v35, %v13913_v31 }
 0xcb6   :  { %11770 = vmatpush3.bf16.msra.mxu1 %v13017_v29 }
 0xcb7   :  { %11771 = vmatprep.subr.bf16.mxu1 %v13018_v28  ;;  %v7191_v28 = vrot.slane %v14263_v35, %v13919_v33 }
 0xcba   :  { %11772 = vmatpush3.bf16.msra.mxu1 %v13019_v6 }
 0xcbb   :  { %11773 = vmatprep.subr.bf16.mxu1 %v13020_v27 }
 0xcbe   :  { %11774 = vmatpush3.bf16.msra.mxu1 %v13021_v32 }
 0xcbf   :  { %12041 = vmatprep.subr.bf16.mxu1 %v13650_v3 }
 0xcc1   :  { %7136 = vmatmul.mubr.bf16.vlgmr.msra.gmra.mrb[140].mxu1 %v6612_v59  ;;  %v13061_v59 = vld [vmem:[#allocation7 + $0x4cc] ss:$12 sps:$4 sm:$0xff]  }
 0xcc2   :  { %12042 = vmatpush3.bf16.msra.mxu1 %v13022_v36  ;;  %12049 = vmatprep.mubr.msk.bf16.mxu1 %vm13651_vm1, %v13650_v3 }
 0xcc3   :  { %12043 = vmatprep.subr.bf16.mxu1 %v13650_v3  ;;  %7639 = vmatprep.subr.bf16.mxu0 %v13061_v59 }
 0xcc4   :  { %7640 = vmatpush1.bf16.msra.mxu0 %v13059_v54 }
 0xcc5   :  { %7641 = vmatprep.subr.bf16.mxu0 %v13064_v60  ;;  %v13092_v60 = vld [vmem:[#allocation9 + $0x450] ss:$12 sps:$4 sm:$0xff]  }
 0xcc6   :  { %12044 = vmatpush3.bf16.msra.mxu1 %v13023_v37 }
 0xcc7   :  { %12045 = vmatprep.subr.bf16.mxu1 %v13650_v3 }
 0xcc8   :  { %7642 = vmatpush1.bf16.msra.mxu0 %v13062_v41 }
 0xcc9   :  { %7643 = vmatprep.subr.bf16.mxu0 %v13067_v5  ;;  %v13097_v5 = vld [vmem:[#allocation9 + $0x46c] ss:$12 sps:$4 sm:$0xff]  }
 0xcca   :  { %12046 = vmatpush3.bf16.msra.mxu1 %v13024_v38 }
 0xccb   :  { %12047 = vmatprep.subr.bf16.mxu1 %v13650_v3 }
 0xccc   :  { %7644 = vmatpush1.bf16.msra.mxu0 %v13065_v61  ;;  %v13095_v61 = vld [vmem:[#allocation9 + $0x468] ss:$12 sps:$4 sm:$0xff]  }
 0xccd   :  { %7645 = vmatprep.subr.bf16.mxu0 %v13070_v62  ;;  %v13103_v62 = vld [vmem:[#allocation9 + $0x484] ss:$12 sps:$4 sm:$0xff]  }
 0xcce   :  { %12048 = vmatpush3.bf16.msra.mxu1 %v13025_v15 }
 0xccf   :  { %7658 = vmatprep.subr.bf16.mxu1 %v13100_v63 }
 0xcd0   :  { %7646 = vmatpush1.bf16.msra.mxu0 %v13068_v0  ;;  %v13101_v0 = vld [vmem:[#allocation9 + $0x480] ss:$12 sps:$4 sm:$0xff]  }
 0xcd1   :  { %12050 = vmatmul.mubr.msk.bf16.vlgmr.msra.gmra.mrb[144].mxu1 %vm582_vm0, %v6614_v7  ;;  %7647 = vmatprep.subr.bf16.mxu0 %v13073_v4  ;;  %v13110_v7 = vld [vmem:[#allocation7 + $0x570] ss:$12 sps:$4 sm:$0xff]  }
 0xcd2   :  { %7690 = vmatprep.mubr.bf16.mxu1 %v13648_v2  ;;  %7659 = vmatpush1.bf16.msra.mxu1 %v13098_v11  ;;  %v13109_v4 = vld [vmem:[#allocation9 + $0x49c] ss:$12 sps:$4 sm:$0xff]   ;;  %v13115_v11 = vld [vmem:[#allocation9 + $0x4b4] ss:$12 sps:$4 sm:$0xff]  }
 0xcd3   :  { %7660 = vmatprep.subr.bf16.mxu1 %v13106_v13 }
 0xcd4   :  { %7648 = vmatpush1.bf16.msra.mxu0 %v13071_v10  ;;  %v13107_v10 = vld [vmem:[#allocation9 + $0x498] ss:$12 sps:$4 sm:$0xff]  }
 0xcd5   :  { %8204 = vmatprep.subr.bf16.mxu0 %v13076_v30  ;;  %v7195_v30 = vrot.slane %v14263_v35, %v13922_v34  ;;  %v13123_v35 = vld [vmem:[#allocation7 + $0x3c8] ss:$12 sps:$4 sm:$0xff]  }
 0xcd6   :  { %7661 = vmatpush1.bf16.msra.mxu1 %v13104_v24 }
 0xcd7   :  { %7662 = vmatprep.subr.bf16.mxu1 %v13112_v12 }
 0xcda   :  { %7663 = vmatpush1.bf16.msra.mxu1 %v13110_v7  ;;  %v13113_v7 = vld [vmem:[#allocation9 + $0x4b0] ss:$12 sps:$4 sm:$0xff]  }
 0xcdb   :  { %7664 = vmatprep.subr.bf16.mxu1 %v13118_v17 }
 0xcde   :  { %7665 = vmatpush1.bf16.msra.mxu1 %v13116_v18 }
 0xcdf   :  { %11786 = vmatprep.subr.bf16.mxu1 %v13122_v19  ;;  %v13121_v19 = vld [vmem:[#allocation9 + $0x4cc] ss:$12 sps:$4 sm:$0xff]  }
 0xd47   :  { %v7055_v20 = vpop.f32.mrb[56].mxu0 }
 0xd48   :  { %v7057_v21 = vpop.f32.mrb[57].mxu0 }
 0xd49   :  { %v7059_v25 = vpop.f32.mrb[58].mxu0 }
 0xd4a   :  { %v7060_v55 = vpop.f32.mrb[59].mxu0 }
 0xd4b   :  { %v13126_v55 = vld [vmem:[#allocation9 + $0x4e4] ss:$12 sps:$4 sm:$0xff]  }
 0xd74   :  { %v7096_v29 = vpop.f32.mrb[136].mxu1 }
 0xd75   :  { %v7097_v6 = vadd.f32 %v7096_v29, %v7055_v20  ;;  %v7098_v27 = vpop.f32.mrb[137].mxu1  ;;  %v13127_v29 = vld [vmem:[#allocation7 + $0x4a0] ss:$12 sps:$4 sm:$0xff]  }
 0xd76   :  { %v7099_v32 = vadd.f32 %v7098_v27, %v7057_v21  ;;  %v7100_v36 = vpop.f32.mrb[138].mxu1  ;;  %v13119_v21 = vld [vmem:[#allocation9 + $0x4c8] ss:$12 sps:$4 sm:$0xff]   ;;  %v13132_v27 = vld [vmem:[#allocation7 + $0x4b8] ss:$12 sps:$4 sm:$0xff]  }
 0xd77   :  { %v7199_v37 = vadd.f32 %v7187_v26, %v7097_v6  ;;  %v7101_v38 = vpop.f32.mrb[139].mxu1  ;;  %v13131_v6 = vld [vmem:[#allocation9 + $0x4fc] ss:$12 sps:$4 sm:$0xff]   ;;  %v13136_v36 = vld [vmem:[#allocation9 + $0x514] ss:$12 sps:$4 sm:$0xff]  }
 0xd78   :  { %v7200_v22 = vadd.f32 %v7191_v28, %v7099_v32  ;;  %v13124_v28 = vld [vmem:[#allocation9 + $0x4e0] ss:$12 sps:$4 sm:$0xff]   ;;  %v13129_v32 = vld [vmem:[#allocation9 + $0x4f8] ss:$12 sps:$4 sm:$0xff]   ;;  %v13137_v38 = vld [vmem:[#allocation7 + $0x4d0] ss:$12 sps:$4 sm:$0xff]  }
 0xd79   :  { %v7202_v8 = vmax.f32 %v7199_v37, 0.0  ;;  %v13133_v37 = vld [vmem:[#allocation7 + $0x3f8] ss:$12 sps:$4 sm:$0xff]  }
 0xd7a   :  { %v7203_v15 = vmax.f32 %v7200_v22, 0.0  ;;  %v13134_v22 = vld [vmem:[#allocation9 + $0x510] ss:$12 sps:$4 sm:$0xff]  }
 0xd7b   :  { %v14270_v1 = vadd.f32 %v7202_v8, %v14236_v53  ;;  %v13077_v53 = vld [vmem:[#allocation9 + $0x3d8] ss:$12 sps:$4 sm:$0xff]  }
 0xd7c   :  { %v14273_v39 = vadd.f32 %v7203_v15, %v14239_v46  ;;  %v13082_v46 = vld [vmem:[#allocation9 + $0x3f4] ss:$12 sps:$4 sm:$0xff]   ;;  %v13141_v8 = vld [vmem:[#allocation9 + $0x52c] ss:$12 sps:$4 sm:$0xff]   ;;  %v13138_v15 = vld [vmem:[#allocation7 + $0x410] ss:$12 sps:$4 sm:$0xff]  }
 0xd7d   :  { %v14281_v43 = vpack.c.bf16 %v14270_v1, %v14270_v1 }
 0xd7e   :  { %v14277_v40 = vpack.c.bf16 %v14273_v39, %v14273_v39 }
 0xd80   :  { %7649 = vmatprep.mubr.bf16.mxu0 %v14277_v40 }
 0xd81   :  { %7650 = vmatmul.mubr.bf16.vlgmr.msra.gmra.mrb[60].mxu0 %v14281_v43 }
 0xd82   :  { %8205 = vmatpush1.bf16.msra.mxu0 %v13074_v42  ;;  %8236 = vmatprep.mubr.bf16.mxu0 %v14277_v40  ;;  %v13142_v42 = vld [vmem:[#allocation7 + $0x4e8] ss:$12 sps:$4 sm:$0xff]  }
 0xd83   :  { %8206 = vmatprep.subr.bf16.mxu0 %v13079_v44  ;;  %v13139_v44 = vld [vmem:[#allocation9 + $0x528] ss:$12 sps:$4 sm:$0xff]  }
 0xd86   :  { %8207 = vmatpush1.bf16.msra.mxu0 %v13077_v53  ;;  %v13146_v53 = vld [vmem:[#allocation10 + $0x3c4] ss:$12 sps:$4 sm:$0xff]  }
 0xd87   :  { %8208 = vmatprep.subr.bf16.mxu0 %v13082_v46  ;;  %v13143_v46 = vld [vmem:[#allocation7 + $0x428] ss:$12 sps:$4 sm:$0xff]  }
 0xd8a   :  { %8209 = vmatpush1.bf16.msra.mxu0 %v13080_v58  ;;  %v13147_v58 = vld [vmem:[#allocation7 + $0x500] ss:$12 sps:$4 sm:$0xff]  }
 0xd8b   :  { %8210 = vmatprep.subr.bf16.mxu0 %v13085_v16  ;;  %v13144_v16 = vld [vmem:[#allocation10 + $0x3c0] ss:$12 sps:$4 sm:$0xff]  }
 0xd8e   :  { %8211 = vmatpush1.bf16.msra.mxu0 %v13083_v45  ;;  %v13151_v45 = vld [vmem:[#allocation10 + $0x3dc] ss:$12 sps:$4 sm:$0xff]  }
 0xd8f   :  { %8212 = vmatprep.subr.bf16.mxu0 %v13088_v48  ;;  %v13148_v48 = vld [vmem:[#allocation7 + $0x440] ss:$12 sps:$4 sm:$0xff]  }
 0xd92   :  { %8213 = vmatpush1.bf16.msra.mxu0 %v13086_v49  ;;  %v13152_v49 = vld [vmem:[#allocation7 + $0x518] ss:$12 sps:$4 sm:$0xff]  }
 0xd93   :  { %8214 = vmatprep.subr.bf16.mxu0 %v13091_v50  ;;  %v13149_v50 = vld [vmem:[#allocation10 + $0x3d8] ss:$12 sps:$4 sm:$0xff]  }
 0xd94   :  { %v11775_v56 = vpop.f32.mrb[140].mxu1 }
 0xd95   :  { %v11776_v57 = vpop.f32.mrb[141].mxu1 }
 0xd96   :  { %v11777_v59 = vadd.f32 %v11776_v57, %v11775_v56  ;;  %v11778_v54 = vpop.f32.mrb[142].mxu1  ;;  %8215 = vmatpush1.bf16.msra.mxu0 %v13089_v52  ;;  %v13156_v52 = vld [vmem:[#allocation10 + $0x3f4] ss:$12 sps:$4 sm:$0xff]   ;;  %v13157_v56 = vld [vmem:[#allocation7 + $0x530] ss:$12 sps:$4 sm:$0xff]  }
 0xd97   :  { %v11779_v41 = vpop.f32.mrb[143].mxu1  ;;  %8216 = vmatprep.subr.bf16.mxu0 %v13094_v47  ;;  %v13153_v47 = vld [vmem:[#allocation7 + $0x458] ss:$12 sps:$4 sm:$0xff]   ;;  %v13154_v57 = vld [vmem:[#allocation10 + $0x3f0] ss:$12 sps:$4 sm:$0xff]  }
 0xd98   :  { %v13158_v54 = vld [vmem:[#allocation7 + $0x470] ss:$12 sps:$4 sm:$0xff]  }
 0xd99   :  { %v13165_v41 = vld [vmem:[#allocation10 + $0x424] ss:$12 sps:$4 sm:$0xff]  }
 0xd9a   :  { %8217 = vmatpush1.bf16.msra.mxu0 %v13092_v60  ;;  %v13159_v60 = vld [vmem:[#allocation10 + $0x408] ss:$12 sps:$4 sm:$0xff]  }
 0xd9b   :  { %8218 = vmatprep.subr.bf16.mxu0 %v13097_v5  ;;  %v13162_v5 = vld [vmem:[#allocation7 + $0x548] ss:$12 sps:$4 sm:$0xff]  }
 0xd9e   :  { %8219 = vmatpush1.bf16.msra.mxu0 %v13095_v61  ;;  %v13163_v61 = vld [vmem:[#allocation10 + $0x420] ss:$12 sps:$4 sm:$0xff]  }
 0xd9f   :  { %8220 = vmatprep.subr.bf16.mxu0 %v13103_v62  ;;  %v13169_v62 = vld [vmem:[#allocation10 + $0x43c] ss:$12 sps:$4 sm:$0xff]  }
 0xda2   :  { %8221 = vmatpush1.bf16.msra.mxu0 %v13101_v0  ;;  %v13166_v0 = vld [vmem:[#allocation7 + $0x560] ss:$12 sps:$4 sm:$0xff]  }
 0xda3   :  { %8222 = vmatprep.subr.bf16.mxu0 %v13109_v4  ;;  %v13167_v4 = vld [vmem:[#allocation10 + $0x438] ss:$12 sps:$4 sm:$0xff]  }
 0xda4   :  { %v7177_v63 = vpop.f32.mrb[144].mxu1 }
 0xda5   :  { %v7178_v24 = vadd.f32 %v11777_v59, %v7177_v63  ;;  %v12051_v13 = vpop.f32.mrb[145].mxu1  ;;  %v13161_v59 = vld [vmem:[#allocation10 + $0x40c] ss:$12 sps:$4 sm:$0xff]  }
 0xda6   :  { %v7180_v12 = vpop.f32.mrb[146].mxu1  ;;  %8223 = vmatpush1.bf16.msra.mxu0 %v13107_v10  ;;  %v13173_v10 = vld [vmem:[#allocation10 + $0x454] ss:$12 sps:$4 sm:$0xff]   ;;  %v13177_v63 = vld [vmem:[#allocation10 + $0x46c] ss:$12 sps:$4 sm:$0xff]  }
 0xda7   :  { %v7201_v17 = vadd.f32 %v7195_v30, %v7178_v24  ;;  %v12052_v18 = vpop.f32.mrb[147].mxu1  ;;  %8224 = vmatprep.subr.bf16.mxu0 %v13115_v11  ;;  %v13170_v30 = vld [vmem:[#allocation7 + $0x578] ss:$12 sps:$4 sm:$0xff]   ;;  %v13171_v11 = vld [vmem:[#allocation10 + $0x450] ss:$12 sps:$4 sm:$0xff]  }
 0xda8   :  { %v13174_v24 = vld [vmem:[#allocation7 + $0x590] ss:$12 sps:$4 sm:$0xff]   ;;  %v13175_v12 = vld [vmem:[#allocation10 + $0x468] ss:$12 sps:$4 sm:$0xff]  }
 0xda9   :  { %v7204_v20 = vmax.f32 %v7201_v17, 0.0  ;;  %v13180_v13 = vld [vmem:[#allocation9 + $0x544] ss:$12 sps:$4 sm:$0xff]   ;;  %v13178_v17 = vld [vmem:[#allocation9 + $0x540] ss:$12 sps:$4 sm:$0xff]  }
 0xdaa   :  { %8225 = vmatpush1.bf16.msra.mxu0 %v13113_v7  ;;  %v13183_v7 = vld [vmem:[#allocation10 + $0x484] ss:$12 sps:$4 sm:$0xff]   ;;  %v13186_v18 = vld [vmem:[#allocation9 + $0x55c] ss:$12 sps:$4 sm:$0xff]  }
 0xdab   :  { %v14289_v25 = vadd.f32 %v7204_v20, %v14247_v14  ;;  %8226 = vmatprep.subr.bf16.mxu0 %v13121_v19  ;;  %v13128_v14 = vld [vmem:[#allocation7 + $0x3e0] ss:$12 sps:$4 sm:$0xff]   ;;  %v13189_v20 = vld [vmem:[#allocation10 + $0x49c] ss:$12 sps:$4 sm:$0xff]  }
 0xdac   :  { %v13181_v19 = vld [vmem:[#allocation10 + $0x480] ss:$12 sps:$4 sm:$0xff]  }
 0xdad   :  { %v14293_v26 = vpack.c.bf16 %v14289_v25, %v14289_v25 }
 0xdae   :  { %8227 = vmatpush1.bf16.msra.mxu0 %v13119_v21  ;;  %v13184_v21 = vld [vmem:[#allocation9 + $0x558] ss:$12 sps:$4 sm:$0xff]  }
 0xdaf   :  { %11226 = vmatmul.mubr.msk.bf16.vlgmr.msra.gmra.mrb[148].mxu1 %vm582_vm0, %v14293_v26  ;;  %8228 = vmatprep.subr.bf16.mxu0 %v13126_v55  ;;  %v13192_v55 = vld [vmem:[#allocation9 + $0x574] ss:$12 sps:$4 sm:$0xff]  }
 0xdb0   :  { %11787 = vmatpush3.bf16.msra.mxu1 %v13123_v35  ;;  %7731 = vmatprep.mubr.bf16.mxu1 %v14277_v40  ;;  %v13187_v35 = vld [vmem:[#allocation10 + $0x498] ss:$12 sps:$4 sm:$0xff]  }
 0xdb1   :  { %11788 = vmatprep.subr.bf16.mxu1 %v13127_v29  ;;  %v13195_v29 = vld [vmem:[#allocation10 + $0x4b4] ss:$12 sps:$4 sm:$0xff]  }
 0xdb2   :  { %8229 = vmatpush1.bf16.msra.mxu0 %v13124_v28  ;;  %v13190_v28 = vld [vmem:[#allocation9 + $0x570] ss:$12 sps:$4 sm:$0xff]  }
 0xdb3   :  { %8230 = vmatprep.subr.bf16.mxu0 %v13131_v6  ;;  %v13198_v6 = vld [vmem:[#allocation9 + $0x58c] ss:$12 sps:$4 sm:$0xff]  }
 0xdb4   :  { %11789 = vmatpush3.bf16.msra.mxu1 %v13128_v14  ;;  %v13193_v14 = vld [vmem:[#allocation10 + $0x4b0] ss:$12 sps:$4 sm:$0xff]  }
 0xdb5   :  { %11790 = vmatprep.subr.bf16.mxu1 %v13132_v27  ;;  %v13201_v27 = vld [vmem:[#allocation10 + $0x4cc] ss:$12 sps:$4 sm:$0xff]  }
 0xdb6   :  { %8231 = vmatpush1.bf16.msra.mxu0 %v13129_v32  ;;  %v13196_v32 = vld [vmem:[#allocation9 + $0x588] ss:$12 sps:$4 sm:$0xff]  }
 0xdb7   :  { %8232 = vmatprep.subr.bf16.mxu0 %v13136_v36  ;;  %v13202_v36 = vld [vmem:[#allocation9 + $0x488] ss:$12 sps:$4 sm:$0xff]  }
 0xdb8   :  { %11791 = vmatpush3.bf16.msra.mxu1 %v13133_v37  ;;  %v13199_v37 = vld [vmem:[#allocation10 + $0x4c8] ss:$12 sps:$4 sm:$0xff]  }
 0xdb9   :  { %11792 = vmatprep.subr.bf16.mxu1 %v13137_v38  ;;  %v13206_v38 = vld [vmem:[#allocation10 + $0x4e4] ss:$12 sps:$4 sm:$0xff]  }
 0xdba   :  { %8233 = vmatpush1.bf16.msra.mxu0 %v13134_v22  ;;  %v13203_v22 = vld [vmem:[#allocation9 + $0x3c8] ss:$12 sps:$4 sm:$0xff]  }
 0xdbb   :  { %8234 = vmatprep.subr.bf16.mxu0 %v13141_v8  ;;  %v13207_v8 = vld [vmem:[#allocation9 + $0x4a0] ss:$12 sps:$4 sm:$0xff]  }
 0xdbc   :  { %11793 = vmatpush3.bf16.msra.mxu1 %v13138_v15  ;;  %v13204_v15 = vld [vmem:[#allocation10 + $0x4e0] ss:$12 sps:$4 sm:$0xff]  }
 0xdbd   :  { %11794 = vmatprep.subr.bf16.mxu1 %v13142_v42  ;;  %v13211_v42 = vld [vmem:[#allocation10 + $0x4fc] ss:$12 sps:$4 sm:$0xff]  }
 0xdbe   :  { %8235 = vmatpush1.bf16.msra.mxu0 %v13139_v44  ;;  %v13208_v44 = vld [vmem:[#allocation9 + $0x3e0] ss:$12 sps:$4 sm:$0xff]  }
 0xdbf   :  { %8791 = vmatprep.subr.bf16.mxu0 %v13146_v53  ;;  %v13212_v53 = vld [vmem:[#allocation9 + $0x4b8] ss:$12 sps:$4 sm:$0xff]  }
 0xdc0   :  { %11795 = vmatpush3.bf16.msra.mxu1 %v13143_v46  ;;  %v13209_v46 = vld [vmem:[#allocation10 + $0x4f8] ss:$12 sps:$4 sm:$0xff]  }
 0xdc1   :  { %8237 = vmatmul.mubr.bf16.vlgmr.msra.gmra.mrb[64].mxu0 %v14281_v43  ;;  %11796 = vmatprep.subr.bf16.mxu1 %v13147_v58  ;;  %v13216_v58 = vld [vmem:[#allocation10 + $0x514] ss:$12 sps:$4 sm:$0xff]  }
 0xdc2   :  { %8792 = vmatpush1.bf16.msra.mxu0 %v13144_v16  ;;  %8823 = vmatprep.mubr.bf16.mxu0 %v14277_v40  ;;  %v13213_v16 = vld [vmem:[#allocation9 + $0x3f8] ss:$12 sps:$4 sm:$0xff]  }
 0xdc3   :  { %8793 = vmatprep.subr.bf16.mxu0 %v13151_v45  ;;  %v13217_v45 = vld [vmem:[#allocation9 + $0x4d0] ss:$12 sps:$4 sm:$0xff]  }
 0xdc4   :  { %11797 = vmatpush3.bf16.msra.mxu1 %v13148_v48  ;;  %v13214_v48 = vld [vmem:[#allocation10 + $0x510] ss:$12 sps:$4 sm:$0xff]  }
 0xdc5   :  { %11798 = vmatprep.subr.bf16.mxu1 %v13152_v49  ;;  %v13221_v49 = vld [vmem:[#allocation10 + $0x52c] ss:$12 sps:$4 sm:$0xff]  }
 0xdc6   :  { %8794 = vmatpush1.bf16.msra.mxu0 %v13149_v50  ;;  %v13218_v50 = vld [vmem:[#allocation9 + $0x410] ss:$12 sps:$4 sm:$0xff]  }
 0xdc7   :  { %8795 = vmatprep.subr.bf16.mxu0 %v13156_v52  ;;  %v13222_v52 = vld [vmem:[#allocation9 + $0x4e8] ss:$12 sps:$4 sm:$0xff]  }
 0xdc8   :  { %11799 = vmatpush3.bf16.msra.mxu1 %v13153_v47  ;;  %v13219_v47 = vld [vmem:[#allocation10 + $0x528] ss:$12 sps:$4 sm:$0xff]  }
 0xdc9   :  { %11800 = vmatprep.subr.bf16.mxu1 %v13157_v56  ;;  %v13223_v56 = vld [vmem:[#allocation9 + $0x428] ss:$12 sps:$4 sm:$0xff]  }
 0xdca   :  { %8796 = vmatpush1.bf16.msra.mxu0 %v13154_v57  ;;  %v13224_v57 = vld [vmem:[#allocation9 + $0x500] ss:$12 sps:$4 sm:$0xff]  }
 0xdcb   :  { %8797 = vmatprep.subr.bf16.mxu0 %v13161_v59  ;;  %v13225_v59 = vld [vmem:[#allocation9 + $0x440] ss:$12 sps:$4 sm:$0xff]  }
 0xdcc   :  { %11801 = vmatpush3.bf16.msra.mxu1 %v13158_v54  ;;  %v13226_v54 = vld [vmem:[#allocation9 + $0x518] ss:$12 sps:$4 sm:$0xff]  }
 0xdcd   :  { %12053 = vmatprep.subr.bf16.mxu1 %v13650_v3 }
 0xdce   :  { %8798 = vmatpush1.bf16.msra.mxu0 %v13159_v60  ;;  %v13227_v60 = vld [vmem:[#allocation9 + $0x458] ss:$12 sps:$4 sm:$0xff]  }
 0xdcf   :  { %7732 = vmatmul.mubr.bf16.vlgmr.msra.gmra.mrb[152].mxu1 %v14281_v43  ;;  %8799 = vmatprep.subr.bf16.mxu0 %v13165_v41  ;;  %v13228_v41 = vld [vmem:[#allocation9 + $0x530] ss:$12 sps:$4 sm:$0xff]  }
 0xdd0   :  { %12054 = vmatpush3.bf16.msra.mxu1 %v13162_v5  ;;  %12061 = vmatprep.mubr.msk.bf16.mxu1 %vm13651_vm1, %v13650_v3  ;;  %v13229_v5 = vld [vmem:[#allocation9 + $0x470] ss:$12 sps:$4 sm:$0xff]  }
 0xdd1   :  { %12055 = vmatprep.subr.bf16.mxu1 %v13650_v3 }
 0xdd2   :  { %8800 = vmatpush1.bf16.msra.mxu0 %v13163_v61  ;;  %v13230_v61 = vld [vmem:[#allocation9 + $0x548] ss:$12 sps:$4 sm:$0xff]  }
 0xdd3   :  { %8801 = vmatprep.subr.bf16.mxu0 %v13169_v62  ;;  %v13231_v62 = vld [vmem:[#allocation9 + $0x560] ss:$12 sps:$4 sm:$0xff]  }
 0xdd4   :  { %12056 = vmatpush3.bf16.msra.mxu1 %v13166_v0  ;;  %v13232_v0 = vld [vmem:[#allocation9 + $0x578] ss:$12 sps:$4 sm:$0xff]  }
 0xdd5   :  { %12057 = vmatprep.subr.bf16.mxu1 %v13650_v3 }
 0xdd6   :  { %8802 = vmatpush1.bf16.msra.mxu0 %v13167_v4  ;;  %v13233_v4 = vld [vmem:[#allocation9 + $0x590] ss:$12 sps:$4 sm:$0xff]  }
 0xdd7   :  { %8803 = vmatprep.subr.bf16.mxu0 %v13173_v10  ;;  %v13236_v10 = vld [vmem:[#allocation10 + $0x544] ss:$12 sps:$4 sm:$0xff]  }
 0xdd8   :  { %12058 = vmatpush3.bf16.msra.mxu1 %v13170_v30  ;;  %v13234_v30 = vld [vmem:[#allocation10 + $0x540] ss:$12 sps:$4 sm:$0xff]  }
 0xdd9   :  { %12059 = vmatprep.subr.bf16.mxu1 %v13650_v3 }
 0xdda   :  { %8804 = vmatpush1.bf16.msra.mxu0 %v13171_v11  ;;  %v13239_v11 = vld [vmem:[#allocation10 + $0x55c] ss:$12 sps:$4 sm:$0xff]  }
 0xddb   :  { %8805 = vmatprep.subr.bf16.mxu0 %v13177_v63  ;;  %v13237_v63 = vld [vmem:[#allocation10 + $0x558] ss:$12 sps:$4 sm:$0xff]  }
 0xddc   :  { %12060 = vmatpush3.bf16.msra.mxu1 %v13174_v24  ;;  %v13242_v24 = vld [vmem:[#allocation10 + $0x574] ss:$12 sps:$4 sm:$0xff]  }
 0xddd   :  { %8245 = vmatprep.subr.bf16.mxu1 %v13180_v13  ;;  %v13240_v13 = vld [vmem:[#allocation10 + $0x570] ss:$12 sps:$4 sm:$0xff]  }
 0xdde   :  { %8806 = vmatpush1.bf16.msra.mxu0 %v13175_v12  ;;  %v13245_v12 = vld [vmem:[#allocation10 + $0x58c] ss:$12 sps:$4 sm:$0xff]  }
 0xddf   :  { %12062 = vmatmul.mubr.msk.bf16.vlgmr.msra.gmra.mrb[156].mxu1 %vm582_vm0, %v14293_v26  ;;  %8807 = vmatprep.subr.bf16.mxu0 %v13183_v7  ;;  %v13243_v7 = vld [vmem:[#allocation10 + $0x588] ss:$12 sps:$4 sm:$0xff]  }
 0xde0   :  { %8246 = vmatpush1.bf16.msra.mxu1 %v13178_v17  ;;  %8277 = vmatprep.mubr.bf16.mxu1 %v13648_v2  ;;  %v13246_v17 = vld [vmem:[#allocation10 + $0x488] ss:$12 sps:$4 sm:$0xff]  }
 0xde1   :  { %8247 = vmatprep.subr.bf16.mxu1 %v13186_v18  ;;  %v13247_v18 = vld [vmem:[#allocation10 + $0x3c8] ss:$12 sps:$4 sm:$0xff]  }
 0xde2   :  { %8808 = vmatpush1.bf16.msra.mxu0 %v13181_v19  ;;  %v13248_v19 = vld [vmem:[#allocation10 + $0x4a0] ss:$12 sps:$4 sm:$0xff]  }
 0xde3   :  { %8809 = vmatprep.subr.bf16.mxu0 %v13189_v20  ;;  %v13249_v20 = vld [vmem:[#allocation10 + $0x3e0] ss:$12 sps:$4 sm:$0xff]  }
 0xde4   :  { %8248 = vmatpush1.bf16.msra.mxu1 %v13184_v21  ;;  %v13250_v21 = vld [vmem:[#allocation10 + $0x4b8] ss:$12 sps:$4 sm:$0xff]  }
 0xde5   :  { %8249 = vmatprep.subr.bf16.mxu1 %v13192_v55  ;;  %v13251_v55 = vld [vmem:[#allocation10 + $0x3f8] ss:$12 sps:$4 sm:$0xff]  }
 0xde6   :  { %8810 = vmatpush1.bf16.msra.mxu0 %v13187_v35  ;;  %v13252_v35 = vld [vmem:[#allocation10 + $0x4d0] ss:$12 sps:$4 sm:$0xff]  }
 0xde7   :  { %8811 = vmatprep.subr.bf16.mxu0 %v13195_v29  ;;  %v13253_v29 = vld [vmem:[#allocation10 + $0x410] ss:$12 sps:$4 sm:$0xff]  }
 0xde8   :  { %8250 = vmatpush1.bf16.msra.mxu1 %v13190_v28  ;;  %v13254_v28 = vld [vmem:[#allocation10 + $0x4e8] ss:$12 sps:$4 sm:$0xff]  }
 0xde9   :  { %8251 = vmatprep.subr.bf16.mxu1 %v13198_v6  ;;  %v13255_v6 = vld [vmem:[#allocation10 + $0x428] ss:$12 sps:$4 sm:$0xff]  }
 0xdea   :  { %8812 = vmatpush1.bf16.msra.mxu0 %v13193_v14  ;;  %v13256_v14 = vld [vmem:[#allocation10 + $0x500] ss:$12 sps:$4 sm:$0xff]  }
 0xdeb   :  { %8813 = vmatprep.subr.bf16.mxu0 %v13201_v27  ;;  %v13257_v27 = vld [vmem:[#allocation10 + $0x440] ss:$12 sps:$4 sm:$0xff]  }
 0xdec   :  { %8252 = vmatpush1.bf16.msra.mxu1 %v13196_v32  ;;  %v13258_v32 = vld [vmem:[#allocation10 + $0x518] ss:$12 sps:$4 sm:$0xff]  }
 0xded   :  { %11813 = vmatprep.subr.bf16.mxu1 %v13202_v36  ;;  %v13260_v36 = vld [vmem:[#allocation10 + $0x530] ss:$12 sps:$4 sm:$0xff]  }
 0xdee   :  { %8814 = vmatpush1.bf16.msra.mxu0 %v13199_v37  ;;  %v13261_v37 = vld [vmem:[#allocation10 + $0x470] ss:$12 sps:$4 sm:$0xff]  }
 0xdef   :  { %11289 = vmatmul.mubr.msk.bf16.vlgmr.msra.gmra.mrb[160].mxu1 %vm582_vm0, %v14293_v26  ;;  %8815 = vmatprep.subr.bf16.mxu0 %v13206_v38  ;;  %v13262_v38 = vld [vmem:[#allocation10 + $0x548] ss:$12 sps:$4 sm:$0xff]  }
 0xdf0   :  { %11814 = vmatpush3.bf16.msra.mxu1 %v13203_v22  ;;  %8318 = vmatprep.mubr.bf16.mxu1 %v14277_v40  ;;  %v13263_v22 = vld [vmem:[#allocation10 + $0x560] ss:$12 sps:$4 sm:$0xff]  }
 0xdf1   :  { %11815 = vmatprep.subr.bf16.mxu1 %v13207_v8 }
 0xdf2   :  { %8816 = vmatpush1.bf16.msra.mxu0 %v13204_v15  ;;  %v13264_v15 = vld [vmem:[#allocation10 + $0x578] ss:$12 sps:$4 sm:$0xff]  }
 0xdf3   :  { %8817 = vmatprep.subr.bf16.mxu0 %v13211_v42 }
 0xdf4   :  { %11816 = vmatpush3.bf16.msra.mxu1 %v13208_v44 }
 0xdf5   :  { %11817 = vmatprep.subr.bf16.mxu1 %v13212_v53 }
 0xdf6   :  { %8818 = vmatpush1.bf16.msra.mxu0 %v13209_v46  ;;  %v13265_v46 = vld [vmem:[#allocation10 + $0x590] ss:$12 sps:$4 sm:$0xff]  }
 0xdf7   :  { %8819 = vmatprep.subr.bf16.mxu0 %v13216_v58 }
 0xdf8   :  { %11818 = vmatpush3.bf16.msra.mxu1 %v13213_v16 }
 0xdf9   :  { %11819 = vmatprep.subr.bf16.mxu1 %v13217_v45 }
 0xdfa   :  { %8820 = vmatpush1.bf16.msra.mxu0 %v13214_v48 }
 0xdfb   :  { %8821 = vmatprep.subr.bf16.mxu0 %v13221_v49 }
 0xdfc   :  { %11820 = vmatpush3.bf16.msra.mxu1 %v13218_v50 }
 0xdfd   :  { %11821 = vmatprep.subr.bf16.mxu1 %v13222_v52 }
 0xdfe   :  { %8822 = vmatpush1.bf16.msra.mxu0 %v13219_v47 }
 0xe00   :  { %11822 = vmatpush3.bf16.msra.mxu1 %v13223_v56 }
 0xe01   :  { %8824 = vmatmul.mubr.bf16.vlgmr.msra.gmra.mrb[68].mxu0 %v14281_v43  ;;  %11823 = vmatprep.subr.bf16.mxu1 %v13224_v57 }
 0xe04   :  { %11824 = vmatpush3.bf16.msra.mxu1 %v13225_v59 }
 0xe05   :  { %11825 = vmatprep.subr.bf16.mxu1 %v13226_v54 }
 0xe08   :  { %11826 = vmatpush3.bf16.msra.mxu1 %v13227_v60 }
 0xe09   :  { %11827 = vmatprep.subr.bf16.mxu1 %v13228_v41 }
 0xe0c   :  { %11828 = vmatpush3.bf16.msra.mxu1 %v13229_v5 }
 0xe0d   :  { %12065 = vmatprep.subr.bf16.mxu1 %v13650_v3 }
 0xe0f   :  { %8319 = vmatmul.mubr.bf16.vlgmr.msra.gmra.mrb[164].mxu1 %v14281_v43 }
 0xe10   :  { %12066 = vmatpush3.bf16.msra.mxu1 %v13230_v61  ;;  %12073 = vmatprep.mubr.msk.bf16.mxu1 %vm13651_vm1, %v13650_v3 }
 0xe11   :  { %12067 = vmatprep.subr.bf16.mxu1 %v13650_v3 }
 0xe14   :  { %12068 = vmatpush3.bf16.msra.mxu1 %v13231_v62 }
 0xe15   :  { %12069 = vmatprep.subr.bf16.mxu1 %v13650_v3 }
 0xe18   :  { %12070 = vmatpush3.bf16.msra.mxu1 %v13232_v0 }
 0xe19   :  { %12071 = vmatprep.subr.bf16.mxu1 %v13650_v3 }
 0xe1c   :  { %12072 = vmatpush3.bf16.msra.mxu1 %v13233_v4 }
 0xe1d   :  { %8832 = vmatprep.subr.bf16.mxu1 %v13236_v10 }
 0xe1f   :  { %12074 = vmatmul.mubr.msk.bf16.vlgmr.msra.gmra.mrb[168].mxu1 %vm582_vm0, %v14293_v26 }
 0xe20   :  { %8833 = vmatpush1.bf16.msra.mxu1 %v13234_v30  ;;  %8864 = vmatprep.mubr.bf16.mxu1 %v13648_v2 }
 0xe21   :  { %8834 = vmatprep.subr.bf16.mxu1 %v13239_v11 }
 0xe24   :  { %8835 = vmatpush1.bf16.msra.mxu1 %v13237_v63 }
 0xe25   :  { %8836 = vmatprep.subr.bf16.mxu1 %v13242_v24 }
 0xe28   :  { %8837 = vmatpush1.bf16.msra.mxu1 %v13240_v13 }
 0xe29   :  { %8838 = vmatprep.subr.bf16.mxu1 %v13245_v12 }
 0xe2c   :  { %8839 = vmatpush1.bf16.msra.mxu1 %v13243_v7  ;;  %v11228_v7 = vld [vmem:[%s14463_s6 + $0x6] sm:$0x7] }
 0xe2d   :  { %11840 = vmatprep.subr.bf16.mxu1 %v13246_v17  ;;  %v8370_v17 = vrot.slane %v11228_v7, %v13913_v31 }
 0xe2f   :  { %11352 = vmatmul.mubr.msk.bf16.vlgmr.msra.gmra.mrb[172].mxu1 %vm582_vm0, %v14293_v26 }
 0xe30   :  { %11841 = vmatpush3.bf16.msra.mxu1 %v13247_v18  ;;  %8905 = vmatprep.mubr.bf16.mxu1 %v14277_v40  ;;  %v13259_v40 = vld [vmem:[#allocation10 + $0x458] ss:$12 sps:$4 sm:$0xff]  }
 0xe31   :  { %11842 = vmatprep.subr.bf16.mxu1 %v13248_v19  ;;  %v8374_v19 = vrot.slane %v11228_v7, %v13919_v33 }
 0xe34   :  { %11843 = vmatpush3.bf16.msra.mxu1 %v13249_v20 }
 0xe35   :  { %11844 = vmatprep.subr.bf16.mxu1 %v13250_v21 }
 0xe38   :  { %11845 = vmatpush3.bf16.msra.mxu1 %v13251_v55 }
 0xe39   :  { %11846 = vmatprep.subr.bf16.mxu1 %v13252_v35 }
 0xe3c   :  { %11847 = vmatpush3.bf16.msra.mxu1 %v13253_v29 }
 0xe3d   :  { %11848 = vmatprep.subr.bf16.mxu1 %v13254_v28 }
 0xe40   :  { %11849 = vmatpush3.bf16.msra.mxu1 %v13255_v6 }
 0xe41   :  { %11850 = vmatprep.subr.bf16.mxu1 %v13256_v14 }
 0xe44   :  { %11851 = vmatpush3.bf16.msra.mxu1 %v13257_v27 }
 0xe45   :  { %11852 = vmatprep.subr.bf16.mxu1 %v13258_v32 }
 0xe48   :  { %11853 = vmatpush3.bf16.msra.mxu1 %v13259_v40 }
 0xe49   :  { %11854 = vmatprep.subr.bf16.mxu1 %v13260_v36 }
 0xe4c   :  { %11855 = vmatpush3.bf16.msra.mxu1 %v13261_v37 }
 0xe4d   :  { %12077 = vmatprep.subr.bf16.mxu1 %v13650_v3 }
 0xe4f   :  { %8906 = vmatmul.mubr.bf16.vlgmr.msra.gmra.mrb[176].mxu1 %v14281_v43  ;;  %v11165_v43 = vld [vmem:[%s14461_s4 + $0x6] sm:$0x7] }
 0xe50   :  { %12078 = vmatpush3.bf16.msra.mxu1 %v13262_v38  ;;  %12085 = vmatprep.mubr.msk.bf16.mxu1 %vm13651_vm1, %v13650_v3  ;;  %v7783_v58 = vrot.slane %v11165_v43, %v13913_v31  ;;  %v7787_v45 = vrot.slane %v11165_v43, %v13919_v33  ;;  %v7791_v10 = vrot.slane %v11165_v43, %v13922_v34 }
 0xe51   :  { %12079 = vmatprep.subr.bf16.mxu1 %v13650_v3 }
 0xe54   :  { %12080 = vmatpush3.bf16.msra.mxu1 %v13263_v22  ;;  %v7651_v8 = vpop.f32.mrb[60].mxu0 }
 0xe55   :  { %v7653_v42 = vpop.f32.mrb[61].mxu0  ;;  %12081 = vmatprep.subr.bf16.mxu1 %v13650_v3 }
 0xe56   :  { %v7655_v44 = vpop.f32.mrb[62].mxu0 }
 0xe57   :  { %v7656_v53 = vpop.f32.mrb[63].mxu0 }
 0xe58   :  { %12082 = vmatpush3.bf16.msra.mxu1 %v13264_v15  ;;  %v8378_v53 = vrot.slane %v11228_v7, %v13922_v34 }
 0xe59   :  { %12083 = vmatprep.subr.bf16.mxu1 %v13650_v3 }
 0xe5c   :  { %12084 = vmatpush3.bf16.msra.mxu1 %v13265_v46 }
 0xe5f   :  { %12086 = vmatmul.mubr.msk.bf16.vlgmr.msra.gmra.mrb[180].mxu1 %vm582_vm0, %v14293_v26 }
 0xe60   :  { %9069 = vmatprep.mubr.bf16.mxu1 %v13648_v2 }
 0xe82   :  { %v7692_v16 = vpop.f32.mrb[148].mxu1 }
 0xe83   :  { %v7693_v48 = vadd.f32 %v7692_v16, %v7651_v8  ;;  %v7694_v49 = vpop.f32.mrb[149].mxu1 }
 0xe84   :  { %v7695_v50 = vadd.f32 %v7694_v49, %v7653_v42  ;;  %v7696_v52 = vpop.f32.mrb[150].mxu1 }
 0xe85   :  { %v7795_v47 = vadd.f32 %v7783_v58, %v7693_v48  ;;  %v7697_v56 = vpop.f32.mrb[151].mxu1  ;;  %v11291_v52 = vld [vmem:[%s14465_s8 + $0x6] sm:$0x7] }
 0xe86   :  { %v7796_v57 = vadd.f32 %v7787_v45, %v7695_v50 }
 0xe87   :  { %v7798_v32 = vpack.c.bf16 %v7795_v47, %v7795_v47  ;;  %v8957_v47 = vrot.slane %v11291_v52, %v13913_v31 }
 0xe88   :  { %v7799_v59 = vpack.c.bf16 %v7796_v57, %v7796_v57  ;;  %v8961_v57 = vrot.slane %v11291_v52, %v13919_v33 }
 0xe8a   :  { %11355 = vmatprep.mubr.msk.bf16.mxu0 %vm1940_vm2, %v7799_v59 }
 0xe94   :  { %v8238_v26 = vpop.f32.mrb[64].mxu0 }
 0xe95   :  { %v8240_v54 = vpop.f32.mrb[65].mxu0 }
 0xe96   :  { %v8242_v60 = vpop.f32.mrb[66].mxu0 }
 0xe97   :  { %v8243_v41 = vpop.f32.mrb[67].mxu0 }
 0xea2   :  { %v11802_v5 = vpop.f32.mrb[152].mxu1 }
 0xea3   :  { %v11803_v61 = vpop.f32.mrb[153].mxu1 }
 0xea4   :  { %v11804_v62 = vadd.f32 %v11803_v61, %v11802_v5  ;;  %v11805_v0 = vpop.f32.mrb[154].mxu1 }
 0xea5   :  { %v11806_v4 = vpop.f32.mrb[155].mxu1 }
 0xeb2   :  { %v7773_v30 = vpop.f32.mrb[156].mxu1 }
 0xeb3   :  { %v7774_v11 = vadd.f32 %v11804_v62, %v7773_v30  ;;  %v12063_v63 = vpop.f32.mrb[157].mxu1 }
 0xeb4   :  { %v7776_v24 = vpop.f32.mrb[158].mxu1 }
 0xeb5   :  { %v7797_v13 = vadd.f32 %v7791_v10, %v7774_v11  ;;  %v12064_v12 = vpop.f32.mrb[159].mxu1 }
 0xeb6   :  { %v8965_v12 = vrot.slane %v11291_v52, %v13922_v34 }
 0xeb7   :  { %v7800_v50 = vpack.c.bf16 %v7797_v13, %v7797_v13 }
 0xec2   :  { %v8279_v18 = vpop.f32.mrb[160].mxu1 }
 0xec3   :  { %v8280_v20 = vadd.f32 %v8279_v18, %v8238_v26  ;;  %v8281_v21 = vpop.f32.mrb[161].mxu1 }
 0xec4   :  { %v8282_v55 = vadd.f32 %v8281_v21, %v8240_v54  ;;  %v8283_v35 = vpop.f32.mrb[162].mxu1 }
 0xec5   :  { %v8382_v29 = vadd.f32 %v8370_v17, %v8280_v20  ;;  %v8284_v28 = vpop.f32.mrb[163].mxu1 }
 0xec6   :  { %v8383_v6 = vadd.f32 %v8374_v19, %v8282_v55 }
 0xec7   :  { %v8385_v27 = vpack.c.bf16 %v8382_v29, %v8382_v29 }
 0xec8   :  { %v8386_v14 = vpack.c.bf16 %v8383_v6, %v8383_v6 }
 0xeca   :  { %9088 = vrot.lane.b32.xlu1 %v8386_v14, %s13652_s19  ;;  %11354 = vmatprep.subr.msk.bf16.mxu0 %vm1940_vm2, %v8386_v14 }
 0xecb   :  { %8982 = vmatpush1.bf16.xpose.msra.mxu0 %v8385_v27 }
 0xece   :  { %9080 = vrot.lane.b32.xlu1 %v7799_v59, %s13652_s19 }
 0xed2   :  { %9014 = vmatmul.mubr.bf16.vlgmr.msra.gmra.mrb[72].mxu0 %v7798_v32 }
 0xed4   :  { %v8825_v40 = vpop.f32.mrb[68].mxu0 }
 0xed5   :  { %v8827_v36 = vpop.f32.mrb[69].mxu0 }
 0xed6   :  { %v8829_v37 = vpop.f32.mrb[70].mxu0 }
 0xed7   :  { %v8830_v38 = vpop.f32.mrb[71].mxu0 }
 0xee2   :  { %v11829_v22 = vpop.f32.mrb[164].mxu1 }
 0xee3   :  { %v11830_v8 = vpop.f32.mrb[165].mxu1 }
 0xee4   :  { %v11831_v15 = vadd.f32 %v11830_v8, %v11829_v22  ;;  %v11832_v42 = vpop.f32.mrb[166].mxu1 }
 0xee5   :  { %v11833_v44 = vpop.f32.mrb[167].mxu1 }
 0xef2   :  { %v8360_v46 = vpop.f32.mrb[168].mxu1 }
 0xef3   :  { %v8361_v43 = vadd.f32 %v11831_v15, %v8360_v46  ;;  %v12075_v58 = vpop.f32.mrb[169].mxu1 }
 0xef4   :  { %v8363_v16 = vpop.f32.mrb[170].mxu1 }
 0xef5   :  { %v8384_v45 = vadd.f32 %v8378_v53, %v8361_v43  ;;  %v12076_v48 = vpop.f32.mrb[171].mxu1 }
 0xef7   :  { %v8387_v49 = vpack.c.bf16 %v8384_v45, %v8384_v45 }
 0xef9   :  { %9090 = vrot.lane.b32.xlu0 %v8387_v49, %s13652_s19 }
 0xefd   :  { %9082 = vrot.lane.b32.xlu0 %v7800_v50, %s13652_s19 }
 0xf02   :  { %v8866_v56 = vpop.f32.mrb[172].mxu1 }
 0xf03   :  { %v8867_v59 = vadd.f32 %v8866_v56, %v8825_v40  ;;  %v8868_v26 = vpop.f32.mrb[173].mxu1 }
 0xf04   :  { %v8869_v54 = vadd.f32 %v8868_v26, %v8827_v36  ;;  %v8870_v60 = vpop.f32.mrb[174].mxu1 }
 0xf05   :  { %v8969_v41 = vadd.f32 %v8957_v47, %v8867_v59  ;;  %v8871_v5 = vpop.f32.mrb[175].mxu1 }
 0xf06   :  { %v8970_v61 = vadd.f32 %v8961_v57, %v8869_v54  ;;  %v13266_v5 = vld [vmem:[#allocation12 + $0x3c0] ss:$12 sps:$4 sm:$0xff]  }
 0xf07   :  { %v8972_v62 = vpack.c.bf16 %v8969_v41, %v8969_v41 }
 0xf08   :  { %v8973_v0 = vpack.c.bf16 %v8970_v61, %v8970_v61  ;;  %v13268_v61 = vld [vmem:[#allocation12 + $0x3c4] ss:$12 sps:$4 sm:$0xff]  }
 0xf09   :  { %v9032_v10 = vand.u32 %v8972_v62, %v13946_v51  ;;  %v13271_v62 = vld [vmem:[#allocation12 + $0x3dc] ss:$12 sps:$4 sm:$0xff]  }
 0xf0a   :  { %9149 = vrot.lane.b32.xlu1 %v8973_v0, %s13652_s19  ;;  %v9035_v4 = vand.u32 %v8973_v0, %v13946_v51  ;;  %v13269_v0 = vld [vmem:[#allocation12 + $0x3d8] ss:$12 sps:$4 sm:$0xff]  }
 0xf0c   :  { %9037 = vmatprep.subr.bf16.mxu1 %v9035_v4  ;;  %v13274_v4 = vld [vmem:[#allocation12 + $0x3f4] ss:$12 sps:$4 sm:$0xff]  }
 0xf0d   :  { %9038 = vmatpush1.bf16.msra.mxu1 %v9032_v10  ;;  %v13272_v10 = vld [vmem:[#allocation12 + $0x3f0] ss:$12 sps:$4 sm:$0xff]  }
 0xf22   :  { %v11856_v30 = vpop.f32.mrb[176].mxu1 }
 0xf23   :  { %v11857_v11 = vpop.f32.mrb[177].mxu1 }
 0xf24   :  { %v11858_v63 = vadd.f32 %v11857_v11, %v11856_v30  ;;  %v11859_v24 = vpop.f32.mrb[178].mxu1  ;;  %v13277_v30 = vld [vmem:[#allocation12 + $0x40c] ss:$12 sps:$4 sm:$0xff]  }
 0xf25   :  { %v11860_v13 = vpop.f32.mrb[179].mxu1  ;;  %v13302_v11 = vld [vmem:[#allocation12 + $0x540] ss:$12 sps:$4 sm:$0xff]   ;;  %v13310_v24 = vld [vmem:[#allocation12 + $0x55c] ss:$12 sps:$4 sm:$0xff]  }
 0xf26   :  { %v13275_v13 = vld [vmem:[#allocation12 + $0x408] ss:$12 sps:$4 sm:$0xff]  }
 0xf32   :  { %v8947_v7 = vpop.f32.mrb[180].mxu1 }
 0xf33   :  { %v8948_v17 = vadd.f32 %v11858_v63, %v8947_v7  ;;  %v12087_v18 = vpop.f32.mrb[181].mxu1  ;;  %v13304_v63 = vld [vmem:[#allocation12 + $0x544] ss:$12 sps:$4 sm:$0xff]  }
 0xf34   :  { %v8950_v19 = vpop.f32.mrb[182].mxu1  ;;  %v13280_v7 = vld [vmem:[#allocation12 + $0x424] ss:$12 sps:$4 sm:$0xff]   ;;  %v13278_v18 = vld [vmem:[#allocation12 + $0x420] ss:$12 sps:$4 sm:$0xff]  }
 0xf35   :  { %v8971_v20 = vadd.f32 %v8965_v12, %v8948_v17  ;;  %v12088_v21 = vpop.f32.mrb[183].mxu1  ;;  %v13308_v12 = vld [vmem:[#allocation12 + $0x558] ss:$12 sps:$4 sm:$0xff]   ;;  %v13316_v17 = vld [vmem:[#allocation12 + $0x574] ss:$12 sps:$4 sm:$0xff]  }
 0xf36   :  { %v13314_v19 = vld [vmem:[#allocation12 + $0x570] ss:$12 sps:$4 sm:$0xff]   ;;  %v13281_v21 = vld [vmem:[#allocation12 + $0x438] ss:$12 sps:$4 sm:$0xff]  }
 0xf37   :  { %v8974_v55 = vpack.c.bf16 %v8971_v20, %v8971_v20  ;;  %v13283_v20 = vld [vmem:[#allocation12 + $0x43c] ss:$12 sps:$4 sm:$0xff]  }
 0xf39   :  { %9151 = vrot.lane.b32.xlu0 %v8974_v55, %s13652_s19  ;;  %v13286_v55 = vld [vmem:[#allocation12 + $0x454] ss:$12 sps:$4 sm:$0xff]  }
 0xf3c   :  { %v9089_v35 = vpop.permute.xlu1 %9088 }
 0xf40   :  { %v9081_v14 = vpop.permute.xlu1 %9080 }
 0xf6b   :  { %v9091_v29 = vpop.permute.xlu0 %9090 }
 0xf6c   :  { %v9092_v28 = vsel %vm2054_vm4, %v9089_v35, %v9091_v29  ;;  %11357 = vmatprep.subr.msk.bf16.mxu0 %vm1940_vm2, %v9091_v29  ;;  %v13284_v35 = vld [vmem:[#allocation12 + $0x450] ss:$12 sps:$4 sm:$0xff]   ;;  %v13289_v29 = vld [vmem:[#allocation12 + $0x46c] ss:$12 sps:$4 sm:$0xff]  }
 0xf6d   :  { %9101 = vmatpush1.bf16.xpose.msra.mxu0 %v9092_v28  ;;  %v13287_v28 = vld [vmem:[#allocation12 + $0x468] ss:$12 sps:$4 sm:$0xff]  }
 0xf6e   :  { %9623 = vmatprep.subr.bf16.mxu0 %v13268_v61 }
 0xf6f   :  { %v9083_v6 = vpop.permute.xlu0 %9082 }
 0xf70   :  { %11358 = vmatprep.mubr.msk.bf16.mxu0 %vm1940_vm2, %v9083_v6  ;;  %v9084_v27 = vsel %vm2054_vm4, %v9081_v14, %v9083_v6  ;;  %v13292_v6 = vld [vmem:[#allocation12 + $0x484] ss:$12 sps:$4 sm:$0xff]   ;;  %v13290_v14 = vld [vmem:[#allocation12 + $0x480] ss:$12 sps:$4 sm:$0xff]  }
 0xf74   :  { %9133 = vmatmul.mubr.bf16.vlgmr.msra.gmra.mrb[76].mxu0 %v9084_v27  ;;  %v13295_v27 = vld [vmem:[#allocation12 + $0x49c] ss:$12 sps:$4 sm:$0xff]  }
 0xf75   :  { %9624 = vmatpush1.bf16.msra.mxu0 %v13266_v5  ;;  %v13327_v5 = vld [vmem:[#allocation12 + $0x3c8] ss:$12 sps:$4 sm:$0xff]  }
 0xf76   :  { %9625 = vmatprep.subr.bf16.mxu0 %v13271_v62 }
 0xf79   :  { %9626 = vmatpush1.bf16.msra.mxu0 %v13269_v0  ;;  %v13328_v0 = vld [vmem:[#allocation12 + $0x4a0] ss:$12 sps:$4 sm:$0xff]  }
 0xf7a   :  { %9627 = vmatprep.subr.bf16.mxu0 %v13274_v4 }
 0xf7c   :  { %v9150_v53 = vpop.permute.xlu1 %9149 }
 0xf7d   :  { %9628 = vmatpush1.bf16.msra.mxu0 %v13272_v10  ;;  %v13346_v10 = vld [vmem:[#allocation13 + $0x3c0] ss:$12 sps:$4 sm:$0xff]  }
 0xf7e   :  { %9629 = vmatprep.subr.bf16.mxu0 %v13277_v30  ;;  %v13351_v30 = vld [vmem:[#allocation13 + $0x3dc] ss:$12 sps:$4 sm:$0xff]  }
 0xf81   :  { %9630 = vmatpush1.bf16.msra.mxu0 %v13275_v13  ;;  %v13332_v13 = vld [vmem:[#allocation12 + $0x4d0] ss:$12 sps:$4 sm:$0xff]  }
 0xf82   :  { %9631 = vmatprep.subr.bf16.mxu0 %v13280_v7  ;;  %v13357_v7 = vld [vmem:[#allocation13 + $0x40c] ss:$12 sps:$4 sm:$0xff]  }
 0xf85   :  { %9632 = vmatpush1.bf16.msra.mxu0 %v13278_v18  ;;  %v13334_v18 = vld [vmem:[#allocation12 + $0x4e8] ss:$12 sps:$4 sm:$0xff]  }
 0xf86   :  { %9633 = vmatprep.subr.bf16.mxu0 %v13283_v20  ;;  %v13360_v20 = vld [vmem:[#allocation13 + $0x424] ss:$12 sps:$4 sm:$0xff]  }
 0xf89   :  { %9634 = vmatpush1.bf16.msra.mxu0 %v13281_v21  ;;  %v13335_v21 = vld [vmem:[#allocation12 + $0x428] ss:$12 sps:$4 sm:$0xff]  }
 0xf8a   :  { %9635 = vmatprep.subr.bf16.mxu0 %v13286_v55  ;;  %v13336_v55 = vld [vmem:[#allocation12 + $0x500] ss:$12 sps:$4 sm:$0xff]  }
 0xf8d   :  { %9636 = vmatpush1.bf16.msra.mxu0 %v13284_v35  ;;  %v13358_v35 = vld [vmem:[#allocation13 + $0x420] ss:$12 sps:$4 sm:$0xff]  }
 0xf8e   :  { %9637 = vmatprep.subr.bf16.mxu0 %v13289_v29  ;;  %v13363_v29 = vld [vmem:[#allocation13 + $0x43c] ss:$12 sps:$4 sm:$0xff]  }
 0xf91   :  { %9638 = vmatpush1.bf16.msra.mxu0 %v13287_v28  ;;  %v13337_v28 = vld [vmem:[#allocation12 + $0x440] ss:$12 sps:$4 sm:$0xff]  }
 0xf92   :  { %9639 = vmatprep.subr.bf16.mxu0 %v13292_v6  ;;  %v13338_v6 = vld [vmem:[#allocation12 + $0x518] ss:$12 sps:$4 sm:$0xff]  }
 0xf95   :  { %9640 = vmatpush1.bf16.msra.mxu0 %v13290_v14  ;;  %v13361_v14 = vld [vmem:[#allocation13 + $0x438] ss:$12 sps:$4 sm:$0xff]  }
 0xf96   :  { %9641 = vmatprep.subr.bf16.mxu0 %v13295_v27  ;;  %v13366_v27 = vld [vmem:[#allocation13 + $0x454] ss:$12 sps:$4 sm:$0xff]  }
 0xfa5   :  { %v9015_v32 = vpop.f32.mrb[72].mxu0 }
 0xfa6   :  { %v9021_v40 = vsub.f32 %v9015_v32, %v9015_v32  ;;  %v9017_v36 = vpop.f32.mrb[73].mxu0  ;;  %v13293_v32 = vld [vmem:[#allocation12 + $0x498] ss:$12 sps:$4 sm:$0xff]  }
 0xfa7   :  { %v9018_v37 = vpop.f32.mrb[74].mxu0  ;;  %9642 = vmatpush1.bf16.msra.mxu0 %v13293_v32  ;;  %v13296_v36 = vld [vmem:[#allocation12 + $0x4b0] ss:$12 sps:$4 sm:$0xff]   ;;  %v13339_v32 = vld [vmem:[#allocation12 + $0x458] ss:$12 sps:$4 sm:$0xff]  }
 0xfa8   :  { %v9022_v38 = vmul.f32 1.442695, %v9021_v40  ;;  %v9019_v22 = vpop.f32.mrb[75].mxu0  ;;  %v13298_v40 = vld [vmem:[#allocation12 + $0x4b4] ss:$12 sps:$4 sm:$0xff]  }
 0xfa9   :  { %9643 = vmatprep.subr.bf16.mxu0 %v13298_v40  ;;  %v13301_v37 = vld [vmem:[#allocation12 + $0x4cc] ss:$12 sps:$4 sm:$0xff]   ;;  %v13307_v22 = vld [vmem:[#allocation12 + $0x4e4] ss:$12 sps:$4 sm:$0xff]  }
 0xfaa   :  { %13442 = vpow2.f32 %v9022_v38  ;;  %v13299_v38 = vld [vmem:[#allocation12 + $0x4c8] ss:$12 sps:$4 sm:$0xff]   ;;  %v13340_v40 = vld [vmem:[#allocation12 + $0x530] ss:$12 sps:$4 sm:$0xff]  }
 0xfab   :  { %v9152_v8 = vpop.permute.xlu0 %9151  ;;  %9644 = vmatpush1.bf16.msra.mxu0 %v13296_v36  ;;  %v13364_v36 = vld [vmem:[#allocation13 + $0x450] ss:$12 sps:$4 sm:$0xff]  }
 0xfac   :  { %v9161_v15 = vand.u32 %v9152_v8, %v13946_v51  ;;  %v9153_v46 = vsel %vm2054_vm4, %v9150_v53, %v9152_v8  ;;  %9645 = vmatprep.subr.bf16.mxu0 %v13301_v37  ;;  %v13305_v8 = vld [vmem:[#allocation12 + $0x4e0] ss:$12 sps:$4 sm:$0xff]   ;;  %v13317_v53 = vld [vmem:[#allocation12 + $0x510] ss:$12 sps:$4 sm:$0xff]  }
 0xfad   :  { %v9158_v16 = vand.u32 %v9153_v46, %v13946_v51  ;;  %v13322_v46 = vld [vmem:[#allocation12 + $0x58c] ss:$12 sps:$4 sm:$0xff]  }
 0xfae   :  { %9163 = vmatprep.subr.bf16.mxu1 %v9161_v15  ;;  %v13313_v15 = vld [vmem:[#allocation12 + $0x4fc] ss:$12 sps:$4 sm:$0xff]   ;;  %v13369_v37 = vld [vmem:[#allocation13 + $0x46c] ss:$12 sps:$4 sm:$0xff]  }
 0xfaf   :  { %9646 = vmatpush1.bf16.msra.mxu0 %v13299_v38  ;;  %v13341_v38 = vld [vmem:[#allocation12 + $0x470] ss:$12 sps:$4 sm:$0xff]  }
 0xfb0   :  { %9647 = vmatprep.subr.bf16.mxu0 %v13307_v22  ;;  %v13367_v22 = vld [vmem:[#allocation13 + $0x468] ss:$12 sps:$4 sm:$0xff]  }
 0xfb3   :  { %9648 = vmatpush1.bf16.msra.mxu0 %v13305_v8  ;;  %v13372_v8 = vld [vmem:[#allocation13 + $0x484] ss:$12 sps:$4 sm:$0xff]  }
 0xfb4   :  { %v13443_v42 = vpop.eup %13442  ;;  %9649 = vmatprep.subr.bf16.mxu0 %v13313_v15  ;;  %v13342_v15 = vld [vmem:[#allocation12 + $0x548] ss:$12 sps:$4 sm:$0xff]  }
 0xfb5   :  { %13444 = vrcp.f32 %v13443_v42 }
 0xfbf   :  { %v13445_v44 = vpop.eup %13444 }
 0xfc0   :  { %v9026_v43 = vmul.f32 %v13445_v44, %v13443_v42  ;;  %v13311_v42 = vld [vmem:[#allocation12 + $0x4f8] ss:$12 sps:$4 sm:$0xff]   ;;  %v13319_v44 = vld [vmem:[#allocation12 + $0x514] ss:$12 sps:$4 sm:$0xff]  }
 0xfc1   :  { %9650 = vmatpush1.bf16.msra.mxu0 %v13311_v42  ;;  %v13370_v42 = vld [vmem:[#allocation13 + $0x480] ss:$12 sps:$4 sm:$0xff]  }
 0xfc2   :  { %v9027_v58 = vpack.c.bf16 %v9026_v43, %v9026_v43  ;;  %9651 = vmatprep.subr.bf16.mxu0 %v13319_v44  ;;  %v13320_v43 = vld [vmem:[#allocation12 + $0x588] ss:$12 sps:$4 sm:$0xff]  }
 0xfc3   :  { %v13375_v44 = vld [vmem:[#allocation13 + $0x49c] ss:$12 sps:$4 sm:$0xff]  }
 0xfc4   :  { %11356 = vmatmul.mubr.msk.bf16.vlgmr.msra.gmra.mrb[184].mxu1 %vm1994_vm5, %v9027_v58  ;;  %v13325_v58 = vld [vmem:[#allocation12 + $0x52c] ss:$12 sps:$4 sm:$0xff]  }
 0xfc5   :  { %9164 = vmatpush1.bf16.msra.mxu1 %v9158_v16  ;;  %9195 = vmatprep.mubr.bf16.mxu1 %v13648_v2  ;;  %v13323_v16 = vld [vmem:[#allocation12 + $0x528] ss:$12 sps:$4 sm:$0xff]  }
 0xfc6   :  { %9664 = vmatprep.subr.bf16.mxu1 %v13304_v63  ;;  %9652 = vmatpush1.bf16.msra.mxu0 %v13317_v53  ;;  %v13349_v63 = vld [vmem:[#allocation13 + $0x3d8] ss:$12 sps:$4 sm:$0xff]   ;;  %v13343_v53 = vld [vmem:[#allocation12 + $0x560] ss:$12 sps:$4 sm:$0xff]  }
 0xfc7   :  { %9653 = vmatprep.subr.bf16.mxu0 %v13325_v58  ;;  %v13344_v58 = vld [vmem:[#allocation12 + $0x578] ss:$12 sps:$4 sm:$0xff]  }
 0xfca   :  { %9654 = vmatpush1.bf16.msra.mxu0 %v13323_v16  ;;  %v13376_v16 = vld [vmem:[#allocation13 + $0x4b0] ss:$12 sps:$4 sm:$0xff]  }
0x1047   :  { %v9134_v45 = vpop.f32.mrb[76].mxu0 }
0x1048   :  { %v9140_v48 = vsub.f32 %v9134_v45, %v9134_v45  ;;  %v9136_v49 = vpop.f32.mrb[77].mxu0  ;;  %v13326_v45 = vld [vmem:[#allocation12 + $0x488] ss:$12 sps:$4 sm:$0xff]  }
0x1049   :  { %v9137_v50 = vpop.f32.mrb[78].mxu0 }
0x104a   :  { %v9141_v52 = vmul.f32 1.442695, %v9140_v48  ;;  %v9138_v47 = vpop.f32.mrb[79].mxu0 }
0x104c   :  { %13446 = vpow2.f32 %v9141_v52 }
0x1056   :  { %v13447_v56 = vpop.eup %13446 }
0x1057   :  { %13448 = vrcp.f32 %v13447_v56 }
0x1061   :  { %v13449_v57 = vpop.eup %13448 }
0x1062   :  { %v9145_v59 = vmul.f32 %v13449_v57, %v13447_v56  ;;  %v13348_v56 = vld [vmem:[#allocation13 + $0x3c4] ss:$12 sps:$4 sm:$0xff]  }
0x1063   :  { %10216 = vmatprep.subr.bf16.mxu0 %v13348_v56  ;;  %v13385_v56 = vld [vmem:[#allocation13 + $0x4f8] ss:$12 sps:$4 sm:$0xff]  }
0x1064   :  { %v9146_v26 = vpack.c.bf16 %v9145_v59, %v9145_v59 }
0x1066   :  { %11359 = vmatmul.mubr.msk.bf16.vlgmr.msra.gmra.mrb[188].mxu1 %vm1994_vm5, %v9146_v26 }
0x1067   :  { %9696 = vmatprep.mubr.bf16.mxu1 %v13648_v2  ;;  %9665 = vmatpush1.bf16.msra.mxu1 %v13302_v11  ;;  %v13329_v11 = vld [vmem:[#allocation12 + $0x3e0] ss:$12 sps:$4 sm:$0xff]  }
0x1068   :  { %9666 = vmatprep.subr.bf16.mxu1 %v13310_v24  ;;  %v13354_v24 = vld [vmem:[#allocation13 + $0x3f4] ss:$12 sps:$4 sm:$0xff]  }
0x106b   :  { %9667 = vmatpush1.bf16.msra.mxu1 %v13308_v12  ;;  %v13352_v12 = vld [vmem:[#allocation13 + $0x3f0] ss:$12 sps:$4 sm:$0xff]  }
0x106c   :  { %9668 = vmatprep.subr.bf16.mxu1 %v13316_v17  ;;  %v13333_v17 = vld [vmem:[#allocation12 + $0x410] ss:$12 sps:$4 sm:$0xff]  }
0x106f   :  { %9669 = vmatpush1.bf16.msra.mxu1 %v13314_v19  ;;  %v13355_v19 = vld [vmem:[#allocation13 + $0x408] ss:$12 sps:$4 sm:$0xff]  }
0x1070   :  { %9670 = vmatprep.subr.bf16.mxu1 %v13322_v46  ;;  %v13373_v46 = vld [vmem:[#allocation13 + $0x498] ss:$12 sps:$4 sm:$0xff]  }
0x1073   :  { %9671 = vmatpush1.bf16.msra.mxu1 %v13320_v43  ;;  %v13378_v43 = vld [vmem:[#allocation13 + $0x4b4] ss:$12 sps:$4 sm:$0xff]  }
0x1074   :  { %11867 = vmatprep.subr.bf16.mxu1 %v13326_v45  ;;  %v13381_v45 = vld [vmem:[#allocation13 + $0x4cc] ss:$12 sps:$4 sm:$0xff]  }
0x1097   :  { %v14376_v51 = vpop.f32.mrb[184].mxu1 }
0x1098   :  { %v14378_v54 = vpop.f32.mrb[185].mxu1  ;;  %v14388_v4 = vpack.c.bf16 %v14376_v51, %v14376_v51  ;;  %v13331_v51 = vld [vmem:[#allocation12 + $0x3f8] ss:$12 sps:$4 sm:$0xff]  }
0x1099   :  { %v9075_v60 = vpop.f32.mrb[186].mxu1 }
0x109a   :  { %v9076_v41 = vpop.f32.mrb[187].mxu1 }
0x1139   :  { %v9197_v48 = vpop.f32.mrb[188].mxu1 }
0x113a   :  { %v9199_v49 = vpop.f32.mrb[189].mxu1 }
0x113b   :  { %v12140_v50 = vpack.i.bf16 %v9199_v49, %v9197_v48  ;;  %v9201_v52 = vpop.f32.mrb[190].mxu1  ;;  %v13345_v48 = vld [vmem:[#allocation12 + $0x590] ss:$12 sps:$4 sm:$0xff]   ;;  %v13379_v49 = vld [vmem:[#allocation13 + $0x4c8] ss:$12 sps:$4 sm:$0xff]  }
0x113c   :  { %v9202_v47 = vpop.f32.mrb[191].mxu1  ;;  %v13382_v52 = vld [vmem:[#allocation13 + $0x4e0] ss:$12 sps:$4 sm:$0xff]  }
0x113d   :  { %12141 = vrot.lane.b32.xlu1 %v12140_v50, %s13653_s23  ;;  %v13384_v50 = vld [vmem:[#allocation13 + $0x4e4] ss:$12 sps:$4 sm:$0xff]   ;;  %v13387_v47 = vld [vmem:[#allocation13 + $0x4fc] ss:$12 sps:$4 sm:$0xff]  }
0x11af   :  { %v12142_v57 = vpop.permute.xlu1 %12141 }
0x11b0   :  { %v12144_v59 = vunpack.i.h.bf16 %v12142_v57  ;;  %v12143_v26 = vunpack.i.l.bf16 %v12142_v57  ;;  %v13390_v57 = vld [vmem:[#allocation13 + $0x514] ss:$12 sps:$4 sm:$0xff]  }
0x11b2   :  { %v9210_v60 = vsel %vm1940_vm2, %v12143_v26, %v12144_v59  ;;  %v9213_v41 = vsel %vm1940_vm2, %v14378_v54, %v12143_v26  ;;  %v13330_v54 = vld [vmem:[#allocation12 + $0x4b8] ss:$12 sps:$4 sm:$0xff]   ;;  %v13388_v59 = vld [vmem:[#allocation13 + $0x510] ss:$12 sps:$4 sm:$0xff]  }
0x11b3   :  { %v14384_v61 = vpack.c.bf16 %v9210_v60, %v9210_v60  ;;  %v9215_v62 = vpack.c.bf16 %v9213_v41, %v9213_v41  ;;  %v13393_v26 = vld [vmem:[#allocation13 + $0x52c] ss:$12 sps:$4 sm:$0xff]   ;;  %v13391_v60 = vld [vmem:[#allocation13 + $0x528] ss:$12 sps:$4 sm:$0xff]  }
0x11b4   :  { %v13394_v41 = vld [vmem:[#allocation13 + $0x540] ss:$12 sps:$4 sm:$0xff]  }
0x11b5   :  { %9655 = vmatprep.mubr.bf16.mxu0 %v9215_v62  ;;  %11421 = vmatmul.mubr.msk.bf16.vlgmr.msra.gmra.mrb[192].mxu1 %vm582_vm0, %v14384_v61 }
0x11b6   :  { %11868 = vmatpush3.bf16.msra.mxu1 %v13327_v5  ;;  %9656 = vmatmul.mubr.bf16.vlgmr.msra.gmra.mrb[80].mxu0 %v14388_v4  ;;  %v13396_v5 = vld [vmem:[#allocation13 + $0x544] ss:$12 sps:$4 sm:$0xff]  }
0x11b7   :  { %9737 = vmatprep.mubr.bf16.mxu1 %v9215_v62  ;;  %11869 = vmatprep.subr.bf16.mxu1 %v13328_v0  ;;  %v13399_v62 = vld [vmem:[#allocation13 + $0x55c] ss:$12 sps:$4 sm:$0xff]  }
0x11b8   :  { %10217 = vmatpush1.bf16.msra.mxu0 %v13346_v10  ;;  %v13400_v0 = vld [vmem:[#allocation13 + $0x570] ss:$12 sps:$4 sm:$0xff]   ;;  %v13403_v10 = vld [vmem:[#allocation13 + $0x588] ss:$12 sps:$4 sm:$0xff]  }
0x11b9   :  { %10218 = vmatprep.subr.bf16.mxu0 %v13351_v30  ;;  %v13406_v30 = vld [vmem:[#allocation13 + $0x488] ss:$12 sps:$4 sm:$0xff]  }
0x11ba   :  { %11870 = vmatpush3.bf16.msra.mxu1 %v13329_v11  ;;  %v11360_v11 = vld [vmem:[%s14467_s10 + $0x6] sm:$0x7] }
0x11bb   :  { %11871 = vmatprep.subr.bf16.mxu1 %v13330_v54 }
0x11bc   :  { %10219 = vmatpush1.bf16.msra.mxu0 %v13349_v63  ;;  %v9789_v63 = vrot.slane %v11360_v11, %v13913_v31 }
0x11bd   :  { %10220 = vmatprep.subr.bf16.mxu0 %v13354_v24 }
0x11be   :  { %11872 = vmatpush3.bf16.msra.mxu1 %v13331_v51 }
0x11bf   :  { %11873 = vmatprep.subr.bf16.mxu1 %v13332_v13  ;;  %v9793_v13 = vrot.slane %v11360_v11, %v13919_v33 }
0x11c0   :  { %10221 = vmatpush1.bf16.msra.mxu0 %v13352_v12 }
0x11c1   :  { %10222 = vmatprep.subr.bf16.mxu0 %v13357_v7 }
0x11c2   :  { %11874 = vmatpush3.bf16.msra.mxu1 %v13333_v17 }
0x11c3   :  { %11875 = vmatprep.subr.bf16.mxu1 %v13334_v18 }
0x11c4   :  { %10223 = vmatpush1.bf16.msra.mxu0 %v13355_v19 }
0x11c5   :  { %10224 = vmatprep.subr.bf16.mxu0 %v13360_v20 }
0x11c6   :  { %11876 = vmatpush3.bf16.msra.mxu1 %v13335_v21 }
0x11c7   :  { %11877 = vmatprep.subr.bf16.mxu1 %v13336_v55 }
0x11c8   :  { %10225 = vmatpush1.bf16.msra.mxu0 %v13358_v35 }
0x11c9   :  { %10226 = vmatprep.subr.bf16.mxu0 %v13363_v29 }
0x11ca   :  { %11878 = vmatpush3.bf16.msra.mxu1 %v13337_v28 }
0x11cb   :  { %11879 = vmatprep.subr.bf16.mxu1 %v13338_v6 }
0x11cc   :  { %10227 = vmatpush1.bf16.msra.mxu0 %v13361_v14 }
0x11cd   :  { %10228 = vmatprep.subr.bf16.mxu0 %v13366_v27 }
0x11ce   :  { %11880 = vmatpush3.bf16.msra.mxu1 %v13339_v32 }
0x11cf   :  { %11881 = vmatprep.subr.bf16.mxu1 %v13340_v40 }
0x11d0   :  { %10229 = vmatpush1.bf16.msra.mxu0 %v13364_v36 }
0x11d1   :  { %10230 = vmatprep.subr.bf16.mxu0 %v13369_v37 }
0x11d2   :  { %11882 = vmatpush3.bf16.msra.mxu1 %v13341_v38  ;;  %v9797_v38 = vrot.slane %v11360_v11, %v13922_v34 }
0x11d3   :  { %12089 = vmatprep.subr.bf16.mxu1 %v13650_v3 }
0x11d4   :  { %10231 = vmatpush1.bf16.msra.mxu0 %v13367_v22 }
0x11d5   :  { %9738 = vmatmul.mubr.bf16.vlgmr.msra.gmra.mrb[196].mxu1 %v14388_v4  ;;  %10232 = vmatprep.subr.bf16.mxu0 %v13372_v8  ;;  %v13405_v4 = vld [vmem:[#allocation13 + $0x58c] ss:$12 sps:$4 sm:$0xff]  }
0x11d6   :  { %12090 = vmatpush3.bf16.msra.mxu1 %v13342_v15  ;;  %12097 = vmatprep.mubr.msk.bf16.mxu1 %vm13651_vm1, %v13650_v3 }
0x11d7   :  { %12091 = vmatprep.subr.bf16.mxu1 %v13650_v3 }
0x11d8   :  { %10233 = vmatpush1.bf16.msra.mxu0 %v13370_v42 }
0x11d9   :  { %10234 = vmatprep.subr.bf16.mxu0 %v13375_v44 }
0x11da   :  { %12092 = vmatpush3.bf16.msra.mxu1 %v13343_v53  ;;  %v13407_v53 = vld [vmem:[#allocation13 + $0x3c8] ss:$12 sps:$4 sm:$0xff]  }
0x11db   :  { %12093 = vmatprep.subr.bf16.mxu1 %v13650_v3 }
0x11dc   :  { %10235 = vmatpush1.bf16.msra.mxu0 %v13373_v46 }
0x11dd   :  { %10236 = vmatprep.subr.bf16.mxu0 %v13378_v43  ;;  %v13408_v43 = vld [vmem:[#allocation13 + $0x4a0] ss:$12 sps:$4 sm:$0xff]  }
0x11de   :  { %12094 = vmatpush3.bf16.msra.mxu1 %v13344_v58  ;;  %v13409_v58 = vld [vmem:[#allocation13 + $0x3e0] ss:$12 sps:$4 sm:$0xff]  }
0x11df   :  { %12095 = vmatprep.subr.bf16.mxu1 %v13650_v3 }
0x11e0   :  { %10237 = vmatpush1.bf16.msra.mxu0 %v13376_v16  ;;  %v13410_v16 = vld [vmem:[#allocation13 + $0x4b8] ss:$12 sps:$4 sm:$0xff]  }
0x11e1   :  { %10238 = vmatprep.subr.bf16.mxu0 %v13381_v45  ;;  %v13411_v45 = vld [vmem:[#allocation13 + $0x3f8] ss:$12 sps:$4 sm:$0xff]  }
0x11e2   :  { %12096 = vmatpush3.bf16.msra.mxu1 %v13345_v48  ;;  %v13412_v48 = vld [vmem:[#allocation13 + $0x4d0] ss:$12 sps:$4 sm:$0xff]  }
0x11e3   :  { %10257 = vmatprep.subr.bf16.mxu1 %v13396_v5  ;;  %v13424_v5 = vld [vmem:[#allocation13 + $0x578] ss:$12 sps:$4 sm:$0xff]  }
0x11e4   :  { %10239 = vmatpush1.bf16.msra.mxu0 %v13379_v49  ;;  %v13413_v49 = vld [vmem:[#allocation13 + $0x410] ss:$12 sps:$4 sm:$0xff]  }
0x11e5   :  { %12098 = vmatmul.mubr.msk.bf16.vlgmr.msra.gmra.mrb[200].mxu1 %vm582_vm0, %v14384_v61  ;;  %10240 = vmatprep.subr.bf16.mxu0 %v13384_v50  ;;  %v13397_v61 = vld [vmem:[#allocation13 + $0x558] ss:$12 sps:$4 sm:$0xff]   ;;  %v13415_v50 = vld [vmem:[#allocation13 + $0x428] ss:$12 sps:$4 sm:$0xff]  }
0x11e6   :  { %10289 = vmatprep.mubr.bf16.mxu1 %v13648_v2  ;;  %10258 = vmatpush1.bf16.msra.mxu1 %v13394_v41  ;;  %v13402_v2 = vld [vmem:[#allocation13 + $0x574] ss:$12 sps:$4 sm:$0xff]  }
0x11e7   :  { %10259 = vmatprep.subr.bf16.mxu1 %v13399_v62  ;;  %v13423_v41 = vld [vmem:[#allocation13 + $0x560] ss:$12 sps:$4 sm:$0xff]   ;;  %v13425_v62 = vld [vmem:[#allocation13 + $0x590] ss:$12 sps:$4 sm:$0xff]  }
0x11e8   :  { %10241 = vmatpush1.bf16.msra.mxu0 %v13382_v52  ;;  %v13416_v52 = vld [vmem:[#allocation13 + $0x500] ss:$12 sps:$4 sm:$0xff]  }
0x11e9   :  { %10242 = vmatprep.subr.bf16.mxu0 %v13387_v47  ;;  %v13417_v47 = vld [vmem:[#allocation13 + $0x440] ss:$12 sps:$4 sm:$0xff]  }
0x11ea   :  { %10260 = vmatpush1.bf16.msra.mxu1 %v13397_v61 }
0x11eb   :  { %10261 = vmatprep.subr.bf16.mxu1 %v13402_v2 }
0x11ec   :  { %10243 = vmatpush1.bf16.msra.mxu0 %v13385_v56  ;;  %v13418_v56 = vld [vmem:[#allocation13 + $0x518] ss:$12 sps:$4 sm:$0xff]  }
0x11ed   :  { %10244 = vmatprep.subr.bf16.mxu0 %v13390_v57  ;;  %v13419_v57 = vld [vmem:[#allocation13 + $0x458] ss:$12 sps:$4 sm:$0xff]  }
0x11ee   :  { %10262 = vmatpush1.bf16.msra.mxu1 %v13400_v0 }
0x11ef   :  { %10263 = vmatprep.subr.bf16.mxu1 %v13405_v4 }
0x11f0   :  { %10245 = vmatpush1.bf16.msra.mxu0 %v13388_v59  ;;  %v13420_v59 = vld [vmem:[#allocation13 + $0x530] ss:$12 sps:$4 sm:$0xff]  }
0x11f1   :  { %10246 = vmatprep.subr.bf16.mxu0 %v13393_v26  ;;  %v13421_v26 = vld [vmem:[#allocation13 + $0x470] ss:$12 sps:$4 sm:$0xff]  }
0x11f2   :  { %10264 = vmatpush1.bf16.msra.mxu1 %v13403_v10  ;;  %v11423_v10 = vld [vmem:[%s14469_s12 + $0x6] sm:$0x7]  ;;  %s13654_s12 = smov [#allocation16]  }
0x11f3   :  { %11894 = vmatprep.subr.bf16.mxu1 %v13406_v30  ;;  %v10382_v30 = vrot.slane %v11423_v10, %v13913_v31  ;;  %s10454_s23 = sshll.u32 %s13654_s12, 4  ;;  %s10455_s23 = int_to_ptr.vmem [resolvable:$true] %s10454_s23 }
0x11f4   :  { %10247 = vmatpush1.bf16.msra.mxu0 %v13391_v60  ;;  %v13422_v60 = vld [vmem:[#allocation13 + $0x548] ss:$12 sps:$4 sm:$0xff]   ;;  %s13607_s1 = scalar_lea.vmem %s10455_s23, 48  ;;  %s13611_s2 = scalar_lea.vmem %s10455_s23, 64 }
0x11f5   :  { %p13608_p0 = scmp.ne.s32.totalorder %s10455_s23, %s13607_s1  ;;  %p13612_p1 = scmp.lt.s32.totalorder %s10455_s23, %s10455_s23 }
0x11f6   :  { %p13613_p2 = scmp.lt.s32.totalorder %s13611_s2, %s13607_s1 }
0x11f8   :  { %p13614_p3 = por %p13613_p2, %p13612_p1 }
0x11fa   :  { %p13615_p4 = pnand %p13614_p3, %p13608_p0 }
0x1288   :  { %v9698_v54 = vpop.f32.mrb[192].mxu1 }
0x1289   :  { %v9657_v24 = vpop.f32.mrb[80].mxu0  ;;  %v9700_v51 = vpop.f32.mrb[193].mxu1 }
0x128a   :  { %v9699_v12 = vadd.f32 %v9698_v54, %v9657_v24  ;;  %v9659_v7 = vpop.f32.mrb[81].mxu0  ;;  %v9702_v17 = vpop.f32.mrb[194].mxu1  ;;  %v10386_v54 = vrot.slane %v11423_v10, %v13919_v33 }
0x128b   :  { %v9701_v18 = vadd.f32 %v9700_v51, %v9659_v7  ;;  %v9661_v19 = vpop.f32.mrb[82].mxu0  ;;  %v9703_v20 = vpop.f32.mrb[195].mxu1 }
0x128c   :  { %v9801_v21 = vadd.f32 %v9789_v63, %v9699_v12  ;;  %v9662_v55 = vpop.f32.mrb[83].mxu0 }
0x128d   :  { %v9802_v35 = vadd.f32 %v9793_v13, %v9701_v18 }
0x128e   :  { %v14409_v29 = vadd.f32 %v9801_v21, %v14270_v1 }
0x128f   :  { %v14412_v28 = vadd.f32 %v9802_v35, %v14273_v39 }
0x1290   :  { %v9807_v14 = vpack.c.bf16 %v14409_v29, %v14409_v29 }
0x1291   :  { %v9808_v6 = vpack.c.bf16 %v14412_v28, %v14412_v28 }
0x1293   :  { %10248 = vmatprep.mubr.bf16.mxu0 %v9808_v6 }
0x1294   :  { %10249 = vmatmul.mubr.bf16.vlgmr.msra.gmra.mrb[84].mxu0 %v9807_v14 }
0x12a8   :  { %v11883_v27 = vpop.f32.mrb[196].mxu1 }
0x12a9   :  { %v11884_v32 = vpop.f32.mrb[197].mxu1 }
0x12aa   :  { %v11885_v40 = vadd.f32 %v11884_v32, %v11883_v27  ;;  %v11886_v36 = vpop.f32.mrb[198].mxu1 }
0x12ab   :  { %v11887_v37 = vpop.f32.mrb[199].mxu1  ;;  %v10390_v36 = vrot.slane %v11423_v10, %v13922_v34 }
0x12b8   :  { %v9779_v1 = vpop.f32.mrb[200].mxu1 }
0x12b9   :  { %v9780_v22 = vadd.f32 %v11885_v40, %v9779_v1  ;;  %v12099_v8 = vpop.f32.mrb[201].mxu1 }
0x12ba   :  { %v9782_v39 = vpop.f32.mrb[202].mxu1 }
0x12bb   :  { %v9803_v15 = vadd.f32 %v9797_v38, %v9780_v22  ;;  %v12100_v42 = vpop.f32.mrb[203].mxu1 }
0x12bd   :  { %v14420_v44 = vadd.f32 %v9803_v15, %v14289_v25  ;;  %v13414_v25 = vld [vmem:[#allocation13 + $0x4e8] ss:$12 sps:$4 sm:$0xff]  }
0x12bf   :  { %v9809_v46 = vpack.c.bf16 %v14420_v44, %v14420_v44 }
0x12c1   :  { %11484 = vmatmul.mubr.msk.bf16.vlgmr.msra.gmra.mrb[204].mxu1 %vm582_vm0, %v9809_v46 }
0x12c2   :  { %11895 = vmatpush3.bf16.msra.mxu1 %v13407_v53  ;;  %10330 = vmatprep.mubr.bf16.mxu1 %v9808_v6 }
0x12c3   :  { %11896 = vmatprep.subr.bf16.mxu1 %v13408_v43 }
0x12c6   :  { %11897 = vmatpush3.bf16.msra.mxu1 %v13409_v58 }
0x12c7   :  { %11898 = vmatprep.subr.bf16.mxu1 %v13410_v16 }
0x12ca   :  { %11899 = vmatpush3.bf16.msra.mxu1 %v13411_v45 }
0x12cb   :  { %11900 = vmatprep.subr.bf16.mxu1 %v13412_v48 }
0x12ce   :  { %11901 = vmatpush3.bf16.msra.mxu1 %v13413_v49 }
0x12cf   :  { %11902 = vmatprep.subr.bf16.mxu1 %v13414_v25 }
0x12d2   :  { %11903 = vmatpush3.bf16.msra.mxu1 %v13415_v50 }
0x12d3   :  { %11904 = vmatprep.subr.bf16.mxu1 %v13416_v52 }
0x12d6   :  { %11905 = vmatpush3.bf16.msra.mxu1 %v13417_v47 }
0x12d7   :  { %11906 = vmatprep.subr.bf16.mxu1 %v13418_v56 }
0x12da   :  { %11907 = vmatpush3.bf16.msra.mxu1 %v13419_v57 }
0x12db   :  { %11908 = vmatprep.subr.bf16.mxu1 %v13420_v59 }
0x12de   :  { %11909 = vmatpush3.bf16.msra.mxu1 %v13421_v26 }
0x12df   :  { %12101 = vmatprep.subr.bf16.mxu1 %v13650_v3 }
0x12e1   :  { %10331 = vmatmul.mubr.bf16.vlgmr.msra.gmra.mrb[208].mxu1 %v9807_v14 }
0x12e2   :  { %12102 = vmatpush3.bf16.msra.mxu1 %v13422_v60  ;;  %12109 = vmatprep.mubr.msk.bf16.mxu1 %vm13651_vm1, %v13650_v3 }
0x12e3   :  { %12103 = vmatprep.subr.bf16.mxu1 %v13650_v3 }
0x12e6   :  { %12104 = vmatpush3.bf16.msra.mxu1 %v13423_v41 }
0x12e7   :  { %12105 = vmatprep.subr.bf16.mxu1 %v13650_v3 }
0x12ea   :  { %12106 = vmatpush3.bf16.msra.mxu1 %v13424_v5 }
0x12eb   :  { %12107 = vmatprep.subr.bf16.mxu1 %v13650_v3 }
0x12ee   :  { %12108 = vmatpush3.bf16.msra.mxu1 %v13425_v62 }
0x12f1   :  { %12110 = vmatmul.mubr.msk.bf16.vlgmr.msra.gmra.mrb[212].mxu1 %vm582_vm0, %v9809_v46 }
0x1367   :  { %v10250_v61 = vpop.f32.mrb[84].mxu0 }
0x1368   :  { %v10252_v2 = vpop.f32.mrb[85].mxu0 }
0x1369   :  { %v10254_v0 = vpop.f32.mrb[86].mxu0 }
0x136a   :  { %v10255_v4 = vpop.f32.mrb[87].mxu0 }
0x1394   :  { %v10291_v11 = vpop.f32.mrb[204].mxu1 }
0x1395   :  { %v10292_v63 = vadd.f32 %v10291_v11, %v10250_v61  ;;  %v10293_v24 = vpop.f32.mrb[205].mxu1 }
0x1396   :  { %v10294_v51 = vadd.f32 %v10293_v24, %v10252_v2  ;;  %v10295_v3 = vpop.f32.mrb[206].mxu1 }
0x1397   :  { %v10394_v13 = vadd.f32 %v10382_v30, %v10292_v63  ;;  %v10296_v12 = vpop.f32.mrb[207].mxu1 }
0x1398   :  { %v10395_v7 = vadd.f32 %v10386_v54, %v10294_v51 }
0x1399   :  { %v10397_v17 = vmax.f32 %v10394_v13, 0.0 }
0x139a   :  { %v10398_v18 = vmax.f32 %v10395_v7, 0.0 }
0x139b   :  { %v10400_v19 = vadd.f32 %v10397_v17, %v14409_v29 }
0x139c   :  { %v10401_v20 = vadd.f32 %v10398_v18, %v14412_v28 }
0x139d   :  { %vm10403_vm6 = vcmp.ne.f32.partialorder %v10400_v19, %v10400_v19 }
0x139e   :  { %v10406_v21 = vsel %vm10403_vm6, 0.0, %v10400_v19  ;;  %vm10404_vm7 = vcmp.ne.f32.partialorder %v10401_v20, %v10401_v20 }
0x139f   :  { %v11486_v31 = vclamps-f32 %v10406_v21, 3.4028235e+38  ;;  %v10407_v55 = vsel %vm10404_vm7, 0.0, %v10401_v20 }
0x13a0   :  { %v11487_v35 = vclamps-f32 %v10407_v55, 3.4028235e+38 }
0x13a2   :  { %v10419_v33 = vcombine.low %v11486_v31, %v11487_v35 }
0x13a4   :  { %v10426_v46 = vrot.slane %v10419_v33, %v13855_v23 }
0x13b4   :  { %v11910_v6 = vpop.f32.mrb[208].mxu1 }
0x13b5   :  { %v11911_v14 = vpop.f32.mrb[209].mxu1 }
0x13b6   :  { %v11912_v27 = vadd.f32 %v11911_v14, %v11910_v6  ;;  %v11913_v32 = vpop.f32.mrb[210].mxu1 }
0x13b7   :  { %v11914_v40 = vpop.f32.mrb[211].mxu1 }
0x13c4   :  { %v10372_v37 = vpop.f32.mrb[212].mxu1 }
0x13c5   :  { %v10373_v38 = vadd.f32 %v11912_v27, %v10372_v37  ;;  %v12111_v1 = vpop.f32.mrb[213].mxu1 }
0x13c6   :  { %v10375_v29 = vpop.f32.mrb[214].mxu1 }
0x13c7   :  { %v10396_v22 = vadd.f32 %v10390_v36, %v10373_v38  ;;  %v12112_v28 = vpop.f32.mrb[215].mxu1 }
0x13c9   :  { %v10399_v8 = vmax.f32 %v10396_v22, 0.0 }
0x13cb   :  { %v10402_v39 = vadd.f32 %v10399_v8, %v14420_v44 }
0x13cd   :  { %vm10405_vm8 = vcmp.ne.f32.partialorder %v10402_v39, %v10402_v39 }
0x13ce   :  { %v10408_v15 = vsel %vm10405_vm8, 0.0, %v10402_v39 }
0x13cf   :  { %v11488_v42 = vclamps-f32 %v10408_v15, 3.4028235e+38 }
0x13d1   :  { %v10415_v53 = vsel %vm582_vm0, %v11488_v42, 0.0 }
0x13d2   :  { %v10433_v43 = vrot.slane %v10415_v53, %v13855_v23 }
0x13d4   :  { %v10434_v34 = vcombine.low %v10426_v46, %v10433_v43 }
0x13d6   :  { %v10441_v58 = vrot.slane %v10434_v34, %v13855_v23 }
0x13d8   :  { %10447 = vst.msk [vmem:[#allocation16] sm:$0x7] %vm10445_vm9, %v10441_v58 }
0x13d9   :  { %13618 = shalt.err (!%p13615_p4)
}
0x13da   :  { %s13619_s26 = scalar_lea.hbm %s14473_s16, 48 }
0x13db   :  { %p13620_p5 = scmp.ne.s32.totalorder %s14473_s16, %s13619_s26  ;;  %p13623_p6 = scmp.lt.u32.totalorder %s13619_s26, %s14473_s16 }
0x13dd   :  { %p13625_p7 = pnand %p13623_p6, %p13620_p5 }
0x13df   :  { %13628 = shalt.err (!%p13625_p7)
}
0x13e0   :  { %10457 = dma.vmem_to_hbm [thread:$0]  %s10455_s23, 48, %s14473_s16, [#allocation6]  }
0x13e1   :  { %13637 = dma.done.wait [#allocation6], 48  }
0x13e2   :  { %13638 = vsyncadd [#allocation6], 4294967248 }
0x13e3   :  { %10461 = vsyncpa [#allocation5], 1 }
0x13e4   :  { %10462 = vsyncpa [#allocation8], 1 }
0x13e5   :  { %10463 = vsyncpa [#allocation11], 1 }
0x13e6   :  { %10464 = vsyncpa [#allocation14], 1 }
0x13e7   :  { %10465 = vsyncpa [#allocation6], 1 }

</bundles_post_ra>
